<compile_context>
chip_gen: v6e
topology: v6e:2x2x1
jax: 0.10.0
libtpu: 0.0.40
codegen_flags: <defaults>
</compile_context>

<pallas_src>
from functools import partial

import jax
import jax.numpy as jnp
from jax.experimental import pallas as pl
from jax.experimental.pallas import tpu as pltpu


def _round_up(x, m):
    return ((x + m - 1) // m) * m


def _pick_tile(n, candidates=(512, 256, 128)):
    for t in candidates:
        if n % t == 0:
            return t
    return n


# ---------------------------------------------------------------------------
# Kernel 1: fused MLP  (Linear -> ReLU -> Linear -> ReLU)
#   grid = (N2p // tn,)  over output columns of the second Linear.
#   h1 = relu(z @ W1 + b1) is computed once (pl.when step 0) into VMEM scratch
#   and reused for every W2 column tile, so huge d2 never needs a full-array
#   W2 block in VMEM (size-robust on v7x's 64 MiB).
# ---------------------------------------------------------------------------
def _fused_mlp_kernel(z_ref, w1_ref, b1_ref, w2_ref, b2_ref, o_ref, h1_ref):
    @pl.when(pl.program_id(0) == 0)
    def _():
        h1 = jnp.dot(z_ref[...], w1_ref[...], preferred_element_type=jnp.float32)
        h1 = jnp.maximum(h1 + b1_ref[...], 0.0)
        h1_ref[...] = h1.astype(h1_ref.dtype)

    h2 = jnp.dot(h1_ref[...], w2_ref[...], preferred_element_type=jnp.float32)
    h2 = jnp.maximum(h2 + b2_ref[...], 0.0)
    o_ref[...] = h2


def fused_mlp(z, w1p, b1r, w2p, b2p, d2):
    """z: (B, z_dim) -> (B, d2) f32, columns already in NHWC order."""
    B, zd = z.shape
    Kp, H1 = w1p.shape
    N2p = w2p.shape[1]
    Mp = _round_up(max(B, 8), 8)                  # pad tiny batch to >=8 sublanes
    zp = jnp.pad(z.astype(jnp.bfloat16), ((0, Mp - B), (0, Kp - zd)))
    tn = _pick_tile(N2p)

    out = pl.pallas_call(
        _fused_mlp_kernel,
        grid=(N2p // tn,),
        in_specs=[
            pl.BlockSpec((Mp, Kp), lambda j: (0, 0)),      # z   (resident)
            pl.BlockSpec((Kp, H1), lambda j: (0, 0)),      # W1  (resident)
            pl.BlockSpec((1, H1), lambda j: (0, 0)),       # b1
            pl.BlockSpec((H1, tn), lambda j: (0, j)),      # W2  (streamed)
            pl.BlockSpec((1, tn), lambda j: (0, j)),       # b2
        ],
        out_specs=pl.BlockSpec((Mp, tn), lambda j: (0, j)),
        out_shape=jax.ShapeDtypeStruct((Mp, N2p), jnp.float32),
        scratch_shapes=[pltpu.VMEM((Mp, H1), jnp.bfloat16)],
        compiler_params=pltpu.CompilerParams(
            dimension_semantics=("arbitrary",),            # h1 scratch carried
            vmem_limit_bytes=32 * 1024 * 1024,
        ),
    )(zp, w1p, b1r, w2p, b2p)
    return out[:B, :d2]


# ---------------------------------------------------------------------------
# Kernel 2: ConvTranspose2d(Cin, Cout, 4, stride=2, padding=1), NHWC.
#   Parity decomposition:
#     out[2m+r, 2n+c, co] = sum_{a,b in {0,1}} xpad[m+r+a, n+c+b] . W[:,co,3-r-2a,3-c-2b]
#   where xpad is the input zero-padded by 1 (built in VMEM scratch).
#   Grid over batch; each step accumulates 4 parities x 4 taps of small
#   bf16 matmuls into f32 and stores a lane-dense (W, 4*Cp) output block.
# ---------------------------------------------------------------------------
def _deconv_kernel(x_ref, w_ref, b_ref, o_ref, xp_ref, *, H, W, act):
    # In-kernel zero padding (no XLA-side pad / im2col, no HBM blow-up).
    xp_ref[...] = jnp.zeros(xp_ref.shape, xp_ref.dtype)
    xp_ref[0, 1:H + 1, 1:W + 1, :] = x_ref[0]

    bias = b_ref[...]                              # (1, Cp) f32
    Cp = b_ref.shape[1]
    for p in range(4):                             # output parity p = 2*r + c
        r, c = divmod(p, 2)
        wp = [w_ref[p, t] for t in range(4)]       # 4 taps, each (Cin, Cp) bf16
        for m in range(H):                         # output super-row
            acc = jnp.zeros((W, Cp), jnp.float32)
            for t in range(4):
                a, bb = divmod(t, 2)
                row = xp_ref[0, m + r + a, c + bb:c + bb + W, :]   # (W, Cin)
                acc = acc + jnp.dot(row.astype(jnp.bfloat16), wp[t],
                                    preferred_element_type=jnp.float32)
            acc = acc + bias
            if act == "relu":
                acc = jnp.maximum(acc, 0.0)
            else:
                acc = jax.nn.sigmoid(acc)
            o_ref[0, m, :, p * Cp:(p + 1) * Cp] = acc


def deconv_4x4_s2_p1(x, ws, bp, cout, act):
    """x: NHWC (B, H, W, Cin) -> NHWC (B, 2H, 2W, cout)."""
    B, H, W, Cin = x.shape
    Cp = bp.shape[1]                               # Cout padded so 4*Cp % 128 == 0

    out = pl.pallas_call(
        partial(_deconv_kernel, H=H, W=W, act=act),
        grid=(B,),
        in_specs=[
            pl.BlockSpec((1, H, W, Cin), lambda b: (b, 0, 0, 0)),
            pl.BlockSpec((4, 4, Cin, Cp), lambda b: (0, 0, 0, 0)),
            pl.BlockSpec((1, Cp), lambda b: (0, 0)),
        ],
        out_specs=pl.BlockSpec((1, H, W, 4 * Cp), lambda b: (b, 0, 0, 0)),
        out_shape=jax.ShapeDtypeStruct((B, H, W, 4 * Cp), jnp.float32),
        scratch_shapes=[pltpu.VMEM((1, H + 2, W + 2, Cin), jnp.float32)],
        compiler_params=pltpu.CompilerParams(
            dimension_semantics=("parallel",),     # independent per batch (2 TCs on v7x)
            vmem_limit_bytes=32 * 1024 * 1024,
        ),
    )(x.astype(jnp.float32), ws, bp)

    # Depth-to-space interleave of the 4 parity planes (pure layout glue).
    y = out.reshape(B, H, W, 2, 2, Cp)[..., :cout]
    y = y.transpose(0, 1, 3, 2, 4, 5).reshape(B, 2 * H, 2 * W, cout)
    return y


# ---------------------------------------------------------------------------
# Parameter preparation (done once, outside jit): transpose / permute weights,
# pad to aligned shapes, build per-parity 2x2 sub-kernels, cast MXU inputs bf16.
# ---------------------------------------------------------------------------
def _prep_deconv_weights(w, b):
    # w: (Cin, Cout, 4, 4) PyTorch ConvTranspose2d layout, b: (Cout,)
    Cin, Cout = w.shape[0], w.shape[1]
    Cp = _round_up(Cout, 32)          # 4*Cp is a multiple of 128 -> lane-dense output
    ws = jnp.zeros((4, 4, Cin, Cp), jnp.bfloat16)
    for r in range(2):
        for c in range(2):
            for a in range(2):
                for bb in range(2):
                    sub = w[:, :, 3 - r - 2 * a, 3 - c - 2 * bb].astype(jnp.bfloat16)
                    ws = ws.at[r * 2 + c, a * 2 + bb, :, :Cout].set(sub)
    bp = jnp.zeros((1, Cp), jnp.float32).at[0, :Cout].set(b.astype(jnp.float32))
    return ws, bp


def prepare_params(raw, *, z_dim, nc, n_filters, after_conv):
    d2 = after_conv * after_conv * 2 * n_filters
    H1 = 1024
    Kp = _round_up(z_dim, 128)
    N2p = _round_up(d2, 128)

    # Linear 1: store (z_dim_padded, 1024), bf16.
    w1p = jnp.zeros((Kp, H1), jnp.bfloat16).at[:z_dim, :].set(
        raw["w1"].T.astype(jnp.bfloat16))
    b1r = raw["b1"].reshape(1, H1).astype(jnp.float32)

    # Linear 2: permute columns so the MLP output is NHWC-flattened directly.
    w2_nhwc = (raw["w2"].T.reshape(H1, 2 * n_filters, after_conv, after_conv)
               .transpose(0, 2, 3, 1).reshape(H1, d2))
    w2p = jnp.zeros((H1, N2p), jnp.bfloat16).at[:, :d2].set(
        w2_nhwc.astype(jnp.bfloat16))
    b2_nhwc = (raw["b2"].reshape(2 * n_filters, after_conv, after_conv)
               .transpose(1, 2, 0).reshape(d2))
    b2p = jnp.zeros((1, N2p), jnp.float32).at[0, :d2].set(b2_nhwc.astype(jnp.float32))

    wt1s, bt1p = _prep_deconv_weights(raw["wt1"], raw["bt1"])
    wt2s, bt2p = _prep_deconv_weights(raw["wt2"], raw["bt2"])
    return dict(w1p=w1p, b1r=b1r, w2p=w2p, b2p=b2p,
                wt1s=wt1s, bt1p=bt1p, wt2s=wt2s, bt2p=bt2p)


# ---------------------------------------------------------------------------
# Decoder forward
# ---------------------------------------------------------------------------
def decoder_forward(z, params, *, n_filters, after_conv, nc):
    B = z.shape[0]
    d2 = after_conv * after_conv * 2 * n_filters
    # Linear -> ReLU -> Linear -> ReLU (single fused kernel), NHWC columns.
    h = fused_mlp(z, params["w1p"], params["b1r"], params["w2p"], params["b2p"], d2)
    x = h.reshape(B, after_conv, after_conv, 2 * n_filters)          # NHWC
    # ConvTranspose2d(2nf, nf, 4, 2, 1) -> ReLU
    x = deconv_4x4_s2_p1(x, params["wt1s"], params["bt1p"], n_filters, "relu")
    # ConvTranspose2d(nf, nc, 4, 2, 1) -> Sigmoid
    x = deconv_4x4_s2_p1(x, params["wt2s"], params["bt2p"], nc, "sigmoid")
    return x.transpose(0, 3, 1, 2)                                   # NHWC -> NCHW


def init_params(key, z_dim, nc, n_filters, after_conv):
    ks = jax.random.split(key, 8)
    s = 0.05
    d2 = after_conv * after_conv * 2 * n_filters
    return {
        # PyTorch Linear weight layout: (out_features, in_features)
        "w1": s * jax.random.normal(ks[0], (1024, z_dim), jnp.float32),
        "b1": s * jax.random.normal(ks[1], (1024,), jnp.float32),
        "w2": s * jax.random.normal(ks[2], (d2, 1024), jnp.float32),
        "b2": s * jax.random.normal(ks[3], (d2,), jnp.float32),
        # PyTorch ConvTranspose2d weight layout: (in_ch, out_ch, kH, kW)
        "wt1": s * jax.random.normal(ks[4], (2 * n_filters, n_filters, 4, 4), jnp.float32),
        "bt1": s * jax.random.normal(ks[5], (n_filters,), jnp.float32),
        "wt2": s * jax.random.normal(ks[6], (n_filters, nc, 4, 4), jnp.float32),
        "bt2": s * jax.random.normal(ks[7], (nc,), jnp.float32),
    }


if __name__ == "__main__":
    # small config: z_dim=32, nc=3, n_filters=4, after_conv=4 -> output (B, 3, 16, 16)
    z_dim, nc, n_filters, after_conv = 32, 3, 4, 4
    batch = 2

    key = jax.random.PRNGKey(0)
    k_x, k_p = jax.random.split(key)
    z = jax.random.normal(k_x, (batch, z_dim), jnp.float32)
    raw_params = init_params(k_p, z_dim, nc, n_filters, after_conv)
    params = prepare_params(raw_params, z_dim=z_dim, nc=nc,
                            n_filters=n_filters, after_conv=after_conv)

    fwd = jax.jit(partial(decoder_forward, n_filters=n_filters,
                          after_conv=after_conv, nc=nc))
    out = fwd(z, params)
    jax.block_until_ready(out)

    assert out.shape == (batch, nc, 4 * after_conv, 4 * after_conv), out.shape
    assert out.dtype == jnp.float32
    assert bool(jnp.all((out >= 0.0) & (out <= 1.0)))  # sigmoid range sanity check
    print("KERNEL_OK")
</pallas_src>

<mosaic_0001>
module attributes {stable_mosaic.version = 11 : i64} {
  func.func @_fused_mlp_kernel(%arg0: i32, %arg1: memref<8x128xbf16, #tpu.memory_space<vmem>>, %arg2: memref<128x1024xbf16, #tpu.memory_space<vmem>>, %arg3: memref<1x1024xf32, #tpu.memory_space<vmem>>, %arg4: memref<1024x128xbf16, #tpu.memory_space<vmem>>, %arg5: memref<1x128xf32, #tpu.memory_space<vmem>>, %arg6: memref<8x128xf32, #tpu.memory_space<vmem>>, %arg7: memref<8x1024xbf16, #tpu.memory_space<vmem>>) attributes {dimension_semantics = [#tpu.dimension_semantics<arbitrary>], iteration_bounds = array<i64: 1>, scalar_prefetch = 0 : i64, scratch_operands = 1 : i64, tpu.core_type = #tpu.core_type<tc>, window_params = [{pipeline_mode = #tpu.pipeline_mode<synchronous>, transform_indices = @transform_0, window_bounds = array<i64: 8, 128>}, {pipeline_mode = #tpu.pipeline_mode<synchronous>, transform_indices = @transform_1, window_bounds = array<i64: 128, 1024>}, {pipeline_mode = #tpu.pipeline_mode<synchronous>, transform_indices = @transform_2, window_bounds = array<i64: 1, 1024>}, {transform_indices = @transform_3, window_bounds = array<i64: 1024, 128>}, {transform_indices = @transform_4, window_bounds = array<i64: 1, 128>}, {transform_indices = @transform_5, window_bounds = array<i64: 8, 128>}]} {
    %c0_i32 = arith.constant 0 : i32
    %0 = arith.cmpi eq, %arg0, %c0_i32 : i32
    %1 = arith.extui %0 : i1 to i32
    %c0_i32_0 = arith.constant 0 : i32
    %2 = arith.cmpi ne, %1, %c0_i32_0 : i32
    scf.if %2 {
      %c0_9 = arith.constant 0 : index
      %c0_10 = arith.constant 0 : index
      %12 = vector.load %arg1[%c0_9, %c0_10] : memref<8x128xbf16, #tpu.memory_space<vmem>>, vector<8x128xbf16>
      %c0_11 = arith.constant 0 : index
      %c0_12 = arith.constant 0 : index
      %13 = vector.load %arg2[%c0_11, %c0_12] : memref<128x1024xbf16, #tpu.memory_space<vmem>>, vector<128x1024xbf16>
      %cst_13 = arith.constant dense<0.000000e+00> : vector<8x1024xf32>
      %14 = tpu.matmul %12, %13, %cst_13 {dimension_numbers = #tpu.dot_dimension_numbers<[1], [0], [0], [1], [0, 0, 1, 1], [], []>} : vector<8x128xbf16>, vector<128x1024xbf16>, vector<8x1024xf32> -> vector<8x1024xf32>
      %c0_14 = arith.constant 0 : index
      %c0_15 = arith.constant 0 : index
      %15 = vector.load %arg3[%c0_14, %c0_15] : memref<1x1024xf32, #tpu.memory_space<vmem>>, vector<1x1024xf32>
      %16 = vector.broadcast %15 : vector<1x1024xf32> to vector<8x1024xf32>
      %17 = arith.addf %14, %16 : vector<8x1024xf32>
      %cst_16 = arith.constant 0.000000e+00 : f32
      %18 = vector.broadcast %cst_16 : f32 to vector<8x1024xf32>
      %19 = arith.maximumf %17, %18 : vector<8x1024xf32>
      %20 = arith.truncf %19 : vector<8x1024xf32> to vector<8x1024xbf16>
      %c0_17 = arith.constant 0 : index
      %c0_18 = arith.constant 0 : index
      %21 = vector.load %arg7[%c0_17, %c0_18] : memref<8x1024xbf16, #tpu.memory_space<vmem>>, vector<8x1024xbf16>
      tpu.vector_store %arg7[%c0_17, %c0_18], %20 {strides = array<i32>} : memref<8x1024xbf16, #tpu.memory_space<vmem>>, vector<8x1024xbf16>,
    } else {
    }
    %c0 = arith.constant 0 : index
    %c0_1 = arith.constant 0 : index
    %3 = vector.load %arg7[%c0, %c0_1] : memref<8x1024xbf16, #tpu.memory_space<vmem>>, vector<8x1024xbf16>
    %c0_2 = arith.constant 0 : index
    %c0_3 = arith.constant 0 : index
    %4 = vector.load %arg4[%c0_2, %c0_3] : memref<1024x128xbf16, #tpu.memory_space<vmem>>, vector<1024x128xbf16>
    %cst = arith.constant dense<0.000000e+00> : vector<8x128xf32>
    %5 = tpu.matmul %3, %4, %cst {dimension_numbers = #tpu.dot_dimension_numbers<[1], [0], [0], [1], [0, 0, 1, 1], [], []>} : vector<8x1024xbf16>, vector<1024x128xbf16>, vector<8x128xf32> -> vector<8x128xf32>
    %c0_4 = arith.constant 0 : index
    %c0_5 = arith.constant 0 : index
    %6 = vector.load %arg5[%c0_4, %c0_5] : memref<1x128xf32, #tpu.memory_space<vmem>>, vector<1x128xf32>
    %7 = vector.broadcast %6 : vector<1x128xf32> to vector<8x128xf32>
    %8 = arith.addf %5, %7 : vector<8x128xf32>
    %cst_6 = arith.constant 0.000000e+00 : f32
    %9 = vector.broadcast %cst_6 : f32 to vector<8x128xf32>
    %10 = arith.maximumf %8, %9 : vector<8x128xf32>
    %c0_7 = arith.constant 0 : index
    %c0_8 = arith.constant 0 : index
    %11 = vector.load %arg6[%c0_7, %c0_8] : memref<8x128xf32, #tpu.memory_space<vmem>>, vector<8x128xf32>
    tpu.vector_store %arg6[%c0_7, %c0_8], %10 {strides = array<i32>} : memref<8x128xf32, #tpu.memory_space<vmem>>, vector<8x128xf32>,
    return
  }
  func.func @transform_0(%arg0: i32) -> (i32, i32) {
    %c0_i32 = arith.constant 0 : i32
    %c0_i32_0 = arith.constant 0 : i32
    %c0_i32_1 = arith.constant 0 : i32
    return %c0_i32, %c0_i32_0 : i32, i32
  }
  func.func @transform_1(%arg0: i32) -> (i32, i32) {
    %c0_i32 = arith.constant 0 : i32
    %c0_i32_0 = arith.constant 0 : i32
    %c0_i32_1 = arith.constant 0 : i32
    return %c0_i32, %c0_i32_0 : i32, i32
  }
  func.func @transform_2(%arg0: i32) -> (i32, i32) {
    %c0_i32 = arith.constant 0 : i32
    %c0_i32_0 = arith.constant 0 : i32
    %c0_i32_1 = arith.constant 0 : i32
    return %c0_i32, %c0_i32_0 : i32, i32
  }
  func.func @transform_3(%arg0: i32) -> (i32, i32) {
    %c0_i32 = arith.constant 0 : i32
    %c0_i32_0 = arith.constant 0 : i32
    return %c0_i32, %arg0 : i32, i32
  }
  func.func @transform_4(%arg0: i32) -> (i32, i32) {
    %c0_i32 = arith.constant 0 : i32
    %c0_i32_0 = arith.constant 0 : i32
    return %c0_i32, %arg0 : i32, i32
  }
  func.func @transform_5(%arg0: i32) -> (i32, i32) {
    %c0_i32 = arith.constant 0 : i32
    %c0_i32_0 = arith.constant 0 : i32
    return %c0_i32, %arg0 : i32, i32
  }
}

module attributes {stable_mosaic.version = 11 : i64} {
  func.func @_deconv_kernel(%arg0: i32, %arg1: memref<1x4x4x8xf32, #tpu.memory_space<vmem>>, %arg2: memref<4x4x8x32xbf16, #tpu.memory_space<vmem>>, %arg3: memref<1x32xf32, #tpu.memory_space<vmem>>, %arg4: memref<1x4x4x128xf32, #tpu.memory_space<vmem>>, %arg5: memref<1x6x6x8xf32, #tpu.memory_space<vmem>>) attributes {dimension_semantics = [#tpu.dimension_semantics<parallel>], iteration_bounds = array<i64: 2>, scalar_prefetch = 0 : i64, scratch_operands = 1 : i64, tpu.core_type = #tpu.core_type<tc>, window_params = [{transform_indices = @transform_0, window_bounds = array<i64: 1, 4, 4, 8>}, {pipeline_mode = #tpu.pipeline_mode<synchronous>, transform_indices = @transform_1, window_bounds = array<i64: 4, 4, 8, 32>}, {pipeline_mode = #tpu.pipeline_mode<synchronous>, transform_indices = @transform_2, window_bounds = array<i64: 1, 32>}, {transform_indices = @transform_3, window_bounds = array<i64: 1, 4, 4, 128>}]} {
    %cst = arith.constant 0.000000e+00 : f32
    %0 = vector.broadcast %cst : f32 to vector<1x6x6x8xf32>
    %c0 = arith.constant 0 : index
    %c0_0 = arith.constant 0 : index
    %c0_1 = arith.constant 0 : index
    %c0_2 = arith.constant 0 : index
    %1 = vector.load %arg5[%c0, %c0_0, %c0_1, %c0_2] : memref<1x6x6x8xf32, #tpu.memory_space<vmem>>, vector<1x6x6x8xf32>
    tpu.vector_store %arg5[%c0, %c0_0, %c0_1, %c0_2], %0 {strides = array<i32>} : memref<1x6x6x8xf32, #tpu.memory_space<vmem>>, vector<1x6x6x8xf32>,
    %c0_3 = arith.constant 0 : index
    %c0_4 = arith.constant 0 : index
    %c0_5 = arith.constant 0 : index
    %c0_6 = arith.constant 0 : index
    %2 = vector.load %arg1[%c0_3, %c0_4, %c0_5, %c0_6] : memref<1x4x4x8xf32, #tpu.memory_space<vmem>>, vector<1x4x4x8xf32>
    %3 = vector.shape_cast %2 : vector<1x4x4x8xf32> to vector<4x4x8xf32>
    %c0_7 = arith.constant 0 : index
    %c1 = arith.constant 1 : index
    %c1_8 = arith.constant 1 : index
    %c0_9 = arith.constant 0 : index
    %4 = vector.load %arg5[%c0_7, %c1, %c1_8, %c0_9] : memref<1x6x6x8xf32, #tpu.memory_space<vmem>>, vector<1x4x4x8xf32>
    %5 = vector.shape_cast %4 : vector<1x4x4x8xf32> to vector<4x4x8xf32>
    %6 = vector.shape_cast %3 : vector<4x4x8xf32> to vector<1x4x4x8xf32>
    tpu.vector_store %arg5[%c0_7, %c1, %c1_8, %c0_9], %6 {strides = array<i32>} : memref<1x6x6x8xf32, #tpu.memory_space<vmem>>, vector<1x4x4x8xf32>,
    %c0_10 = arith.constant 0 : index
    %c0_11 = arith.constant 0 : index
    %7 = vector.load %arg3[%c0_10, %c0_11] : memref<1x32xf32, #tpu.memory_space<vmem>>, vector<1x32xf32>
    %c0_12 = arith.constant 0 : index
    %c0_13 = arith.constant 0 : index
    %c0_14 = arith.constant 0 : index
    %c0_15 = arith.constant 0 : index
    %8 = vector.load %arg2[%c0_12, %c0_13, %c0_14, %c0_15] : memref<4x4x8x32xbf16, #tpu.memory_space<vmem>>, vector<1x1x8x32xbf16>
    %9 = vector.shape_cast %8 : vector<1x1x8x32xbf16> to vector<8x32xbf16>
    %c0_16 = arith.constant 0 : index
    %c1_17 = arith.constant 1 : index
    %c0_18 = arith.constant 0 : index
    %c0_19 = arith.constant 0 : index
    %10 = vector.load %arg2[%c0_16, %c1_17, %c0_18, %c0_19] : memref<4x4x8x32xbf16, #tpu.memory_space<vmem>>, vector<1x1x8x32xbf16>
    %11 = vector.shape_cast %10 : vector<1x1x8x32xbf16> to vector<8x32xbf16>
    %c0_20 = arith.constant 0 : index
    %c2 = arith.constant 2 : index
    %c0_21 = arith.constant 0 : index
    %c0_22 = arith.constant 0 : index
    %12 = vector.load %arg2[%c0_20, %c2, %c0_21, %c0_22] : memref<4x4x8x32xbf16, #tpu.memory_space<vmem>>, vector<1x1x8x32xbf16>
    %13 = vector.shape_cast %12 : vector<1x1x8x32xbf16> to vector<8x32xbf16>
    %c0_23 = arith.constant 0 : index
    %c3 = arith.constant 3 : index
    %c0_24 = arith.constant 0 : index
    %c0_25 = arith.constant 0 : index
    %14 = vector.load %arg2[%c0_23, %c3, %c0_24, %c0_25] : memref<4x4x8x32xbf16, #tpu.memory_space<vmem>>, vector<1x1x8x32xbf16>
    %15 = vector.shape_cast %14 : vector<1x1x8x32xbf16> to vector<8x32xbf16>
    %cst_26 = arith.constant 0.000000e+00 : f32
    %16 = vector.broadcast %cst_26 : f32 to vector<4x32xf32>
    %c0_27 = arith.constant 0 : index
    %c0_28 = arith.constant 0 : index
    %c0_29 = arith.constant 0 : index
    %c0_30 = arith.constant 0 : index
    %17 = vector.load %arg5[%c0_27, %c0_28, %c0_29, %c0_30] : memref<1x6x6x8xf32, #tpu.memory_space<vmem>>, vector<1x1x4x8xf32>
    %18 = vector.shape_cast %17 : vector<1x1x4x8xf32> to vector<4x8xf32>
    %19 = arith.truncf %18 : vector<4x8xf32> to vector<4x8xbf16>
    %cst_31 = arith.constant dense<0.000000e+00> : vector<4x32xf32>
    %20 = tpu.matmul %19, %9, %cst_31 {dimension_numbers = #tpu.dot_dimension_numbers<[1], [0], [0], [1], [0, 0, 1, 1], [], []>} : vector<4x8xbf16>, vector<8x32xbf16>, vector<4x32xf32> -> vector<4x32xf32>
    %21 = arith.addf %16, %20 : vector<4x32xf32>
    %c0_32 = arith.constant 0 : index
    %c0_33 = arith.constant 0 : index
    %c1_34 = arith.constant 1 : index
    %c0_35 = arith.constant 0 : index
    %22 = vector.load %arg5[%c0_32, %c0_33, %c1_34, %c0_35] : memref<1x6x6x8xf32, #tpu.memory_space<vmem>>, vector<1x1x4x8xf32>
    %23 = vector.shape_cast %22 : vector<1x1x4x8xf32> to vector<4x8xf32>
    %24 = arith.truncf %23 : vector<4x8xf32> to vector<4x8xbf16>
    %cst_36 = arith.constant dense<0.000000e+00> : vector<4x32xf32>
    %25 = tpu.matmul %24, %11, %cst_36 {dimension_numbers = #tpu.dot_dimension_numbers<[1], [0], [0], [1], [0, 0, 1, 1], [], []>} : vector<4x8xbf16>, vector<8x32xbf16>, vector<4x32xf32> -> vector<4x32xf32>
    %26 = arith.addf %21, %25 : vector<4x32xf32>
    %c0_37 = arith.constant 0 : index
    %c1_38 = arith.constant 1 : index
    %c0_39 = arith.constant 0 : index
    %c0_40 = arith.constant 0 : index
    %27 = vector.load %arg5[%c0_37, %c1_38, %c0_39, %c0_40] : memref<1x6x6x8xf32, #tpu.memory_space<vmem>>, vector<1x1x4x8xf32>
    %28 = vector.shape_cast %27 : vector<1x1x4x8xf32> to vector<4x8xf32>
    %29 = arith.truncf %28 : vector<4x8xf32> to vector<4x8xbf16>
    %cst_41 = arith.constant dense<0.000000e+00> : vector<4x32xf32>
    %30 = tpu.matmul %29, %13, %cst_41 {dimension_numbers = #tpu.dot_dimension_numbers<[1], [0], [0], [1], [0, 0, 1, 1], [], []>} : vector<4x8xbf16>, vector<8x32xbf16>, vector<4x32xf32> -> vector<4x32xf32>
    %31 = arith.addf %26, %30 : vector<4x32xf32>
    %c0_42 = arith.constant 0 : index
    %c1_43 = arith.constant 1 : index
    %c1_44 = arith.constant 1 : index
    %c0_45 = arith.constant 0 : index
    %32 = vector.load %arg5[%c0_42, %c1_43, %c1_44, %c0_45] : memref<1x6x6x8xf32, #tpu.memory_space<vmem>>, vector<1x1x4x8xf32>
    %33 = vector.shape_cast %32 : vector<1x1x4x8xf32> to vector<4x8xf32>
    %34 = arith.truncf %33 : vector<4x8xf32> to vector<4x8xbf16>
    %cst_46 = arith.constant dense<0.000000e+00> : vector<4x32xf32>
    %35 = tpu.matmul %34, %15, %cst_46 {dimension_numbers = #tpu.dot_dimension_numbers<[1], [0], [0], [1], [0, 0, 1, 1], [], []>} : vector<4x8xbf16>, vector<8x32xbf16>, vector<4x32xf32> -> vector<4x32xf32>
    %36 = arith.addf %31, %35 : vector<4x32xf32>
    %37 = vector.broadcast %7 : vector<1x32xf32> to vector<4x32xf32>
    %38 = arith.addf %36, %37 : vector<4x32xf32>
    %cst_47 = arith.constant 0.000000e+00 : f32
    %39 = vector.broadcast %cst_47 : f32 to vector<4x32xf32>
    %40 = arith.maximumf %38, %39 : vector<4x32xf32>
    %c0_48 = arith.constant 0 : index
    %c0_49 = arith.constant 0 : index
    %c0_50 = arith.constant 0 : index
    %c0_51 = arith.constant 0 : index
    %41 = vector.load %arg4[%c0_48, %c0_49, %c0_50, %c0_51] : memref<1x4x4x128xf32, #tpu.memory_space<vmem>>, vector<1x1x4x32xf32>
    %42 = vector.shape_cast %41 : vector<1x1x4x32xf32> to vector<4x32xf32>
    %43 = vector.shape_cast %40 : vector<4x32xf32> to vector<1x1x4x32xf32>
    tpu.vector_store %arg4[%c0_48, %c0_49, %c0_50, %c0_51], %43 {strides = array<i32>} : memref<1x4x4x128xf32, #tpu.memory_space<vmem>>, vector<1x1x4x32xf32>,
    %cst_52 = arith.constant 0.000000e+00 : f32
    %44 = vector.broadcast %cst_52 : f32 to vector<4x32xf32>
    %c0_53 = arith.constant 0 : index
    %c1_54 = arith.constant 1 : index
    %c0_55 = arith.constant 0 : index
    %c0_56 = arith.constant 0 : index
    %45 = vector.load %arg5[%c0_53, %c1_54, %c0_55, %c0_56] : memref<1x6x6x8xf32, #tpu.memory_space<vmem>>, vector<1x1x4x8xf32>
    %46 = vector.shape_cast %45 : vector<1x1x4x8xf32> to vector<4x8xf32>
    %47 = arith.truncf %46 : vector<4x8xf32> to vector<4x8xbf16>
    %cst_57 = arith.constant dense<0.000000e+00> : vector<4x32xf32>
    %48 = tpu.matmul %47, %9, %cst_57 {dimension_numbers = #tpu.dot_dimension_numbers<[1], [0], [0], [1], [0, 0, 1, 1], [], []>} : vector<4x8xbf16>, vector<8x32xbf16>, vector<4x32xf32> -> vector<4x32xf32>
    %49 = arith.addf %44, %48 : vector<4x32xf32>
    %c0_58 = arith.constant 0 : index
    %c1_59 = arith.constant 1 : index
    %c1_60 = arith.constant 1 : index
    %c0_61 = arith.constant 0 : index
    %50 = vector.load %arg5[%c0_58, %c1_59, %c1_60, %c0_61] : memref<1x6x6x8xf32, #tpu.memory_space<vmem>>, vector<1x1x4x8xf32>
    %51 = vector.shape_cast %50 : vector<1x1x4x8xf32> to vector<4x8xf32>
    %52 = arith.truncf %51 : vector<4x8xf32> to vector<4x8xbf16>
    %cst_62 = arith.constant dense<0.000000e+00> : vector<4x32xf32>
    %53 = tpu.matmul %52, %11, %cst_62 {dimension_numbers = #tpu.dot_dimension_numbers<[1], [0], [0], [1], [0, 0, 1, 1], [], []>} : vector<4x8xbf16>, vector<8x32xbf16>, vector<4x32xf32> -> vector<4x32xf32>
    %54 = arith.addf %49, %53 : vector<4x32xf32>
    %c0_63 = arith.constant 0 : index
    %c2_64 = arith.constant 2 : index
    %c0_65 = arith.constant 0 : index
    %c0_66 = arith.constant 0 : index
    %55 = vector.load %arg5[%c0_63, %c2_64, %c0_65, %c0_66] : memref<1x6x6x8xf32, #tpu.memory_space<vmem>>, vector<1x1x4x8xf32>
    %56 = vector.shape_cast %55 : vector<1x1x4x8xf32> to vector<4x8xf32>
    %57 = arith.truncf %56 : vector<4x8xf32> to vector<4x8xbf16>
    %cst_67 = arith.constant dense<0.000000e+00> : vector<4x32xf32>
    %58 = tpu.matmul %57, %13, %cst_67 {dimension_numbers = #tpu.dot_dimension_numbers<[1], [0], [0], [1], [0, 0, 1, 1], [], []>} : vector<4x8xbf16>, vector<8x32xbf16>, vector<4x32xf32> -> vector<4x32xf32>
    %59 = arith.addf %54, %58 : vector<4x32xf32>
    %c0_68 = arith.constant 0 : index
    %c2_69 = arith.constant 2 : index
    %c1_70 = arith.constant 1 : index
    %c0_71 = arith.constant 0 : index
    %60 = vector.load %arg5[%c0_68, %c2_69, %c1_70, %c0_71] : memref<1x6x6x8xf32, #tpu.memory_space<vmem>>, vector<1x1x4x8xf32>
    %61 = vector.shape_cast %60 : vector<1x1x4x8xf32> to vector<4x8xf32>
    %62 = arith.truncf %61 : vector<4x8xf32> to vector<4x8xbf16>
    %cst_72 = arith.constant dense<0.000000e+00> : vector<4x32xf32>
    %63 = tpu.matmul %62, %15, %cst_72 {dimension_numbers = #tpu.dot_dimension_numbers<[1], [0], [0], [1], [0, 0, 1, 1], [], []>} : vector<4x8xbf16>, vector<8x32xbf16>, vector<4x32xf32> -> vector<4x32xf32>
    %64 = arith.addf %59, %63 : vector<4x32xf32>
    %65 = vector.broadcast %7 : vector<1x32xf32> to vector<4x32xf32>
    %66 = arith.addf %64, %65 : vector<4x32xf32>
    %cst_73 = arith.constant 0.000000e+00 : f32
    %67 = vector.broadcast %cst_73 : f32 to vector<4x32xf32>
    %68 = arith.maximumf %66, %67 : vector<4x32xf32>
    %c0_74 = arith.constant 0 : index
    %c1_75 = arith.constant 1 : index
    %c0_76 = arith.constant 0 : index
    %c0_77 = arith.constant 0 : index
    %69 = vector.load %arg4[%c0_74, %c1_75, %c0_76, %c0_77] : memref<1x4x4x128xf32, #tpu.memory_space<vmem>>, vector<1x1x4x32xf32>
    %70 = vector.shape_cast %69 : vector<1x1x4x32xf32> to vector<4x32xf32>
    %71 = vector.shape_cast %68 : vector<4x32xf32> to vector<1x1x4x32xf32>
    tpu.vector_store %arg4[%c0_74, %c1_75, %c0_76, %c0_77], %71 {strides = array<i32>} : memref<1x4x4x128xf32, #tpu.memory_space<vmem>>, vector<1x1x4x32xf32>,
    %cst_78 = arith.constant 0.000000e+00 : f32
    %72 = vector.broadcast %cst_78 : f32 to vector<4x32xf32>
    %c0_79 = arith.constant 0 : index
    %c2_80 = arith.constant 2 : index
    %c0_81 = arith.constant 0 : index
    %c0_82 = arith.constant 0 : index
    %73 = vector.load %arg5[%c0_79, %c2_80, %c0_81, %c0_82] : memref<1x6x6x8xf32, #tpu.memory_space<vmem>>, vector<1x1x4x8xf32>
    %74 = vector.shape_cast %73 : vector<1x1x4x8xf32> to vector<4x8xf32>
    %75 = arith.truncf %74 : vector<4x8xf32> to vector<4x8xbf16>
    %cst_83 = arith.constant dense<0.000000e+00> : vector<4x32xf32>
    %76 = tpu.matmul %75, %9, %cst_83 {dimension_numbers = #tpu.dot_dimension_numbers<[1], [0], [0], [1], [0, 0, 1, 1], [], []>} : vector<4x8xbf16>, vector<8x32xbf16>, vector<4x32xf32> -> vector<4x32xf32>
    %77 = arith.addf %72, %76 : vector<4x32xf32>
    %c0_84 = arith.constant 0 : index
    %c2_85 = arith.constant 2 : index
    %c1_86 = arith.constant 1 : index
    %c0_87 = arith.constant 0 : index
    %78 = vector.load %arg5[%c0_84, %c2_85, %c1_86, %c0_87] : memref<1x6x6x8xf32, #tpu.memory_space<vmem>>, vector<1x1x4x8xf32>
    %79 = vector.shape_cast %78 : vector<1x1x4x8xf32> to vector<4x8xf32>
    %80 = arith.truncf %79 : vector<4x8xf32> to vector<4x8xbf16>
    %cst_88 = arith.constant dense<0.000000e+00> : vector<4x32xf32>
    %81 = tpu.matmul %80, %11, %cst_88 {dimension_numbers = #tpu.dot_dimension_numbers<[1], [0], [0], [1], [0, 0, 1, 1], [], []>} : vector<4x8xbf16>, vector<8x32xbf16>, vector<4x32xf32> -> vector<4x32xf32>
    %82 = arith.addf %77, %81 : vector<4x32xf32>
    %c0_89 = arith.constant 0 : index
    %c3_90 = arith.constant 3 : index
    %c0_91 = arith.constant 0 : index
    %c0_92 = arith.constant 0 : index
    %83 = vector.load %arg5[%c0_89, %c3_90, %c0_91, %c0_92] : memref<1x6x6x8xf32, #tpu.memory_space<vmem>>, vector<1x1x4x8xf32>
    %84 = vector.shape_cast %83 : vector<1x1x4x8xf32> to vector<4x8xf32>
    %85 = arith.truncf %84 : vector<4x8xf32> to vector<4x8xbf16>
    %cst_93 = arith.constant dense<0.000000e+00> : vector<4x32xf32>
    %86 = tpu.matmul %85, %13, %cst_93 {dimension_numbers = #tpu.dot_dimension_numbers<[1], [0], [0], [1], [0, 0, 1, 1], [], []>} : vector<4x8xbf16>, vector<8x32xbf16>, vector<4x32xf32> -> vector<4x32xf32>
    %87 = arith.addf %82, %86 : vector<4x32xf32>
    %c0_94 = arith.constant 0 : index
    %c3_95 = arith.constant 3 : index
    %c1_96 = arith.constant 1 : index
    %c0_97 = arith.constant 0 : index
    %88 = vector.load %arg5[%c0_94, %c3_95, %c1_96, %c0_97] : memref<1x6x6x8xf32, #tpu.memory_space<vmem>>, vector<1x1x4x8xf32>
    %89 = vector.shape_cast %88 : vector<1x1x4x8xf32> to vector<4x8xf32>
    %90 = arith.truncf %89 : vector<4x8xf32> to vector<4x8xbf16>
    %cst_98 = arith.constant dense<0.000000e+00> : vector<4x32xf32>
    %91 = tpu.matmul %90, %15, %cst_98 {dimension_numbers = #tpu.dot_dimension_numbers<[1], [0], [0], [1], [0, 0, 1, 1], [], []>} : vector<4x8xbf16>, vector<8x32xbf16>, vector<4x32xf32> -> vector<4x32xf32>
    %92 = arith.addf %87, %91 : vector<4x32xf32>
    %93 = vector.broadcast %7 : vector<1x32xf32> to vector<4x32xf32>
    %94 = arith.addf %92, %93 : vector<4x32xf32>
    %cst_99 = arith.constant 0.000000e+00 : f32
    %95 = vector.broadcast %cst_99 : f32 to vector<4x32xf32>
    %96 = arith.maximumf %94, %95 : vector<4x32xf32>
    %c0_100 = arith.constant 0 : index
    %c2_101 = arith.constant 2 : index
    %c0_102 = arith.constant 0 : index
    %c0_103 = arith.constant 0 : index
    %97 = vector.load %arg4[%c0_100, %c2_101, %c0_102, %c0_103] : memref<1x4x4x128xf32, #tpu.memory_space<vmem>>, vector<1x1x4x32xf32>
    %98 = vector.shape_cast %97 : vector<1x1x4x32xf32> to vector<4x32xf32>
    %99 = vector.shape_cast %96 : vector<4x32xf32> to vector<1x1x4x32xf32>
    tpu.vector_store %arg4[%c0_100, %c2_101, %c0_102, %c0_103], %99 {strides = array<i32>} : memref<1x4x4x128xf32, #tpu.memory_space<vmem>>, vector<1x1x4x32xf32>,
    %cst_104 = arith.constant 0.000000e+00 : f32
    %100 = vector.broadcast %cst_104 : f32 to vector<4x32xf32>
    %c0_105 = arith.constant 0 : index
    %c3_106 = arith.constant 3 : index
    %c0_107 = arith.constant 0 : index
    %c0_108 = arith.constant 0 : index
    %101 = vector.load %arg5[%c0_105, %c3_106, %c0_107, %c0_108] : memref<1x6x6x8xf32, #tpu.memory_space<vmem>>, vector<1x1x4x8xf32>
    %102 = vector.shape_cast %101 : vector<1x1x4x8xf32> to vector<4x8xf32>
    %103 = arith.truncf %102 : vector<4x8xf32> to vector<4x8xbf16>
    %cst_109 = arith.constant dense<0.000000e+00> : vector<4x32xf32>
    %104 = tpu.matmul %103, %9, %cst_109 {dimension_numbers = #tpu.dot_dimension_numbers<[1], [0], [0], [1], [0, 0, 1, 1], [], []>} : vector<4x8xbf16>, vector<8x32xbf16>, vector<4x32xf32> -> vector<4x32xf32>
    %105 = arith.addf %100, %104 : vector<4x32xf32>
    %c0_110 = arith.constant 0 : index
    %c3_111 = arith.constant 3 : index
    %c1_112 = arith.constant 1 : index
    %c0_113 = arith.constant 0 : index
    %106 = vector.load %arg5[%c0_110, %c3_111, %c1_112, %c0_113] : memref<1x6x6x8xf32, #tpu.memory_space<vmem>>, vector<1x1x4x8xf32>
    %107 = vector.shape_cast %106 : vector<1x1x4x8xf32> to vector<4x8xf32>
    %108 = arith.truncf %107 : vector<4x8xf32> to vector<4x8xbf16>
    %cst_114 = arith.constant dense<0.000000e+00> : vector<4x32xf32>
    %109 = tpu.matmul %108, %11, %cst_114 {dimension_numbers = #tpu.dot_dimension_numbers<[1], [0], [0], [1], [0, 0, 1, 1], [], []>} : vector<4x8xbf16>, vector<8x32xbf16>, vector<4x32xf32> -> vector<4x32xf32>
    %110 = arith.addf %105, %109 : vector<4x32xf32>
    %c0_115 = arith.constant 0 : index
    %c4 = arith.constant 4 : index
    %c0_116 = arith.constant 0 : index
    %c0_117 = arith.constant 0 : index
    %111 = vector.load %arg5[%c0_115, %c4, %c0_116, %c0_117] : memref<1x6x6x8xf32, #tpu.memory_space<vmem>>, vector<1x1x4x8xf32>
    %112 = vector.shape_cast %111 : vector<1x1x4x8xf32> to vector<4x8xf32>
    %113 = arith.truncf %112 : vector<4x8xf32> to vector<4x8xbf16>
    %cst_118 = arith.constant dense<0.000000e+00> : vector<4x32xf32>
    %114 = tpu.matmul %113, %13, %cst_118 {dimension_numbers = #tpu.dot_dimension_numbers<[1], [0], [0], [1], [0, 0, 1, 1], [], []>} : vector<4x8xbf16>, vector<8x32xbf16>, vector<4x32xf32> -> vector<4x32xf32>
    %115 = arith.addf %110, %114 : vector<4x32xf32>
    %c0_119 = arith.constant 0 : index
    %c4_120 = arith.constant 4 : index
    %c1_121 = arith.constant 1 : index
    %c0_122 = arith.constant 0 : index
    %116 = vector.load %arg5[%c0_119, %c4_120, %c1_121, %c0_122] : memref<1x6x6x8xf32, #tpu.memory_space<vmem>>, vector<1x1x4x8xf32>
    %117 = vector.shape_cast %116 : vector<1x1x4x8xf32> to vector<4x8xf32>
    %118 = arith.truncf %117 : vector<4x8xf32> to vector<4x8xbf16>
    %cst_123 = arith.constant dense<0.000000e+00> : vector<4x32xf32>
    %119 = tpu.matmul %118, %15, %cst_123 {dimension_numbers = #tpu.dot_dimension_numbers<[1], [0], [0], [1], [0, 0, 1, 1], [], []>} : vector<4x8xbf16>, vector<8x32xbf16>, vector<4x32xf32> -> vector<4x32xf32>
    %120 = arith.addf %115, %119 : vector<4x32xf32>
    %121 = vector.broadcast %7 : vector<1x32xf32> to vector<4x32xf32>
    %122 = arith.addf %120, %121 : vector<4x32xf32>
    %cst_124 = arith.constant 0.000000e+00 : f32
    %123 = vector.broadcast %cst_124 : f32 to vector<4x32xf32>
    %124 = arith.maximumf %122, %123 : vector<4x32xf32>
    %c0_125 = arith.constant 0 : index
    %c3_126 = arith.constant 3 : index
    %c0_127 = arith.constant 0 : index
    %c0_128 = arith.constant 0 : index
    %125 = vector.load %arg4[%c0_125, %c3_126, %c0_127, %c0_128] : memref<1x4x4x128xf32, #tpu.memory_space<vmem>>, vector<1x1x4x32xf32>
    %126 = vector.shape_cast %125 : vector<1x1x4x32xf32> to vector<4x32xf32>
    %127 = vector.shape_cast %124 : vector<4x32xf32> to vector<1x1x4x32xf32>
    tpu.vector_store %arg4[%c0_125, %c3_126, %c0_127, %c0_128], %127 {strides = array<i32>} : memref<1x4x4x128xf32, #tpu.memory_space<vmem>>, vector<1x1x4x32xf32>,
    %c1_129 = arith.constant 1 : index
    %c0_130 = arith.constant 0 : index
    %c0_131 = arith.constant 0 : index
    %c0_132 = arith.constant 0 : index
    %128 = vector.load %arg2[%c1_129, %c0_130, %c0_131, %c0_132] : memref<4x4x8x32xbf16, #tpu.memory_space<vmem>>, vector<1x1x8x32xbf16>
    %129 = vector.shape_cast %128 : vector<1x1x8x32xbf16> to vector<8x32xbf16>
    %c1_133 = arith.constant 1 : index
    %c1_134 = arith.constant 1 : index
    %c0_135 = arith.constant 0 : index
    %c0_136 = arith.constant 0 : index
    %130 = vector.load %arg2[%c1_133, %c1_134, %c0_135, %c0_136] : memref<4x4x8x32xbf16, #tpu.memory_space<vmem>>, vector<1x1x8x32xbf16>
    %131 = vector.shape_cast %130 : vector<1x1x8x32xbf16> to vector<8x32xbf16>
    %c1_137 = arith.constant 1 : index
    %c2_138 = arith.constant 2 : index
    %c0_139 = arith.constant 0 : index
    %c0_140 = arith.constant 0 : index
    %132 = vector.load %arg2[%c1_137, %c2_138, %c0_139, %c0_140] : memref<4x4x8x32xbf16, #tpu.memory_space<vmem>>, vector<1x1x8x32xbf16>
    %133 = vector.shape_cast %132 : vector<1x1x8x32xbf16> to vector<8x32xbf16>
    %c1_141 = arith.constant 1 : index
    %c3_142 = arith.constant 3 : index
    %c0_143 = arith.constant 0 : index
    %c0_144 = arith.constant 0 : index
    %134 = vector.load %arg2[%c1_141, %c3_142, %c0_143, %c0_144] : memref<4x4x8x32xbf16, #tpu.memory_space<vmem>>, vector<1x1x8x32xbf16>
    %135 = vector.shape_cast %134 : vector<1x1x8x32xbf16> to vector<8x32xbf16>
    %cst_145 = arith.constant 0.000000e+00 : f32
    %136 = vector.broadcast %cst_145 : f32 to vector<4x32xf32>
    %c0_146 = arith.constant 0 : index
    %c0_147 = arith.constant 0 : index
    %c1_148 = arith.constant 1 : index
    %c0_149 = arith.constant 0 : index
    %137 = vector.load %arg5[%c0_146, %c0_147, %c1_148, %c0_149] : memref<1x6x6x8xf32, #tpu.memory_space<vmem>>, vector<1x1x4x8xf32>
    %138 = vector.shape_cast %137 : vector<1x1x4x8xf32> to vector<4x8xf32>
    %139 = arith.truncf %138 : vector<4x8xf32> to vector<4x8xbf16>
    %cst_150 = arith.constant dense<0.000000e+00> : vector<4x32xf32>
    %140 = tpu.matmul %139, %129, %cst_150 {dimension_numbers = #tpu.dot_dimension_numbers<[1], [0], [0], [1], [0, 0, 1, 1], [], []>} : vector<4x8xbf16>, vector<8x32xbf16>, vector<4x32xf32> -> vector<4x32xf32>
    %141 = arith.addf %136, %140 : vector<4x32xf32>
    %c0_151 = arith.constant 0 : index
    %c0_152 = arith.constant 0 : index
    %c2_153 = arith.constant 2 : index
    %c0_154 = arith.constant 0 : index
    %142 = vector.load %arg5[%c0_151, %c0_152, %c2_153, %c0_154] : memref<1x6x6x8xf32, #tpu.memory_space<vmem>>, vector<1x1x4x8xf32>
    %143 = vector.shape_cast %142 : vector<1x1x4x8xf32> to vector<4x8xf32>
    %144 = arith.truncf %143 : vector<4x8xf32> to vector<4x8xbf16>
    %cst_155 = arith.constant dense<0.000000e+00> : vector<4x32xf32>
    %145 = tpu.matmul %144, %131, %cst_155 {dimension_numbers = #tpu.dot_dimension_numbers<[1], [0], [0], [1], [0, 0, 1, 1], [], []>} : vector<4x8xbf16>, vector<8x32xbf16>, vector<4x32xf32> -> vector<4x32xf32>
    %146 = arith.addf %141, %145 : vector<4x32xf32>
    %c0_156 = arith.constant 0 : index
    %c1_157 = arith.constant 1 : index
    %c1_158 = arith.constant 1 : index
    %c0_159 = arith.constant 0 : index
    %147 = vector.load %arg5[%c0_156, %c1_157, %c1_158, %c0_159] : memref<1x6x6x8xf32, #tpu.memory_space<vmem>>, vector<1x1x4x8xf32>
    %148 = vector.shape_cast %147 : vector<1x1x4x8xf32> to vector<4x8xf32>
    %149 = arith.truncf %148 : vector<4x8xf32> to vector<4x8xbf16>
    %cst_160 = arith.constant dense<0.000000e+00> : vector<4x32xf32>
    %150 = tpu.matmul %149, %133, %cst_160 {dimension_numbers = #tpu.dot_dimension_numbers<[1], [0], [0], [1], [0, 0, 1, 1], [], []>} : vector<4x8xbf16>, vector<8x32xbf16>, vector<4x32xf32> -> vector<4x32xf32>
    %151 = arith.addf %146, %150 : vector<4x32xf32>
    %c0_161 = arith.constant 0 : index
    %c1_162 = arith.constant 1 : index
    %c2_163 = arith.constant 2 : index
    %c0_164 = arith.constant 0 : index
    %152 = vector.load %arg5[%c0_161, %c1_162, %c2_163, %c0_164] : memref<1x6x6x8xf32, #tpu.memory_space<vmem>>, vector<1x1x4x8xf32>
    %153 = vector.shape_cast %152 : vector<1x1x4x8xf32> to vector<4x8xf32>
    %154 = arith.truncf %153 : vector<4x8xf32> to vector<4x8xbf16>
    %cst_165 = arith.constant dense<0.000000e+00> : vector<4x32xf32>
    %155 = tpu.matmul %154, %135, %cst_165 {dimension_numbers = #tpu.dot_dimension_numbers<[1], [0], [0], [1], [0, 0, 1, 1], [], []>} : vector<4x8xbf16>, vector<8x32xbf16>, vector<4x32xf32> -> vector<4x32xf32>
    %156 = arith.addf %151, %155 : vector<4x32xf32>
    %157 = vector.broadcast %7 : vector<1x32xf32> to vector<4x32xf32>
    %158 = arith.addf %156, %157 : vector<4x32xf32>
    %cst_166 = arith.constant 0.000000e+00 : f32
    %159 = vector.broadcast %cst_166 : f32 to vector<4x32xf32>
    %160 = arith.maximumf %158, %159 : vector<4x32xf32>
    %c0_167 = arith.constant 0 : index
    %c0_168 = arith.constant 0 : index
    %c0_169 = arith.constant 0 : index
    %c32 = arith.constant 32 : index
    %161 = vector.load %arg4[%c0_167, %c0_168, %c0_169, %c32] : memref<1x4x4x128xf32, #tpu.memory_space<vmem>>, vector<1x1x4x32xf32>
    %162 = vector.shape_cast %161 : vector<1x1x4x32xf32> to vector<4x32xf32>
    %163 = vector.shape_cast %160 : vector<4x32xf32> to vector<1x1x4x32xf32>
    tpu.vector_store %arg4[%c0_167, %c0_168, %c0_169, %c32], %163 {strides = array<i32>} : memref<1x4x4x128xf32, #tpu.memory_space<vmem>>, vector<1x1x4x32xf32>,
    %cst_170 = arith.constant 0.000000e+00 : f32
    %164 = vector.broadcast %cst_170 : f32 to vector<4x32xf32>
    %c0_171 = arith.constant 0 : index
    %c1_172 = arith.constant 1 : index
    %c1_173 = arith.constant 1 : index
    %c0_174 = arith.constant 0 : index
    %165 = vector.load %arg5[%c0_171, %c1_172, %c1_173, %c0_174] : memref<1x6x6x8xf32, #tpu.memory_space<vmem>>, vector<1x1x4x8xf32>
    %166 = vector.shape_cast %165 : vector<1x1x4x8xf32> to vector<4x8xf32>
    %167 = arith.truncf %166 : vector<4x8xf32> to vector<4x8xbf16>
    %cst_175 = arith.constant dense<0.000000e+00> : vector<4x32xf32>
    %168 = tpu.matmul %167, %129, %cst_175 {dimension_numbers = #tpu.dot_dimension_numbers<[1], [0], [0], [1], [0, 0, 1, 1], [], []>} : vector<4x8xbf16>, vector<8x32xbf16>, vector<4x32xf32> -> vector<4x32xf32>
    %169 = arith.addf %164, %168 : vector<4x32xf32>
    %c0_176 = arith.constant 0 : index
    %c1_177 = arith.constant 1 : index
    %c2_178 = arith.constant 2 : index
    %c0_179 = arith.constant 0 : index
    %170 = vector.load %arg5[%c0_176, %c1_177, %c2_178, %c0_179] : memref<1x6x6x8xf32, #tpu.memory_space<vmem>>, vector<1x1x4x8xf32>
    %171 = vector.shape_cast %170 : vector<1x1x4x8xf32> to vector<4x8xf32>
    %172 = arith.truncf %171 : vector<4x8xf32> to vector<4x8xbf16>
    %cst_180 = arith.constant dense<0.000000e+00> : vector<4x32xf32>
    %173 = tpu.matmul %172, %131, %cst_180 {dimension_numbers = #tpu.dot_dimension_numbers<[1], [0], [0], [1], [0, 0, 1, 1], [], []>} : vector<4x8xbf16>, vector<8x32xbf16>, vector<4x32xf32> -> vector<4x32xf32>
    %174 = arith.addf %169, %173 : vector<4x32xf32>
    %c0_181 = arith.constant 0 : index
    %c2_182 = arith.constant 2 : index
    %c1_183 = arith.constant 1 : index
    %c0_184 = arith.constant 0 : index
    %175 = vector.load %arg5[%c0_181, %c2_182, %c1_183, %c0_184] : memref<1x6x6x8xf32, #tpu.memory_space<vmem>>, vector<1x1x4x8xf32>
    %176 = vector.shape_cast %175 : vector<1x1x4x8xf32> to vector<4x8xf32>
    %177 = arith.truncf %176 : vector<4x8xf32> to vector<4x8xbf16>
    %cst_185 = arith.constant dense<0.000000e+00> : vector<4x32xf32>
    %178 = tpu.matmul %177, %133, %cst_185 {dimension_numbers = #tpu.dot_dimension_numbers<[1], [0], [0], [1], [0, 0, 1, 1], [], []>} : vector<4x8xbf16>, vector<8x32xbf16>, vector<4x32xf32> -> vector<4x32xf32>
    %179 = arith.addf %174, %178 : vector<4x32xf32>
    %c0_186 = arith.constant 0 : index
    %c2_187 = arith.constant 2 : index
    %c2_188 = arith.constant 2 : index
    %c0_189 = arith.constant 0 : index
    %180 = vector.load %arg5[%c0_186, %c2_187, %c2_188, %c0_189] : memref<1x6x6x8xf32, #tpu.memory_space<vmem>>, vector<1x1x4x8xf32>
    %181 = vector.shape_cast %180 : vector<1x1x4x8xf32> to vector<4x8xf32>
    %182 = arith.truncf %181 : vector<4x8xf32> to vector<4x8xbf16>
    %cst_190 = arith.constant dense<0.000000e+00> : vector<4x32xf32>
    %183 = tpu.matmul %182, %135, %cst_190 {dimension_numbers = #tpu.dot_dimension_numbers<[1], [0], [0], [1], [0, 0, 1, 1], [], []>} : vector<4x8xbf16>, vector<8x32xbf16>, vector<4x32xf32> -> vector<4x32xf32>
    %184 = arith.addf %179, %183 : vector<4x32xf32>
    %185 = vector.broadcast %7 : vector<1x32xf32> to vector<4x32xf32>
    %186 = arith.addf %184, %185 : vector<4x32xf32>
    %cst_191 = arith.constant 0.000000e+00 : f32
    %187 = vector.broadcast %cst_191 : f32 to vector<4x32xf32>
    %188 = arith.maximumf %186, %187 : vector<4x32xf32>
    %c0_192 = arith.constant 0 : index
    %c1_193 = arith.constant 1 : index
    %c0_194 = arith.constant 0 : index
    %c32_195 = arith.constant 32 : index
    %189 = vector.load %arg4[%c0_192, %c1_193, %c0_194, %c32_195] : memref<1x4x4x128xf32, #tpu.memory_space<vmem>>, vector<1x1x4x32xf32>
    %190 = vector.shape_cast %189 : vector<1x1x4x32xf32> to vector<4x32xf32>
    %191 = vector.shape_cast %188 : vector<4x32xf32> to vector<1x1x4x32xf32>
    tpu.vector_store %arg4[%c0_192, %c1_193, %c0_194, %c32_195], %191 {strides = array<i32>} : memref<1x4x4x128xf32, #tpu.memory_space<vmem>>, vector<1x1x4x32xf32>,
    %cst_196 = arith.constant 0.000000e+00 : f32
    %192 = vector.broadcast %cst_196 : f32 to vector<4x32xf32>
    %c0_197 = arith.constant 0 : index
    %c2_198 = arith.constant 2 : index
    %c1_199 = arith.constant 1 : index
    %c0_200 = arith.constant 0 : index
    %193 = vector.load %arg5[%c0_197, %c2_198, %c1_199, %c0_200] : memref<1x6x6x8xf32, #tpu.memory_space<vmem>>, vector<1x1x4x8xf32>
    %194 = vector.shape_cast %193 : vector<1x1x4x8xf32> to vector<4x8xf32>
    %195 = arith.truncf %194 : vector<4x8xf32> to vector<4x8xbf16>
    %cst_201 = arith.constant dense<0.000000e+00> : vector<4x32xf32>
    %196 = tpu.matmul %195, %129, %cst_201 {dimension_numbers = #tpu.dot_dimension_numbers<[1], [0], [0], [1], [0, 0, 1, 1], [], []>} : vector<4x8xbf16>, vector<8x32xbf16>, vector<4x32xf32> -> vector<4x32xf32>
    %197 = arith.addf %192, %196 : vector<4x32xf32>
    %c0_202 = arith.constant 0 : index
    %c2_203 = arith.constant 2 : index
    %c2_204 = arith.constant 2 : index
    %c0_205 = arith.constant 0 : index
    %198 = vector.load %arg5[%c0_202, %c2_203, %c2_204, %c0_205] : memref<1x6x6x8xf32, #tpu.memory_space<vmem>>, vector<1x1x4x8xf32>
    %199 = vector.shape_cast %198 : vector<1x1x4x8xf32> to vector<4x8xf32>
    %200 = arith.truncf %199 : vector<4x8xf32> to vector<4x8xbf16>
    %cst_206 = arith.constant dense<0.000000e+00> : vector<4x32xf32>
    %201 = tpu.matmul %200, %131, %cst_206 {dimension_numbers = #tpu.dot_dimension_numbers<[1], [0], [0], [1], [0, 0, 1, 1], [], []>} : vector<4x8xbf16>, vector<8x32xbf16>, vector<4x32xf32> -> vector<4x32xf32>
    %202 = arith.addf %197, %201 : vector<4x32xf32>
    %c0_207 = arith.constant 0 : index
    %c3_208 = arith.constant 3 : index
    %c1_209 = arith.constant 1 : index
    %c0_210 = arith.constant 0 : index
    %203 = vector.load %arg5[%c0_207, %c3_208, %c1_209, %c0_210] : memref<1x6x6x8xf32, #tpu.memory_space<vmem>>, vector<1x1x4x8xf32>
    %204 = vector.shape_cast %203 : vector<1x1x4x8xf32> to vector<4x8xf32>
    %205 = arith.truncf %204 : vector<4x8xf32> to vector<4x8xbf16>
    %cst_211 = arith.constant dense<0.000000e+00> : vector<4x32xf32>
    %206 = tpu.matmul %205, %133, %cst_211 {dimension_numbers = #tpu.dot_dimension_numbers<[1], [0], [0], [1], [0, 0, 1, 1], [], []>} : vector<4x8xbf16>, vector<8x32xbf16>, vector<4x32xf32> -> vector<4x32xf32>
    %207 = arith.addf %202, %206 : vector<4x32xf32>
    %c0_212 = arith.constant 0 : index
    %c3_213 = arith.constant 3 : index
    %c2_214 = arith.constant 2 : index
    %c0_215 = arith.constant 0 : index
    %208 = vector.load %arg5[%c0_212, %c3_213, %c2_214, %c0_215] : memref<1x6x6x8xf32, #tpu.memory_space<vmem>>, vector<1x1x4x8xf32>
    %209 = vector.shape_cast %208 : vector<1x1x4x8xf32> to vector<4x8xf32>
    %210 = arith.truncf %209 : vector<4x8xf32> to vector<4x8xbf16>
    %cst_216 = arith.constant dense<0.000000e+00> : vector<4x32xf32>
    %211 = tpu.matmul %210, %135, %cst_216 {dimension_numbers = #tpu.dot_dimension_numbers<[1], [0], [0], [1], [0, 0, 1, 1], [], []>} : vector<4x8xbf16>, vector<8x32xbf16>, vector<4x32xf32> -> vector<4x32xf32>
    %212 = arith.addf %207, %211 : vector<4x32xf32>
    %213 = vector.broadcast %7 : vector<1x32xf32> to vector<4x32xf32>
    %214 = arith.addf %212, %213 : vector<4x32xf32>
    %cst_217 = arith.constant 0.000000e+00 : f32
    %215 = vector.broadcast %cst_217 : f32 to vector<4x32xf32>
    %216 = arith.maximumf %214, %215 : vector<4x32xf32>
    %c0_218 = arith.constant 0 : index
    %c2_219 = arith.constant 2 : index
    %c0_220 = arith.constant 0 : index
    %c32_221 = arith.constant 32 : index
    %217 = vector.load %arg4[%c0_218, %c2_219, %c0_220, %c32_221] : memref<1x4x4x128xf32, #tpu.memory_space<vmem>>, vector<1x1x4x32xf32>
    %218 = vector.shape_cast %217 : vector<1x1x4x32xf32> to vector<4x32xf32>
    %219 = vector.shape_cast %216 : vector<4x32xf32> to vector<1x1x4x32xf32>
    tpu.vector_store %arg4[%c0_218, %c2_219, %c0_220, %c32_221], %219 {strides = array<i32>} : memref<1x4x4x128xf32, #tpu.memory_space<vmem>>, vector<1x1x4x32xf32>,
    %cst_222 = arith.constant 0.000000e+00 : f32
    %220 = vector.broadcast %cst_222 : f32 to vector<4x32xf32>
    %c0_223 = arith.constant 0 : index
    %c3_224 = arith.constant 3 : index
    %c1_225 = arith.constant 1 : index
    %c0_226 = arith.constant 0 : index
    %221 = vector.load %arg5[%c0_223, %c3_224, %c1_225, %c0_226] : memref<1x6x6x8xf32, #tpu.memory_space<vmem>>, vector<1x1x4x8xf32>
    %222 = vector.shape_cast %221 : vector<1x1x4x8xf32> to vector<4x8xf32>
    %223 = arith.truncf %222 : vector<4x8xf32> to vector<4x8xbf16>
    %cst_227 = arith.constant dense<0.000000e+00> : vector<4x32xf32>
    %224 = tpu.matmul %223, %129, %cst_227 {dimension_numbers = #tpu.dot_dimension_numbers<[1], [0], [0], [1], [0, 0, 1, 1], [], []>} : vector<4x8xbf16>, vector<8x32xbf16>, vector<4x32xf32> -> vector<4x32xf32>
    %225 = arith.addf %220, %224 : vector<4x32xf32>
    %c0_228 = arith.constant 0 : index
    %c3_229 = arith.constant 3 : index
    %c2_230 = arith.constant 2 : index
    %c0_231 = arith.constant 0 : index
    %226 = vector.load %arg5[%c0_228, %c3_229, %c2_230, %c0_231] : memref<1x6x6x8xf32, #tpu.memory_space<vmem>>, vector<1x1x4x8xf32>
    %227 = vector.shape_cast %226 : vector<1x1x4x8xf32> to vector<4x8xf32>
    %228 = arith.truncf %227 : vector<4x8xf32> to vector<4x8xbf16>
    %cst_232 = arith.constant dense<0.000000e+00> : vector<4x32xf32>
    %229 = tpu.matmul %228, %131, %cst_232 {dimension_numbers = #tpu.dot_dimension_numbers<[1], [0], [0], [1], [0, 0, 1, 1], [], []>} : vector<4x8xbf16>, vector<8x32xbf16>, vector<4x32xf32> -> vector<4x32xf32>
    %230 = arith.addf %225, %229 : vector<4x32xf32>
    %c0_233 = arith.constant 0 : index
    %c4_234 = arith.constant 4 : index
    %c1_235 = arith.constant 1 : index
    %c0_236 = arith.constant 0 : index
    %231 = vector.load %arg5[%c0_233, %c4_234, %c1_235, %c0_236] : memref<1x6x6x8xf32, #tpu.memory_space<vmem>>, vector<1x1x4x8xf32>
    %232 = vector.shape_cast %231 : vector<1x1x4x8xf32> to vector<4x8xf32>
    %233 = arith.truncf %232 : vector<4x8xf32> to vector<4x8xbf16>
    %cst_237 = arith.constant dense<0.000000e+00> : vector<4x32xf32>
    %234 = tpu.matmul %233, %133, %cst_237 {dimension_numbers = #tpu.dot_dimension_numbers<[1], [0], [0], [1], [0, 0, 1, 1], [], []>} : vector<4x8xbf16>, vector<8x32xbf16>, vector<4x32xf32> -> vector<4x32xf32>
    %235 = arith.addf %230, %234 : vector<4x32xf32>
    %c0_238 = arith.constant 0 : index
    %c4_239 = arith.constant 4 : index
    %c2_240 = arith.constant 2 : index
    %c0_241 = arith.constant 0 : index
    %236 = vector.load %arg5[%c0_238, %c4_239, %c2_240, %c0_241] : memref<1x6x6x8xf32, #tpu.memory_space<vmem>>, vector<1x1x4x8xf32>
    %237 = vector.shape_cast %236 : vector<1x1x4x8xf32> to vector<4x8xf32>
    %238 = arith.truncf %237 : vector<4x8xf32> to vector<4x8xbf16>
    %cst_242 = arith.constant dense<0.000000e+00> : vector<4x32xf32>
    %239 = tpu.matmul %238, %135, %cst_242 {dimension_numbers = #tpu.dot_dimension_numbers<[1], [0], [0], [1], [0, 0, 1, 1], [], []>} : vector<4x8xbf16>, vector<8x32xbf16>, vector<4x32xf32> -> vector<4x32xf32>
    %240 = arith.addf %235, %239 : vector<4x32xf32>
    %241 = vector.broadcast %7 : vector<1x32xf32> to vector<4x32xf32>
    %242 = arith.addf %240, %241 : vector<4x32xf32>
    %cst_243 = arith.constant 0.000000e+00 : f32
    %243 = vector.broadcast %cst_243 : f32 to vector<4x32xf32>
    %244 = arith.maximumf %242, %243 : vector<4x32xf32>
    %c0_244 = arith.constant 0 : index
    %c3_245 = arith.constant 3 : index
    %c0_246 = arith.constant 0 : index
    %c32_247 = arith.constant 32 : index
    %245 = vector.load %arg4[%c0_244, %c3_245, %c0_246, %c32_247] : memref<1x4x4x128xf32, #tpu.memory_space<vmem>>, vector<1x1x4x32xf32>
    %246 = vector.shape_cast %245 : vector<1x1x4x32xf32> to vector<4x32xf32>
    %247 = vector.shape_cast %244 : vector<4x32xf32> to vector<1x1x4x32xf32>
    tpu.vector_store %arg4[%c0_244, %c3_245, %c0_246, %c32_247], %247 {strides = array<i32>} : memref<1x4x4x128xf32, #tpu.memory_space<vmem>>, vector<1x1x4x32xf32>,
    %c2_248 = arith.constant 2 : index
    %c0_249 = arith.constant 0 : index
    %c0_250 = arith.constant 0 : index
    %c0_251 = arith.constant 0 : index
    %248 = vector.load %arg2[%c2_248, %c0_249, %c0_250, %c0_251] : memref<4x4x8x32xbf16, #tpu.memory_space<vmem>>, vector<1x1x8x32xbf16>
    %249 = vector.shape_cast %248 : vector<1x1x8x32xbf16> to vector<8x32xbf16>
    %c2_252 = arith.constant 2 : index
    %c1_253 = arith.constant 1 : index
    %c0_254 = arith.constant 0 : index
    %c0_255 = arith.constant 0 : index
    %250 = vector.load %arg2[%c2_252, %c1_253, %c0_254, %c0_255] : memref<4x4x8x32xbf16, #tpu.memory_space<vmem>>, vector<1x1x8x32xbf16>
    %251 = vector.shape_cast %250 : vector<1x1x8x32xbf16> to vector<8x32xbf16>
    %c2_256 = arith.constant 2 : index
    %c2_257 = arith.constant 2 : index
    %c0_258 = arith.constant 0 : index
    %c0_259 = arith.constant 0 : index
    %252 = vector.load %arg2[%c2_256, %c2_257, %c0_258, %c0_259] : memref<4x4x8x32xbf16, #tpu.memory_space<vmem>>, vector<1x1x8x32xbf16>
    %253 = vector.shape_cast %252 : vector<1x1x8x32xbf16> to vector<8x32xbf16>
    %c2_260 = arith.constant 2 : index
    %c3_261 = arith.constant 3 : index
    %c0_262 = arith.constant 0 : index
    %c0_263 = arith.constant 0 : index
    %254 = vector.load %arg2[%c2_260, %c3_261, %c0_262, %c0_263] : memref<4x4x8x32xbf16, #tpu.memory_space<vmem>>, vector<1x1x8x32xbf16>
    %255 = vector.shape_cast %254 : vector<1x1x8x32xbf16> to vector<8x32xbf16>
    %cst_264 = arith.constant 0.000000e+00 : f32
    %256 = vector.broadcast %cst_264 : f32 to vector<4x32xf32>
    %c0_265 = arith.constant 0 : index
    %c1_266 = arith.constant 1 : index
    %c0_267 = arith.constant 0 : index
    %c0_268 = arith.constant 0 : index
    %257 = vector.load %arg5[%c0_265, %c1_266, %c0_267, %c0_268] : memref<1x6x6x8xf32, #tpu.memory_space<vmem>>, vector<1x1x4x8xf32>
    %258 = vector.shape_cast %257 : vector<1x1x4x8xf32> to vector<4x8xf32>
    %259 = arith.truncf %258 : vector<4x8xf32> to vector<4x8xbf16>
    %cst_269 = arith.constant dense<0.000000e+00> : vector<4x32xf32>
    %260 = tpu.matmul %259, %249, %cst_269 {dimension_numbers = #tpu.dot_dimension_numbers<[1], [0], [0], [1], [0, 0, 1, 1], [], []>} : vector<4x8xbf16>, vector<8x32xbf16>, vector<4x32xf32> -> vector<4x32xf32>
    %261 = arith.addf %256, %260 : vector<4x32xf32>
    %c0_270 = arith.constant 0 : index
    %c1_271 = arith.constant 1 : index
    %c1_272 = arith.constant 1 : index
    %c0_273 = arith.constant 0 : index
    %262 = vector.load %arg5[%c0_270, %c1_271, %c1_272, %c0_273] : memref<1x6x6x8xf32, #tpu.memory_space<vmem>>, vector<1x1x4x8xf32>
    %263 = vector.shape_cast %262 : vector<1x1x4x8xf32> to vector<4x8xf32>
    %264 = arith.truncf %263 : vector<4x8xf32> to vector<4x8xbf16>
    %cst_274 = arith.constant dense<0.000000e+00> : vector<4x32xf32>
    %265 = tpu.matmul %264, %251, %cst_274 {dimension_numbers = #tpu.dot_dimension_numbers<[1], [0], [0], [1], [0, 0, 1, 1], [], []>} : vector<4x8xbf16>, vector<8x32xbf16>, vector<4x32xf32> -> vector<4x32xf32>
    %266 = arith.addf %261, %265 : vector<4x32xf32>
    %c0_275 = arith.constant 0 : index
    %c2_276 = arith.constant 2 : index
    %c0_277 = arith.constant 0 : index
    %c0_278 = arith.constant 0 : index
    %267 = vector.load %arg5[%c0_275, %c2_276, %c0_277, %c0_278] : memref<1x6x6x8xf32, #tpu.memory_space<vmem>>, vector<1x1x4x8xf32>
    %268 = vector.shape_cast %267 : vector<1x1x4x8xf32> to vector<4x8xf32>
    %269 = arith.truncf %268 : vector<4x8xf32> to vector<4x8xbf16>
    %cst_279 = arith.constant dense<0.000000e+00> : vector<4x32xf32>
    %270 = tpu.matmul %269, %253, %cst_279 {dimension_numbers = #tpu.dot_dimension_numbers<[1], [0], [0], [1], [0, 0, 1, 1], [], []>} : vector<4x8xbf16>, vector<8x32xbf16>, vector<4x32xf32> -> vector<4x32xf32>
    %271 = arith.addf %266, %270 : vector<4x32xf32>
    %c0_280 = arith.constant 0 : index
    %c2_281 = arith.constant 2 : index
    %c1_282 = arith.constant 1 : index
    %c0_283 = arith.constant 0 : index
    %272 = vector.load %arg5[%c0_280, %c2_281, %c1_282, %c0_283] : memref<1x6x6x8xf32, #tpu.memory_space<vmem>>, vector<1x1x4x8xf32>
    %273 = vector.shape_cast %272 : vector<1x1x4x8xf32> to vector<4x8xf32>
    %274 = arith.truncf %273 : vector<4x8xf32> to vector<4x8xbf16>
    %cst_284 = arith.constant dense<0.000000e+00> : vector<4x32xf32>
    %275 = tpu.matmul %274, %255, %cst_284 {dimension_numbers = #tpu.dot_dimension_numbers<[1], [0], [0], [1], [0, 0, 1, 1], [], []>} : vector<4x8xbf16>, vector<8x32xbf16>, vector<4x32xf32> -> vector<4x32xf32>
    %276 = arith.addf %271, %275 : vector<4x32xf32>
    %277 = vector.broadcast %7 : vector<1x32xf32> to vector<4x32xf32>
    %278 = arith.addf %276, %277 : vector<4x32xf32>
    %cst_285 = arith.constant 0.000000e+00 : f32
    %279 = vector.broadcast %cst_285 : f32 to vector<4x32xf32>
    %280 = arith.maximumf %278, %279 : vector<4x32xf32>
    %c0_286 = arith.constant 0 : index
    %c0_287 = arith.constant 0 : index
    %c0_288 = arith.constant 0 : index
    %c64 = arith.constant 64 : index
    %281 = vector.load %arg4[%c0_286, %c0_287, %c0_288, %c64] : memref<1x4x4x128xf32, #tpu.memory_space<vmem>>, vector<1x1x4x32xf32>
    %282 = vector.shape_cast %281 : vector<1x1x4x32xf32> to vector<4x32xf32>
    %283 = vector.shape_cast %280 : vector<4x32xf32> to vector<1x1x4x32xf32>
    tpu.vector_store %arg4[%c0_286, %c0_287, %c0_288, %c64], %283 {strides = array<i32>} : memref<1x4x4x128xf32, #tpu.memory_space<vmem>>, vector<1x1x4x32xf32>,
    %cst_289 = arith.constant 0.000000e+00 : f32
    %284 = vector.broadcast %cst_289 : f32 to vector<4x32xf32>
    %c0_290 = arith.constant 0 : index
    %c2_291 = arith.constant 2 : index
    %c0_292 = arith.constant 0 : index
    %c0_293 = arith.constant 0 : index
    %285 = vector.load %arg5[%c0_290, %c2_291, %c0_292, %c0_293] : memref<1x6x6x8xf32, #tpu.memory_space<vmem>>, vector<1x1x4x8xf32>
    %286 = vector.shape_cast %285 : vector<1x1x4x8xf32> to vector<4x8xf32>
    %287 = arith.truncf %286 : vector<4x8xf32> to vector<4x8xbf16>
    %cst_294 = arith.constant dense<0.000000e+00> : vector<4x32xf32>
    %288 = tpu.matmul %287, %249, %cst_294 {dimension_numbers = #tpu.dot_dimension_numbers<[1], [0], [0], [1], [0, 0, 1, 1], [], []>} : vector<4x8xbf16>, vector<8x32xbf16>, vector<4x32xf32> -> vector<4x32xf32>
    %289 = arith.addf %284, %288 : vector<4x32xf32>
    %c0_295 = arith.constant 0 : index
    %c2_296 = arith.constant 2 : index
    %c1_297 = arith.constant 1 : index
    %c0_298 = arith.constant 0 : index
    %290 = vector.load %arg5[%c0_295, %c2_296, %c1_297, %c0_298] : memref<1x6x6x8xf32, #tpu.memory_space<vmem>>, vector<1x1x4x8xf32>
    %291 = vector.shape_cast %290 : vector<1x1x4x8xf32> to vector<4x8xf32>
    %292 = arith.truncf %291 : vector<4x8xf32> to vector<4x8xbf16>
    %cst_299 = arith.constant dense<0.000000e+00> : vector<4x32xf32>
    %293 = tpu.matmul %292, %251, %cst_299 {dimension_numbers = #tpu.dot_dimension_numbers<[1], [0], [0], [1], [0, 0, 1, 1], [], []>} : vector<4x8xbf16>, vector<8x32xbf16>, vector<4x32xf32> -> vector<4x32xf32>
    %294 = arith.addf %289, %293 : vector<4x32xf32>
    %c0_300 = arith.constant 0 : index
    %c3_301 = arith.constant 3 : index
    %c0_302 = arith.constant 0 : index
    %c0_303 = arith.constant 0 : index
    %295 = vector.load %arg5[%c0_300, %c3_301, %c0_302, %c0_303] : memref<1x6x6x8xf32, #tpu.memory_space<vmem>>, vector<1x1x4x8xf32>
    %296 = vector.shape_cast %295 : vector<1x1x4x8xf32> to vector<4x8xf32>
    %297 = arith.truncf %296 : vector<4x8xf32> to vector<4x8xbf16>
    %cst_304 = arith.constant dense<0.000000e+00> : vector<4x32xf32>
    %298 = tpu.matmul %297, %253, %cst_304 {dimension_numbers = #tpu.dot_dimension_numbers<[1], [0], [0], [1], [0, 0, 1, 1], [], []>} : vector<4x8xbf16>, vector<8x32xbf16>, vector<4x32xf32> -> vector<4x32xf32>
    %299 = arith.addf %294, %298 : vector<4x32xf32>
    %c0_305 = arith.constant 0 : index
    %c3_306 = arith.constant 3 : index
    %c1_307 = arith.constant 1 : index
    %c0_308 = arith.constant 0 : index
    %300 = vector.load %arg5[%c0_305, %c3_306, %c1_307, %c0_308] : memref<1x6x6x8xf32, #tpu.memory_space<vmem>>, vector<1x1x4x8xf32>
    %301 = vector.shape_cast %300 : vector<1x1x4x8xf32> to vector<4x8xf32>
    %302 = arith.truncf %301 : vector<4x8xf32> to vector<4x8xbf16>
    %cst_309 = arith.constant dense<0.000000e+00> : vector<4x32xf32>
    %303 = tpu.matmul %302, %255, %cst_309 {dimension_numbers = #tpu.dot_dimension_numbers<[1], [0], [0], [1], [0, 0, 1, 1], [], []>} : vector<4x8xbf16>, vector<8x32xbf16>, vector<4x32xf32> -> vector<4x32xf32>
    %304 = arith.addf %299, %303 : vector<4x32xf32>
    %305 = vector.broadcast %7 : vector<1x32xf32> to vector<4x32xf32>
    %306 = arith.addf %304, %305 : vector<4x32xf32>
    %cst_310 = arith.constant 0.000000e+00 : f32
    %307 = vector.broadcast %cst_310 : f32 to vector<4x32xf32>
    %308 = arith.maximumf %306, %307 : vector<4x32xf32>
    %c0_311 = arith.constant 0 : index
    %c1_312 = arith.constant 1 : index
    %c0_313 = arith.constant 0 : index
    %c64_314 = arith.constant 64 : index
    %309 = vector.load %arg4[%c0_311, %c1_312, %c0_313, %c64_314] : memref<1x4x4x128xf32, #tpu.memory_space<vmem>>, vector<1x1x4x32xf32>
    %310 = vector.shape_cast %309 : vector<1x1x4x32xf32> to vector<4x32xf32>
    %311 = vector.shape_cast %308 : vector<4x32xf32> to vector<1x1x4x32xf32>
    tpu.vector_store %arg4[%c0_311, %c1_312, %c0_313, %c64_314], %311 {strides = array<i32>} : memref<1x4x4x128xf32, #tpu.memory_space<vmem>>, vector<1x1x4x32xf32>,
    %cst_315 = arith.constant 0.000000e+00 : f32
    %312 = vector.broadcast %cst_315 : f32 to vector<4x32xf32>
    %c0_316 = arith.constant 0 : index
    %c3_317 = arith.constant 3 : index
    %c0_318 = arith.constant 0 : index
    %c0_319 = arith.constant 0 : index
    %313 = vector.load %arg5[%c0_316, %c3_317, %c0_318, %c0_319] : memref<1x6x6x8xf32, #tpu.memory_space<vmem>>, vector<1x1x4x8xf32>
    %314 = vector.shape_cast %313 : vector<1x1x4x8xf32> to vector<4x8xf32>
    %315 = arith.truncf %314 : vector<4x8xf32> to vector<4x8xbf16>
    %cst_320 = arith.constant dense<0.000000e+00> : vector<4x32xf32>
    %316 = tpu.matmul %315, %249, %cst_320 {dimension_numbers = #tpu.dot_dimension_numbers<[1], [0], [0], [1], [0, 0, 1, 1], [], []>} : vector<4x8xbf16>, vector<8x32xbf16>, vector<4x32xf32> -> vector<4x32xf32>
    %317 = arith.addf %312, %316 : vector<4x32xf32>
    %c0_321 = arith.constant 0 : index
    %c3_322 = arith.constant 3 : index
    %c1_323 = arith.constant 1 : index
    %c0_324 = arith.constant 0 : index
    %318 = vector.load %arg5[%c0_321, %c3_322, %c1_323, %c0_324] : memref<1x6x6x8xf32, #tpu.memory_space<vmem>>, vector<1x1x4x8xf32>
    %319 = vector.shape_cast %318 : vector<1x1x4x8xf32> to vector<4x8xf32>
    %320 = arith.truncf %319 : vector<4x8xf32> to vector<4x8xbf16>
    %cst_325 = arith.constant dense<0.000000e+00> : vector<4x32xf32>
    %321 = tpu.matmul %320, %251, %cst_325 {dimension_numbers = #tpu.dot_dimension_numbers<[1], [0], [0], [1], [0, 0, 1, 1], [], []>} : vector<4x8xbf16>, vector<8x32xbf16>, vector<4x32xf32> -> vector<4x32xf32>
    %322 = arith.addf %317, %321 : vector<4x32xf32>
    %c0_326 = arith.constant 0 : index
    %c4_327 = arith.constant 4 : index
    %c0_328 = arith.constant 0 : index
    %c0_329 = arith.constant 0 : index
    %323 = vector.load %arg5[%c0_326, %c4_327, %c0_328, %c0_329] : memref<1x6x6x8xf32, #tpu.memory_space<vmem>>, vector<1x1x4x8xf32>
    %324 = vector.shape_cast %323 : vector<1x1x4x8xf32> to vector<4x8xf32>
    %325 = arith.truncf %324 : vector<4x8xf32> to vector<4x8xbf16>
    %cst_330 = arith.constant dense<0.000000e+00> : vector<4x32xf32>
    %326 = tpu.matmul %325, %253, %cst_330 {dimension_numbers = #tpu.dot_dimension_numbers<[1], [0], [0], [1], [0, 0, 1, 1], [], []>} : vector<4x8xbf16>, vector<8x32xbf16>, vector<4x32xf32> -> vector<4x32xf32>
    %327 = arith.addf %322, %326 : vector<4x32xf32>
    %c0_331 = arith.constant 0 : index
    %c4_332 = arith.constant 4 : index
    %c1_333 = arith.constant 1 : index
    %c0_334 = arith.constant 0 : index
    %328 = vector.load %arg5[%c0_331, %c4_332, %c1_333, %c0_334] : memref<1x6x6x8xf32, #tpu.memory_space<vmem>>, vector<1x1x4x8xf32>
    %329 = vector.shape_cast %328 : vector<1x1x4x8xf32> to vector<4x8xf32>
    %330 = arith.truncf %329 : vector<4x8xf32> to vector<4x8xbf16>
    %cst_335 = arith.constant dense<0.000000e+00> : vector<4x32xf32>
    %331 = tpu.matmul %330, %255, %cst_335 {dimension_numbers = #tpu.dot_dimension_numbers<[1], [0], [0], [1], [0, 0, 1, 1], [], []>} : vector<4x8xbf16>, vector<8x32xbf16>, vector<4x32xf32> -> vector<4x32xf32>
    %332 = arith.addf %327, %331 : vector<4x32xf32>
    %333 = vector.broadcast %7 : vector<1x32xf32> to vector<4x32xf32>
    %334 = arith.addf %332, %333 : vector<4x32xf32>
    %cst_336 = arith.constant 0.000000e+00 : f32
    %335 = vector.broadcast %cst_336 : f32 to vector<4x32xf32>
    %336 = arith.maximumf %334, %335 : vector<4x32xf32>
    %c0_337 = arith.constant 0 : index
    %c2_338 = arith.constant 2 : index
    %c0_339 = arith.constant 0 : index
    %c64_340 = arith.constant 64 : index
    %337 = vector.load %arg4[%c0_337, %c2_338, %c0_339, %c64_340] : memref<1x4x4x128xf32, #tpu.memory_space<vmem>>, vector<1x1x4x32xf32>
    %338 = vector.shape_cast %337 : vector<1x1x4x32xf32> to vector<4x32xf32>
    %339 = vector.shape_cast %336 : vector<4x32xf32> to vector<1x1x4x32xf32>
    tpu.vector_store %arg4[%c0_337, %c2_338, %c0_339, %c64_340], %339 {strides = array<i32>} : memref<1x4x4x128xf32, #tpu.memory_space<vmem>>, vector<1x1x4x32xf32>,
    %cst_341 = arith.constant 0.000000e+00 : f32
    %340 = vector.broadcast %cst_341 : f32 to vector<4x32xf32>
    %c0_342 = arith.constant 0 : index
    %c4_343 = arith.constant 4 : index
    %c0_344 = arith.constant 0 : index
    %c0_345 = arith.constant 0 : index
    %341 = vector.load %arg5[%c0_342, %c4_343, %c0_344, %c0_345] : memref<1x6x6x8xf32, #tpu.memory_space<vmem>>, vector<1x1x4x8xf32>
    %342 = vector.shape_cast %341 : vector<1x1x4x8xf32> to vector<4x8xf32>
    %343 = arith.truncf %342 : vector<4x8xf32> to vector<4x8xbf16>
    %cst_346 = arith.constant dense<0.000000e+00> : vector<4x32xf32>
    %344 = tpu.matmul %343, %249, %cst_346 {dimension_numbers = #tpu.dot_dimension_numbers<[1], [0], [0], [1], [0, 0, 1, 1], [], []>} : vector<4x8xbf16>, vector<8x32xbf16>, vector<4x32xf32> -> vector<4x32xf32>
    %345 = arith.addf %340, %344 : vector<4x32xf32>
    %c0_347 = arith.constant 0 : index
    %c4_348 = arith.constant 4 : index
    %c1_349 = arith.constant 1 : index
    %c0_350 = arith.constant 0 : index
    %346 = vector.load %arg5[%c0_347, %c4_348, %c1_349, %c0_350] : memref<1x6x6x8xf32, #tpu.memory_space<vmem>>, vector<1x1x4x8xf32>
    %347 = vector.shape_cast %346 : vector<1x1x4x8xf32> to vector<4x8xf32>
    %348 = arith.truncf %347 : vector<4x8xf32> to vector<4x8xbf16>
    %cst_351 = arith.constant dense<0.000000e+00> : vector<4x32xf32>
    %349 = tpu.matmul %348, %251, %cst_351 {dimension_numbers = #tpu.dot_dimension_numbers<[1], [0], [0], [1], [0, 0, 1, 1], [], []>} : vector<4x8xbf16>, vector<8x32xbf16>, vector<4x32xf32> -> vector<4x32xf32>
    %350 = arith.addf %345, %349 : vector<4x32xf32>
    %c0_352 = arith.constant 0 : index
    %c5 = arith.constant 5 : index
    %c0_353 = arith.constant 0 : index
    %c0_354 = arith.constant 0 : index
    %351 = vector.load %arg5[%c0_352, %c5, %c0_353, %c0_354] : memref<1x6x6x8xf32, #tpu.memory_space<vmem>>, vector<1x1x4x8xf32>
    %352 = vector.shape_cast %351 : vector<1x1x4x8xf32> to vector<4x8xf32>
    %353 = arith.truncf %352 : vector<4x8xf32> to vector<4x8xbf16>
    %cst_355 = arith.constant dense<0.000000e+00> : vector<4x32xf32>
    %354 = tpu.matmul %353, %253, %cst_355 {dimension_numbers = #tpu.dot_dimension_numbers<[1], [0], [0], [1], [0, 0, 1, 1], [], []>} : vector<4x8xbf16>, vector<8x32xbf16>, vector<4x32xf32> -> vector<4x32xf32>
    %355 = arith.addf %350, %354 : vector<4x32xf32>
    %c0_356 = arith.constant 0 : index
    %c5_357 = arith.constant 5 : index
    %c1_358 = arith.constant 1 : index
    %c0_359 = arith.constant 0 : index
    %356 = vector.load %arg5[%c0_356, %c5_357, %c1_358, %c0_359] : memref<1x6x6x8xf32, #tpu.memory_space<vmem>>, vector<1x1x4x8xf32>
    %357 = vector.shape_cast %356 : vector<1x1x4x8xf32> to vector<4x8xf32>
    %358 = arith.truncf %357 : vector<4x8xf32> to vector<4x8xbf16>
    %cst_360 = arith.constant dense<0.000000e+00> : vector<4x32xf32>
    %359 = tpu.matmul %358, %255, %cst_360 {dimension_numbers = #tpu.dot_dimension_numbers<[1], [0], [0], [1], [0, 0, 1, 1], [], []>} : vector<4x8xbf16>, vector<8x32xbf16>, vector<4x32xf32> -> vector<4x32xf32>
    %360 = arith.addf %355, %359 : vector<4x32xf32>
    %361 = vector.broadcast %7 : vector<1x32xf32> to vector<4x32xf32>
    %362 = arith.addf %360, %361 : vector<4x32xf32>
    %cst_361 = arith.constant 0.000000e+00 : f32
    %363 = vector.broadcast %cst_361 : f32 to vector<4x32xf32>
    %364 = arith.maximumf %362, %363 : vector<4x32xf32>
    %c0_362 = arith.constant 0 : index
    %c3_363 = arith.constant 3 : index
    %c0_364 = arith.constant 0 : index
    %c64_365 = arith.constant 64 : index
    %365 = vector.load %arg4[%c0_362, %c3_363, %c0_364, %c64_365] : memref<1x4x4x128xf32, #tpu.memory_space<vmem>>, vector<1x1x4x32xf32>
    %366 = vector.shape_cast %365 : vector<1x1x4x32xf32> to vector<4x32xf32>
    %367 = vector.shape_cast %364 : vector<4x32xf32> to vector<1x1x4x32xf32>
    tpu.vector_store %arg4[%c0_362, %c3_363, %c0_364, %c64_365], %367 {strides = array<i32>} : memref<1x4x4x128xf32, #tpu.memory_space<vmem>>, vector<1x1x4x32xf32>,
    %c3_366 = arith.constant 3 : index
    %c0_367 = arith.constant 0 : index
    %c0_368 = arith.constant 0 : index
    %c0_369 = arith.constant 0 : index
    %368 = vector.load %arg2[%c3_366, %c0_367, %c0_368, %c0_369] : memref<4x4x8x32xbf16, #tpu.memory_space<vmem>>, vector<1x1x8x32xbf16>
    %369 = vector.shape_cast %368 : vector<1x1x8x32xbf16> to vector<8x32xbf16>
    %c3_370 = arith.constant 3 : index
    %c1_371 = arith.constant 1 : index
    %c0_372 = arith.constant 0 : index
    %c0_373 = arith.constant 0 : index
    %370 = vector.load %arg2[%c3_370, %c1_371, %c0_372, %c0_373] : memref<4x4x8x32xbf16, #tpu.memory_space<vmem>>, vector<1x1x8x32xbf16>
    %371 = vector.shape_cast %370 : vector<1x1x8x32xbf16> to vector<8x32xbf16>
    %c3_374 = arith.constant 3 : index
    %c2_375 = arith.constant 2 : index
    %c0_376 = arith.constant 0 : index
    %c0_377 = arith.constant 0 : index
    %372 = vector.load %arg2[%c3_374, %c2_375, %c0_376, %c0_377] : memref<4x4x8x32xbf16, #tpu.memory_space<vmem>>, vector<1x1x8x32xbf16>
    %373 = vector.shape_cast %372 : vector<1x1x8x32xbf16> to vector<8x32xbf16>
    %c3_378 = arith.constant 3 : index
    %c3_379 = arith.constant 3 : index
    %c0_380 = arith.constant 0 : index
    %c0_381 = arith.constant 0 : index
    %374 = vector.load %arg2[%c3_378, %c3_379, %c0_380, %c0_381] : memref<4x4x8x32xbf16, #tpu.memory_space<vmem>>, vector<1x1x8x32xbf16>
    %375 = vector.shape_cast %374 : vector<1x1x8x32xbf16> to vector<8x32xbf16>
    %cst_382 = arith.constant 0.000000e+00 : f32
    %376 = vector.broadcast %cst_382 : f32 to vector<4x32xf32>
    %c0_383 = arith.constant 0 : index
    %c1_384 = arith.constant 1 : index
    %c1_385 = arith.constant 1 : index
    %c0_386 = arith.constant 0 : index
    %377 = vector.load %arg5[%c0_383, %c1_384, %c1_385, %c0_386] : memref<1x6x6x8xf32, #tpu.memory_space<vmem>>, vector<1x1x4x8xf32>
    %378 = vector.shape_cast %377 : vector<1x1x4x8xf32> to vector<4x8xf32>
    %379 = arith.truncf %378 : vector<4x8xf32> to vector<4x8xbf16>
    %cst_387 = arith.constant dense<0.000000e+00> : vector<4x32xf32>
    %380 = tpu.matmul %379, %369, %cst_387 {dimension_numbers = #tpu.dot_dimension_numbers<[1], [0], [0], [1], [0, 0, 1, 1], [], []>} : vector<4x8xbf16>, vector<8x32xbf16>, vector<4x32xf32> -> vector<4x32xf32>
    %381 = arith.addf %376, %380 : vector<4x32xf32>
    %c0_388 = arith.constant 0 : index
    %c1_389 = arith.constant 1 : index
    %c2_390 = arith.constant 2 : index
    %c0_391 = arith.constant 0 : index
    %382 = vector.load %arg5[%c0_388, %c1_389, %c2_390, %c0_391] : memref<1x6x6x8xf32, #tpu.memory_space<vmem>>, vector<1x1x4x8xf32>
    %383 = vector.shape_cast %382 : vector<1x1x4x8xf32> to vector<4x8xf32>
    %384 = arith.truncf %383 : vector<4x8xf32> to vector<4x8xbf16>
    %cst_392 = arith.constant dense<0.000000e+00> : vector<4x32xf32>
    %385 = tpu.matmul %384, %371, %cst_392 {dimension_numbers = #tpu.dot_dimension_numbers<[1], [0], [0], [1], [0, 0, 1, 1], [], []>} : vector<4x8xbf16>, vector<8x32xbf16>, vector<4x32xf32> -> vector<4x32xf32>
    %386 = arith.addf %381, %385 : vector<4x32xf32>
    %c0_393 = arith.constant 0 : index
    %c2_394 = arith.constant 2 : index
    %c1_395 = arith.constant 1 : index
    %c0_396 = arith.constant 0 : index
    %387 = vector.load %arg5[%c0_393, %c2_394, %c1_395, %c0_396] : memref<1x6x6x8xf32, #tpu.memory_space<vmem>>, vector<1x1x4x8xf32>
    %388 = vector.shape_cast %387 : vector<1x1x4x8xf32> to vector<4x8xf32>
    %389 = arith.truncf %388 : vector<4x8xf32> to vector<4x8xbf16>
    %cst_397 = arith.constant dense<0.000000e+00> : vector<4x32xf32>
    %390 = tpu.matmul %389, %373, %cst_397 {dimension_numbers = #tpu.dot_dimension_numbers<[1], [0], [0], [1], [0, 0, 1, 1], [], []>} : vector<4x8xbf16>, vector<8x32xbf16>, vector<4x32xf32> -> vector<4x32xf32>
    %391 = arith.addf %386, %390 : vector<4x32xf32>
    %c0_398 = arith.constant 0 : index
    %c2_399 = arith.constant 2 : index
    %c2_400 = arith.constant 2 : index
    %c0_401 = arith.constant 0 : index
    %392 = vector.load %arg5[%c0_398, %c2_399, %c2_400, %c0_401] : memref<1x6x6x8xf32, #tpu.memory_space<vmem>>, vector<1x1x4x8xf32>
    %393 = vector.shape_cast %392 : vector<1x1x4x8xf32> to vector<4x8xf32>
    %394 = arith.truncf %393 : vector<4x8xf32> to vector<4x8xbf16>
    %cst_402 = arith.constant dense<0.000000e+00> : vector<4x32xf32>
    %395 = tpu.matmul %394, %375, %cst_402 {dimension_numbers = #tpu.dot_dimension_numbers<[1], [0], [0], [1], [0, 0, 1, 1], [], []>} : vector<4x8xbf16>, vector<8x32xbf16>, vector<4x32xf32> -> vector<4x32xf32>
    %396 = arith.addf %391, %395 : vector<4x32xf32>
    %397 = vector.broadcast %7 : vector<1x32xf32> to vector<4x32xf32>
    %398 = arith.addf %396, %397 : vector<4x32xf32>
    %cst_403 = arith.constant 0.000000e+00 : f32
    %399 = vector.broadcast %cst_403 : f32 to vector<4x32xf32>
    %400 = arith.maximumf %398, %399 : vector<4x32xf32>
    %c0_404 = arith.constant 0 : index
    %c0_405 = arith.constant 0 : index
    %c0_406 = arith.constant 0 : index
    %c96 = arith.constant 96 : index
    %401 = vector.load %arg4[%c0_404, %c0_405, %c0_406, %c96] : memref<1x4x4x128xf32, #tpu.memory_space<vmem>>, vector<1x1x4x32xf32>
    %402 = vector.shape_cast %401 : vector<1x1x4x32xf32> to vector<4x32xf32>
    %403 = vector.shape_cast %400 : vector<4x32xf32> to vector<1x1x4x32xf32>
    tpu.vector_store %arg4[%c0_404, %c0_405, %c0_406, %c96], %403 {strides = array<i32>} : memref<1x4x4x128xf32, #tpu.memory_space<vmem>>, vector<1x1x4x32xf32>,
    %cst_407 = arith.constant 0.000000e+00 : f32
    %404 = vector.broadcast %cst_407 : f32 to vector<4x32xf32>
    %c0_408 = arith.constant 0 : index
    %c2_409 = arith.constant 2 : index
    %c1_410 = arith.constant 1 : index
    %c0_411 = arith.constant 0 : index
    %405 = vector.load %arg5[%c0_408, %c2_409, %c1_410, %c0_411] : memref<1x6x6x8xf32, #tpu.memory_space<vmem>>, vector<1x1x4x8xf32>
    %406 = vector.shape_cast %405 : vector<1x1x4x8xf32> to vector<4x8xf32>
    %407 = arith.truncf %406 : vector<4x8xf32> to vector<4x8xbf16>
    %cst_412 = arith.constant dense<0.000000e+00> : vector<4x32xf32>
    %408 = tpu.matmul %407, %369, %cst_412 {dimension_numbers = #tpu.dot_dimension_numbers<[1], [0], [0], [1], [0, 0, 1, 1], [], []>} : vector<4x8xbf16>, vector<8x32xbf16>, vector<4x32xf32> -> vector<4x32xf32>
    %409 = arith.addf %404, %408 : vector<4x32xf32>
    %c0_413 = arith.constant 0 : index
    %c2_414 = arith.constant 2 : index
    %c2_415 = arith.constant 2 : index
    %c0_416 = arith.constant 0 : index
    %410 = vector.load %arg5[%c0_413, %c2_414, %c2_415, %c0_416] : memref<1x6x6x8xf32, #tpu.memory_space<vmem>>, vector<1x1x4x8xf32>
    %411 = vector.shape_cast %410 : vector<1x1x4x8xf32> to vector<4x8xf32>
    %412 = arith.truncf %411 : vector<4x8xf32> to vector<4x8xbf16>
    %cst_417 = arith.constant dense<0.000000e+00> : vector<4x32xf32>
    %413 = tpu.matmul %412, %371, %cst_417 {dimension_numbers = #tpu.dot_dimension_numbers<[1], [0], [0], [1], [0, 0, 1, 1], [], []>} : vector<4x8xbf16>, vector<8x32xbf16>, vector<4x32xf32> -> vector<4x32xf32>
    %414 = arith.addf %409, %413 : vector<4x32xf32>
    %c0_418 = arith.constant 0 : index
    %c3_419 = arith.constant 3 : index
    %c1_420 = arith.constant 1 : index
    %c0_421 = arith.constant 0 : index
    %415 = vector.load %arg5[%c0_418, %c3_419, %c1_420, %c0_421] : memref<1x6x6x8xf32, #tpu.memory_space<vmem>>, vector<1x1x4x8xf32>
    %416 = vector.shape_cast %415 : vector<1x1x4x8xf32> to vector<4x8xf32>
    %417 = arith.truncf %416 : vector<4x8xf32> to vector<4x8xbf16>
    %cst_422 = arith.constant dense<0.000000e+00> : vector<4x32xf32>
    %418 = tpu.matmul %417, %373, %cst_422 {dimension_numbers = #tpu.dot_dimension_numbers<[1], [0], [0], [1], [0, 0, 1, 1], [], []>} : vector<4x8xbf16>, vector<8x32xbf16>, vector<4x32xf32> -> vector<4x32xf32>
    %419 = arith.addf %414, %418 : vector<4x32xf32>
    %c0_423 = arith.constant 0 : index
    %c3_424 = arith.constant 3 : index
    %c2_425 = arith.constant 2 : index
    %c0_426 = arith.constant 0 : index
    %420 = vector.load %arg5[%c0_423, %c3_424, %c2_425, %c0_426] : memref<1x6x6x8xf32, #tpu.memory_space<vmem>>, vector<1x1x4x8xf32>
    %421 = vector.shape_cast %420 : vector<1x1x4x8xf32> to vector<4x8xf32>
    %422 = arith.truncf %421 : vector<4x8xf32> to vector<4x8xbf16>
    %cst_427 = arith.constant dense<0.000000e+00> : vector<4x32xf32>
    %423 = tpu.matmul %422, %375, %cst_427 {dimension_numbers = #tpu.dot_dimension_numbers<[1], [0], [0], [1], [0, 0, 1, 1], [], []>} : vector<4x8xbf16>, vector<8x32xbf16>, vector<4x32xf32> -> vector<4x32xf32>
    %424 = arith.addf %419, %423 : vector<4x32xf32>
    %425 = vector.broadcast %7 : vector<1x32xf32> to vector<4x32xf32>
    %426 = arith.addf %424, %425 : vector<4x32xf32>
    %cst_428 = arith.constant 0.000000e+00 : f32
    %427 = vector.broadcast %cst_428 : f32 to vector<4x32xf32>
    %428 = arith.maximumf %426, %427 : vector<4x32xf32>
    %c0_429 = arith.constant 0 : index
    %c1_430 = arith.constant 1 : index
    %c0_431 = arith.constant 0 : index
    %c96_432 = arith.constant 96 : index
    %429 = vector.load %arg4[%c0_429, %c1_430, %c0_431, %c96_432] : memref<1x4x4x128xf32, #tpu.memory_space<vmem>>, vector<1x1x4x32xf32>
    %430 = vector.shape_cast %429 : vector<1x1x4x32xf32> to vector<4x32xf32>
    %431 = vector.shape_cast %428 : vector<4x32xf32> to vector<1x1x4x32xf32>
    tpu.vector_store %arg4[%c0_429, %c1_430, %c0_431, %c96_432], %431 {strides = array<i32>} : memref<1x4x4x128xf32, #tpu.memory_space<vmem>>, vector<1x1x4x32xf32>,
    %cst_433 = arith.constant 0.000000e+00 : f32
    %432 = vector.broadcast %cst_433 : f32 to vector<4x32xf32>
    %c0_434 = arith.constant 0 : index
    %c3_435 = arith.constant 3 : index
    %c1_436 = arith.constant 1 : index
    %c0_437 = arith.constant 0 : index
    %433 = vector.load %arg5[%c0_434, %c3_435, %c1_436, %c0_437] : memref<1x6x6x8xf32, #tpu.memory_space<vmem>>, vector<1x1x4x8xf32>
    %434 = vector.shape_cast %433 : vector<1x1x4x8xf32> to vector<4x8xf32>
    %435 = arith.truncf %434 : vector<4x8xf32> to vector<4x8xbf16>
    %cst_438 = arith.constant dense<0.000000e+00> : vector<4x32xf32>
    %436 = tpu.matmul %435, %369, %cst_438 {dimension_numbers = #tpu.dot_dimension_numbers<[1], [0], [0], [1], [0, 0, 1, 1], [], []>} : vector<4x8xbf16>, vector<8x32xbf16>, vector<4x32xf32> -> vector<4x32xf32>
    %437 = arith.addf %432, %436 : vector<4x32xf32>
    %c0_439 = arith.constant 0 : index
    %c3_440 = arith.constant 3 : index
    %c2_441 = arith.constant 2 : index
    %c0_442 = arith.constant 0 : index
    %438 = vector.load %arg5[%c0_439, %c3_440, %c2_441, %c0_442] : memref<1x6x6x8xf32, #tpu.memory_space<vmem>>, vector<1x1x4x8xf32>
    %439 = vector.shape_cast %438 : vector<1x1x4x8xf32> to vector<4x8xf32>
    %440 = arith.truncf %439 : vector<4x8xf32> to vector<4x8xbf16>
    %cst_443 = arith.constant dense<0.000000e+00> : vector<4x32xf32>
    %441 = tpu.matmul %440, %371, %cst_443 {dimension_numbers = #tpu.dot_dimension_numbers<[1], [0], [0], [1], [0, 0, 1, 1], [], []>} : vector<4x8xbf16>, vector<8x32xbf16>, vector<4x32xf32> -> vector<4x32xf32>
    %442 = arith.addf %437, %441 : vector<4x32xf32>
    %c0_444 = arith.constant 0 : index
    %c4_445 = arith.constant 4 : index
    %c1_446 = arith.constant 1 : index
    %c0_447 = arith.constant 0 : index
    %443 = vector.load %arg5[%c0_444, %c4_445, %c1_446, %c0_447] : memref<1x6x6x8xf32, #tpu.memory_space<vmem>>, vector<1x1x4x8xf32>
    %444 = vector.shape_cast %443 : vector<1x1x4x8xf32> to vector<4x8xf32>
    %445 = arith.truncf %444 : vector<4x8xf32> to vector<4x8xbf16>
    %cst_448 = arith.constant dense<0.000000e+00> : vector<4x32xf32>
    %446 = tpu.matmul %445, %373, %cst_448 {dimension_numbers = #tpu.dot_dimension_numbers<[1], [0], [0], [1], [0, 0, 1, 1], [], []>} : vector<4x8xbf16>, vector<8x32xbf16>, vector<4x32xf32> -> vector<4x32xf32>
    %447 = arith.addf %442, %446 : vector<4x32xf32>
    %c0_449 = arith.constant 0 : index
    %c4_450 = arith.constant 4 : index
    %c2_451 = arith.constant 2 : index
    %c0_452 = arith.constant 0 : index
    %448 = vector.load %arg5[%c0_449, %c4_450, %c2_451, %c0_452] : memref<1x6x6x8xf32, #tpu.memory_space<vmem>>, vector<1x1x4x8xf32>
    %449 = vector.shape_cast %448 : vector<1x1x4x8xf32> to vector<4x8xf32>
    %450 = arith.truncf %449 : vector<4x8xf32> to vector<4x8xbf16>
    %cst_453 = arith.constant dense<0.000000e+00> : vector<4x32xf32>
    %451 = tpu.matmul %450, %375, %cst_453 {dimension_numbers = #tpu.dot_dimension_numbers<[1], [0], [0], [1], [0, 0, 1, 1], [], []>} : vector<4x8xbf16>, vector<8x32xbf16>, vector<4x32xf32> -> vector<4x32xf32>
    %452 = arith.addf %447, %451 : vector<4x32xf32>
    %453 = vector.broadcast %7 : vector<1x32xf32> to vector<4x32xf32>
    %454 = arith.addf %452, %453 : vector<4x32xf32>
    %cst_454 = arith.constant 0.000000e+00 : f32
    %455 = vector.broadcast %cst_454 : f32 to vector<4x32xf32>
    %456 = arith.maximumf %454, %455 : vector<4x32xf32>
    %c0_455 = arith.constant 0 : index
    %c2_456 = arith.constant 2 : index
    %c0_457 = arith.constant 0 : index
    %c96_458 = arith.constant 96 : index
    %457 = vector.load %arg4[%c0_455, %c2_456, %c0_457, %c96_458] : memref<1x4x4x128xf32, #tpu.memory_space<vmem>>, vector<1x1x4x32xf32>
    %458 = vector.shape_cast %457 : vector<1x1x4x32xf32> to vector<4x32xf32>
    %459 = vector.shape_cast %456 : vector<4x32xf32> to vector<1x1x4x32xf32>
    tpu.vector_store %arg4[%c0_455, %c2_456, %c0_457, %c96_458], %459 {strides = array<i32>} : memref<1x4x4x128xf32, #tpu.memory_space<vmem>>, vector<1x1x4x32xf32>,
    %cst_459 = arith.constant 0.000000e+00 : f32
    %460 = vector.broadcast %cst_459 : f32 to vector<4x32xf32>
    %c0_460 = arith.constant 0 : index
    %c4_461 = arith.constant 4 : index
    %c1_462 = arith.constant 1 : index
    %c0_463 = arith.constant 0 : index
    %461 = vector.load %arg5[%c0_460, %c4_461, %c1_462, %c0_463] : memref<1x6x6x8xf32, #tpu.memory_space<vmem>>, vector<1x1x4x8xf32>
    %462 = vector.shape_cast %461 : vector<1x1x4x8xf32> to vector<4x8xf32>
    %463 = arith.truncf %462 : vector<4x8xf32> to vector<4x8xbf16>
    %cst_464 = arith.constant dense<0.000000e+00> : vector<4x32xf32>
    %464 = tpu.matmul %463, %369, %cst_464 {dimension_numbers = #tpu.dot_dimension_numbers<[1], [0], [0], [1], [0, 0, 1, 1], [], []>} : vector<4x8xbf16>, vector<8x32xbf16>, vector<4x32xf32> -> vector<4x32xf32>
    %465 = arith.addf %460, %464 : vector<4x32xf32>
    %c0_465 = arith.constant 0 : index
    %c4_466 = arith.constant 4 : index
    %c2_467 = arith.constant 2 : index
    %c0_468 = arith.constant 0 : index
    %466 = vector.load %arg5[%c0_465, %c4_466, %c2_467, %c0_468] : memref<1x6x6x8xf32, #tpu.memory_space<vmem>>, vector<1x1x4x8xf32>
    %467 = vector.shape_cast %466 : vector<1x1x4x8xf32> to vector<4x8xf32>
    %468 = arith.truncf %467 : vector<4x8xf32> to vector<4x8xbf16>
    %cst_469 = arith.constant dense<0.000000e+00> : vector<4x32xf32>
    %469 = tpu.matmul %468, %371, %cst_469 {dimension_numbers = #tpu.dot_dimension_numbers<[1], [0], [0], [1], [0, 0, 1, 1], [], []>} : vector<4x8xbf16>, vector<8x32xbf16>, vector<4x32xf32> -> vector<4x32xf32>
    %470 = arith.addf %465, %469 : vector<4x32xf32>
    %c0_470 = arith.constant 0 : index
    %c5_471 = arith.constant 5 : index
    %c1_472 = arith.constant 1 : index
    %c0_473 = arith.constant 0 : index
    %471 = vector.load %arg5[%c0_470, %c5_471, %c1_472, %c0_473] : memref<1x6x6x8xf32, #tpu.memory_space<vmem>>, vector<1x1x4x8xf32>
    %472 = vector.shape_cast %471 : vector<1x1x4x8xf32> to vector<4x8xf32>
    %473 = arith.truncf %472 : vector<4x8xf32> to vector<4x8xbf16>
    %cst_474 = arith.constant dense<0.000000e+00> : vector<4x32xf32>
    %474 = tpu.matmul %473, %373, %cst_474 {dimension_numbers = #tpu.dot_dimension_numbers<[1], [0], [0], [1], [0, 0, 1, 1], [], []>} : vector<4x8xbf16>, vector<8x32xbf16>, vector<4x32xf32> -> vector<4x32xf32>
    %475 = arith.addf %470, %474 : vector<4x32xf32>
    %c0_475 = arith.constant 0 : index
    %c5_476 = arith.constant 5 : index
    %c2_477 = arith.constant 2 : index
    %c0_478 = arith.constant 0 : index
    %476 = vector.load %arg5[%c0_475, %c5_476, %c2_477, %c0_478] : memref<1x6x6x8xf32, #tpu.memory_space<vmem>>, vector<1x1x4x8xf32>
    %477 = vector.shape_cast %476 : vector<1x1x4x8xf32> to vector<4x8xf32>
    %478 = arith.truncf %477 : vector<4x8xf32> to vector<4x8xbf16>
    %cst_479 = arith.constant dense<0.000000e+00> : vector<4x32xf32>
    %479 = tpu.matmul %478, %375, %cst_479 {dimension_numbers = #tpu.dot_dimension_numbers<[1], [0], [0], [1], [0, 0, 1, 1], [], []>} : vector<4x8xbf16>, vector<8x32xbf16>, vector<4x32xf32> -> vector<4x32xf32>
    %480 = arith.addf %475, %479 : vector<4x32xf32>
    %481 = vector.broadcast %7 : vector<1x32xf32> to vector<4x32xf32>
    %482 = arith.addf %480, %481 : vector<4x32xf32>
    %cst_480 = arith.constant 0.000000e+00 : f32
    %483 = vector.broadcast %cst_480 : f32 to vector<4x32xf32>
    %484 = arith.maximumf %482, %483 : vector<4x32xf32>
    %c0_481 = arith.constant 0 : index
    %c3_482 = arith.constant 3 : index
    %c0_483 = arith.constant 0 : index
    %c96_484 = arith.constant 96 : index
    %485 = vector.load %arg4[%c0_481, %c3_482, %c0_483, %c96_484] : memref<1x4x4x128xf32, #tpu.memory_space<vmem>>, vector<1x1x4x32xf32>
    %486 = vector.shape_cast %485 : vector<1x1x4x32xf32> to vector<4x32xf32>
    %487 = vector.shape_cast %484 : vector<4x32xf32> to vector<1x1x4x32xf32>
    tpu.vector_store %arg4[%c0_481, %c3_482, %c0_483, %c96_484], %487 {strides = array<i32>} : memref<1x4x4x128xf32, #tpu.memory_space<vmem>>, vector<1x1x4x32xf32>,
    return
  }
  func.func @transform_0(%arg0: i32) -> (i32, i32, i32, i32) {
    %c0_i32 = arith.constant 0 : i32
    %c0_i32_0 = arith.constant 0 : i32
    %c0_i32_1 = arith.constant 0 : i32
    %c0_i32_2 = arith.constant 0 : i32
    return %arg0, %c0_i32, %c0_i32_0, %c0_i32_1 : i32, i32, i32, i32
  }
  func.func @transform_1(%arg0: i32) -> (i32, i32, i32, i32) {
    %c0_i32 = arith.constant 0 : i32
    %c0_i32_0 = arith.constant 0 : i32
    %c0_i32_1 = arith.constant 0 : i32
    %c0_i32_2 = arith.constant 0 : i32
    %c0_i32_3 = arith.constant 0 : i32
    return %c0_i32, %c0_i32_0, %c0_i32_1, %c0_i32_2 : i32, i32, i32, i32
  }
  func.func @transform_2(%arg0: i32) -> (i32, i32) {
    %c0_i32 = arith.constant 0 : i32
    %c0_i32_0 = arith.constant 0 : i32
    %c0_i32_1 = arith.constant 0 : i32
    return %c0_i32, %c0_i32_0 : i32, i32
  }
  func.func @transform_3(%arg0: i32) -> (i32, i32, i32, i32) {
    %c0_i32 = arith.constant 0 : i32
    %c0_i32_0 = arith.constant 0 : i32
    %c0_i32_1 = arith.constant 0 : i32
    %c0_i32_2 = arith.constant 0 : i32
    return %arg0, %c0_i32, %c0_i32_0, %c0_i32_1 : i32, i32, i32, i32
  }
}

module attributes {stable_mosaic.version = 11 : i64} {
  func.func @_deconv_kernel(%arg0: i32, %arg1: memref<1x8x8x4xf32, #tpu.memory_space<vmem>>, %arg2: memref<4x4x4x32xbf16, #tpu.memory_space<vmem>>, %arg3: memref<1x32xf32, #tpu.memory_space<vmem>>, %arg4: memref<1x8x8x128xf32, #tpu.memory_space<vmem>>, %arg5: memref<1x10x10x4xf32, #tpu.memory_space<vmem>>) attributes {dimension_semantics = [#tpu.dimension_semantics<parallel>], iteration_bounds = array<i64: 2>, scalar_prefetch = 0 : i64, scratch_operands = 1 : i64, tpu.core_type = #tpu.core_type<tc>, window_params = [{transform_indices = @transform_0, window_bounds = array<i64: 1, 8, 8, 4>}, {pipeline_mode = #tpu.pipeline_mode<synchronous>, transform_indices = @transform_1, window_bounds = array<i64: 4, 4, 4, 32>}, {pipeline_mode = #tpu.pipeline_mode<synchronous>, transform_indices = @transform_2, window_bounds = array<i64: 1, 32>}, {transform_indices = @transform_3, window_bounds = array<i64: 1, 8, 8, 128>}]} {
    %cst = arith.constant 0.000000e+00 : f32
    %0 = vector.broadcast %cst : f32 to vector<1x10x10x4xf32>
    %c0 = arith.constant 0 : index
    %c0_0 = arith.constant 0 : index
    %c0_1 = arith.constant 0 : index
    %c0_2 = arith.constant 0 : index
    %1 = vector.load %arg5[%c0, %c0_0, %c0_1, %c0_2] : memref<1x10x10x4xf32, #tpu.memory_space<vmem>>, vector<1x10x10x4xf32>
    tpu.vector_store %arg5[%c0, %c0_0, %c0_1, %c0_2], %0 {strides = array<i32>} : memref<1x10x10x4xf32, #tpu.memory_space<vmem>>, vector<1x10x10x4xf32>,
    %c0_3 = arith.constant 0 : index
    %c0_4 = arith.constant 0 : index
    %c0_5 = arith.constant 0 : index
    %c0_6 = arith.constant 0 : index
    %2 = vector.load %arg1[%c0_3, %c0_4, %c0_5, %c0_6] : memref<1x8x8x4xf32, #tpu.memory_space<vmem>>, vector<1x8x8x4xf32>
    %3 = vector.shape_cast %2 : vector<1x8x8x4xf32> to vector<8x8x4xf32>
    %c0_7 = arith.constant 0 : index
    %c1 = arith.constant 1 : index
    %c1_8 = arith.constant 1 : index
    %c0_9 = arith.constant 0 : index
    %4 = vector.load %arg5[%c0_7, %c1, %c1_8, %c0_9] : memref<1x10x10x4xf32, #tpu.memory_space<vmem>>, vector<1x8x8x4xf32>
    %5 = vector.shape_cast %4 : vector<1x8x8x4xf32> to vector<8x8x4xf32>
    %6 = vector.shape_cast %3 : vector<8x8x4xf32> to vector<1x8x8x4xf32>
    tpu.vector_store %arg5[%c0_7, %c1, %c1_8, %c0_9], %6 {strides = array<i32>} : memref<1x10x10x4xf32, #tpu.memory_space<vmem>>, vector<1x8x8x4xf32>,
    %c0_10 = arith.constant 0 : index
    %c0_11 = arith.constant 0 : index
    %7 = vector.load %arg3[%c0_10, %c0_11] : memref<1x32xf32, #tpu.memory_space<vmem>>, vector<1x32xf32>
    %c0_12 = arith.constant 0 : index
    %c0_13 = arith.constant 0 : index
    %c0_14 = arith.constant 0 : index
    %c0_15 = arith.constant 0 : index
    %8 = vector.load %arg2[%c0_12, %c0_13, %c0_14, %c0_15] : memref<4x4x4x32xbf16, #tpu.memory_space<vmem>>, vector<1x1x4x32xbf16>
    %9 = vector.shape_cast %8 : vector<1x1x4x32xbf16> to vector<4x32xbf16>
    %c0_16 = arith.constant 0 : index
    %c1_17 = arith.constant 1 : index
    %c0_18 = arith.constant 0 : index
    %c0_19 = arith.constant 0 : index
    %10 = vector.load %arg2[%c0_16, %c1_17, %c0_18, %c0_19] : memref<4x4x4x32xbf16, #tpu.memory_space<vmem>>, vector<1x1x4x32xbf16>
    %11 = vector.shape_cast %10 : vector<1x1x4x32xbf16> to vector<4x32xbf16>
    %c0_20 = arith.constant 0 : index
    %c2 = arith.constant 2 : index
    %c0_21 = arith.constant 0 : index
    %c0_22 = arith.constant 0 : index
    %12 = vector.load %arg2[%c0_20, %c2, %c0_21, %c0_22] : memref<4x4x4x32xbf16, #tpu.memory_space<vmem>>, vector<1x1x4x32xbf16>
    %13 = vector.shape_cast %12 : vector<1x1x4x32xbf16> to vector<4x32xbf16>
    %c0_23 = arith.constant 0 : index
    %c3 = arith.constant 3 : index
    %c0_24 = arith.constant 0 : index
    %c0_25 = arith.constant 0 : index
    %14 = vector.load %arg2[%c0_23, %c3, %c0_24, %c0_25] : memref<4x4x4x32xbf16, #tpu.memory_space<vmem>>, vector<1x1x4x32xbf16>
    %15 = vector.shape_cast %14 : vector<1x1x4x32xbf16> to vector<4x32xbf16>
    %cst_26 = arith.constant 0.000000e+00 : f32
    %16 = vector.broadcast %cst_26 : f32 to vector<8x32xf32>
    %c0_27 = arith.constant 0 : index
    %c0_28 = arith.constant 0 : index
    %c0_29 = arith.constant 0 : index
    %c0_30 = arith.constant 0 : index
    %17 = vector.load %arg5[%c0_27, %c0_28, %c0_29, %c0_30] : memref<1x10x10x4xf32, #tpu.memory_space<vmem>>, vector<1x1x8x4xf32>
    %18 = vector.shape_cast %17 : vector<1x1x8x4xf32> to vector<8x4xf32>
    %19 = arith.truncf %18 : vector<8x4xf32> to vector<8x4xbf16>
    %cst_31 = arith.constant dense<0.000000e+00> : vector<8x32xf32>
    %20 = tpu.matmul %19, %9, %cst_31 {dimension_numbers = #tpu.dot_dimension_numbers<[1], [0], [0], [1], [0, 0, 1, 1], [], []>} : vector<8x4xbf16>, vector<4x32xbf16>, vector<8x32xf32> -> vector<8x32xf32>
    %21 = arith.addf %16, %20 : vector<8x32xf32>
    %c0_32 = arith.constant 0 : index
    %c0_33 = arith.constant 0 : index
    %c1_34 = arith.constant 1 : index
    %c0_35 = arith.constant 0 : index
    %22 = vector.load %arg5[%c0_32, %c0_33, %c1_34, %c0_35] : memref<1x10x10x4xf32, #tpu.memory_space<vmem>>, vector<1x1x8x4xf32>
    %23 = vector.shape_cast %22 : vector<1x1x8x4xf32> to vector<8x4xf32>
    %24 = arith.truncf %23 : vector<8x4xf32> to vector<8x4xbf16>
    %cst_36 = arith.constant dense<0.000000e+00> : vector<8x32xf32>
    %25 = tpu.matmul %24, %11, %cst_36 {dimension_numbers = #tpu.dot_dimension_numbers<[1], [0], [0], [1], [0, 0, 1, 1], [], []>} : vector<8x4xbf16>, vector<4x32xbf16>, vector<8x32xf32> -> vector<8x32xf32>
    %26 = arith.addf %21, %25 : vector<8x32xf32>
    %c0_37 = arith.constant 0 : index
    %c1_38 = arith.constant 1 : index
    %c0_39 = arith.constant 0 : index
    %c0_40 = arith.constant 0 : index
    %27 = vector.load %arg5[%c0_37, %c1_38, %c0_39, %c0_40] : memref<1x10x10x4xf32, #tpu.memory_space<vmem>>, vector<1x1x8x4xf32>
    %28 = vector.shape_cast %27 : vector<1x1x8x4xf32> to vector<8x4xf32>
    %29 = arith.truncf %28 : vector<8x4xf32> to vector<8x4xbf16>
    %cst_41 = arith.constant dense<0.000000e+00> : vector<8x32xf32>
    %30 = tpu.matmul %29, %13, %cst_41 {dimension_numbers = #tpu.dot_dimension_numbers<[1], [0], [0], [1], [0, 0, 1, 1], [], []>} : vector<8x4xbf16>, vector<4x32xbf16>, vector<8x32xf32> -> vector<8x32xf32>
    %31 = arith.addf %26, %30 : vector<8x32xf32>
    %c0_42 = arith.constant 0 : index
    %c1_43 = arith.constant 1 : index
    %c1_44 = arith.constant 1 : index
    %c0_45 = arith.constant 0 : index
    %32 = vector.load %arg5[%c0_42, %c1_43, %c1_44, %c0_45] : memref<1x10x10x4xf32, #tpu.memory_space<vmem>>, vector<1x1x8x4xf32>
    %33 = vector.shape_cast %32 : vector<1x1x8x4xf32> to vector<8x4xf32>
    %34 = arith.truncf %33 : vector<8x4xf32> to vector<8x4xbf16>
    %cst_46 = arith.constant dense<0.000000e+00> : vector<8x32xf32>
    %35 = tpu.matmul %34, %15, %cst_46 {dimension_numbers = #tpu.dot_dimension_numbers<[1], [0], [0], [1], [0, 0, 1, 1], [], []>} : vector<8x4xbf16>, vector<4x32xbf16>, vector<8x32xf32> -> vector<8x32xf32>
    %36 = arith.addf %31, %35 : vector<8x32xf32>
    %37 = vector.broadcast %7 : vector<1x32xf32> to vector<8x32xf32>
    %38 = arith.addf %36, %37 : vector<8x32xf32>
    %39 = arith.negf %38 : vector<8x32xf32>
    %40 = math.exp %39 : vector<8x32xf32>
    %cst_47 = arith.constant 1.000000e+00 : f32
    %41 = vector.broadcast %cst_47 : f32 to vector<8x32xf32>
    %42 = arith.addf %41, %40 : vector<8x32xf32>
    %43 = arith.divf %41, %42 : vector<8x32xf32>
    %c0_48 = arith.constant 0 : index
    %c0_49 = arith.constant 0 : index
    %c0_50 = arith.constant 0 : index
    %c0_51 = arith.constant 0 : index
    %44 = vector.load %arg4[%c0_48, %c0_49, %c0_50, %c0_51] : memref<1x8x8x128xf32, #tpu.memory_space<vmem>>, vector<1x1x8x32xf32>
    %45 = vector.shape_cast %44 : vector<1x1x8x32xf32> to vector<8x32xf32>
    %46 = vector.shape_cast %43 : vector<8x32xf32> to vector<1x1x8x32xf32>
    tpu.vector_store %arg4[%c0_48, %c0_49, %c0_50, %c0_51], %46 {strides = array<i32>} : memref<1x8x8x128xf32, #tpu.memory_space<vmem>>, vector<1x1x8x32xf32>,
    %cst_52 = arith.constant 0.000000e+00 : f32
    %47 = vector.broadcast %cst_52 : f32 to vector<8x32xf32>
    %c0_53 = arith.constant 0 : index
    %c1_54 = arith.constant 1 : index
    %c0_55 = arith.constant 0 : index
    %c0_56 = arith.constant 0 : index
    %48 = vector.load %arg5[%c0_53, %c1_54, %c0_55, %c0_56] : memref<1x10x10x4xf32, #tpu.memory_space<vmem>>, vector<1x1x8x4xf32>
    %49 = vector.shape_cast %48 : vector<1x1x8x4xf32> to vector<8x4xf32>
    %50 = arith.truncf %49 : vector<8x4xf32> to vector<8x4xbf16>
    %cst_57 = arith.constant dense<0.000000e+00> : vector<8x32xf32>
    %51 = tpu.matmul %50, %9, %cst_57 {dimension_numbers = #tpu.dot_dimension_numbers<[1], [0], [0], [1], [0, 0, 1, 1], [], []>} : vector<8x4xbf16>, vector<4x32xbf16>, vector<8x32xf32> -> vector<8x32xf32>
    %52 = arith.addf %47, %51 : vector<8x32xf32>
    %c0_58 = arith.constant 0 : index
    %c1_59 = arith.constant 1 : index
    %c1_60 = arith.constant 1 : index
    %c0_61 = arith.constant 0 : index
    %53 = vector.load %arg5[%c0_58, %c1_59, %c1_60, %c0_61] : memref<1x10x10x4xf32, #tpu.memory_space<vmem>>, vector<1x1x8x4xf32>
    %54 = vector.shape_cast %53 : vector<1x1x8x4xf32> to vector<8x4xf32>
    %55 = arith.truncf %54 : vector<8x4xf32> to vector<8x4xbf16>
    %cst_62 = arith.constant dense<0.000000e+00> : vector<8x32xf32>
    %56 = tpu.matmul %55, %11, %cst_62 {dimension_numbers = #tpu.dot_dimension_numbers<[1], [0], [0], [1], [0, 0, 1, 1], [], []>} : vector<8x4xbf16>, vector<4x32xbf16>, vector<8x32xf32> -> vector<8x32xf32>
    %57 = arith.addf %52, %56 : vector<8x32xf32>
    %c0_63 = arith.constant 0 : index
    %c2_64 = arith.constant 2 : index
    %c0_65 = arith.constant 0 : index
    %c0_66 = arith.constant 0 : index
    %58 = vector.load %arg5[%c0_63, %c2_64, %c0_65, %c0_66] : memref<1x10x10x4xf32, #tpu.memory_space<vmem>>, vector<1x1x8x4xf32>
    %59 = vector.shape_cast %58 : vector<1x1x8x4xf32> to vector<8x4xf32>
    %60 = arith.truncf %59 : vector<8x4xf32> to vector<8x4xbf16>
    %cst_67 = arith.constant dense<0.000000e+00> : vector<8x32xf32>
    %61 = tpu.matmul %60, %13, %cst_67 {dimension_numbers = #tpu.dot_dimension_numbers<[1], [0], [0], [1], [0, 0, 1, 1], [], []>} : vector<8x4xbf16>, vector<4x32xbf16>, vector<8x32xf32> -> vector<8x32xf32>
    %62 = arith.addf %57, %61 : vector<8x32xf32>
    %c0_68 = arith.constant 0 : index
    %c2_69 = arith.constant 2 : index
    %c1_70 = arith.constant 1 : index
    %c0_71 = arith.constant 0 : index
    %63 = vector.load %arg5[%c0_68, %c2_69, %c1_70, %c0_71] : memref<1x10x10x4xf32, #tpu.memory_space<vmem>>, vector<1x1x8x4xf32>
    %64 = vector.shape_cast %63 : vector<1x1x8x4xf32> to vector<8x4xf32>
    %65 = arith.truncf %64 : vector<8x4xf32> to vector<8x4xbf16>
    %cst_72 = arith.constant dense<0.000000e+00> : vector<8x32xf32>
    %66 = tpu.matmul %65, %15, %cst_72 {dimension_numbers = #tpu.dot_dimension_numbers<[1], [0], [0], [1], [0, 0, 1, 1], [], []>} : vector<8x4xbf16>, vector<4x32xbf16>, vector<8x32xf32> -> vector<8x32xf32>
    %67 = arith.addf %62, %66 : vector<8x32xf32>
    %68 = vector.broadcast %7 : vector<1x32xf32> to vector<8x32xf32>
    %69 = arith.addf %67, %68 : vector<8x32xf32>
    %70 = arith.negf %69 : vector<8x32xf32>
    %71 = math.exp %70 : vector<8x32xf32>
    %cst_73 = arith.constant 1.000000e+00 : f32
    %72 = vector.broadcast %cst_73 : f32 to vector<8x32xf32>
    %73 = arith.addf %72, %71 : vector<8x32xf32>
    %74 = arith.divf %72, %73 : vector<8x32xf32>
    %c0_74 = arith.constant 0 : index
    %c1_75 = arith.constant 1 : index
    %c0_76 = arith.constant 0 : index
    %c0_77 = arith.constant 0 : index
    %75 = vector.load %arg4[%c0_74, %c1_75, %c0_76, %c0_77] : memref<1x8x8x128xf32, #tpu.memory_space<vmem>>, vector<1x1x8x32xf32>
    %76 = vector.shape_cast %75 : vector<1x1x8x32xf32> to vector<8x32xf32>
    %77 = vector.shape_cast %74 : vector<8x32xf32> to vector<1x1x8x32xf32>
    tpu.vector_store %arg4[%c0_74, %c1_75, %c0_76, %c0_77], %77 {strides = array<i32>} : memref<1x8x8x128xf32, #tpu.memory_space<vmem>>, vector<1x1x8x32xf32>,
    %cst_78 = arith.constant 0.000000e+00 : f32
    %78 = vector.broadcast %cst_78 : f32 to vector<8x32xf32>
    %c0_79 = arith.constant 0 : index
    %c2_80 = arith.constant 2 : index
    %c0_81 = arith.constant 0 : index
    %c0_82 = arith.constant 0 : index
    %79 = vector.load %arg5[%c0_79, %c2_80, %c0_81, %c0_82] : memref<1x10x10x4xf32, #tpu.memory_space<vmem>>, vector<1x1x8x4xf32>
    %80 = vector.shape_cast %79 : vector<1x1x8x4xf32> to vector<8x4xf32>
    %81 = arith.truncf %80 : vector<8x4xf32> to vector<8x4xbf16>
    %cst_83 = arith.constant dense<0.000000e+00> : vector<8x32xf32>
    %82 = tpu.matmul %81, %9, %cst_83 {dimension_numbers = #tpu.dot_dimension_numbers<[1], [0], [0], [1], [0, 0, 1, 1], [], []>} : vector<8x4xbf16>, vector<4x32xbf16>, vector<8x32xf32> -> vector<8x32xf32>
    %83 = arith.addf %78, %82 : vector<8x32xf32>
    %c0_84 = arith.constant 0 : index
    %c2_85 = arith.constant 2 : index
    %c1_86 = arith.constant 1 : index
    %c0_87 = arith.constant 0 : index
    %84 = vector.load %arg5[%c0_84, %c2_85, %c1_86, %c0_87] : memref<1x10x10x4xf32, #tpu.memory_space<vmem>>, vector<1x1x8x4xf32>
    %85 = vector.shape_cast %84 : vector<1x1x8x4xf32> to vector<8x4xf32>
    %86 = arith.truncf %85 : vector<8x4xf32> to vector<8x4xbf16>
    %cst_88 = arith.constant dense<0.000000e+00> : vector<8x32xf32>
    %87 = tpu.matmul %86, %11, %cst_88 {dimension_numbers = #tpu.dot_dimension_numbers<[1], [0], [0], [1], [0, 0, 1, 1], [], []>} : vector<8x4xbf16>, vector<4x32xbf16>, vector<8x32xf32> -> vector<8x32xf32>
    %88 = arith.addf %83, %87 : vector<8x32xf32>
    %c0_89 = arith.constant 0 : index
    %c3_90 = arith.constant 3 : index
    %c0_91 = arith.constant 0 : index
    %c0_92 = arith.constant 0 : index
    %89 = vector.load %arg5[%c0_89, %c3_90, %c0_91, %c0_92] : memref<1x10x10x4xf32, #tpu.memory_space<vmem>>, vector<1x1x8x4xf32>
    %90 = vector.shape_cast %89 : vector<1x1x8x4xf32> to vector<8x4xf32>
    %91 = arith.truncf %90 : vector<8x4xf32> to vector<8x4xbf16>
    %cst_93 = arith.constant dense<0.000000e+00> : vector<8x32xf32>
    %92 = tpu.matmul %91, %13, %cst_93 {dimension_numbers = #tpu.dot_dimension_numbers<[1], [0], [0], [1], [0, 0, 1, 1], [], []>} : vector<8x4xbf16>, vector<4x32xbf16>, vector<8x32xf32> -> vector<8x32xf32>
    %93 = arith.addf %88, %92 : vector<8x32xf32>
    %c0_94 = arith.constant 0 : index
    %c3_95 = arith.constant 3 : index
    %c1_96 = arith.constant 1 : index
    %c0_97 = arith.constant 0 : index
    %94 = vector.load %arg5[%c0_94, %c3_95, %c1_96, %c0_97] : memref<1x10x10x4xf32, #tpu.memory_space<vmem>>, vector<1x1x8x4xf32>
    %95 = vector.shape_cast %94 : vector<1x1x8x4xf32> to vector<8x4xf32>
    %96 = arith.truncf %95 : vector<8x4xf32> to vector<8x4xbf16>
    %cst_98 = arith.constant dense<0.000000e+00> : vector<8x32xf32>
    %97 = tpu.matmul %96, %15, %cst_98 {dimension_numbers = #tpu.dot_dimension_numbers<[1], [0], [0], [1], [0, 0, 1, 1], [], []>} : vector<8x4xbf16>, vector<4x32xbf16>, vector<8x32xf32> -> vector<8x32xf32>
    %98 = arith.addf %93, %97 : vector<8x32xf32>
    %99 = vector.broadcast %7 : vector<1x32xf32> to vector<8x32xf32>
    %100 = arith.addf %98, %99 : vector<8x32xf32>
    %101 = arith.negf %100 : vector<8x32xf32>
    %102 = math.exp %101 : vector<8x32xf32>
    %cst_99 = arith.constant 1.000000e+00 : f32
    %103 = vector.broadcast %cst_99 : f32 to vector<8x32xf32>
    %104 = arith.addf %103, %102 : vector<8x32xf32>
    %105 = arith.divf %103, %104 : vector<8x32xf32>
    %c0_100 = arith.constant 0 : index
    %c2_101 = arith.constant 2 : index
    %c0_102 = arith.constant 0 : index
    %c0_103 = arith.constant 0 : index
    %106 = vector.load %arg4[%c0_100, %c2_101, %c0_102, %c0_103] : memref<1x8x8x128xf32, #tpu.memory_space<vmem>>, vector<1x1x8x32xf32>
    %107 = vector.shape_cast %106 : vector<1x1x8x32xf32> to vector<8x32xf32>
    %108 = vector.shape_cast %105 : vector<8x32xf32> to vector<1x1x8x32xf32>
    tpu.vector_store %arg4[%c0_100, %c2_101, %c0_102, %c0_103], %108 {strides = array<i32>} : memref<1x8x8x128xf32, #tpu.memory_space<vmem>>, vector<1x1x8x32xf32>,
    %cst_104 = arith.constant 0.000000e+00 : f32
    %109 = vector.broadcast %cst_104 : f32 to vector<8x32xf32>
    %c0_105 = arith.constant 0 : index
    %c3_106 = arith.constant 3 : index
    %c0_107 = arith.constant 0 : index
    %c0_108 = arith.constant 0 : index
    %110 = vector.load %arg5[%c0_105, %c3_106, %c0_107, %c0_108] : memref<1x10x10x4xf32, #tpu.memory_space<vmem>>, vector<1x1x8x4xf32>
    %111 = vector.shape_cast %110 : vector<1x1x8x4xf32> to vector<8x4xf32>
    %112 = arith.truncf %111 : vector<8x4xf32> to vector<8x4xbf16>
    %cst_109 = arith.constant dense<0.000000e+00> : vector<8x32xf32>
    %113 = tpu.matmul %112, %9, %cst_109 {dimension_numbers = #tpu.dot_dimension_numbers<[1], [0], [0], [1], [0, 0, 1, 1], [], []>} : vector<8x4xbf16>, vector<4x32xbf16>, vector<8x32xf32> -> vector<8x32xf32>
    %114 = arith.addf %109, %113 : vector<8x32xf32>
    %c0_110 = arith.constant 0 : index
    %c3_111 = arith.constant 3 : index
    %c1_112 = arith.constant 1 : index
    %c0_113 = arith.constant 0 : index
    %115 = vector.load %arg5[%c0_110, %c3_111, %c1_112, %c0_113] : memref<1x10x10x4xf32, #tpu.memory_space<vmem>>, vector<1x1x8x4xf32>
    %116 = vector.shape_cast %115 : vector<1x1x8x4xf32> to vector<8x4xf32>
    %117 = arith.truncf %116 : vector<8x4xf32> to vector<8x4xbf16>
    %cst_114 = arith.constant dense<0.000000e+00> : vector<8x32xf32>
    %118 = tpu.matmul %117, %11, %cst_114 {dimension_numbers = #tpu.dot_dimension_numbers<[1], [0], [0], [1], [0, 0, 1, 1], [], []>} : vector<8x4xbf16>, vector<4x32xbf16>, vector<8x32xf32> -> vector<8x32xf32>
    %119 = arith.addf %114, %118 : vector<8x32xf32>
    %c0_115 = arith.constant 0 : index
    %c4 = arith.constant 4 : index
    %c0_116 = arith.constant 0 : index
    %c0_117 = arith.constant 0 : index
    %120 = vector.load %arg5[%c0_115, %c4, %c0_116, %c0_117] : memref<1x10x10x4xf32, #tpu.memory_space<vmem>>, vector<1x1x8x4xf32>
    %121 = vector.shape_cast %120 : vector<1x1x8x4xf32> to vector<8x4xf32>
    %122 = arith.truncf %121 : vector<8x4xf32> to vector<8x4xbf16>
    %cst_118 = arith.constant dense<0.000000e+00> : vector<8x32xf32>
    %123 = tpu.matmul %122, %13, %cst_118 {dimension_numbers = #tpu.dot_dimension_numbers<[1], [0], [0], [1], [0, 0, 1, 1], [], []>} : vector<8x4xbf16>, vector<4x32xbf16>, vector<8x32xf32> -> vector<8x32xf32>
    %124 = arith.addf %119, %123 : vector<8x32xf32>
    %c0_119 = arith.constant 0 : index
    %c4_120 = arith.constant 4 : index
    %c1_121 = arith.constant 1 : index
    %c0_122 = arith.constant 0 : index
    %125 = vector.load %arg5[%c0_119, %c4_120, %c1_121, %c0_122] : memref<1x10x10x4xf32, #tpu.memory_space<vmem>>, vector<1x1x8x4xf32>
    %126 = vector.shape_cast %125 : vector<1x1x8x4xf32> to vector<8x4xf32>
    %127 = arith.truncf %126 : vector<8x4xf32> to vector<8x4xbf16>
    %cst_123 = arith.constant dense<0.000000e+00> : vector<8x32xf32>
    %128 = tpu.matmul %127, %15, %cst_123 {dimension_numbers = #tpu.dot_dimension_numbers<[1], [0], [0], [1], [0, 0, 1, 1], [], []>} : vector<8x4xbf16>, vector<4x32xbf16>, vector<8x32xf32> -> vector<8x32xf32>
    %129 = arith.addf %124, %128 : vector<8x32xf32>
    %130 = vector.broadcast %7 : vector<1x32xf32> to vector<8x32xf32>
    %131 = arith.addf %129, %130 : vector<8x32xf32>
    %132 = arith.negf %131 : vector<8x32xf32>
    %133 = math.exp %132 : vector<8x32xf32>
    %cst_124 = arith.constant 1.000000e+00 : f32
    %134 = vector.broadcast %cst_124 : f32 to vector<8x32xf32>
    %135 = arith.addf %134, %133 : vector<8x32xf32>
    %136 = arith.divf %134, %135 : vector<8x32xf32>
    %c0_125 = arith.constant 0 : index
    %c3_126 = arith.constant 3 : index
    %c0_127 = arith.constant 0 : index
    %c0_128 = arith.constant 0 : index
    %137 = vector.load %arg4[%c0_125, %c3_126, %c0_127, %c0_128] : memref<1x8x8x128xf32, #tpu.memory_space<vmem>>, vector<1x1x8x32xf32>
    %138 = vector.shape_cast %137 : vector<1x1x8x32xf32> to vector<8x32xf32>
    %139 = vector.shape_cast %136 : vector<8x32xf32> to vector<1x1x8x32xf32>
    tpu.vector_store %arg4[%c0_125, %c3_126, %c0_127, %c0_128], %139 {strides = array<i32>} : memref<1x8x8x128xf32, #tpu.memory_space<vmem>>, vector<1x1x8x32xf32>,
    %cst_129 = arith.constant 0.000000e+00 : f32
    %140 = vector.broadcast %cst_129 : f32 to vector<8x32xf32>
    %c0_130 = arith.constant 0 : index
    %c4_131 = arith.constant 4 : index
    %c0_132 = arith.constant 0 : index
    %c0_133 = arith.constant 0 : index
    %141 = vector.load %arg5[%c0_130, %c4_131, %c0_132, %c0_133] : memref<1x10x10x4xf32, #tpu.memory_space<vmem>>, vector<1x1x8x4xf32>
    %142 = vector.shape_cast %141 : vector<1x1x8x4xf32> to vector<8x4xf32>
    %143 = arith.truncf %142 : vector<8x4xf32> to vector<8x4xbf16>
    %cst_134 = arith.constant dense<0.000000e+00> : vector<8x32xf32>
    %144 = tpu.matmul %143, %9, %cst_134 {dimension_numbers = #tpu.dot_dimension_numbers<[1], [0], [0], [1], [0, 0, 1, 1], [], []>} : vector<8x4xbf16>, vector<4x32xbf16>, vector<8x32xf32> -> vector<8x32xf32>
    %145 = arith.addf %140, %144 : vector<8x32xf32>
    %c0_135 = arith.constant 0 : index
    %c4_136 = arith.constant 4 : index
    %c1_137 = arith.constant 1 : index
    %c0_138 = arith.constant 0 : index
    %146 = vector.load %arg5[%c0_135, %c4_136, %c1_137, %c0_138] : memref<1x10x10x4xf32, #tpu.memory_space<vmem>>, vector<1x1x8x4xf32>
    %147 = vector.shape_cast %146 : vector<1x1x8x4xf32> to vector<8x4xf32>
    %148 = arith.truncf %147 : vector<8x4xf32> to vector<8x4xbf16>
    %cst_139 = arith.constant dense<0.000000e+00> : vector<8x32xf32>
    %149 = tpu.matmul %148, %11, %cst_139 {dimension_numbers = #tpu.dot_dimension_numbers<[1], [0], [0], [1], [0, 0, 1, 1], [], []>} : vector<8x4xbf16>, vector<4x32xbf16>, vector<8x32xf32> -> vector<8x32xf32>
    %150 = arith.addf %145, %149 : vector<8x32xf32>
    %c0_140 = arith.constant 0 : index
    %c5 = arith.constant 5 : index
    %c0_141 = arith.constant 0 : index
    %c0_142 = arith.constant 0 : index
    %151 = vector.load %arg5[%c0_140, %c5, %c0_141, %c0_142] : memref<1x10x10x4xf32, #tpu.memory_space<vmem>>, vector<1x1x8x4xf32>
    %152 = vector.shape_cast %151 : vector<1x1x8x4xf32> to vector<8x4xf32>
    %153 = arith.truncf %152 : vector<8x4xf32> to vector<8x4xbf16>
    %cst_143 = arith.constant dense<0.000000e+00> : vector<8x32xf32>
    %154 = tpu.matmul %153, %13, %cst_143 {dimension_numbers = #tpu.dot_dimension_numbers<[1], [0], [0], [1], [0, 0, 1, 1], [], []>} : vector<8x4xbf16>, vector<4x32xbf16>, vector<8x32xf32> -> vector<8x32xf32>
    %155 = arith.addf %150, %154 : vector<8x32xf32>
    %c0_144 = arith.constant 0 : index
    %c5_145 = arith.constant 5 : index
    %c1_146 = arith.constant 1 : index
    %c0_147 = arith.constant 0 : index
    %156 = vector.load %arg5[%c0_144, %c5_145, %c1_146, %c0_147] : memref<1x10x10x4xf32, #tpu.memory_space<vmem>>, vector<1x1x8x4xf32>
    %157 = vector.shape_cast %156 : vector<1x1x8x4xf32> to vector<8x4xf32>
    %158 = arith.truncf %157 : vector<8x4xf32> to vector<8x4xbf16>
    %cst_148 = arith.constant dense<0.000000e+00> : vector<8x32xf32>
    %159 = tpu.matmul %158, %15, %cst_148 {dimension_numbers = #tpu.dot_dimension_numbers<[1], [0], [0], [1], [0, 0, 1, 1], [], []>} : vector<8x4xbf16>, vector<4x32xbf16>, vector<8x32xf32> -> vector<8x32xf32>
    %160 = arith.addf %155, %159 : vector<8x32xf32>
    %161 = vector.broadcast %7 : vector<1x32xf32> to vector<8x32xf32>
    %162 = arith.addf %160, %161 : vector<8x32xf32>
    %163 = arith.negf %162 : vector<8x32xf32>
    %164 = math.exp %163 : vector<8x32xf32>
    %cst_149 = arith.constant 1.000000e+00 : f32
    %165 = vector.broadcast %cst_149 : f32 to vector<8x32xf32>
    %166 = arith.addf %165, %164 : vector<8x32xf32>
    %167 = arith.divf %165, %166 : vector<8x32xf32>
    %c0_150 = arith.constant 0 : index
    %c4_151 = arith.constant 4 : index
    %c0_152 = arith.constant 0 : index
    %c0_153 = arith.constant 0 : index
    %168 = vector.load %arg4[%c0_150, %c4_151, %c0_152, %c0_153] : memref<1x8x8x128xf32, #tpu.memory_space<vmem>>, vector<1x1x8x32xf32>
    %169 = vector.shape_cast %168 : vector<1x1x8x32xf32> to vector<8x32xf32>
    %170 = vector.shape_cast %167 : vector<8x32xf32> to vector<1x1x8x32xf32>
    tpu.vector_store %arg4[%c0_150, %c4_151, %c0_152, %c0_153], %170 {strides = array<i32>} : memref<1x8x8x128xf32, #tpu.memory_space<vmem>>, vector<1x1x8x32xf32>,
    %cst_154 = arith.constant 0.000000e+00 : f32
    %171 = vector.broadcast %cst_154 : f32 to vector<8x32xf32>
    %c0_155 = arith.constant 0 : index
    %c5_156 = arith.constant 5 : index
    %c0_157 = arith.constant 0 : index
    %c0_158 = arith.constant 0 : index
    %172 = vector.load %arg5[%c0_155, %c5_156, %c0_157, %c0_158] : memref<1x10x10x4xf32, #tpu.memory_space<vmem>>, vector<1x1x8x4xf32>
    %173 = vector.shape_cast %172 : vector<1x1x8x4xf32> to vector<8x4xf32>
    %174 = arith.truncf %173 : vector<8x4xf32> to vector<8x4xbf16>
    %cst_159 = arith.constant dense<0.000000e+00> : vector<8x32xf32>
    %175 = tpu.matmul %174, %9, %cst_159 {dimension_numbers = #tpu.dot_dimension_numbers<[1], [0], [0], [1], [0, 0, 1, 1], [], []>} : vector<8x4xbf16>, vector<4x32xbf16>, vector<8x32xf32> -> vector<8x32xf32>
    %176 = arith.addf %171, %175 : vector<8x32xf32>
    %c0_160 = arith.constant 0 : index
    %c5_161 = arith.constant 5 : index
    %c1_162 = arith.constant 1 : index
    %c0_163 = arith.constant 0 : index
    %177 = vector.load %arg5[%c0_160, %c5_161, %c1_162, %c0_163] : memref<1x10x10x4xf32, #tpu.memory_space<vmem>>, vector<1x1x8x4xf32>
    %178 = vector.shape_cast %177 : vector<1x1x8x4xf32> to vector<8x4xf32>
    %179 = arith.truncf %178 : vector<8x4xf32> to vector<8x4xbf16>
    %cst_164 = arith.constant dense<0.000000e+00> : vector<8x32xf32>
    %180 = tpu.matmul %179, %11, %cst_164 {dimension_numbers = #tpu.dot_dimension_numbers<[1], [0], [0], [1], [0, 0, 1, 1], [], []>} : vector<8x4xbf16>, vector<4x32xbf16>, vector<8x32xf32> -> vector<8x32xf32>
    %181 = arith.addf %176, %180 : vector<8x32xf32>
    %c0_165 = arith.constant 0 : index
    %c6 = arith.constant 6 : index
    %c0_166 = arith.constant 0 : index
    %c0_167 = arith.constant 0 : index
    %182 = vector.load %arg5[%c0_165, %c6, %c0_166, %c0_167] : memref<1x10x10x4xf32, #tpu.memory_space<vmem>>, vector<1x1x8x4xf32>
    %183 = vector.shape_cast %182 : vector<1x1x8x4xf32> to vector<8x4xf32>
    %184 = arith.truncf %183 : vector<8x4xf32> to vector<8x4xbf16>
    %cst_168 = arith.constant dense<0.000000e+00> : vector<8x32xf32>
    %185 = tpu.matmul %184, %13, %cst_168 {dimension_numbers = #tpu.dot_dimension_numbers<[1], [0], [0], [1], [0, 0, 1, 1], [], []>} : vector<8x4xbf16>, vector<4x32xbf16>, vector<8x32xf32> -> vector<8x32xf32>
    %186 = arith.addf %181, %185 : vector<8x32xf32>
    %c0_169 = arith.constant 0 : index
    %c6_170 = arith.constant 6 : index
    %c1_171 = arith.constant 1 : index
    %c0_172 = arith.constant 0 : index
    %187 = vector.load %arg5[%c0_169, %c6_170, %c1_171, %c0_172] : memref<1x10x10x4xf32, #tpu.memory_space<vmem>>, vector<1x1x8x4xf32>
    %188 = vector.shape_cast %187 : vector<1x1x8x4xf32> to vector<8x4xf32>
    %189 = arith.truncf %188 : vector<8x4xf32> to vector<8x4xbf16>
    %cst_173 = arith.constant dense<0.000000e+00> : vector<8x32xf32>
    %190 = tpu.matmul %189, %15, %cst_173 {dimension_numbers = #tpu.dot_dimension_numbers<[1], [0], [0], [1], [0, 0, 1, 1], [], []>} : vector<8x4xbf16>, vector<4x32xbf16>, vector<8x32xf32> -> vector<8x32xf32>
    %191 = arith.addf %186, %190 : vector<8x32xf32>
    %192 = vector.broadcast %7 : vector<1x32xf32> to vector<8x32xf32>
    %193 = arith.addf %191, %192 : vector<8x32xf32>
    %194 = arith.negf %193 : vector<8x32xf32>
    %195 = math.exp %194 : vector<8x32xf32>
    %cst_174 = arith.constant 1.000000e+00 : f32
    %196 = vector.broadcast %cst_174 : f32 to vector<8x32xf32>
    %197 = arith.addf %196, %195 : vector<8x32xf32>
    %198 = arith.divf %196, %197 : vector<8x32xf32>
    %c0_175 = arith.constant 0 : index
    %c5_176 = arith.constant 5 : index
    %c0_177 = arith.constant 0 : index
    %c0_178 = arith.constant 0 : index
    %199 = vector.load %arg4[%c0_175, %c5_176, %c0_177, %c0_178] : memref<1x8x8x128xf32, #tpu.memory_space<vmem>>, vector<1x1x8x32xf32>
    %200 = vector.shape_cast %199 : vector<1x1x8x32xf32> to vector<8x32xf32>
    %201 = vector.shape_cast %198 : vector<8x32xf32> to vector<1x1x8x32xf32>
    tpu.vector_store %arg4[%c0_175, %c5_176, %c0_177, %c0_178], %201 {strides = array<i32>} : memref<1x8x8x128xf32, #tpu.memory_space<vmem>>, vector<1x1x8x32xf32>,
    %cst_179 = arith.constant 0.000000e+00 : f32
    %202 = vector.broadcast %cst_179 : f32 to vector<8x32xf32>
    %c0_180 = arith.constant 0 : index
    %c6_181 = arith.constant 6 : index
    %c0_182 = arith.constant 0 : index
    %c0_183 = arith.constant 0 : index
    %203 = vector.load %arg5[%c0_180, %c6_181, %c0_182, %c0_183] : memref<1x10x10x4xf32, #tpu.memory_space<vmem>>, vector<1x1x8x4xf32>
    %204 = vector.shape_cast %203 : vector<1x1x8x4xf32> to vector<8x4xf32>
    %205 = arith.truncf %204 : vector<8x4xf32> to vector<8x4xbf16>
    %cst_184 = arith.constant dense<0.000000e+00> : vector<8x32xf32>
    %206 = tpu.matmul %205, %9, %cst_184 {dimension_numbers = #tpu.dot_dimension_numbers<[1], [0], [0], [1], [0, 0, 1, 1], [], []>} : vector<8x4xbf16>, vector<4x32xbf16>, vector<8x32xf32> -> vector<8x32xf32>
    %207 = arith.addf %202, %206 : vector<8x32xf32>
    %c0_185 = arith.constant 0 : index
    %c6_186 = arith.constant 6 : index
    %c1_187 = arith.constant 1 : index
    %c0_188 = arith.constant 0 : index
    %208 = vector.load %arg5[%c0_185, %c6_186, %c1_187, %c0_188] : memref<1x10x10x4xf32, #tpu.memory_space<vmem>>, vector<1x1x8x4xf32>
    %209 = vector.shape_cast %208 : vector<1x1x8x4xf32> to vector<8x4xf32>
    %210 = arith.truncf %209 : vector<8x4xf32> to vector<8x4xbf16>
    %cst_189 = arith.constant dense<0.000000e+00> : vector<8x32xf32>
    %211 = tpu.matmul %210, %11, %cst_189 {dimension_numbers = #tpu.dot_dimension_numbers<[1], [0], [0], [1], [0, 0, 1, 1], [], []>} : vector<8x4xbf16>, vector<4x32xbf16>, vector<8x32xf32> -> vector<8x32xf32>
    %212 = arith.addf %207, %211 : vector<8x32xf32>
    %c0_190 = arith.constant 0 : index
    %c7 = arith.constant 7 : index
    %c0_191 = arith.constant 0 : index
    %c0_192 = arith.constant 0 : index
    %213 = vector.load %arg5[%c0_190, %c7, %c0_191, %c0_192] : memref<1x10x10x4xf32, #tpu.memory_space<vmem>>, vector<1x1x8x4xf32>
    %214 = vector.shape_cast %213 : vector<1x1x8x4xf32> to vector<8x4xf32>
    %215 = arith.truncf %214 : vector<8x4xf32> to vector<8x4xbf16>
    %cst_193 = arith.constant dense<0.000000e+00> : vector<8x32xf32>
    %216 = tpu.matmul %215, %13, %cst_193 {dimension_numbers = #tpu.dot_dimension_numbers<[1], [0], [0], [1], [0, 0, 1, 1], [], []>} : vector<8x4xbf16>, vector<4x32xbf16>, vector<8x32xf32> -> vector<8x32xf32>
    %217 = arith.addf %212, %216 : vector<8x32xf32>
    %c0_194 = arith.constant 0 : index
    %c7_195 = arith.constant 7 : index
    %c1_196 = arith.constant 1 : index
    %c0_197 = arith.constant 0 : index
    %218 = vector.load %arg5[%c0_194, %c7_195, %c1_196, %c0_197] : memref<1x10x10x4xf32, #tpu.memory_space<vmem>>, vector<1x1x8x4xf32>
    %219 = vector.shape_cast %218 : vector<1x1x8x4xf32> to vector<8x4xf32>
    %220 = arith.truncf %219 : vector<8x4xf32> to vector<8x4xbf16>
    %cst_198 = arith.constant dense<0.000000e+00> : vector<8x32xf32>
    %221 = tpu.matmul %220, %15, %cst_198 {dimension_numbers = #tpu.dot_dimension_numbers<[1], [0], [0], [1], [0, 0, 1, 1], [], []>} : vector<8x4xbf16>, vector<4x32xbf16>, vector<8x32xf32> -> vector<8x32xf32>
    %222 = arith.addf %217, %221 : vector<8x32xf32>
    %223 = vector.broadcast %7 : vector<1x32xf32> to vector<8x32xf32>
    %224 = arith.addf %222, %223 : vector<8x32xf32>
    %225 = arith.negf %224 : vector<8x32xf32>
    %226 = math.exp %225 : vector<8x32xf32>
    %cst_199 = arith.constant 1.000000e+00 : f32
    %227 = vector.broadcast %cst_199 : f32 to vector<8x32xf32>
    %228 = arith.addf %227, %226 : vector<8x32xf32>
    %229 = arith.divf %227, %228 : vector<8x32xf32>
    %c0_200 = arith.constant 0 : index
    %c6_201 = arith.constant 6 : index
    %c0_202 = arith.constant 0 : index
    %c0_203 = arith.constant 0 : index
    %230 = vector.load %arg4[%c0_200, %c6_201, %c0_202, %c0_203] : memref<1x8x8x128xf32, #tpu.memory_space<vmem>>, vector<1x1x8x32xf32>
    %231 = vector.shape_cast %230 : vector<1x1x8x32xf32> to vector<8x32xf32>
    %232 = vector.shape_cast %229 : vector<8x32xf32> to vector<1x1x8x32xf32>
    tpu.vector_store %arg4[%c0_200, %c6_201, %c0_202, %c0_203], %232 {strides = array<i32>} : memref<1x8x8x128xf32, #tpu.memory_space<vmem>>, vector<1x1x8x32xf32>,
    %cst_204 = arith.constant 0.000000e+00 : f32
    %233 = vector.broadcast %cst_204 : f32 to vector<8x32xf32>
    %c0_205 = arith.constant 0 : index
    %c7_206 = arith.constant 7 : index
    %c0_207 = arith.constant 0 : index
    %c0_208 = arith.constant 0 : index
    %234 = vector.load %arg5[%c0_205, %c7_206, %c0_207, %c0_208] : memref<1x10x10x4xf32, #tpu.memory_space<vmem>>, vector<1x1x8x4xf32>
    %235 = vector.shape_cast %234 : vector<1x1x8x4xf32> to vector<8x4xf32>
    %236 = arith.truncf %235 : vector<8x4xf32> to vector<8x4xbf16>
    %cst_209 = arith.constant dense<0.000000e+00> : vector<8x32xf32>
    %237 = tpu.matmul %236, %9, %cst_209 {dimension_numbers = #tpu.dot_dimension_numbers<[1], [0], [0], [1], [0, 0, 1, 1], [], []>} : vector<8x4xbf16>, vector<4x32xbf16>, vector<8x32xf32> -> vector<8x32xf32>
    %238 = arith.addf %233, %237 : vector<8x32xf32>
    %c0_210 = arith.constant 0 : index
    %c7_211 = arith.constant 7 : index
    %c1_212 = arith.constant 1 : index
    %c0_213 = arith.constant 0 : index
    %239 = vector.load %arg5[%c0_210, %c7_211, %c1_212, %c0_213] : memref<1x10x10x4xf32, #tpu.memory_space<vmem>>, vector<1x1x8x4xf32>
    %240 = vector.shape_cast %239 : vector<1x1x8x4xf32> to vector<8x4xf32>
    %241 = arith.truncf %240 : vector<8x4xf32> to vector<8x4xbf16>
    %cst_214 = arith.constant dense<0.000000e+00> : vector<8x32xf32>
    %242 = tpu.matmul %241, %11, %cst_214 {dimension_numbers = #tpu.dot_dimension_numbers<[1], [0], [0], [1], [0, 0, 1, 1], [], []>} : vector<8x4xbf16>, vector<4x32xbf16>, vector<8x32xf32> -> vector<8x32xf32>
    %243 = arith.addf %238, %242 : vector<8x32xf32>
    %c0_215 = arith.constant 0 : index
    %c8 = arith.constant 8 : index
    %c0_216 = arith.constant 0 : index
    %c0_217 = arith.constant 0 : index
    %244 = vector.load %arg5[%c0_215, %c8, %c0_216, %c0_217] : memref<1x10x10x4xf32, #tpu.memory_space<vmem>>, vector<1x1x8x4xf32>
    %245 = vector.shape_cast %244 : vector<1x1x8x4xf32> to vector<8x4xf32>
    %246 = arith.truncf %245 : vector<8x4xf32> to vector<8x4xbf16>
    %cst_218 = arith.constant dense<0.000000e+00> : vector<8x32xf32>
    %247 = tpu.matmul %246, %13, %cst_218 {dimension_numbers = #tpu.dot_dimension_numbers<[1], [0], [0], [1], [0, 0, 1, 1], [], []>} : vector<8x4xbf16>, vector<4x32xbf16>, vector<8x32xf32> -> vector<8x32xf32>
    %248 = arith.addf %243, %247 : vector<8x32xf32>
    %c0_219 = arith.constant 0 : index
    %c8_220 = arith.constant 8 : index
    %c1_221 = arith.constant 1 : index
    %c0_222 = arith.constant 0 : index
    %249 = vector.load %arg5[%c0_219, %c8_220, %c1_221, %c0_222] : memref<1x10x10x4xf32, #tpu.memory_space<vmem>>, vector<1x1x8x4xf32>
    %250 = vector.shape_cast %249 : vector<1x1x8x4xf32> to vector<8x4xf32>
    %251 = arith.truncf %250 : vector<8x4xf32> to vector<8x4xbf16>
    %cst_223 = arith.constant dense<0.000000e+00> : vector<8x32xf32>
    %252 = tpu.matmul %251, %15, %cst_223 {dimension_numbers = #tpu.dot_dimension_numbers<[1], [0], [0], [1], [0, 0, 1, 1], [], []>} : vector<8x4xbf16>, vector<4x32xbf16>, vector<8x32xf32> -> vector<8x32xf32>
    %253 = arith.addf %248, %252 : vector<8x32xf32>
    %254 = vector.broadcast %7 : vector<1x32xf32> to vector<8x32xf32>
    %255 = arith.addf %253, %254 : vector<8x32xf32>
    %256 = arith.negf %255 : vector<8x32xf32>
    %257 = math.exp %256 : vector<8x32xf32>
    %cst_224 = arith.constant 1.000000e+00 : f32
    %258 = vector.broadcast %cst_224 : f32 to vector<8x32xf32>
    %259 = arith.addf %258, %257 : vector<8x32xf32>
    %260 = arith.divf %258, %259 : vector<8x32xf32>
    %c0_225 = arith.constant 0 : index
    %c7_226 = arith.constant 7 : index
    %c0_227 = arith.constant 0 : index
    %c0_228 = arith.constant 0 : index
    %261 = vector.load %arg4[%c0_225, %c7_226, %c0_227, %c0_228] : memref<1x8x8x128xf32, #tpu.memory_space<vmem>>, vector<1x1x8x32xf32>
    %262 = vector.shape_cast %261 : vector<1x1x8x32xf32> to vector<8x32xf32>
    %263 = vector.shape_cast %260 : vector<8x32xf32> to vector<1x1x8x32xf32>
    tpu.vector_store %arg4[%c0_225, %c7_226, %c0_227, %c0_228], %263 {strides = array<i32>} : memref<1x8x8x128xf32, #tpu.memory_space<vmem>>, vector<1x1x8x32xf32>,
    %c1_229 = arith.constant 1 : index
    %c0_230 = arith.constant 0 : index
    %c0_231 = arith.constant 0 : index
    %c0_232 = arith.constant 0 : index
    %264 = vector.load %arg2[%c1_229, %c0_230, %c0_231, %c0_232] : memref<4x4x4x32xbf16, #tpu.memory_space<vmem>>, vector<1x1x4x32xbf16>
    %265 = vector.shape_cast %264 : vector<1x1x4x32xbf16> to vector<4x32xbf16>
    %c1_233 = arith.constant 1 : index
    %c1_234 = arith.constant 1 : index
    %c0_235 = arith.constant 0 : index
    %c0_236 = arith.constant 0 : index
    %266 = vector.load %arg2[%c1_233, %c1_234, %c0_235, %c0_236] : memref<4x4x4x32xbf16, #tpu.memory_space<vmem>>, vector<1x1x4x32xbf16>
    %267 = vector.shape_cast %266 : vector<1x1x4x32xbf16> to vector<4x32xbf16>
    %c1_237 = arith.constant 1 : index
    %c2_238 = arith.constant 2 : index
    %c0_239 = arith.constant 0 : index
    %c0_240 = arith.constant 0 : index
    %268 = vector.load %arg2[%c1_237, %c2_238, %c0_239, %c0_240] : memref<4x4x4x32xbf16, #tpu.memory_space<vmem>>, vector<1x1x4x32xbf16>
    %269 = vector.shape_cast %268 : vector<1x1x4x32xbf16> to vector<4x32xbf16>
    %c1_241 = arith.constant 1 : index
    %c3_242 = arith.constant 3 : index
    %c0_243 = arith.constant 0 : index
    %c0_244 = arith.constant 0 : index
    %270 = vector.load %arg2[%c1_241, %c3_242, %c0_243, %c0_244] : memref<4x4x4x32xbf16, #tpu.memory_space<vmem>>, vector<1x1x4x32xbf16>
    %271 = vector.shape_cast %270 : vector<1x1x4x32xbf16> to vector<4x32xbf16>
    %cst_245 = arith.constant 0.000000e+00 : f32
    %272 = vector.broadcast %cst_245 : f32 to vector<8x32xf32>
    %c0_246 = arith.constant 0 : index
    %c0_247 = arith.constant 0 : index
    %c1_248 = arith.constant 1 : index
    %c0_249 = arith.constant 0 : index
    %273 = vector.load %arg5[%c0_246, %c0_247, %c1_248, %c0_249] : memref<1x10x10x4xf32, #tpu.memory_space<vmem>>, vector<1x1x8x4xf32>
    %274 = vector.shape_cast %273 : vector<1x1x8x4xf32> to vector<8x4xf32>
    %275 = arith.truncf %274 : vector<8x4xf32> to vector<8x4xbf16>
    %cst_250 = arith.constant dense<0.000000e+00> : vector<8x32xf32>
    %276 = tpu.matmul %275, %265, %cst_250 {dimension_numbers = #tpu.dot_dimension_numbers<[1], [0], [0], [1], [0, 0, 1, 1], [], []>} : vector<8x4xbf16>, vector<4x32xbf16>, vector<8x32xf32> -> vector<8x32xf32>
    %277 = arith.addf %272, %276 : vector<8x32xf32>
    %c0_251 = arith.constant 0 : index
    %c0_252 = arith.constant 0 : index
    %c2_253 = arith.constant 2 : index
    %c0_254 = arith.constant 0 : index
    %278 = vector.load %arg5[%c0_251, %c0_252, %c2_253, %c0_254] : memref<1x10x10x4xf32, #tpu.memory_space<vmem>>, vector<1x1x8x4xf32>
    %279 = vector.shape_cast %278 : vector<1x1x8x4xf32> to vector<8x4xf32>
    %280 = arith.truncf %279 : vector<8x4xf32> to vector<8x4xbf16>
    %cst_255 = arith.constant dense<0.000000e+00> : vector<8x32xf32>
    %281 = tpu.matmul %280, %267, %cst_255 {dimension_numbers = #tpu.dot_dimension_numbers<[1], [0], [0], [1], [0, 0, 1, 1], [], []>} : vector<8x4xbf16>, vector<4x32xbf16>, vector<8x32xf32> -> vector<8x32xf32>
    %282 = arith.addf %277, %281 : vector<8x32xf32>
    %c0_256 = arith.constant 0 : index
    %c1_257 = arith.constant 1 : index
    %c1_258 = arith.constant 1 : index
    %c0_259 = arith.constant 0 : index
    %283 = vector.load %arg5[%c0_256, %c1_257, %c1_258, %c0_259] : memref<1x10x10x4xf32, #tpu.memory_space<vmem>>, vector<1x1x8x4xf32>
    %284 = vector.shape_cast %283 : vector<1x1x8x4xf32> to vector<8x4xf32>
    %285 = arith.truncf %284 : vector<8x4xf32> to vector<8x4xbf16>
    %cst_260 = arith.constant dense<0.000000e+00> : vector<8x32xf32>
    %286 = tpu.matmul %285, %269, %cst_260 {dimension_numbers = #tpu.dot_dimension_numbers<[1], [0], [0], [1], [0, 0, 1, 1], [], []>} : vector<8x4xbf16>, vector<4x32xbf16>, vector<8x32xf32> -> vector<8x32xf32>
    %287 = arith.addf %282, %286 : vector<8x32xf32>
    %c0_261 = arith.constant 0 : index
    %c1_262 = arith.constant 1 : index
    %c2_263 = arith.constant 2 : index
    %c0_264 = arith.constant 0 : index
    %288 = vector.load %arg5[%c0_261, %c1_262, %c2_263, %c0_264] : memref<1x10x10x4xf32, #tpu.memory_space<vmem>>, vector<1x1x8x4xf32>
    %289 = vector.shape_cast %288 : vector<1x1x8x4xf32> to vector<8x4xf32>
    %290 = arith.truncf %289 : vector<8x4xf32> to vector<8x4xbf16>
    %cst_265 = arith.constant dense<0.000000e+00> : vector<8x32xf32>
    %291 = tpu.matmul %290, %271, %cst_265 {dimension_numbers = #tpu.dot_dimension_numbers<[1], [0], [0], [1], [0, 0, 1, 1], [], []>} : vector<8x4xbf16>, vector<4x32xbf16>, vector<8x32xf32> -> vector<8x32xf32>
    %292 = arith.addf %287, %291 : vector<8x32xf32>
    %293 = vector.broadcast %7 : vector<1x32xf32> to vector<8x32xf32>
    %294 = arith.addf %292, %293 : vector<8x32xf32>
    %295 = arith.negf %294 : vector<8x32xf32>
    %296 = math.exp %295 : vector<8x32xf32>
    %cst_266 = arith.constant 1.000000e+00 : f32
    %297 = vector.broadcast %cst_266 : f32 to vector<8x32xf32>
    %298 = arith.addf %297, %296 : vector<8x32xf32>
    %299 = arith.divf %297, %298 : vector<8x32xf32>
    %c0_267 = arith.constant 0 : index
    %c0_268 = arith.constant 0 : index
    %c0_269 = arith.constant 0 : index
    %c32 = arith.constant 32 : index
    %300 = vector.load %arg4[%c0_267, %c0_268, %c0_269, %c32] : memref<1x8x8x128xf32, #tpu.memory_space<vmem>>, vector<1x1x8x32xf32>
    %301 = vector.shape_cast %300 : vector<1x1x8x32xf32> to vector<8x32xf32>
    %302 = vector.shape_cast %299 : vector<8x32xf32> to vector<1x1x8x32xf32>
    tpu.vector_store %arg4[%c0_267, %c0_268, %c0_269, %c32], %302 {strides = array<i32>} : memref<1x8x8x128xf32, #tpu.memory_space<vmem>>, vector<1x1x8x32xf32>,
    %cst_270 = arith.constant 0.000000e+00 : f32
    %303 = vector.broadcast %cst_270 : f32 to vector<8x32xf32>
    %c0_271 = arith.constant 0 : index
    %c1_272 = arith.constant 1 : index
    %c1_273 = arith.constant 1 : index
    %c0_274 = arith.constant 0 : index
    %304 = vector.load %arg5[%c0_271, %c1_272, %c1_273, %c0_274] : memref<1x10x10x4xf32, #tpu.memory_space<vmem>>, vector<1x1x8x4xf32>
    %305 = vector.shape_cast %304 : vector<1x1x8x4xf32> to vector<8x4xf32>
    %306 = arith.truncf %305 : vector<8x4xf32> to vector<8x4xbf16>
    %cst_275 = arith.constant dense<0.000000e+00> : vector<8x32xf32>
    %307 = tpu.matmul %306, %265, %cst_275 {dimension_numbers = #tpu.dot_dimension_numbers<[1], [0], [0], [1], [0, 0, 1, 1], [], []>} : vector<8x4xbf16>, vector<4x32xbf16>, vector<8x32xf32> -> vector<8x32xf32>
    %308 = arith.addf %303, %307 : vector<8x32xf32>
    %c0_276 = arith.constant 0 : index
    %c1_277 = arith.constant 1 : index
    %c2_278 = arith.constant 2 : index
    %c0_279 = arith.constant 0 : index
    %309 = vector.load %arg5[%c0_276, %c1_277, %c2_278, %c0_279] : memref<1x10x10x4xf32, #tpu.memory_space<vmem>>, vector<1x1x8x4xf32>
    %310 = vector.shape_cast %309 : vector<1x1x8x4xf32> to vector<8x4xf32>
    %311 = arith.truncf %310 : vector<8x4xf32> to vector<8x4xbf16>
    %cst_280 = arith.constant dense<0.000000e+00> : vector<8x32xf32>
    %312 = tpu.matmul %311, %267, %cst_280 {dimension_numbers = #tpu.dot_dimension_numbers<[1], [0], [0], [1], [0, 0, 1, 1], [], []>} : vector<8x4xbf16>, vector<4x32xbf16>, vector<8x32xf32> -> vector<8x32xf32>
    %313 = arith.addf %308, %312 : vector<8x32xf32>
    %c0_281 = arith.constant 0 : index
    %c2_282 = arith.constant 2 : index
    %c1_283 = arith.constant 1 : index
    %c0_284 = arith.constant 0 : index
    %314 = vector.load %arg5[%c0_281, %c2_282, %c1_283, %c0_284] : memref<1x10x10x4xf32, #tpu.memory_space<vmem>>, vector<1x1x8x4xf32>
    %315 = vector.shape_cast %314 : vector<1x1x8x4xf32> to vector<8x4xf32>
    %316 = arith.truncf %315 : vector<8x4xf32> to vector<8x4xbf16>
    %cst_285 = arith.constant dense<0.000000e+00> : vector<8x32xf32>
    %317 = tpu.matmul %316, %269, %cst_285 {dimension_numbers = #tpu.dot_dimension_numbers<[1], [0], [0], [1], [0, 0, 1, 1], [], []>} : vector<8x4xbf16>, vector<4x32xbf16>, vector<8x32xf32> -> vector<8x32xf32>
    %318 = arith.addf %313, %317 : vector<8x32xf32>
    %c0_286 = arith.constant 0 : index
    %c2_287 = arith.constant 2 : index
    %c2_288 = arith.constant 2 : index
    %c0_289 = arith.constant 0 : index
    %319 = vector.load %arg5[%c0_286, %c2_287, %c2_288, %c0_289] : memref<1x10x10x4xf32, #tpu.memory_space<vmem>>, vector<1x1x8x4xf32>
    %320 = vector.shape_cast %319 : vector<1x1x8x4xf32> to vector<8x4xf32>
    %321 = arith.truncf %320 : vector<8x4xf32> to vector<8x4xbf16>
    %cst_290 = arith.constant dense<0.000000e+00> : vector<8x32xf32>
    %322 = tpu.matmul %321, %271, %cst_290 {dimension_numbers = #tpu.dot_dimension_numbers<[1], [0], [0], [1], [0, 0, 1, 1], [], []>} : vector<8x4xbf16>, vector<4x32xbf16>, vector<8x32xf32> -> vector<8x32xf32>
    %323 = arith.addf %318, %322 : vector<8x32xf32>
    %324 = vector.broadcast %7 : vector<1x32xf32> to vector<8x32xf32>
    %325 = arith.addf %323, %324 : vector<8x32xf32>
    %326 = arith.negf %325 : vector<8x32xf32>
    %327 = math.exp %326 : vector<8x32xf32>
    %cst_291 = arith.constant 1.000000e+00 : f32
    %328 = vector.broadcast %cst_291 : f32 to vector<8x32xf32>
    %329 = arith.addf %328, %327 : vector<8x32xf32>
    %330 = arith.divf %328, %329 : vector<8x32xf32>
    %c0_292 = arith.constant 0 : index
    %c1_293 = arith.constant 1 : index
    %c0_294 = arith.constant 0 : index
    %c32_295 = arith.constant 32 : index
    %331 = vector.load %arg4[%c0_292, %c1_293, %c0_294, %c32_295] : memref<1x8x8x128xf32, #tpu.memory_space<vmem>>, vector<1x1x8x32xf32>
    %332 = vector.shape_cast %331 : vector<1x1x8x32xf32> to vector<8x32xf32>
    %333 = vector.shape_cast %330 : vector<8x32xf32> to vector<1x1x8x32xf32>
    tpu.vector_store %arg4[%c0_292, %c1_293, %c0_294, %c32_295], %333 {strides = array<i32>} : memref<1x8x8x128xf32, #tpu.memory_space<vmem>>, vector<1x1x8x32xf32>,
    %cst_296 = arith.constant 0.000000e+00 : f32
    %334 = vector.broadcast %cst_296 : f32 to vector<8x32xf32>
    %c0_297 = arith.constant 0 : index
    %c2_298 = arith.constant 2 : index
    %c1_299 = arith.constant 1 : index
    %c0_300 = arith.constant 0 : index
    %335 = vector.load %arg5[%c0_297, %c2_298, %c1_299, %c0_300] : memref<1x10x10x4xf32, #tpu.memory_space<vmem>>, vector<1x1x8x4xf32>
    %336 = vector.shape_cast %335 : vector<1x1x8x4xf32> to vector<8x4xf32>
    %337 = arith.truncf %336 : vector<8x4xf32> to vector<8x4xbf16>
    %cst_301 = arith.constant dense<0.000000e+00> : vector<8x32xf32>
    %338 = tpu.matmul %337, %265, %cst_301 {dimension_numbers = #tpu.dot_dimension_numbers<[1], [0], [0], [1], [0, 0, 1, 1], [], []>} : vector<8x4xbf16>, vector<4x32xbf16>, vector<8x32xf32> -> vector<8x32xf32>
    %339 = arith.addf %334, %338 : vector<8x32xf32>
    %c0_302 = arith.constant 0 : index
    %c2_303 = arith.constant 2 : index
    %c2_304 = arith.constant 2 : index
    %c0_305 = arith.constant 0 : index
    %340 = vector.load %arg5[%c0_302, %c2_303, %c2_304, %c0_305] : memref<1x10x10x4xf32, #tpu.memory_space<vmem>>, vector<1x1x8x4xf32>
    %341 = vector.shape_cast %340 : vector<1x1x8x4xf32> to vector<8x4xf32>
    %342 = arith.truncf %341 : vector<8x4xf32> to vector<8x4xbf16>
    %cst_306 = arith.constant dense<0.000000e+00> : vector<8x32xf32>
    %343 = tpu.matmul %342, %267, %cst_306 {dimension_numbers = #tpu.dot_dimension_numbers<[1], [0], [0], [1], [0, 0, 1, 1], [], []>} : vector<8x4xbf16>, vector<4x32xbf16>, vector<8x32xf32> -> vector<8x32xf32>
    %344 = arith.addf %339, %343 : vector<8x32xf32>
    %c0_307 = arith.constant 0 : index
    %c3_308 = arith.constant 3 : index
    %c1_309 = arith.constant 1 : index
    %c0_310 = arith.constant 0 : index
    %345 = vector.load %arg5[%c0_307, %c3_308, %c1_309, %c0_310] : memref<1x10x10x4xf32, #tpu.memory_space<vmem>>, vector<1x1x8x4xf32>
    %346 = vector.shape_cast %345 : vector<1x1x8x4xf32> to vector<8x4xf32>
    %347 = arith.truncf %346 : vector<8x4xf32> to vector<8x4xbf16>
    %cst_311 = arith.constant dense<0.000000e+00> : vector<8x32xf32>
    %348 = tpu.matmul %347, %269, %cst_311 {dimension_numbers = #tpu.dot_dimension_numbers<[1], [0], [0], [1], [0, 0, 1, 1], [], []>} : vector<8x4xbf16>, vector<4x32xbf16>, vector<8x32xf32> -> vector<8x32xf32>
    %349 = arith.addf %344, %348 : vector<8x32xf32>
    %c0_312 = arith.constant 0 : index
    %c3_313 = arith.constant 3 : index
    %c2_314 = arith.constant 2 : index
    %c0_315 = arith.constant 0 : index
    %350 = vector.load %arg5[%c0_312, %c3_313, %c2_314, %c0_315] : memref<1x10x10x4xf32, #tpu.memory_space<vmem>>, vector<1x1x8x4xf32>
    %351 = vector.shape_cast %350 : vector<1x1x8x4xf32> to vector<8x4xf32>
    %352 = arith.truncf %351 : vector<8x4xf32> to vector<8x4xbf16>
    %cst_316 = arith.constant dense<0.000000e+00> : vector<8x32xf32>
    %353 = tpu.matmul %352, %271, %cst_316 {dimension_numbers = #tpu.dot_dimension_numbers<[1], [0], [0], [1], [0, 0, 1, 1], [], []>} : vector<8x4xbf16>, vector<4x32xbf16>, vector<8x32xf32> -> vector<8x32xf32>
    %354 = arith.addf %349, %353 : vector<8x32xf32>
    %355 = vector.broadcast %7 : vector<1x32xf32> to vector<8x32xf32>
    %356 = arith.addf %354, %355 : vector<8x32xf32>
    %357 = arith.negf %356 : vector<8x32xf32>
    %358 = math.exp %357 : vector<8x32xf32>
    %cst_317 = arith.constant 1.000000e+00 : f32
    %359 = vector.broadcast %cst_317 : f32 to vector<8x32xf32>
    %360 = arith.addf %359, %358 : vector<8x32xf32>
    %361 = arith.divf %359, %360 : vector<8x32xf32>
    %c0_318 = arith.constant 0 : index
    %c2_319 = arith.constant 2 : index
    %c0_320 = arith.constant 0 : index
    %c32_321 = arith.constant 32 : index
    %362 = vector.load %arg4[%c0_318, %c2_319, %c0_320, %c32_321] : memref<1x8x8x128xf32, #tpu.memory_space<vmem>>, vector<1x1x8x32xf32>
    %363 = vector.shape_cast %362 : vector<1x1x8x32xf32> to vector<8x32xf32>
    %364 = vector.shape_cast %361 : vector<8x32xf32> to vector<1x1x8x32xf32>
    tpu.vector_store %arg4[%c0_318, %c2_319, %c0_320, %c32_321], %364 {strides = array<i32>} : memref<1x8x8x128xf32, #tpu.memory_space<vmem>>, vector<1x1x8x32xf32>,
    %cst_322 = arith.constant 0.000000e+00 : f32
    %365 = vector.broadcast %cst_322 : f32 to vector<8x32xf32>
    %c0_323 = arith.constant 0 : index
    %c3_324 = arith.constant 3 : index
    %c1_325 = arith.constant 1 : index
    %c0_326 = arith.constant 0 : index
    %366 = vector.load %arg5[%c0_323, %c3_324, %c1_325, %c0_326] : memref<1x10x10x4xf32, #tpu.memory_space<vmem>>, vector<1x1x8x4xf32>
    %367 = vector.shape_cast %366 : vector<1x1x8x4xf32> to vector<8x4xf32>
    %368 = arith.truncf %367 : vector<8x4xf32> to vector<8x4xbf16>
    %cst_327 = arith.constant dense<0.000000e+00> : vector<8x32xf32>
    %369 = tpu.matmul %368, %265, %cst_327 {dimension_numbers = #tpu.dot_dimension_numbers<[1], [0], [0], [1], [0, 0, 1, 1], [], []>} : vector<8x4xbf16>, vector<4x32xbf16>, vector<8x32xf32> -> vector<8x32xf32>
    %370 = arith.addf %365, %369 : vector<8x32xf32>
    %c0_328 = arith.constant 0 : index
    %c3_329 = arith.constant 3 : index
    %c2_330 = arith.constant 2 : index
    %c0_331 = arith.constant 0 : index
    %371 = vector.load %arg5[%c0_328, %c3_329, %c2_330, %c0_331] : memref<1x10x10x4xf32, #tpu.memory_space<vmem>>, vector<1x1x8x4xf32>
    %372 = vector.shape_cast %371 : vector<1x1x8x4xf32> to vector<8x4xf32>
    %373 = arith.truncf %372 : vector<8x4xf32> to vector<8x4xbf16>
    %cst_332 = arith.constant dense<0.000000e+00> : vector<8x32xf32>
    %374 = tpu.matmul %373, %267, %cst_332 {dimension_numbers = #tpu.dot_dimension_numbers<[1], [0], [0], [1], [0, 0, 1, 1], [], []>} : vector<8x4xbf16>, vector<4x32xbf16>, vector<8x32xf32> -> vector<8x32xf32>
    %375 = arith.addf %370, %374 : vector<8x32xf32>
    %c0_333 = arith.constant 0 : index
    %c4_334 = arith.constant 4 : index
    %c1_335 = arith.constant 1 : index
    %c0_336 = arith.constant 0 : index
    %376 = vector.load %arg5[%c0_333, %c4_334, %c1_335, %c0_336] : memref<1x10x10x4xf32, #tpu.memory_space<vmem>>, vector<1x1x8x4xf32>
    %377 = vector.shape_cast %376 : vector<1x1x8x4xf32> to vector<8x4xf32>
    %378 = arith.truncf %377 : vector<8x4xf32> to vector<8x4xbf16>
    %cst_337 = arith.constant dense<0.000000e+00> : vector<8x32xf32>
    %379 = tpu.matmul %378, %269, %cst_337 {dimension_numbers = #tpu.dot_dimension_numbers<[1], [0], [0], [1], [0, 0, 1, 1], [], []>} : vector<8x4xbf16>, vector<4x32xbf16>, vector<8x32xf32> -> vector<8x32xf32>
    %380 = arith.addf %375, %379 : vector<8x32xf32>
    %c0_338 = arith.constant 0 : index
    %c4_339 = arith.constant 4 : index
    %c2_340 = arith.constant 2 : index
    %c0_341 = arith.constant 0 : index
    %381 = vector.load %arg5[%c0_338, %c4_339, %c2_340, %c0_341] : memref<1x10x10x4xf32, #tpu.memory_space<vmem>>, vector<1x1x8x4xf32>
    %382 = vector.shape_cast %381 : vector<1x1x8x4xf32> to vector<8x4xf32>
    %383 = arith.truncf %382 : vector<8x4xf32> to vector<8x4xbf16>
    %cst_342 = arith.constant dense<0.000000e+00> : vector<8x32xf32>
    %384 = tpu.matmul %383, %271, %cst_342 {dimension_numbers = #tpu.dot_dimension_numbers<[1], [0], [0], [1], [0, 0, 1, 1], [], []>} : vector<8x4xbf16>, vector<4x32xbf16>, vector<8x32xf32> -> vector<8x32xf32>
    %385 = arith.addf %380, %384 : vector<8x32xf32>
    %386 = vector.broadcast %7 : vector<1x32xf32> to vector<8x32xf32>
    %387 = arith.addf %385, %386 : vector<8x32xf32>
    %388 = arith.negf %387 : vector<8x32xf32>
    %389 = math.exp %388 : vector<8x32xf32>
    %cst_343 = arith.constant 1.000000e+00 : f32
    %390 = vector.broadcast %cst_343 : f32 to vector<8x32xf32>
    %391 = arith.addf %390, %389 : vector<8x32xf32>
    %392 = arith.divf %390, %391 : vector<8x32xf32>
    %c0_344 = arith.constant 0 : index
    %c3_345 = arith.constant 3 : index
    %c0_346 = arith.constant 0 : index
    %c32_347 = arith.constant 32 : index
    %393 = vector.load %arg4[%c0_344, %c3_345, %c0_346, %c32_347] : memref<1x8x8x128xf32, #tpu.memory_space<vmem>>, vector<1x1x8x32xf32>
    %394 = vector.shape_cast %393 : vector<1x1x8x32xf32> to vector<8x32xf32>
    %395 = vector.shape_cast %392 : vector<8x32xf32> to vector<1x1x8x32xf32>
    tpu.vector_store %arg4[%c0_344, %c3_345, %c0_346, %c32_347], %395 {strides = array<i32>} : memref<1x8x8x128xf32, #tpu.memory_space<vmem>>, vector<1x1x8x32xf32>,
    %cst_348 = arith.constant 0.000000e+00 : f32
    %396 = vector.broadcast %cst_348 : f32 to vector<8x32xf32>
    %c0_349 = arith.constant 0 : index
    %c4_350 = arith.constant 4 : index
    %c1_351 = arith.constant 1 : index
    %c0_352 = arith.constant 0 : index
    %397 = vector.load %arg5[%c0_349, %c4_350, %c1_351, %c0_352] : memref<1x10x10x4xf32, #tpu.memory_space<vmem>>, vector<1x1x8x4xf32>
    %398 = vector.shape_cast %397 : vector<1x1x8x4xf32> to vector<8x4xf32>
    %399 = arith.truncf %398 : vector<8x4xf32> to vector<8x4xbf16>
    %cst_353 = arith.constant dense<0.000000e+00> : vector<8x32xf32>
    %400 = tpu.matmul %399, %265, %cst_353 {dimension_numbers = #tpu.dot_dimension_numbers<[1], [0], [0], [1], [0, 0, 1, 1], [], []>} : vector<8x4xbf16>, vector<4x32xbf16>, vector<8x32xf32> -> vector<8x32xf32>
    %401 = arith.addf %396, %400 : vector<8x32xf32>
    %c0_354 = arith.constant 0 : index
    %c4_355 = arith.constant 4 : index
    %c2_356 = arith.constant 2 : index
    %c0_357 = arith.constant 0 : index
    %402 = vector.load %arg5[%c0_354, %c4_355, %c2_356, %c0_357] : memref<1x10x10x4xf32, #tpu.memory_space<vmem>>, vector<1x1x8x4xf32>
    %403 = vector.shape_cast %402 : vector<1x1x8x4xf32> to vector<8x4xf32>
    %404 = arith.truncf %403 : vector<8x4xf32> to vector<8x4xbf16>
    %cst_358 = arith.constant dense<0.000000e+00> : vector<8x32xf32>
    %405 = tpu.matmul %404, %267, %cst_358 {dimension_numbers = #tpu.dot_dimension_numbers<[1], [0], [0], [1], [0, 0, 1, 1], [], []>} : vector<8x4xbf16>, vector<4x32xbf16>, vector<8x32xf32> -> vector<8x32xf32>
    %406 = arith.addf %401, %405 : vector<8x32xf32>
    %c0_359 = arith.constant 0 : index
    %c5_360 = arith.constant 5 : index
    %c1_361 = arith.constant 1 : index
    %c0_362 = arith.constant 0 : index
    %407 = vector.load %arg5[%c0_359, %c5_360, %c1_361, %c0_362] : memref<1x10x10x4xf32, #tpu.memory_space<vmem>>, vector<1x1x8x4xf32>
    %408 = vector.shape_cast %407 : vector<1x1x8x4xf32> to vector<8x4xf32>
    %409 = arith.truncf %408 : vector<8x4xf32> to vector<8x4xbf16>
    %cst_363 = arith.constant dense<0.000000e+00> : vector<8x32xf32>
    %410 = tpu.matmul %409, %269, %cst_363 {dimension_numbers = #tpu.dot_dimension_numbers<[1], [0], [0], [1], [0, 0, 1, 1], [], []>} : vector<8x4xbf16>, vector<4x32xbf16>, vector<8x32xf32> -> vector<8x32xf32>
    %411 = arith.addf %406, %410 : vector<8x32xf32>
    %c0_364 = arith.constant 0 : index
    %c5_365 = arith.constant 5 : index
    %c2_366 = arith.constant 2 : index
    %c0_367 = arith.constant 0 : index
    %412 = vector.load %arg5[%c0_364, %c5_365, %c2_366, %c0_367] : memref<1x10x10x4xf32, #tpu.memory_space<vmem>>, vector<1x1x8x4xf32>
    %413 = vector.shape_cast %412 : vector<1x1x8x4xf32> to vector<8x4xf32>
    %414 = arith.truncf %413 : vector<8x4xf32> to vector<8x4xbf16>
    %cst_368 = arith.constant dense<0.000000e+00> : vector<8x32xf32>
    %415 = tpu.matmul %414, %271, %cst_368 {dimension_numbers = #tpu.dot_dimension_numbers<[1], [0], [0], [1], [0, 0, 1, 1], [], []>} : vector<8x4xbf16>, vector<4x32xbf16>, vector<8x32xf32> -> vector<8x32xf32>
    %416 = arith.addf %411, %415 : vector<8x32xf32>
    %417 = vector.broadcast %7 : vector<1x32xf32> to vector<8x32xf32>
    %418 = arith.addf %416, %417 : vector<8x32xf32>
    %419 = arith.negf %418 : vector<8x32xf32>
    %420 = math.exp %419 : vector<8x32xf32>
    %cst_369 = arith.constant 1.000000e+00 : f32
    %421 = vector.broadcast %cst_369 : f32 to vector<8x32xf32>
    %422 = arith.addf %421, %420 : vector<8x32xf32>
    %423 = arith.divf %421, %422 : vector<8x32xf32>
    %c0_370 = arith.constant 0 : index
    %c4_371 = arith.constant 4 : index
    %c0_372 = arith.constant 0 : index
    %c32_373 = arith.constant 32 : index
    %424 = vector.load %arg4[%c0_370, %c4_371, %c0_372, %c32_373] : memref<1x8x8x128xf32, #tpu.memory_space<vmem>>, vector<1x1x8x32xf32>
    %425 = vector.shape_cast %424 : vector<1x1x8x32xf32> to vector<8x32xf32>
    %426 = vector.shape_cast %423 : vector<8x32xf32> to vector<1x1x8x32xf32>
    tpu.vector_store %arg4[%c0_370, %c4_371, %c0_372, %c32_373], %426 {strides = array<i32>} : memref<1x8x8x128xf32, #tpu.memory_space<vmem>>, vector<1x1x8x32xf32>,
    %cst_374 = arith.constant 0.000000e+00 : f32
    %427 = vector.broadcast %cst_374 : f32 to vector<8x32xf32>
    %c0_375 = arith.constant 0 : index
    %c5_376 = arith.constant 5 : index
    %c1_377 = arith.constant 1 : index
    %c0_378 = arith.constant 0 : index
    %428 = vector.load %arg5[%c0_375, %c5_376, %c1_377, %c0_378] : memref<1x10x10x4xf32, #tpu.memory_space<vmem>>, vector<1x1x8x4xf32>
    %429 = vector.shape_cast %428 : vector<1x1x8x4xf32> to vector<8x4xf32>
    %430 = arith.truncf %429 : vector<8x4xf32> to vector<8x4xbf16>
    %cst_379 = arith.constant dense<0.000000e+00> : vector<8x32xf32>
    %431 = tpu.matmul %430, %265, %cst_379 {dimension_numbers = #tpu.dot_dimension_numbers<[1], [0], [0], [1], [0, 0, 1, 1], [], []>} : vector<8x4xbf16>, vector<4x32xbf16>, vector<8x32xf32> -> vector<8x32xf32>
    %432 = arith.addf %427, %431 : vector<8x32xf32>
    %c0_380 = arith.constant 0 : index
    %c5_381 = arith.constant 5 : index
    %c2_382 = arith.constant 2 : index
    %c0_383 = arith.constant 0 : index
    %433 = vector.load %arg5[%c0_380, %c5_381, %c2_382, %c0_383] : memref<1x10x10x4xf32, #tpu.memory_space<vmem>>, vector<1x1x8x4xf32>
    %434 = vector.shape_cast %433 : vector<1x1x8x4xf32> to vector<8x4xf32>
    %435 = arith.truncf %434 : vector<8x4xf32> to vector<8x4xbf16>
    %cst_384 = arith.constant dense<0.000000e+00> : vector<8x32xf32>
    %436 = tpu.matmul %435, %267, %cst_384 {dimension_numbers = #tpu.dot_dimension_numbers<[1], [0], [0], [1], [0, 0, 1, 1], [], []>} : vector<8x4xbf16>, vector<4x32xbf16>, vector<8x32xf32> -> vector<8x32xf32>
    %437 = arith.addf %432, %436 : vector<8x32xf32>
    %c0_385 = arith.constant 0 : index
    %c6_386 = arith.constant 6 : index
    %c1_387 = arith.constant 1 : index
    %c0_388 = arith.constant 0 : index
    %438 = vector.load %arg5[%c0_385, %c6_386, %c1_387, %c0_388] : memref<1x10x10x4xf32, #tpu.memory_space<vmem>>, vector<1x1x8x4xf32>
    %439 = vector.shape_cast %438 : vector<1x1x8x4xf32> to vector<8x4xf32>
    %440 = arith.truncf %439 : vector<8x4xf32> to vector<8x4xbf16>
    %cst_389 = arith.constant dense<0.000000e+00> : vector<8x32xf32>
    %441 = tpu.matmul %440, %269, %cst_389 {dimension_numbers = #tpu.dot_dimension_numbers<[1], [0], [0], [1], [0, 0, 1, 1], [], []>} : vector<8x4xbf16>, vector<4x32xbf16>, vector<8x32xf32> -> vector<8x32xf32>
    %442 = arith.addf %437, %441 : vector<8x32xf32>
    %c0_390 = arith.constant 0 : index
    %c6_391 = arith.constant 6 : index
    %c2_392 = arith.constant 2 : index
    %c0_393 = arith.constant 0 : index
    %443 = vector.load %arg5[%c0_390, %c6_391, %c2_392, %c0_393] : memref<1x10x10x4xf32, #tpu.memory_space<vmem>>, vector<1x1x8x4xf32>
    %444 = vector.shape_cast %443 : vector<1x1x8x4xf32> to vector<8x4xf32>
    %445 = arith.truncf %444 : vector<8x4xf32> to vector<8x4xbf16>
    %cst_394 = arith.constant dense<0.000000e+00> : vector<8x32xf32>
    %446 = tpu.matmul %445, %271, %cst_394 {dimension_numbers = #tpu.dot_dimension_numbers<[1], [0], [0], [1], [0, 0, 1, 1], [], []>} : vector<8x4xbf16>, vector<4x32xbf16>, vector<8x32xf32> -> vector<8x32xf32>
    %447 = arith.addf %442, %446 : vector<8x32xf32>
    %448 = vector.broadcast %7 : vector<1x32xf32> to vector<8x32xf32>
    %449 = arith.addf %447, %448 : vector<8x32xf32>
    %450 = arith.negf %449 : vector<8x32xf32>
    %451 = math.exp %450 : vector<8x32xf32>
    %cst_395 = arith.constant 1.000000e+00 : f32
    %452 = vector.broadcast %cst_395 : f32 to vector<8x32xf32>
    %453 = arith.addf %452, %451 : vector<8x32xf32>
    %454 = arith.divf %452, %453 : vector<8x32xf32>
    %c0_396 = arith.constant 0 : index
    %c5_397 = arith.constant 5 : index
    %c0_398 = arith.constant 0 : index
    %c32_399 = arith.constant 32 : index
    %455 = vector.load %arg4[%c0_396, %c5_397, %c0_398, %c32_399] : memref<1x8x8x128xf32, #tpu.memory_space<vmem>>, vector<1x1x8x32xf32>
    %456 = vector.shape_cast %455 : vector<1x1x8x32xf32> to vector<8x32xf32>
    %457 = vector.shape_cast %454 : vector<8x32xf32> to vector<1x1x8x32xf32>
    tpu.vector_store %arg4[%c0_396, %c5_397, %c0_398, %c32_399], %457 {strides = array<i32>} : memref<1x8x8x128xf32, #tpu.memory_space<vmem>>, vector<1x1x8x32xf32>,
    %cst_400 = arith.constant 0.000000e+00 : f32
    %458 = vector.broadcast %cst_400 : f32 to vector<8x32xf32>
    %c0_401 = arith.constant 0 : index
    %c6_402 = arith.constant 6 : index
    %c1_403 = arith.constant 1 : index
    %c0_404 = arith.constant 0 : index
    %459 = vector.load %arg5[%c0_401, %c6_402, %c1_403, %c0_404] : memref<1x10x10x4xf32, #tpu.memory_space<vmem>>, vector<1x1x8x4xf32>
    %460 = vector.shape_cast %459 : vector<1x1x8x4xf32> to vector<8x4xf32>
    %461 = arith.truncf %460 : vector<8x4xf32> to vector<8x4xbf16>
    %cst_405 = arith.constant dense<0.000000e+00> : vector<8x32xf32>
    %462 = tpu.matmul %461, %265, %cst_405 {dimension_numbers = #tpu.dot_dimension_numbers<[1], [0], [0], [1], [0, 0, 1, 1], [], []>} : vector<8x4xbf16>, vector<4x32xbf16>, vector<8x32xf32> -> vector<8x32xf32>
    %463 = arith.addf %458, %462 : vector<8x32xf32>
    %c0_406 = arith.constant 0 : index
    %c6_407 = arith.constant 6 : index
    %c2_408 = arith.constant 2 : index
    %c0_409 = arith.constant 0 : index
    %464 = vector.load %arg5[%c0_406, %c6_407, %c2_408, %c0_409] : memref<1x10x10x4xf32, #tpu.memory_space<vmem>>, vector<1x1x8x4xf32>
    %465 = vector.shape_cast %464 : vector<1x1x8x4xf32> to vector<8x4xf32>
    %466 = arith.truncf %465 : vector<8x4xf32> to vector<8x4xbf16>
    %cst_410 = arith.constant dense<0.000000e+00> : vector<8x32xf32>
    %467 = tpu.matmul %466, %267, %cst_410 {dimension_numbers = #tpu.dot_dimension_numbers<[1], [0], [0], [1], [0, 0, 1, 1], [], []>} : vector<8x4xbf16>, vector<4x32xbf16>, vector<8x32xf32> -> vector<8x32xf32>
    %468 = arith.addf %463, %467 : vector<8x32xf32>
    %c0_411 = arith.constant 0 : index
    %c7_412 = arith.constant 7 : index
    %c1_413 = arith.constant 1 : index
    %c0_414 = arith.constant 0 : index
    %469 = vector.load %arg5[%c0_411, %c7_412, %c1_413, %c0_414] : memref<1x10x10x4xf32, #tpu.memory_space<vmem>>, vector<1x1x8x4xf32>
    %470 = vector.shape_cast %469 : vector<1x1x8x4xf32> to vector<8x4xf32>
    %471 = arith.truncf %470 : vector<8x4xf32> to vector<8x4xbf16>
    %cst_415 = arith.constant dense<0.000000e+00> : vector<8x32xf32>
    %472 = tpu.matmul %471, %269, %cst_415 {dimension_numbers = #tpu.dot_dimension_numbers<[1], [0], [0], [1], [0, 0, 1, 1], [], []>} : vector<8x4xbf16>, vector<4x32xbf16>, vector<8x32xf32> -> vector<8x32xf32>
    %473 = arith.addf %468, %472 : vector<8x32xf32>
    %c0_416 = arith.constant 0 : index
    %c7_417 = arith.constant 7 : index
    %c2_418 = arith.constant 2 : index
    %c0_419 = arith.constant 0 : index
    %474 = vector.load %arg5[%c0_416, %c7_417, %c2_418, %c0_419] : memref<1x10x10x4xf32, #tpu.memory_space<vmem>>, vector<1x1x8x4xf32>
    %475 = vector.shape_cast %474 : vector<1x1x8x4xf32> to vector<8x4xf32>
    %476 = arith.truncf %475 : vector<8x4xf32> to vector<8x4xbf16>
    %cst_420 = arith.constant dense<0.000000e+00> : vector<8x32xf32>
    %477 = tpu.matmul %476, %271, %cst_420 {dimension_numbers = #tpu.dot_dimension_numbers<[1], [0], [0], [1], [0, 0, 1, 1], [], []>} : vector<8x4xbf16>, vector<4x32xbf16>, vector<8x32xf32> -> vector<8x32xf32>
    %478 = arith.addf %473, %477 : vector<8x32xf32>
    %479 = vector.broadcast %7 : vector<1x32xf32> to vector<8x32xf32>
    %480 = arith.addf %478, %479 : vector<8x32xf32>
    %481 = arith.negf %480 : vector<8x32xf32>
    %482 = math.exp %481 : vector<8x32xf32>
    %cst_421 = arith.constant 1.000000e+00 : f32
    %483 = vector.broadcast %cst_421 : f32 to vector<8x32xf32>
    %484 = arith.addf %483, %482 : vector<8x32xf32>
    %485 = arith.divf %483, %484 : vector<8x32xf32>
    %c0_422 = arith.constant 0 : index
    %c6_423 = arith.constant 6 : index
    %c0_424 = arith.constant 0 : index
    %c32_425 = arith.constant 32 : index
    %486 = vector.load %arg4[%c0_422, %c6_423, %c0_424, %c32_425] : memref<1x8x8x128xf32, #tpu.memory_space<vmem>>, vector<1x1x8x32xf32>
    %487 = vector.shape_cast %486 : vector<1x1x8x32xf32> to vector<8x32xf32>
    %488 = vector.shape_cast %485 : vector<8x32xf32> to vector<1x1x8x32xf32>
    tpu.vector_store %arg4[%c0_422, %c6_423, %c0_424, %c32_425], %488 {strides = array<i32>} : memref<1x8x8x128xf32, #tpu.memory_space<vmem>>, vector<1x1x8x32xf32>,
    %cst_426 = arith.constant 0.000000e+00 : f32
    %489 = vector.broadcast %cst_426 : f32 to vector<8x32xf32>
    %c0_427 = arith.constant 0 : index
    %c7_428 = arith.constant 7 : index
    %c1_429 = arith.constant 1 : index
    %c0_430 = arith.constant 0 : index
    %490 = vector.load %arg5[%c0_427, %c7_428, %c1_429, %c0_430] : memref<1x10x10x4xf32, #tpu.memory_space<vmem>>, vector<1x1x8x4xf32>
    %491 = vector.shape_cast %490 : vector<1x1x8x4xf32> to vector<8x4xf32>
    %492 = arith.truncf %491 : vector<8x4xf32> to vector<8x4xbf16>
    %cst_431 = arith.constant dense<0.000000e+00> : vector<8x32xf32>
    %493 = tpu.matmul %492, %265, %cst_431 {dimension_numbers = #tpu.dot_dimension_numbers<[1], [0], [0], [1], [0, 0, 1, 1], [], []>} : vector<8x4xbf16>, vector<4x32xbf16>, vector<8x32xf32> -> vector<8x32xf32>
    %494 = arith.addf %489, %493 : vector<8x32xf32>
    %c0_432 = arith.constant 0 : index
    %c7_433 = arith.constant 7 : index
    %c2_434 = arith.constant 2 : index
    %c0_435 = arith.constant 0 : index
    %495 = vector.load %arg5[%c0_432, %c7_433, %c2_434, %c0_435] : memref<1x10x10x4xf32, #tpu.memory_space<vmem>>, vector<1x1x8x4xf32>
    %496 = vector.shape_cast %495 : vector<1x1x8x4xf32> to vector<8x4xf32>
    %497 = arith.truncf %496 : vector<8x4xf32> to vector<8x4xbf16>
    %cst_436 = arith.constant dense<0.000000e+00> : vector<8x32xf32>
    %498 = tpu.matmul %497, %267, %cst_436 {dimension_numbers = #tpu.dot_dimension_numbers<[1], [0], [0], [1], [0, 0, 1, 1], [], []>} : vector<8x4xbf16>, vector<4x32xbf16>, vector<8x32xf32> -> vector<8x32xf32>
    %499 = arith.addf %494, %498 : vector<8x32xf32>
    %c0_437 = arith.constant 0 : index
    %c8_438 = arith.constant 8 : index
    %c1_439 = arith.constant 1 : index
    %c0_440 = arith.constant 0 : index
    %500 = vector.load %arg5[%c0_437, %c8_438, %c1_439, %c0_440] : memref<1x10x10x4xf32, #tpu.memory_space<vmem>>, vector<1x1x8x4xf32>
    %501 = vector.shape_cast %500 : vector<1x1x8x4xf32> to vector<8x4xf32>
    %502 = arith.truncf %501 : vector<8x4xf32> to vector<8x4xbf16>
    %cst_441 = arith.constant dense<0.000000e+00> : vector<8x32xf32>
    %503 = tpu.matmul %502, %269, %cst_441 {dimension_numbers = #tpu.dot_dimension_numbers<[1], [0], [0], [1], [0, 0, 1, 1], [], []>} : vector<8x4xbf16>, vector<4x32xbf16>, vector<8x32xf32> -> vector<8x32xf32>
    %504 = arith.addf %499, %503 : vector<8x32xf32>
    %c0_442 = arith.constant 0 : index
    %c8_443 = arith.constant 8 : index
    %c2_444 = arith.constant 2 : index
    %c0_445 = arith.constant 0 : index
    %505 = vector.load %arg5[%c0_442, %c8_443, %c2_444, %c0_445] : memref<1x10x10x4xf32, #tpu.memory_space<vmem>>, vector<1x1x8x4xf32>
    %506 = vector.shape_cast %505 : vector<1x1x8x4xf32> to vector<8x4xf32>
    %507 = arith.truncf %506 : vector<8x4xf32> to vector<8x4xbf16>
    %cst_446 = arith.constant dense<0.000000e+00> : vector<8x32xf32>
    %508 = tpu.matmul %507, %271, %cst_446 {dimension_numbers = #tpu.dot_dimension_numbers<[1], [0], [0], [1], [0, 0, 1, 1], [], []>} : vector<8x4xbf16>, vector<4x32xbf16>, vector<8x32xf32> -> vector<8x32xf32>
    %509 = arith.addf %504, %508 : vector<8x32xf32>
    %510 = vector.broadcast %7 : vector<1x32xf32> to vector<8x32xf32>
    %511 = arith.addf %509, %510 : vector<8x32xf32>
    %512 = arith.negf %511 : vector<8x32xf32>
    %513 = math.exp %512 : vector<8x32xf32>
    %cst_447 = arith.constant 1.000000e+00 : f32
    %514 = vector.broadcast %cst_447 : f32 to vector<8x32xf32>
    %515 = arith.addf %514, %513 : vector<8x32xf32>
    %516 = arith.divf %514, %515 : vector<8x32xf32>
    %c0_448 = arith.constant 0 : index
    %c7_449 = arith.constant 7 : index
    %c0_450 = arith.constant 0 : index
    %c32_451 = arith.constant 32 : index
    %517 = vector.load %arg4[%c0_448, %c7_449, %c0_450, %c32_451] : memref<1x8x8x128xf32, #tpu.memory_space<vmem>>, vector<1x1x8x32xf32>
    %518 = vector.shape_cast %517 : vector<1x1x8x32xf32> to vector<8x32xf32>
    %519 = vector.shape_cast %516 : vector<8x32xf32> to vector<1x1x8x32xf32>
    tpu.vector_store %arg4[%c0_448, %c7_449, %c0_450, %c32_451], %519 {strides = array<i32>} : memref<1x8x8x128xf32, #tpu.memory_space<vmem>>, vector<1x1x8x32xf32>,
    %c2_452 = arith.constant 2 : index
    %c0_453 = arith.constant 0 : index
    %c0_454 = arith.constant 0 : index
    %c0_455 = arith.constant 0 : index
    %520 = vector.load %arg2[%c2_452, %c0_453, %c0_454, %c0_455] : memref<4x4x4x32xbf16, #tpu.memory_space<vmem>>, vector<1x1x4x32xbf16>
    %521 = vector.shape_cast %520 : vector<1x1x4x32xbf16> to vector<4x32xbf16>
    %c2_456 = arith.constant 2 : index
    %c1_457 = arith.constant 1 : index
    %c0_458 = arith.constant 0 : index
    %c0_459 = arith.constant 0 : index
    %522 = vector.load %arg2[%c2_456, %c1_457, %c0_458, %c0_459] : memref<4x4x4x32xbf16, #tpu.memory_space<vmem>>, vector<1x1x4x32xbf16>
    %523 = vector.shape_cast %522 : vector<1x1x4x32xbf16> to vector<4x32xbf16>
    %c2_460 = arith.constant 2 : index
    %c2_461 = arith.constant 2 : index
    %c0_462 = arith.constant 0 : index
    %c0_463 = arith.constant 0 : index
    %524 = vector.load %arg2[%c2_460, %c2_461, %c0_462, %c0_463] : memref<4x4x4x32xbf16, #tpu.memory_space<vmem>>, vector<1x1x4x32xbf16>
    %525 = vector.shape_cast %524 : vector<1x1x4x32xbf16> to vector<4x32xbf16>
    %c2_464 = arith.constant 2 : index
    %c3_465 = arith.constant 3 : index
    %c0_466 = arith.constant 0 : index
    %c0_467 = arith.constant 0 : index
    %526 = vector.load %arg2[%c2_464, %c3_465, %c0_466, %c0_467] : memref<4x4x4x32xbf16, #tpu.memory_space<vmem>>, vector<1x1x4x32xbf16>
    %527 = vector.shape_cast %526 : vector<1x1x4x32xbf16> to vector<4x32xbf16>
    %cst_468 = arith.constant 0.000000e+00 : f32
    %528 = vector.broadcast %cst_468 : f32 to vector<8x32xf32>
    %c0_469 = arith.constant 0 : index
    %c1_470 = arith.constant 1 : index
    %c0_471 = arith.constant 0 : index
    %c0_472 = arith.constant 0 : index
    %529 = vector.load %arg5[%c0_469, %c1_470, %c0_471, %c0_472] : memref<1x10x10x4xf32, #tpu.memory_space<vmem>>, vector<1x1x8x4xf32>
    %530 = vector.shape_cast %529 : vector<1x1x8x4xf32> to vector<8x4xf32>
    %531 = arith.truncf %530 : vector<8x4xf32> to vector<8x4xbf16>
    %cst_473 = arith.constant dense<0.000000e+00> : vector<8x32xf32>
    %532 = tpu.matmul %531, %521, %cst_473 {dimension_numbers = #tpu.dot_dimension_numbers<[1], [0], [0], [1], [0, 0, 1, 1], [], []>} : vector<8x4xbf16>, vector<4x32xbf16>, vector<8x32xf32> -> vector<8x32xf32>
    %533 = arith.addf %528, %532 : vector<8x32xf32>
    %c0_474 = arith.constant 0 : index
    %c1_475 = arith.constant 1 : index
    %c1_476 = arith.constant 1 : index
    %c0_477 = arith.constant 0 : index
    %534 = vector.load %arg5[%c0_474, %c1_475, %c1_476, %c0_477] : memref<1x10x10x4xf32, #tpu.memory_space<vmem>>, vector<1x1x8x4xf32>
    %535 = vector.shape_cast %534 : vector<1x1x8x4xf32> to vector<8x4xf32>
    %536 = arith.truncf %535 : vector<8x4xf32> to vector<8x4xbf16>
    %cst_478 = arith.constant dense<0.000000e+00> : vector<8x32xf32>
    %537 = tpu.matmul %536, %523, %cst_478 {dimension_numbers = #tpu.dot_dimension_numbers<[1], [0], [0], [1], [0, 0, 1, 1], [], []>} : vector<8x4xbf16>, vector<4x32xbf16>, vector<8x32xf32> -> vector<8x32xf32>
    %538 = arith.addf %533, %537 : vector<8x32xf32>
    %c0_479 = arith.constant 0 : index
    %c2_480 = arith.constant 2 : index
    %c0_481 = arith.constant 0 : index
    %c0_482 = arith.constant 0 : index
    %539 = vector.load %arg5[%c0_479, %c2_480, %c0_481, %c0_482] : memref<1x10x10x4xf32, #tpu.memory_space<vmem>>, vector<1x1x8x4xf32>
    %540 = vector.shape_cast %539 : vector<1x1x8x4xf32> to vector<8x4xf32>
    %541 = arith.truncf %540 : vector<8x4xf32> to vector<8x4xbf16>
    %cst_483 = arith.constant dense<0.000000e+00> : vector<8x32xf32>
    %542 = tpu.matmul %541, %525, %cst_483 {dimension_numbers = #tpu.dot_dimension_numbers<[1], [0], [0], [1], [0, 0, 1, 1], [], []>} : vector<8x4xbf16>, vector<4x32xbf16>, vector<8x32xf32> -> vector<8x32xf32>
    %543 = arith.addf %538, %542 : vector<8x32xf32>
    %c0_484 = arith.constant 0 : index
    %c2_485 = arith.constant 2 : index
    %c1_486 = arith.constant 1 : index
    %c0_487 = arith.constant 0 : index
    %544 = vector.load %arg5[%c0_484, %c2_485, %c1_486, %c0_487] : memref<1x10x10x4xf32, #tpu.memory_space<vmem>>, vector<1x1x8x4xf32>
    %545 = vector.shape_cast %544 : vector<1x1x8x4xf32> to vector<8x4xf32>
    %546 = arith.truncf %545 : vector<8x4xf32> to vector<8x4xbf16>
    %cst_488 = arith.constant dense<0.000000e+00> : vector<8x32xf32>
    %547 = tpu.matmul %546, %527, %cst_488 {dimension_numbers = #tpu.dot_dimension_numbers<[1], [0], [0], [1], [0, 0, 1, 1], [], []>} : vector<8x4xbf16>, vector<4x32xbf16>, vector<8x32xf32> -> vector<8x32xf32>
    %548 = arith.addf %543, %547 : vector<8x32xf32>
    %549 = vector.broadcast %7 : vector<1x32xf32> to vector<8x32xf32>
    %550 = arith.addf %548, %549 : vector<8x32xf32>
    %551 = arith.negf %550 : vector<8x32xf32>
    %552 = math.exp %551 : vector<8x32xf32>
    %cst_489 = arith.constant 1.000000e+00 : f32
    %553 = vector.broadcast %cst_489 : f32 to vector<8x32xf32>
    %554 = arith.addf %553, %552 : vector<8x32xf32>
    %555 = arith.divf %553, %554 : vector<8x32xf32>
    %c0_490 = arith.constant 0 : index
    %c0_491 = arith.constant 0 : index
    %c0_492 = arith.constant 0 : index
    %c64 = arith.constant 64 : index
    %556 = vector.load %arg4[%c0_490, %c0_491, %c0_492, %c64] : memref<1x8x8x128xf32, #tpu.memory_space<vmem>>, vector<1x1x8x32xf32>
    %557 = vector.shape_cast %556 : vector<1x1x8x32xf32> to vector<8x32xf32>
    %558 = vector.shape_cast %555 : vector<8x32xf32> to vector<1x1x8x32xf32>
    tpu.vector_store %arg4[%c0_490, %c0_491, %c0_492, %c64], %558 {strides = array<i32>} : memref<1x8x8x128xf32, #tpu.memory_space<vmem>>, vector<1x1x8x32xf32>,
    %cst_493 = arith.constant 0.000000e+00 : f32
    %559 = vector.broadcast %cst_493 : f32 to vector<8x32xf32>
    %c0_494 = arith.constant 0 : index
    %c2_495 = arith.constant 2 : index
    %c0_496 = arith.constant 0 : index
    %c0_497 = arith.constant 0 : index
    %560 = vector.load %arg5[%c0_494, %c2_495, %c0_496, %c0_497] : memref<1x10x10x4xf32, #tpu.memory_space<vmem>>, vector<1x1x8x4xf32>
    %561 = vector.shape_cast %560 : vector<1x1x8x4xf32> to vector<8x4xf32>
    %562 = arith.truncf %561 : vector<8x4xf32> to vector<8x4xbf16>
    %cst_498 = arith.constant dense<0.000000e+00> : vector<8x32xf32>
    %563 = tpu.matmul %562, %521, %cst_498 {dimension_numbers = #tpu.dot_dimension_numbers<[1], [0], [0], [1], [0, 0, 1, 1], [], []>} : vector<8x4xbf16>, vector<4x32xbf16>, vector<8x32xf32> -> vector<8x32xf32>
    %564 = arith.addf %559, %563 : vector<8x32xf32>
    %c0_499 = arith.constant 0 : index
    %c2_500 = arith.constant 2 : index
    %c1_501 = arith.constant 1 : index
    %c0_502 = arith.constant 0 : index
    %565 = vector.load %arg5[%c0_499, %c2_500, %c1_501, %c0_502] : memref<1x10x10x4xf32, #tpu.memory_space<vmem>>, vector<1x1x8x4xf32>
    %566 = vector.shape_cast %565 : vector<1x1x8x4xf32> to vector<8x4xf32>
    %567 = arith.truncf %566 : vector<8x4xf32> to vector<8x4xbf16>
    %cst_503 = arith.constant dense<0.000000e+00> : vector<8x32xf32>
    %568 = tpu.matmul %567, %523, %cst_503 {dimension_numbers = #tpu.dot_dimension_numbers<[1], [0], [0], [1], [0, 0, 1, 1], [], []>} : vector<8x4xbf16>, vector<4x32xbf16>, vector<8x32xf32> -> vector<8x32xf32>
    %569 = arith.addf %564, %568 : vector<8x32xf32>
    %c0_504 = arith.constant 0 : index
    %c3_505 = arith.constant 3 : index
    %c0_506 = arith.constant 0 : index
    %c0_507 = arith.constant 0 : index
    %570 = vector.load %arg5[%c0_504, %c3_505, %c0_506, %c0_507] : memref<1x10x10x4xf32, #tpu.memory_space<vmem>>, vector<1x1x8x4xf32>
    %571 = vector.shape_cast %570 : vector<1x1x8x4xf32> to vector<8x4xf32>
    %572 = arith.truncf %571 : vector<8x4xf32> to vector<8x4xbf16>
    %cst_508 = arith.constant dense<0.000000e+00> : vector<8x32xf32>
    %573 = tpu.matmul %572, %525, %cst_508 {dimension_numbers = #tpu.dot_dimension_numbers<[1], [0], [0], [1], [0, 0, 1, 1], [], []>} : vector<8x4xbf16>, vector<4x32xbf16>, vector<8x32xf32> -> vector<8x32xf32>
    %574 = arith.addf %569, %573 : vector<8x32xf32>
    %c0_509 = arith.constant 0 : index
    %c3_510 = arith.constant 3 : index
    %c1_511 = arith.constant 1 : index
    %c0_512 = arith.constant 0 : index
    %575 = vector.load %arg5[%c0_509, %c3_510, %c1_511, %c0_512] : memref<1x10x10x4xf32, #tpu.memory_space<vmem>>, vector<1x1x8x4xf32>
    %576 = vector.shape_cast %575 : vector<1x1x8x4xf32> to vector<8x4xf32>
    %577 = arith.truncf %576 : vector<8x4xf32> to vector<8x4xbf16>
    %cst_513 = arith.constant dense<0.000000e+00> : vector<8x32xf32>
    %578 = tpu.matmul %577, %527, %cst_513 {dimension_numbers = #tpu.dot_dimension_numbers<[1], [0], [0], [1], [0, 0, 1, 1], [], []>} : vector<8x4xbf16>, vector<4x32xbf16>, vector<8x32xf32> -> vector<8x32xf32>
    %579 = arith.addf %574, %578 : vector<8x32xf32>
    %580 = vector.broadcast %7 : vector<1x32xf32> to vector<8x32xf32>
    %581 = arith.addf %579, %580 : vector<8x32xf32>
    %582 = arith.negf %581 : vector<8x32xf32>
    %583 = math.exp %582 : vector<8x32xf32>
    %cst_514 = arith.constant 1.000000e+00 : f32
    %584 = vector.broadcast %cst_514 : f32 to vector<8x32xf32>
    %585 = arith.addf %584, %583 : vector<8x32xf32>
    %586 = arith.divf %584, %585 : vector<8x32xf32>
    %c0_515 = arith.constant 0 : index
    %c1_516 = arith.constant 1 : index
    %c0_517 = arith.constant 0 : index
    %c64_518 = arith.constant 64 : index
    %587 = vector.load %arg4[%c0_515, %c1_516, %c0_517, %c64_518] : memref<1x8x8x128xf32, #tpu.memory_space<vmem>>, vector<1x1x8x32xf32>
    %588 = vector.shape_cast %587 : vector<1x1x8x32xf32> to vector<8x32xf32>
    %589 = vector.shape_cast %586 : vector<8x32xf32> to vector<1x1x8x32xf32>
    tpu.vector_store %arg4[%c0_515, %c1_516, %c0_517, %c64_518], %589 {strides = array<i32>} : memref<1x8x8x128xf32, #tpu.memory_space<vmem>>, vector<1x1x8x32xf32>,
    %cst_519 = arith.constant 0.000000e+00 : f32
    %590 = vector.broadcast %cst_519 : f32 to vector<8x32xf32>
    %c0_520 = arith.constant 0 : index
    %c3_521 = arith.constant 3 : index
    %c0_522 = arith.constant 0 : index
    %c0_523 = arith.constant 0 : index
    %591 = vector.load %arg5[%c0_520, %c3_521, %c0_522, %c0_523] : memref<1x10x10x4xf32, #tpu.memory_space<vmem>>, vector<1x1x8x4xf32>
    %592 = vector.shape_cast %591 : vector<1x1x8x4xf32> to vector<8x4xf32>
    %593 = arith.truncf %592 : vector<8x4xf32> to vector<8x4xbf16>
    %cst_524 = arith.constant dense<0.000000e+00> : vector<8x32xf32>
    %594 = tpu.matmul %593, %521, %cst_524 {dimension_numbers = #tpu.dot_dimension_numbers<[1], [0], [0], [1], [0, 0, 1, 1], [], []>} : vector<8x4xbf16>, vector<4x32xbf16>, vector<8x32xf32> -> vector<8x32xf32>
    %595 = arith.addf %590, %594 : vector<8x32xf32>
    %c0_525 = arith.constant 0 : index
    %c3_526 = arith.constant 3 : index
    %c1_527 = arith.constant 1 : index
    %c0_528 = arith.constant 0 : index
    %596 = vector.load %arg5[%c0_525, %c3_526, %c1_527, %c0_528] : memref<1x10x10x4xf32, #tpu.memory_space<vmem>>, vector<1x1x8x4xf32>
    %597 = vector.shape_cast %596 : vector<1x1x8x4xf32> to vector<8x4xf32>
    %598 = arith.truncf %597 : vector<8x4xf32> to vector<8x4xbf16>
    %cst_529 = arith.constant dense<0.000000e+00> : vector<8x32xf32>
    %599 = tpu.matmul %598, %523, %cst_529 {dimension_numbers = #tpu.dot_dimension_numbers<[1], [0], [0], [1], [0, 0, 1, 1], [], []>} : vector<8x4xbf16>, vector<4x32xbf16>, vector<8x32xf32> -> vector<8x32xf32>
    %600 = arith.addf %595, %599 : vector<8x32xf32>
    %c0_530 = arith.constant 0 : index
    %c4_531 = arith.constant 4 : index
    %c0_532 = arith.constant 0 : index
    %c0_533 = arith.constant 0 : index
    %601 = vector.load %arg5[%c0_530, %c4_531, %c0_532, %c0_533] : memref<1x10x10x4xf32, #tpu.memory_space<vmem>>, vector<1x1x8x4xf32>
    %602 = vector.shape_cast %601 : vector<1x1x8x4xf32> to vector<8x4xf32>
    %603 = arith.truncf %602 : vector<8x4xf32> to vector<8x4xbf16>
    %cst_534 = arith.constant dense<0.000000e+00> : vector<8x32xf32>
    %604 = tpu.matmul %603, %525, %cst_534 {dimension_numbers = #tpu.dot_dimension_numbers<[1], [0], [0], [1], [0, 0, 1, 1], [], []>} : vector<8x4xbf16>, vector<4x32xbf16>, vector<8x32xf32> -> vector<8x32xf32>
    %605 = arith.addf %600, %604 : vector<8x32xf32>
    %c0_535 = arith.constant 0 : index
    %c4_536 = arith.constant 4 : index
    %c1_537 = arith.constant 1 : index
    %c0_538 = arith.constant 0 : index
    %606 = vector.load %arg5[%c0_535, %c4_536, %c1_537, %c0_538] : memref<1x10x10x4xf32, #tpu.memory_space<vmem>>, vector<1x1x8x4xf32>
    %607 = vector.shape_cast %606 : vector<1x1x8x4xf32> to vector<8x4xf32>
    %608 = arith.truncf %607 : vector<8x4xf32> to vector<8x4xbf16>
    %cst_539 = arith.constant dense<0.000000e+00> : vector<8x32xf32>
    %609 = tpu.matmul %608, %527, %cst_539 {dimension_numbers = #tpu.dot_dimension_numbers<[1], [0], [0], [1], [0, 0, 1, 1], [], []>} : vector<8x4xbf16>, vector<4x32xbf16>, vector<8x32xf32> -> vector<8x32xf32>
    %610 = arith.addf %605, %609 : vector<8x32xf32>
    %611 = vector.broadcast %7 : vector<1x32xf32> to vector<8x32xf32>
    %612 = arith.addf %610, %611 : vector<8x32xf32>
    %613 = arith.negf %612 : vector<8x32xf32>
    %614 = math.exp %613 : vector<8x32xf32>
    %cst_540 = arith.constant 1.000000e+00 : f32
    %615 = vector.broadcast %cst_540 : f32 to vector<8x32xf32>
    %616 = arith.addf %615, %614 : vector<8x32xf32>
    %617 = arith.divf %615, %616 : vector<8x32xf32>
    %c0_541 = arith.constant 0 : index
    %c2_542 = arith.constant 2 : index
    %c0_543 = arith.constant 0 : index
    %c64_544 = arith.constant 64 : index
    %618 = vector.load %arg4[%c0_541, %c2_542, %c0_543, %c64_544] : memref<1x8x8x128xf32, #tpu.memory_space<vmem>>, vector<1x1x8x32xf32>
    %619 = vector.shape_cast %618 : vector<1x1x8x32xf32> to vector<8x32xf32>
    %620 = vector.shape_cast %617 : vector<8x32xf32> to vector<1x1x8x32xf32>
    tpu.vector_store %arg4[%c0_541, %c2_542, %c0_543, %c64_544], %620 {strides = array<i32>} : memref<1x8x8x128xf32, #tpu.memory_space<vmem>>, vector<1x1x8x32xf32>,
    %cst_545 = arith.constant 0.000000e+00 : f32
    %621 = vector.broadcast %cst_545 : f32 to vector<8x32xf32>
    %c0_546 = arith.constant 0 : index
    %c4_547 = arith.constant 4 : index
    %c0_548 = arith.constant 0 : index
    %c0_549 = arith.constant 0 : index
    %622 = vector.load %arg5[%c0_546, %c4_547, %c0_548, %c0_549] : memref<1x10x10x4xf32, #tpu.memory_space<vmem>>, vector<1x1x8x4xf32>
    %623 = vector.shape_cast %622 : vector<1x1x8x4xf32> to vector<8x4xf32>
    %624 = arith.truncf %623 : vector<8x4xf32> to vector<8x4xbf16>
    %cst_550 = arith.constant dense<0.000000e+00> : vector<8x32xf32>
    %625 = tpu.matmul %624, %521, %cst_550 {dimension_numbers = #tpu.dot_dimension_numbers<[1], [0], [0], [1], [0, 0, 1, 1], [], []>} : vector<8x4xbf16>, vector<4x32xbf16>, vector<8x32xf32> -> vector<8x32xf32>
    %626 = arith.addf %621, %625 : vector<8x32xf32>
    %c0_551 = arith.constant 0 : index
    %c4_552 = arith.constant 4 : index
    %c1_553 = arith.constant 1 : index
    %c0_554 = arith.constant 0 : index
    %627 = vector.load %arg5[%c0_551, %c4_552, %c1_553, %c0_554] : memref<1x10x10x4xf32, #tpu.memory_space<vmem>>, vector<1x1x8x4xf32>
    %628 = vector.shape_cast %627 : vector<1x1x8x4xf32> to vector<8x4xf32>
    %629 = arith.truncf %628 : vector<8x4xf32> to vector<8x4xbf16>
    %cst_555 = arith.constant dense<0.000000e+00> : vector<8x32xf32>
    %630 = tpu.matmul %629, %523, %cst_555 {dimension_numbers = #tpu.dot_dimension_numbers<[1], [0], [0], [1], [0, 0, 1, 1], [], []>} : vector<8x4xbf16>, vector<4x32xbf16>, vector<8x32xf32> -> vector<8x32xf32>
    %631 = arith.addf %626, %630 : vector<8x32xf32>
    %c0_556 = arith.constant 0 : index
    %c5_557 = arith.constant 5 : index
    %c0_558 = arith.constant 0 : index
    %c0_559 = arith.constant 0 : index
    %632 = vector.load %arg5[%c0_556, %c5_557, %c0_558, %c0_559] : memref<1x10x10x4xf32, #tpu.memory_space<vmem>>, vector<1x1x8x4xf32>
    %633 = vector.shape_cast %632 : vector<1x1x8x4xf32> to vector<8x4xf32>
    %634 = arith.truncf %633 : vector<8x4xf32> to vector<8x4xbf16>
    %cst_560 = arith.constant dense<0.000000e+00> : vector<8x32xf32>
    %635 = tpu.matmul %634, %525, %cst_560 {dimension_numbers = #tpu.dot_dimension_numbers<[1], [0], [0], [1], [0, 0, 1, 1], [], []>} : vector<8x4xbf16>, vector<4x32xbf16>, vector<8x32xf32> -> vector<8x32xf32>
    %636 = arith.addf %631, %635 : vector<8x32xf32>
    %c0_561 = arith.constant 0 : index
    %c5_562 = arith.constant 5 : index
    %c1_563 = arith.constant 1 : index
    %c0_564 = arith.constant 0 : index
    %637 = vector.load %arg5[%c0_561, %c5_562, %c1_563, %c0_564] : memref<1x10x10x4xf32, #tpu.memory_space<vmem>>, vector<1x1x8x4xf32>
    %638 = vector.shape_cast %637 : vector<1x1x8x4xf32> to vector<8x4xf32>
    %639 = arith.truncf %638 : vector<8x4xf32> to vector<8x4xbf16>
    %cst_565 = arith.constant dense<0.000000e+00> : vector<8x32xf32>
    %640 = tpu.matmul %639, %527, %cst_565 {dimension_numbers = #tpu.dot_dimension_numbers<[1], [0], [0], [1], [0, 0, 1, 1], [], []>} : vector<8x4xbf16>, vector<4x32xbf16>, vector<8x32xf32> -> vector<8x32xf32>
    %641 = arith.addf %636, %640 : vector<8x32xf32>
    %642 = vector.broadcast %7 : vector<1x32xf32> to vector<8x32xf32>
    %643 = arith.addf %641, %642 : vector<8x32xf32>
    %644 = arith.negf %643 : vector<8x32xf32>
    %645 = math.exp %644 : vector<8x32xf32>
    %cst_566 = arith.constant 1.000000e+00 : f32
    %646 = vector.broadcast %cst_566 : f32 to vector<8x32xf32>
    %647 = arith.addf %646, %645 : vector<8x32xf32>
    %648 = arith.divf %646, %647 : vector<8x32xf32>
    %c0_567 = arith.constant 0 : index
    %c3_568 = arith.constant 3 : index
    %c0_569 = arith.constant 0 : index
    %c64_570 = arith.constant 64 : index
    %649 = vector.load %arg4[%c0_567, %c3_568, %c0_569, %c64_570] : memref<1x8x8x128xf32, #tpu.memory_space<vmem>>, vector<1x1x8x32xf32>
    %650 = vector.shape_cast %649 : vector<1x1x8x32xf32> to vector<8x32xf32>
    %651 = vector.shape_cast %648 : vector<8x32xf32> to vector<1x1x8x32xf32>
    tpu.vector_store %arg4[%c0_567, %c3_568, %c0_569, %c64_570], %651 {strides = array<i32>} : memref<1x8x8x128xf32, #tpu.memory_space<vmem>>, vector<1x1x8x32xf32>,
    %cst_571 = arith.constant 0.000000e+00 : f32
    %652 = vector.broadcast %cst_571 : f32 to vector<8x32xf32>
    %c0_572 = arith.constant 0 : index
    %c5_573 = arith.constant 5 : index
    %c0_574 = arith.constant 0 : index
    %c0_575 = arith.constant 0 : index
    %653 = vector.load %arg5[%c0_572, %c5_573, %c0_574, %c0_575] : memref<1x10x10x4xf32, #tpu.memory_space<vmem>>, vector<1x1x8x4xf32>
    %654 = vector.shape_cast %653 : vector<1x1x8x4xf32> to vector<8x4xf32>
    %655 = arith.truncf %654 : vector<8x4xf32> to vector<8x4xbf16>
    %cst_576 = arith.constant dense<0.000000e+00> : vector<8x32xf32>
    %656 = tpu.matmul %655, %521, %cst_576 {dimension_numbers = #tpu.dot_dimension_numbers<[1], [0], [0], [1], [0, 0, 1, 1], [], []>} : vector<8x4xbf16>, vector<4x32xbf16>, vector<8x32xf32> -> vector<8x32xf32>
    %657 = arith.addf %652, %656 : vector<8x32xf32>
    %c0_577 = arith.constant 0 : index
    %c5_578 = arith.constant 5 : index
    %c1_579 = arith.constant 1 : index
    %c0_580 = arith.constant 0 : index
    %658 = vector.load %arg5[%c0_577, %c5_578, %c1_579, %c0_580] : memref<1x10x10x4xf32, #tpu.memory_space<vmem>>, vector<1x1x8x4xf32>
    %659 = vector.shape_cast %658 : vector<1x1x8x4xf32> to vector<8x4xf32>
    %660 = arith.truncf %659 : vector<8x4xf32> to vector<8x4xbf16>
    %cst_581 = arith.constant dense<0.000000e+00> : vector<8x32xf32>
    %661 = tpu.matmul %660, %523, %cst_581 {dimension_numbers = #tpu.dot_dimension_numbers<[1], [0], [0], [1], [0, 0, 1, 1], [], []>} : vector<8x4xbf16>, vector<4x32xbf16>, vector<8x32xf32> -> vector<8x32xf32>
    %662 = arith.addf %657, %661 : vector<8x32xf32>
    %c0_582 = arith.constant 0 : index
    %c6_583 = arith.constant 6 : index
    %c0_584 = arith.constant 0 : index
    %c0_585 = arith.constant 0 : index
    %663 = vector.load %arg5[%c0_582, %c6_583, %c0_584, %c0_585] : memref<1x10x10x4xf32, #tpu.memory_space<vmem>>, vector<1x1x8x4xf32>
    %664 = vector.shape_cast %663 : vector<1x1x8x4xf32> to vector<8x4xf32>
    %665 = arith.truncf %664 : vector<8x4xf32> to vector<8x4xbf16>
    %cst_586 = arith.constant dense<0.000000e+00> : vector<8x32xf32>
    %666 = tpu.matmul %665, %525, %cst_586 {dimension_numbers = #tpu.dot_dimension_numbers<[1], [0], [0], [1], [0, 0, 1, 1], [], []>} : vector<8x4xbf16>, vector<4x32xbf16>, vector<8x32xf32> -> vector<8x32xf32>
    %667 = arith.addf %662, %666 : vector<8x32xf32>
    %c0_587 = arith.constant 0 : index
    %c6_588 = arith.constant 6 : index
    %c1_589 = arith.constant 1 : index
    %c0_590 = arith.constant 0 : index
    %668 = vector.load %arg5[%c0_587, %c6_588, %c1_589, %c0_590] : memref<1x10x10x4xf32, #tpu.memory_space<vmem>>, vector<1x1x8x4xf32>
    %669 = vector.shape_cast %668 : vector<1x1x8x4xf32> to vector<8x4xf32>
    %670 = arith.truncf %669 : vector<8x4xf32> to vector<8x4xbf16>
    %cst_591 = arith.constant dense<0.000000e+00> : vector<8x32xf32>
    %671 = tpu.matmul %670, %527, %cst_591 {dimension_numbers = #tpu.dot_dimension_numbers<[1], [0], [0], [1], [0, 0, 1, 1], [], []>} : vector<8x4xbf16>, vector<4x32xbf16>, vector<8x32xf32> -> vector<8x32xf32>
    %672 = arith.addf %667, %671 : vector<8x32xf32>
    %673 = vector.broadcast %7 : vector<1x32xf32> to vector<8x32xf32>
    %674 = arith.addf %672, %673 : vector<8x32xf32>
    %675 = arith.negf %674 : vector<8x32xf32>
    %676 = math.exp %675 : vector<8x32xf32>
    %cst_592 = arith.constant 1.000000e+00 : f32
    %677 = vector.broadcast %cst_592 : f32 to vector<8x32xf32>
    %678 = arith.addf %677, %676 : vector<8x32xf32>
    %679 = arith.divf %677, %678 : vector<8x32xf32>
    %c0_593 = arith.constant 0 : index
    %c4_594 = arith.constant 4 : index
    %c0_595 = arith.constant 0 : index
    %c64_596 = arith.constant 64 : index
    %680 = vector.load %arg4[%c0_593, %c4_594, %c0_595, %c64_596] : memref<1x8x8x128xf32, #tpu.memory_space<vmem>>, vector<1x1x8x32xf32>
    %681 = vector.shape_cast %680 : vector<1x1x8x32xf32> to vector<8x32xf32>
    %682 = vector.shape_cast %679 : vector<8x32xf32> to vector<1x1x8x32xf32>
    tpu.vector_store %arg4[%c0_593, %c4_594, %c0_595, %c64_596], %682 {strides = array<i32>} : memref<1x8x8x128xf32, #tpu.memory_space<vmem>>, vector<1x1x8x32xf32>,
    %cst_597 = arith.constant 0.000000e+00 : f32
    %683 = vector.broadcast %cst_597 : f32 to vector<8x32xf32>
    %c0_598 = arith.constant 0 : index
    %c6_599 = arith.constant 6 : index
    %c0_600 = arith.constant 0 : index
    %c0_601 = arith.constant 0 : index
    %684 = vector.load %arg5[%c0_598, %c6_599, %c0_600, %c0_601] : memref<1x10x10x4xf32, #tpu.memory_space<vmem>>, vector<1x1x8x4xf32>
    %685 = vector.shape_cast %684 : vector<1x1x8x4xf32> to vector<8x4xf32>
    %686 = arith.truncf %685 : vector<8x4xf32> to vector<8x4xbf16>
    %cst_602 = arith.constant dense<0.000000e+00> : vector<8x32xf32>
    %687 = tpu.matmul %686, %521, %cst_602 {dimension_numbers = #tpu.dot_dimension_numbers<[1], [0], [0], [1], [0, 0, 1, 1], [], []>} : vector<8x4xbf16>, vector<4x32xbf16>, vector<8x32xf32> -> vector<8x32xf32>
    %688 = arith.addf %683, %687 : vector<8x32xf32>
    %c0_603 = arith.constant 0 : index
    %c6_604 = arith.constant 6 : index
    %c1_605 = arith.constant 1 : index
    %c0_606 = arith.constant 0 : index
    %689 = vector.load %arg5[%c0_603, %c6_604, %c1_605, %c0_606] : memref<1x10x10x4xf32, #tpu.memory_space<vmem>>, vector<1x1x8x4xf32>
    %690 = vector.shape_cast %689 : vector<1x1x8x4xf32> to vector<8x4xf32>
    %691 = arith.truncf %690 : vector<8x4xf32> to vector<8x4xbf16>
    %cst_607 = arith.constant dense<0.000000e+00> : vector<8x32xf32>
    %692 = tpu.matmul %691, %523, %cst_607 {dimension_numbers = #tpu.dot_dimension_numbers<[1], [0], [0], [1], [0, 0, 1, 1], [], []>} : vector<8x4xbf16>, vector<4x32xbf16>, vector<8x32xf32> -> vector<8x32xf32>
    %693 = arith.addf %688, %692 : vector<8x32xf32>
    %c0_608 = arith.constant 0 : index
    %c7_609 = arith.constant 7 : index
    %c0_610 = arith.constant 0 : index
    %c0_611 = arith.constant 0 : index
    %694 = vector.load %arg5[%c0_608, %c7_609, %c0_610, %c0_611] : memref<1x10x10x4xf32, #tpu.memory_space<vmem>>, vector<1x1x8x4xf32>
    %695 = vector.shape_cast %694 : vector<1x1x8x4xf32> to vector<8x4xf32>
    %696 = arith.truncf %695 : vector<8x4xf32> to vector<8x4xbf16>
    %cst_612 = arith.constant dense<0.000000e+00> : vector<8x32xf32>
    %697 = tpu.matmul %696, %525, %cst_612 {dimension_numbers = #tpu.dot_dimension_numbers<[1], [0], [0], [1], [0, 0, 1, 1], [], []>} : vector<8x4xbf16>, vector<4x32xbf16>, vector<8x32xf32> -> vector<8x32xf32>
    %698 = arith.addf %693, %697 : vector<8x32xf32>
    %c0_613 = arith.constant 0 : index
    %c7_614 = arith.constant 7 : index
    %c1_615 = arith.constant 1 : index
    %c0_616 = arith.constant 0 : index
    %699 = vector.load %arg5[%c0_613, %c7_614, %c1_615, %c0_616] : memref<1x10x10x4xf32, #tpu.memory_space<vmem>>, vector<1x1x8x4xf32>
    %700 = vector.shape_cast %699 : vector<1x1x8x4xf32> to vector<8x4xf32>
    %701 = arith.truncf %700 : vector<8x4xf32> to vector<8x4xbf16>
    %cst_617 = arith.constant dense<0.000000e+00> : vector<8x32xf32>
    %702 = tpu.matmul %701, %527, %cst_617 {dimension_numbers = #tpu.dot_dimension_numbers<[1], [0], [0], [1], [0, 0, 1, 1], [], []>} : vector<8x4xbf16>, vector<4x32xbf16>, vector<8x32xf32> -> vector<8x32xf32>
    %703 = arith.addf %698, %702 : vector<8x32xf32>
    %704 = vector.broadcast %7 : vector<1x32xf32> to vector<8x32xf32>
    %705 = arith.addf %703, %704 : vector<8x32xf32>
    %706 = arith.negf %705 : vector<8x32xf32>
    %707 = math.exp %706 : vector<8x32xf32>
    %cst_618 = arith.constant 1.000000e+00 : f32
    %708 = vector.broadcast %cst_618 : f32 to vector<8x32xf32>
    %709 = arith.addf %708, %707 : vector<8x32xf32>
    %710 = arith.divf %708, %709 : vector<8x32xf32>
    %c0_619 = arith.constant 0 : index
    %c5_620 = arith.constant 5 : index
    %c0_621 = arith.constant 0 : index
    %c64_622 = arith.constant 64 : index
    %711 = vector.load %arg4[%c0_619, %c5_620, %c0_621, %c64_622] : memref<1x8x8x128xf32, #tpu.memory_space<vmem>>, vector<1x1x8x32xf32>
    %712 = vector.shape_cast %711 : vector<1x1x8x32xf32> to vector<8x32xf32>
    %713 = vector.shape_cast %710 : vector<8x32xf32> to vector<1x1x8x32xf32>
    tpu.vector_store %arg4[%c0_619, %c5_620, %c0_621, %c64_622], %713 {strides = array<i32>} : memref<1x8x8x128xf32, #tpu.memory_space<vmem>>, vector<1x1x8x32xf32>,
    %cst_623 = arith.constant 0.000000e+00 : f32
    %714 = vector.broadcast %cst_623 : f32 to vector<8x32xf32>
    %c0_624 = arith.constant 0 : index
    %c7_625 = arith.constant 7 : index
    %c0_626 = arith.constant 0 : index
    %c0_627 = arith.constant 0 : index
    %715 = vector.load %arg5[%c0_624, %c7_625, %c0_626, %c0_627] : memref<1x10x10x4xf32, #tpu.memory_space<vmem>>, vector<1x1x8x4xf32>
    %716 = vector.shape_cast %715 : vector<1x1x8x4xf32> to vector<8x4xf32>
    %717 = arith.truncf %716 : vector<8x4xf32> to vector<8x4xbf16>
    %cst_628 = arith.constant dense<0.000000e+00> : vector<8x32xf32>
    %718 = tpu.matmul %717, %521, %cst_628 {dimension_numbers = #tpu.dot_dimension_numbers<[1], [0], [0], [1], [0, 0, 1, 1], [], []>} : vector<8x4xbf16>, vector<4x32xbf16>, vector<8x32xf32> -> vector<8x32xf32>
    %719 = arith.addf %714, %718 : vector<8x32xf32>
    %c0_629 = arith.constant 0 : index
    %c7_630 = arith.constant 7 : index
    %c1_631 = arith.constant 1 : index
    %c0_632 = arith.constant 0 : index
    %720 = vector.load %arg5[%c0_629, %c7_630, %c1_631, %c0_632] : memref<1x10x10x4xf32, #tpu.memory_space<vmem>>, vector<1x1x8x4xf32>
    %721 = vector.shape_cast %720 : vector<1x1x8x4xf32> to vector<8x4xf32>
    %722 = arith.truncf %721 : vector<8x4xf32> to vector<8x4xbf16>
    %cst_633 = arith.constant dense<0.000000e+00> : vector<8x32xf32>
    %723 = tpu.matmul %722, %523, %cst_633 {dimension_numbers = #tpu.dot_dimension_numbers<[1], [0], [0], [1], [0, 0, 1, 1], [], []>} : vector<8x4xbf16>, vector<4x32xbf16>, vector<8x32xf32> -> vector<8x32xf32>
    %724 = arith.addf %719, %723 : vector<8x32xf32>
    %c0_634 = arith.constant 0 : index
    %c8_635 = arith.constant 8 : index
    %c0_636 = arith.constant 0 : index
    %c0_637 = arith.constant 0 : index
    %725 = vector.load %arg5[%c0_634, %c8_635, %c0_636, %c0_637] : memref<1x10x10x4xf32, #tpu.memory_space<vmem>>, vector<1x1x8x4xf32>
    %726 = vector.shape_cast %725 : vector<1x1x8x4xf32> to vector<8x4xf32>
    %727 = arith.truncf %726 : vector<8x4xf32> to vector<8x4xbf16>
    %cst_638 = arith.constant dense<0.000000e+00> : vector<8x32xf32>
    %728 = tpu.matmul %727, %525, %cst_638 {dimension_numbers = #tpu.dot_dimension_numbers<[1], [0], [0], [1], [0, 0, 1, 1], [], []>} : vector<8x4xbf16>, vector<4x32xbf16>, vector<8x32xf32> -> vector<8x32xf32>
    %729 = arith.addf %724, %728 : vector<8x32xf32>
    %c0_639 = arith.constant 0 : index
    %c8_640 = arith.constant 8 : index
    %c1_641 = arith.constant 1 : index
    %c0_642 = arith.constant 0 : index
    %730 = vector.load %arg5[%c0_639, %c8_640, %c1_641, %c0_642] : memref<1x10x10x4xf32, #tpu.memory_space<vmem>>, vector<1x1x8x4xf32>
    %731 = vector.shape_cast %730 : vector<1x1x8x4xf32> to vector<8x4xf32>
    %732 = arith.truncf %731 : vector<8x4xf32> to vector<8x4xbf16>
    %cst_643 = arith.constant dense<0.000000e+00> : vector<8x32xf32>
    %733 = tpu.matmul %732, %527, %cst_643 {dimension_numbers = #tpu.dot_dimension_numbers<[1], [0], [0], [1], [0, 0, 1, 1], [], []>} : vector<8x4xbf16>, vector<4x32xbf16>, vector<8x32xf32> -> vector<8x32xf32>
    %734 = arith.addf %729, %733 : vector<8x32xf32>
    %735 = vector.broadcast %7 : vector<1x32xf32> to vector<8x32xf32>
    %736 = arith.addf %734, %735 : vector<8x32xf32>
    %737 = arith.negf %736 : vector<8x32xf32>
    %738 = math.exp %737 : vector<8x32xf32>
    %cst_644 = arith.constant 1.000000e+00 : f32
    %739 = vector.broadcast %cst_644 : f32 to vector<8x32xf32>
    %740 = arith.addf %739, %738 : vector<8x32xf32>
    %741 = arith.divf %739, %740 : vector<8x32xf32>
    %c0_645 = arith.constant 0 : index
    %c6_646 = arith.constant 6 : index
    %c0_647 = arith.constant 0 : index
    %c64_648 = arith.constant 64 : index
    %742 = vector.load %arg4[%c0_645, %c6_646, %c0_647, %c64_648] : memref<1x8x8x128xf32, #tpu.memory_space<vmem>>, vector<1x1x8x32xf32>
    %743 = vector.shape_cast %742 : vector<1x1x8x32xf32> to vector<8x32xf32>
    %744 = vector.shape_cast %741 : vector<8x32xf32> to vector<1x1x8x32xf32>
    tpu.vector_store %arg4[%c0_645, %c6_646, %c0_647, %c64_648], %744 {strides = array<i32>} : memref<1x8x8x128xf32, #tpu.memory_space<vmem>>, vector<1x1x8x32xf32>,
    %cst_649 = arith.constant 0.000000e+00 : f32
    %745 = vector.broadcast %cst_649 : f32 to vector<8x32xf32>
    %c0_650 = arith.constant 0 : index
    %c8_651 = arith.constant 8 : index
    %c0_652 = arith.constant 0 : index
    %c0_653 = arith.constant 0 : index
    %746 = vector.load %arg5[%c0_650, %c8_651, %c0_652, %c0_653] : memref<1x10x10x4xf32, #tpu.memory_space<vmem>>, vector<1x1x8x4xf32>
    %747 = vector.shape_cast %746 : vector<1x1x8x4xf32> to vector<8x4xf32>
    %748 = arith.truncf %747 : vector<8x4xf32> to vector<8x4xbf16>
    %cst_654 = arith.constant dense<0.000000e+00> : vector<8x32xf32>
    %749 = tpu.matmul %748, %521, %cst_654 {dimension_numbers = #tpu.dot_dimension_numbers<[1], [0], [0], [1], [0, 0, 1, 1], [], []>} : vector<8x4xbf16>, vector<4x32xbf16>, vector<8x32xf32> -> vector<8x32xf32>
    %750 = arith.addf %745, %749 : vector<8x32xf32>
    %c0_655 = arith.constant 0 : index
    %c8_656 = arith.constant 8 : index
    %c1_657 = arith.constant 1 : index
    %c0_658 = arith.constant 0 : index
    %751 = vector.load %arg5[%c0_655, %c8_656, %c1_657, %c0_658] : memref<1x10x10x4xf32, #tpu.memory_space<vmem>>, vector<1x1x8x4xf32>
    %752 = vector.shape_cast %751 : vector<1x1x8x4xf32> to vector<8x4xf32>
    %753 = arith.truncf %752 : vector<8x4xf32> to vector<8x4xbf16>
    %cst_659 = arith.constant dense<0.000000e+00> : vector<8x32xf32>
    %754 = tpu.matmul %753, %523, %cst_659 {dimension_numbers = #tpu.dot_dimension_numbers<[1], [0], [0], [1], [0, 0, 1, 1], [], []>} : vector<8x4xbf16>, vector<4x32xbf16>, vector<8x32xf32> -> vector<8x32xf32>
    %755 = arith.addf %750, %754 : vector<8x32xf32>
    %c0_660 = arith.constant 0 : index
    %c9 = arith.constant 9 : index
    %c0_661 = arith.constant 0 : index
    %c0_662 = arith.constant 0 : index
    %756 = vector.load %arg5[%c0_660, %c9, %c0_661, %c0_662] : memref<1x10x10x4xf32, #tpu.memory_space<vmem>>, vector<1x1x8x4xf32>
    %757 = vector.shape_cast %756 : vector<1x1x8x4xf32> to vector<8x4xf32>
    %758 = arith.truncf %757 : vector<8x4xf32> to vector<8x4xbf16>
    %cst_663 = arith.constant dense<0.000000e+00> : vector<8x32xf32>
    %759 = tpu.matmul %758, %525, %cst_663 {dimension_numbers = #tpu.dot_dimension_numbers<[1], [0], [0], [1], [0, 0, 1, 1], [], []>} : vector<8x4xbf16>, vector<4x32xbf16>, vector<8x32xf32> -> vector<8x32xf32>
    %760 = arith.addf %755, %759 : vector<8x32xf32>
    %c0_664 = arith.constant 0 : index
    %c9_665 = arith.constant 9 : index
    %c1_666 = arith.constant 1 : index
    %c0_667 = arith.constant 0 : index
    %761 = vector.load %arg5[%c0_664, %c9_665, %c1_666, %c0_667] : memref<1x10x10x4xf32, #tpu.memory_space<vmem>>, vector<1x1x8x4xf32>
    %762 = vector.shape_cast %761 : vector<1x1x8x4xf32> to vector<8x4xf32>
    %763 = arith.truncf %762 : vector<8x4xf32> to vector<8x4xbf16>
    %cst_668 = arith.constant dense<0.000000e+00> : vector<8x32xf32>
    %764 = tpu.matmul %763, %527, %cst_668 {dimension_numbers = #tpu.dot_dimension_numbers<[1], [0], [0], [1], [0, 0, 1, 1], [], []>} : vector<8x4xbf16>, vector<4x32xbf16>, vector<8x32xf32> -> vector<8x32xf32>
    %765 = arith.addf %760, %764 : vector<8x32xf32>
    %766 = vector.broadcast %7 : vector<1x32xf32> to vector<8x32xf32>
    %767 = arith.addf %765, %766 : vector<8x32xf32>
    %768 = arith.negf %767 : vector<8x32xf32>
    %769 = math.exp %768 : vector<8x32xf32>
    %cst_669 = arith.constant 1.000000e+00 : f32
    %770 = vector.broadcast %cst_669 : f32 to vector<8x32xf32>
    %771 = arith.addf %770, %769 : vector<8x32xf32>
    %772 = arith.divf %770, %771 : vector<8x32xf32>
    %c0_670 = arith.constant 0 : index
    %c7_671 = arith.constant 7 : index
    %c0_672 = arith.constant 0 : index
    %c64_673 = arith.constant 64 : index
    %773 = vector.load %arg4[%c0_670, %c7_671, %c0_672, %c64_673] : memref<1x8x8x128xf32, #tpu.memory_space<vmem>>, vector<1x1x8x32xf32>
    %774 = vector.shape_cast %773 : vector<1x1x8x32xf32> to vector<8x32xf32>
    %775 = vector.shape_cast %772 : vector<8x32xf32> to vector<1x1x8x32xf32>
    tpu.vector_store %arg4[%c0_670, %c7_671, %c0_672, %c64_673], %775 {strides = array<i32>} : memref<1x8x8x128xf32, #tpu.memory_space<vmem>>, vector<1x1x8x32xf32>,
    %c3_674 = arith.constant 3 : index
    %c0_675 = arith.constant 0 : index
    %c0_676 = arith.constant 0 : index
    %c0_677 = arith.constant 0 : index
    %776 = vector.load %arg2[%c3_674, %c0_675, %c0_676, %c0_677] : memref<4x4x4x32xbf16, #tpu.memory_space<vmem>>, vector<1x1x4x32xbf16>
    %777 = vector.shape_cast %776 : vector<1x1x4x32xbf16> to vector<4x32xbf16>
    %c3_678 = arith.constant 3 : index
    %c1_679 = arith.constant 1 : index
    %c0_680 = arith.constant 0 : index
    %c0_681 = arith.constant 0 : index
    %778 = vector.load %arg2[%c3_678, %c1_679, %c0_680, %c0_681] : memref<4x4x4x32xbf16, #tpu.memory_space<vmem>>, vector<1x1x4x32xbf16>
    %779 = vector.shape_cast %778 : vector<1x1x4x32xbf16> to vector<4x32xbf16>
    %c3_682 = arith.constant 3 : index
    %c2_683 = arith.constant 2 : index
    %c0_684 = arith.constant 0 : index
    %c0_685 = arith.constant 0 : index
    %780 = vector.load %arg2[%c3_682, %c2_683, %c0_684, %c0_685] : memref<4x4x4x32xbf16, #tpu.memory_space<vmem>>, vector<1x1x4x32xbf16>
    %781 = vector.shape_cast %780 : vector<1x1x4x32xbf16> to vector<4x32xbf16>
    %c3_686 = arith.constant 3 : index
    %c3_687 = arith.constant 3 : index
    %c0_688 = arith.constant 0 : index
    %c0_689 = arith.constant 0 : index
    %782 = vector.load %arg2[%c3_686, %c3_687, %c0_688, %c0_689] : memref<4x4x4x32xbf16, #tpu.memory_space<vmem>>, vector<1x1x4x32xbf16>
    %783 = vector.shape_cast %782 : vector<1x1x4x32xbf16> to vector<4x32xbf16>
    %cst_690 = arith.constant 0.000000e+00 : f32
    %784 = vector.broadcast %cst_690 : f32 to vector<8x32xf32>
    %c0_691 = arith.constant 0 : index
    %c1_692 = arith.constant 1 : index
    %c1_693 = arith.constant 1 : index
    %c0_694 = arith.constant 0 : index
    %785 = vector.load %arg5[%c0_691, %c1_692, %c1_693, %c0_694] : memref<1x10x10x4xf32, #tpu.memory_space<vmem>>, vector<1x1x8x4xf32>
    %786 = vector.shape_cast %785 : vector<1x1x8x4xf32> to vector<8x4xf32>
    %787 = arith.truncf %786 : vector<8x4xf32> to vector<8x4xbf16>
    %cst_695 = arith.constant dense<0.000000e+00> : vector<8x32xf32>
    %788 = tpu.matmul %787, %777, %cst_695 {dimension_numbers = #tpu.dot_dimension_numbers<[1], [0], [0], [1], [0, 0, 1, 1], [], []>} : vector<8x4xbf16>, vector<4x32xbf16>, vector<8x32xf32> -> vector<8x32xf32>
    %789 = arith.addf %784, %788 : vector<8x32xf32>
    %c0_696 = arith.constant 0 : index
    %c1_697 = arith.constant 1 : index
    %c2_698 = arith.constant 2 : index
    %c0_699 = arith.constant 0 : index
    %790 = vector.load %arg5[%c0_696, %c1_697, %c2_698, %c0_699] : memref<1x10x10x4xf32, #tpu.memory_space<vmem>>, vector<1x1x8x4xf32>
    %791 = vector.shape_cast %790 : vector<1x1x8x4xf32> to vector<8x4xf32>
    %792 = arith.truncf %791 : vector<8x4xf32> to vector<8x4xbf16>
    %cst_700 = arith.constant dense<0.000000e+00> : vector<8x32xf32>
    %793 = tpu.matmul %792, %779, %cst_700 {dimension_numbers = #tpu.dot_dimension_numbers<[1], [0], [0], [1], [0, 0, 1, 1], [], []>} : vector<8x4xbf16>, vector<4x32xbf16>, vector<8x32xf32> -> vector<8x32xf32>
    %794 = arith.addf %789, %793 : vector<8x32xf32>
    %c0_701 = arith.constant 0 : index
    %c2_702 = arith.constant 2 : index
    %c1_703 = arith.constant 1 : index
    %c0_704 = arith.constant 0 : index
    %795 = vector.load %arg5[%c0_701, %c2_702, %c1_703, %c0_704] : memref<1x10x10x4xf32, #tpu.memory_space<vmem>>, vector<1x1x8x4xf32>
    %796 = vector.shape_cast %795 : vector<1x1x8x4xf32> to vector<8x4xf32>
    %797 = arith.truncf %796 : vector<8x4xf32> to vector<8x4xbf16>
    %cst_705 = arith.constant dense<0.000000e+00> : vector<8x32xf32>
    %798 = tpu.matmul %797, %781, %cst_705 {dimension_numbers = #tpu.dot_dimension_numbers<[1], [0], [0], [1], [0, 0, 1, 1], [], []>} : vector<8x4xbf16>, vector<4x32xbf16>, vector<8x32xf32> -> vector<8x32xf32>
    %799 = arith.addf %794, %798 : vector<8x32xf32>
    %c0_706 = arith.constant 0 : index
    %c2_707 = arith.constant 2 : index
    %c2_708 = arith.constant 2 : index
    %c0_709 = arith.constant 0 : index
    %800 = vector.load %arg5[%c0_706, %c2_707, %c2_708, %c0_709] : memref<1x10x10x4xf32, #tpu.memory_space<vmem>>, vector<1x1x8x4xf32>
    %801 = vector.shape_cast %800 : vector<1x1x8x4xf32> to vector<8x4xf32>
    %802 = arith.truncf %801 : vector<8x4xf32> to vector<8x4xbf16>
    %cst_710 = arith.constant dense<0.000000e+00> : vector<8x32xf32>
    %803 = tpu.matmul %802, %783, %cst_710 {dimension_numbers = #tpu.dot_dimension_numbers<[1], [0], [0], [1], [0, 0, 1, 1], [], []>} : vector<8x4xbf16>, vector<4x32xbf16>, vector<8x32xf32> -> vector<8x32xf32>
    %804 = arith.addf %799, %803 : vector<8x32xf32>
    %805 = vector.broadcast %7 : vector<1x32xf32> to vector<8x32xf32>
    %806 = arith.addf %804, %805 : vector<8x32xf32>
    %807 = arith.negf %806 : vector<8x32xf32>
    %808 = math.exp %807 : vector<8x32xf32>
    %cst_711 = arith.constant 1.000000e+00 : f32
    %809 = vector.broadcast %cst_711 : f32 to vector<8x32xf32>
    %810 = arith.addf %809, %808 : vector<8x32xf32>
    %811 = arith.divf %809, %810 : vector<8x32xf32>
    %c0_712 = arith.constant 0 : index
    %c0_713 = arith.constant 0 : index
    %c0_714 = arith.constant 0 : index
    %c96 = arith.constant 96 : index
    %812 = vector.load %arg4[%c0_712, %c0_713, %c0_714, %c96] : memref<1x8x8x128xf32, #tpu.memory_space<vmem>>, vector<1x1x8x32xf32>
    %813 = vector.shape_cast %812 : vector<1x1x8x32xf32> to vector<8x32xf32>
    %814 = vector.shape_cast %811 : vector<8x32xf32> to vector<1x1x8x32xf32>
    tpu.vector_store %arg4[%c0_712, %c0_713, %c0_714, %c96], %814 {strides = array<i32>} : memref<1x8x8x128xf32, #tpu.memory_space<vmem>>, vector<1x1x8x32xf32>,
    %cst_715 = arith.constant 0.000000e+00 : f32
    %815 = vector.broadcast %cst_715 : f32 to vector<8x32xf32>
    %c0_716 = arith.constant 0 : index
    %c2_717 = arith.constant 2 : index
    %c1_718 = arith.constant 1 : index
    %c0_719 = arith.constant 0 : index
    %816 = vector.load %arg5[%c0_716, %c2_717, %c1_718, %c0_719] : memref<1x10x10x4xf32, #tpu.memory_space<vmem>>, vector<1x1x8x4xf32>
    %817 = vector.shape_cast %816 : vector<1x1x8x4xf32> to vector<8x4xf32>
    %818 = arith.truncf %817 : vector<8x4xf32> to vector<8x4xbf16>
    %cst_720 = arith.constant dense<0.000000e+00> : vector<8x32xf32>
    %819 = tpu.matmul %818, %777, %cst_720 {dimension_numbers = #tpu.dot_dimension_numbers<[1], [0], [0], [1], [0, 0, 1, 1], [], []>} : vector<8x4xbf16>, vector<4x32xbf16>, vector<8x32xf32> -> vector<8x32xf32>
    %820 = arith.addf %815, %819 : vector<8x32xf32>
    %c0_721 = arith.constant 0 : index
    %c2_722 = arith.constant 2 : index
    %c2_723 = arith.constant 2 : index
    %c0_724 = arith.constant 0 : index
    %821 = vector.load %arg5[%c0_721, %c2_722, %c2_723, %c0_724] : memref<1x10x10x4xf32, #tpu.memory_space<vmem>>, vector<1x1x8x4xf32>
    %822 = vector.shape_cast %821 : vector<1x1x8x4xf32> to vector<8x4xf32>
    %823 = arith.truncf %822 : vector<8x4xf32> to vector<8x4xbf16>
    %cst_725 = arith.constant dense<0.000000e+00> : vector<8x32xf32>
    %824 = tpu.matmul %823, %779, %cst_725 {dimension_numbers = #tpu.dot_dimension_numbers<[1], [0], [0], [1], [0, 0, 1, 1], [], []>} : vector<8x4xbf16>, vector<4x32xbf16>, vector<8x32xf32> -> vector<8x32xf32>
    %825 = arith.addf %820, %824 : vector<8x32xf32>
    %c0_726 = arith.constant 0 : index
    %c3_727 = arith.constant 3 : index
    %c1_728 = arith.constant 1 : index
    %c0_729 = arith.constant 0 : index
    %826 = vector.load %arg5[%c0_726, %c3_727, %c1_728, %c0_729] : memref<1x10x10x4xf32, #tpu.memory_space<vmem>>, vector<1x1x8x4xf32>
    %827 = vector.shape_cast %826 : vector<1x1x8x4xf32> to vector<8x4xf32>
    %828 = arith.truncf %827 : vector<8x4xf32> to vector<8x4xbf16>
    %cst_730 = arith.constant dense<0.000000e+00> : vector<8x32xf32>
    %829 = tpu.matmul %828, %781, %cst_730 {dimension_numbers = #tpu.dot_dimension_numbers<[1], [0], [0], [1], [0, 0, 1, 1], [], []>} : vector<8x4xbf16>, vector<4x32xbf16>, vector<8x32xf32> -> vector<8x32xf32>
    %830 = arith.addf %825, %829 : vector<8x32xf32>
    %c0_731 = arith.constant 0 : index
    %c3_732 = arith.constant 3 : index
    %c2_733 = arith.constant 2 : index
    %c0_734 = arith.constant 0 : index
    %831 = vector.load %arg5[%c0_731, %c3_732, %c2_733, %c0_734] : memref<1x10x10x4xf32, #tpu.memory_space<vmem>>, vector<1x1x8x4xf32>
    %832 = vector.shape_cast %831 : vector<1x1x8x4xf32> to vector<8x4xf32>
    %833 = arith.truncf %832 : vector<8x4xf32> to vector<8x4xbf16>
    %cst_735 = arith.constant dense<0.000000e+00> : vector<8x32xf32>
    %834 = tpu.matmul %833, %783, %cst_735 {dimension_numbers = #tpu.dot_dimension_numbers<[1], [0], [0], [1], [0, 0, 1, 1], [], []>} : vector<8x4xbf16>, vector<4x32xbf16>, vector<8x32xf32> -> vector<8x32xf32>
    %835 = arith.addf %830, %834 : vector<8x32xf32>
    %836 = vector.broadcast %7 : vector<1x32xf32> to vector<8x32xf32>
    %837 = arith.addf %835, %836 : vector<8x32xf32>
    %838 = arith.negf %837 : vector<8x32xf32>
    %839 = math.exp %838 : vector<8x32xf32>
    %cst_736 = arith.constant 1.000000e+00 : f32
    %840 = vector.broadcast %cst_736 : f32 to vector<8x32xf32>
    %841 = arith.addf %840, %839 : vector<8x32xf32>
    %842 = arith.divf %840, %841 : vector<8x32xf32>
    %c0_737 = arith.constant 0 : index
    %c1_738 = arith.constant 1 : index
    %c0_739 = arith.constant 0 : index
    %c96_740 = arith.constant 96 : index
    %843 = vector.load %arg4[%c0_737, %c1_738, %c0_739, %c96_740] : memref<1x8x8x128xf32, #tpu.memory_space<vmem>>, vector<1x1x8x32xf32>
    %844 = vector.shape_cast %843 : vector<1x1x8x32xf32> to vector<8x32xf32>
    %845 = vector.shape_cast %842 : vector<8x32xf32> to vector<1x1x8x32xf32>
    tpu.vector_store %arg4[%c0_737, %c1_738, %c0_739, %c96_740], %845 {strides = array<i32>} : memref<1x8x8x128xf32, #tpu.memory_space<vmem>>, vector<1x1x8x32xf32>,
    %cst_741 = arith.constant 0.000000e+00 : f32
    %846 = vector.broadcast %cst_741 : f32 to vector<8x32xf32>
    %c0_742 = arith.constant 0 : index
    %c3_743 = arith.constant 3 : index
    %c1_744 = arith.constant 1 : index
    %c0_745 = arith.constant 0 : index
    %847 = vector.load %arg5[%c0_742, %c3_743, %c1_744, %c0_745] : memref<1x10x10x4xf32, #tpu.memory_space<vmem>>, vector<1x1x8x4xf32>
    %848 = vector.shape_cast %847 : vector<1x1x8x4xf32> to vector<8x4xf32>
    %849 = arith.truncf %848 : vector<8x4xf32> to vector<8x4xbf16>
    %cst_746 = arith.constant dense<0.000000e+00> : vector<8x32xf32>
    %850 = tpu.matmul %849, %777, %cst_746 {dimension_numbers = #tpu.dot_dimension_numbers<[1], [0], [0], [1], [0, 0, 1, 1], [], []>} : vector<8x4xbf16>, vector<4x32xbf16>, vector<8x32xf32> -> vector<8x32xf32>
    %851 = arith.addf %846, %850 : vector<8x32xf32>
    %c0_747 = arith.constant 0 : index
    %c3_748 = arith.constant 3 : index
    %c2_749 = arith.constant 2 : index
    %c0_750 = arith.constant 0 : index
    %852 = vector.load %arg5[%c0_747, %c3_748, %c2_749, %c0_750] : memref<1x10x10x4xf32, #tpu.memory_space<vmem>>, vector<1x1x8x4xf32>
    %853 = vector.shape_cast %852 : vector<1x1x8x4xf32> to vector<8x4xf32>
    %854 = arith.truncf %853 : vector<8x4xf32> to vector<8x4xbf16>
    %cst_751 = arith.constant dense<0.000000e+00> : vector<8x32xf32>
    %855 = tpu.matmul %854, %779, %cst_751 {dimension_numbers = #tpu.dot_dimension_numbers<[1], [0], [0], [1], [0, 0, 1, 1], [], []>} : vector<8x4xbf16>, vector<4x32xbf16>, vector<8x32xf32> -> vector<8x32xf32>
    %856 = arith.addf %851, %855 : vector<8x32xf32>
    %c0_752 = arith.constant 0 : index
    %c4_753 = arith.constant 4 : index
    %c1_754 = arith.constant 1 : index
    %c0_755 = arith.constant 0 : index
    %857 = vector.load %arg5[%c0_752, %c4_753, %c1_754, %c0_755] : memref<1x10x10x4xf32, #tpu.memory_space<vmem>>, vector<1x1x8x4xf32>
    %858 = vector.shape_cast %857 : vector<1x1x8x4xf32> to vector<8x4xf32>
    %859 = arith.truncf %858 : vector<8x4xf32> to vector<8x4xbf16>
    %cst_756 = arith.constant dense<0.000000e+00> : vector<8x32xf32>
    %860 = tpu.matmul %859, %781, %cst_756 {dimension_numbers = #tpu.dot_dimension_numbers<[1], [0], [0], [1], [0, 0, 1, 1], [], []>} : vector<8x4xbf16>, vector<4x32xbf16>, vector<8x32xf32> -> vector<8x32xf32>
    %861 = arith.addf %856, %860 : vector<8x32xf32>
    %c0_757 = arith.constant 0 : index
    %c4_758 = arith.constant 4 : index
    %c2_759 = arith.constant 2 : index
    %c0_760 = arith.constant 0 : index
    %862 = vector.load %arg5[%c0_757, %c4_758, %c2_759, %c0_760] : memref<1x10x10x4xf32, #tpu.memory_space<vmem>>, vector<1x1x8x4xf32>
    %863 = vector.shape_cast %862 : vector<1x1x8x4xf32> to vector<8x4xf32>
    %864 = arith.truncf %863 : vector<8x4xf32> to vector<8x4xbf16>
    %cst_761 = arith.constant dense<0.000000e+00> : vector<8x32xf32>
    %865 = tpu.matmul %864, %783, %cst_761 {dimension_numbers = #tpu.dot_dimension_numbers<[1], [0], [0], [1], [0, 0, 1, 1], [], []>} : vector<8x4xbf16>, vector<4x32xbf16>, vector<8x32xf32> -> vector<8x32xf32>
    %866 = arith.addf %861, %865 : vector<8x32xf32>
    %867 = vector.broadcast %7 : vector<1x32xf32> to vector<8x32xf32>
    %868 = arith.addf %866, %867 : vector<8x32xf32>
    %869 = arith.negf %868 : vector<8x32xf32>
    %870 = math.exp %869 : vector<8x32xf32>
    %cst_762 = arith.constant 1.000000e+00 : f32
    %871 = vector.broadcast %cst_762 : f32 to vector<8x32xf32>
    %872 = arith.addf %871, %870 : vector<8x32xf32>
    %873 = arith.divf %871, %872 : vector<8x32xf32>
    %c0_763 = arith.constant 0 : index
    %c2_764 = arith.constant 2 : index
    %c0_765 = arith.constant 0 : index
    %c96_766 = arith.constant 96 : index
    %874 = vector.load %arg4[%c0_763, %c2_764, %c0_765, %c96_766] : memref<1x8x8x128xf32, #tpu.memory_space<vmem>>, vector<1x1x8x32xf32>
    %875 = vector.shape_cast %874 : vector<1x1x8x32xf32> to vector<8x32xf32>
    %876 = vector.shape_cast %873 : vector<8x32xf32> to vector<1x1x8x32xf32>
    tpu.vector_store %arg4[%c0_763, %c2_764, %c0_765, %c96_766], %876 {strides = array<i32>} : memref<1x8x8x128xf32, #tpu.memory_space<vmem>>, vector<1x1x8x32xf32>,
    %cst_767 = arith.constant 0.000000e+00 : f32
    %877 = vector.broadcast %cst_767 : f32 to vector<8x32xf32>
    %c0_768 = arith.constant 0 : index
    %c4_769 = arith.constant 4 : index
    %c1_770 = arith.constant 1 : index
    %c0_771 = arith.constant 0 : index
    %878 = vector.load %arg5[%c0_768, %c4_769, %c1_770, %c0_771] : memref<1x10x10x4xf32, #tpu.memory_space<vmem>>, vector<1x1x8x4xf32>
    %879 = vector.shape_cast %878 : vector<1x1x8x4xf32> to vector<8x4xf32>
    %880 = arith.truncf %879 : vector<8x4xf32> to vector<8x4xbf16>
    %cst_772 = arith.constant dense<0.000000e+00> : vector<8x32xf32>
    %881 = tpu.matmul %880, %777, %cst_772 {dimension_numbers = #tpu.dot_dimension_numbers<[1], [0], [0], [1], [0, 0, 1, 1], [], []>} : vector<8x4xbf16>, vector<4x32xbf16>, vector<8x32xf32> -> vector<8x32xf32>
    %882 = arith.addf %877, %881 : vector<8x32xf32>
    %c0_773 = arith.constant 0 : index
    %c4_774 = arith.constant 4 : index
    %c2_775 = arith.constant 2 : index
    %c0_776 = arith.constant 0 : index
    %883 = vector.load %arg5[%c0_773, %c4_774, %c2_775, %c0_776] : memref<1x10x10x4xf32, #tpu.memory_space<vmem>>, vector<1x1x8x4xf32>
    %884 = vector.shape_cast %883 : vector<1x1x8x4xf32> to vector<8x4xf32>
    %885 = arith.truncf %884 : vector<8x4xf32> to vector<8x4xbf16>
    %cst_777 = arith.constant dense<0.000000e+00> : vector<8x32xf32>
    %886 = tpu.matmul %885, %779, %cst_777 {dimension_numbers = #tpu.dot_dimension_numbers<[1], [0], [0], [1], [0, 0, 1, 1], [], []>} : vector<8x4xbf16>, vector<4x32xbf16>, vector<8x32xf32> -> vector<8x32xf32>
    %887 = arith.addf %882, %886 : vector<8x32xf32>
    %c0_778 = arith.constant 0 : index
    %c5_779 = arith.constant 5 : index
    %c1_780 = arith.constant 1 : index
    %c0_781 = arith.constant 0 : index
    %888 = vector.load %arg5[%c0_778, %c5_779, %c1_780, %c0_781] : memref<1x10x10x4xf32, #tpu.memory_space<vmem>>, vector<1x1x8x4xf32>
    %889 = vector.shape_cast %888 : vector<1x1x8x4xf32> to vector<8x4xf32>
    %890 = arith.truncf %889 : vector<8x4xf32> to vector<8x4xbf16>
    %cst_782 = arith.constant dense<0.000000e+00> : vector<8x32xf32>
    %891 = tpu.matmul %890, %781, %cst_782 {dimension_numbers = #tpu.dot_dimension_numbers<[1], [0], [0], [1], [0, 0, 1, 1], [], []>} : vector<8x4xbf16>, vector<4x32xbf16>, vector<8x32xf32> -> vector<8x32xf32>
    %892 = arith.addf %887, %891 : vector<8x32xf32>
    %c0_783 = arith.constant 0 : index
    %c5_784 = arith.constant 5 : index
    %c2_785 = arith.constant 2 : index
    %c0_786 = arith.constant 0 : index
    %893 = vector.load %arg5[%c0_783, %c5_784, %c2_785, %c0_786] : memref<1x10x10x4xf32, #tpu.memory_space<vmem>>, vector<1x1x8x4xf32>
    %894 = vector.shape_cast %893 : vector<1x1x8x4xf32> to vector<8x4xf32>
    %895 = arith.truncf %894 : vector<8x4xf32> to vector<8x4xbf16>
    %cst_787 = arith.constant dense<0.000000e+00> : vector<8x32xf32>
    %896 = tpu.matmul %895, %783, %cst_787 {dimension_numbers = #tpu.dot_dimension_numbers<[1], [0], [0], [1], [0, 0, 1, 1], [], []>} : vector<8x4xbf16>, vector<4x32xbf16>, vector<8x32xf32> -> vector<8x32xf32>
    %897 = arith.addf %892, %896 : vector<8x32xf32>
    %898 = vector.broadcast %7 : vector<1x32xf32> to vector<8x32xf32>
    %899 = arith.addf %897, %898 : vector<8x32xf32>
    %900 = arith.negf %899 : vector<8x32xf32>
    %901 = math.exp %900 : vector<8x32xf32>
    %cst_788 = arith.constant 1.000000e+00 : f32
    %902 = vector.broadcast %cst_788 : f32 to vector<8x32xf32>
    %903 = arith.addf %902, %901 : vector<8x32xf32>
    %904 = arith.divf %902, %903 : vector<8x32xf32>
    %c0_789 = arith.constant 0 : index
    %c3_790 = arith.constant 3 : index
    %c0_791 = arith.constant 0 : index
    %c96_792 = arith.constant 96 : index
    %905 = vector.load %arg4[%c0_789, %c3_790, %c0_791, %c96_792] : memref<1x8x8x128xf32, #tpu.memory_space<vmem>>, vector<1x1x8x32xf32>
    %906 = vector.shape_cast %905 : vector<1x1x8x32xf32> to vector<8x32xf32>
    %907 = vector.shape_cast %904 : vector<8x32xf32> to vector<1x1x8x32xf32>
    tpu.vector_store %arg4[%c0_789, %c3_790, %c0_791, %c96_792], %907 {strides = array<i32>} : memref<1x8x8x128xf32, #tpu.memory_space<vmem>>, vector<1x1x8x32xf32>,
    %cst_793 = arith.constant 0.000000e+00 : f32
    %908 = vector.broadcast %cst_793 : f32 to vector<8x32xf32>
    %c0_794 = arith.constant 0 : index
    %c5_795 = arith.constant 5 : index
    %c1_796 = arith.constant 1 : index
    %c0_797 = arith.constant 0 : index
    %909 = vector.load %arg5[%c0_794, %c5_795, %c1_796, %c0_797] : memref<1x10x10x4xf32, #tpu.memory_space<vmem>>, vector<1x1x8x4xf32>
    %910 = vector.shape_cast %909 : vector<1x1x8x4xf32> to vector<8x4xf32>
    %911 = arith.truncf %910 : vector<8x4xf32> to vector<8x4xbf16>
    %cst_798 = arith.constant dense<0.000000e+00> : vector<8x32xf32>
    %912 = tpu.matmul %911, %777, %cst_798 {dimension_numbers = #tpu.dot_dimension_numbers<[1], [0], [0], [1], [0, 0, 1, 1], [], []>} : vector<8x4xbf16>, vector<4x32xbf16>, vector<8x32xf32> -> vector<8x32xf32>
    %913 = arith.addf %908, %912 : vector<8x32xf32>
    %c0_799 = arith.constant 0 : index
    %c5_800 = arith.constant 5 : index
    %c2_801 = arith.constant 2 : index
    %c0_802 = arith.constant 0 : index
    %914 = vector.load %arg5[%c0_799, %c5_800, %c2_801, %c0_802] : memref<1x10x10x4xf32, #tpu.memory_space<vmem>>, vector<1x1x8x4xf32>
    %915 = vector.shape_cast %914 : vector<1x1x8x4xf32> to vector<8x4xf32>
    %916 = arith.truncf %915 : vector<8x4xf32> to vector<8x4xbf16>
    %cst_803 = arith.constant dense<0.000000e+00> : vector<8x32xf32>
    %917 = tpu.matmul %916, %779, %cst_803 {dimension_numbers = #tpu.dot_dimension_numbers<[1], [0], [0], [1], [0, 0, 1, 1], [], []>} : vector<8x4xbf16>, vector<4x32xbf16>, vector<8x32xf32> -> vector<8x32xf32>
    %918 = arith.addf %913, %917 : vector<8x32xf32>
    %c0_804 = arith.constant 0 : index
    %c6_805 = arith.constant 6 : index
    %c1_806 = arith.constant 1 : index
    %c0_807 = arith.constant 0 : index
    %919 = vector.load %arg5[%c0_804, %c6_805, %c1_806, %c0_807] : memref<1x10x10x4xf32, #tpu.memory_space<vmem>>, vector<1x1x8x4xf32>
    %920 = vector.shape_cast %919 : vector<1x1x8x4xf32> to vector<8x4xf32>
    %921 = arith.truncf %920 : vector<8x4xf32> to vector<8x4xbf16>
    %cst_808 = arith.constant dense<0.000000e+00> : vector<8x32xf32>
    %922 = tpu.matmul %921, %781, %cst_808 {dimension_numbers = #tpu.dot_dimension_numbers<[1], [0], [0], [1], [0, 0, 1, 1], [], []>} : vector<8x4xbf16>, vector<4x32xbf16>, vector<8x32xf32> -> vector<8x32xf32>
    %923 = arith.addf %918, %922 : vector<8x32xf32>
    %c0_809 = arith.constant 0 : index
    %c6_810 = arith.constant 6 : index
    %c2_811 = arith.constant 2 : index
    %c0_812 = arith.constant 0 : index
    %924 = vector.load %arg5[%c0_809, %c6_810, %c2_811, %c0_812] : memref<1x10x10x4xf32, #tpu.memory_space<vmem>>, vector<1x1x8x4xf32>
    %925 = vector.shape_cast %924 : vector<1x1x8x4xf32> to vector<8x4xf32>
    %926 = arith.truncf %925 : vector<8x4xf32> to vector<8x4xbf16>
    %cst_813 = arith.constant dense<0.000000e+00> : vector<8x32xf32>
    %927 = tpu.matmul %926, %783, %cst_813 {dimension_numbers = #tpu.dot_dimension_numbers<[1], [0], [0], [1], [0, 0, 1, 1], [], []>} : vector<8x4xbf16>, vector<4x32xbf16>, vector<8x32xf32> -> vector<8x32xf32>
    %928 = arith.addf %923, %927 : vector<8x32xf32>
    %929 = vector.broadcast %7 : vector<1x32xf32> to vector<8x32xf32>
    %930 = arith.addf %928, %929 : vector<8x32xf32>
    %931 = arith.negf %930 : vector<8x32xf32>
    %932 = math.exp %931 : vector<8x32xf32>
    %cst_814 = arith.constant 1.000000e+00 : f32
    %933 = vector.broadcast %cst_814 : f32 to vector<8x32xf32>
    %934 = arith.addf %933, %932 : vector<8x32xf32>
    %935 = arith.divf %933, %934 : vector<8x32xf32>
    %c0_815 = arith.constant 0 : index
    %c4_816 = arith.constant 4 : index
    %c0_817 = arith.constant 0 : index
    %c96_818 = arith.constant 96 : index
    %936 = vector.load %arg4[%c0_815, %c4_816, %c0_817, %c96_818] : memref<1x8x8x128xf32, #tpu.memory_space<vmem>>, vector<1x1x8x32xf32>
    %937 = vector.shape_cast %936 : vector<1x1x8x32xf32> to vector<8x32xf32>
    %938 = vector.shape_cast %935 : vector<8x32xf32> to vector<1x1x8x32xf32>
    tpu.vector_store %arg4[%c0_815, %c4_816, %c0_817, %c96_818], %938 {strides = array<i32>} : memref<1x8x8x128xf32, #tpu.memory_space<vmem>>, vector<1x1x8x32xf32>,
    %cst_819 = arith.constant 0.000000e+00 : f32
    %939 = vector.broadcast %cst_819 : f32 to vector<8x32xf32>
    %c0_820 = arith.constant 0 : index
    %c6_821 = arith.constant 6 : index
    %c1_822 = arith.constant 1 : index
    %c0_823 = arith.constant 0 : index
    %940 = vector.load %arg5[%c0_820, %c6_821, %c1_822, %c0_823] : memref<1x10x10x4xf32, #tpu.memory_space<vmem>>, vector<1x1x8x4xf32>
    %941 = vector.shape_cast %940 : vector<1x1x8x4xf32> to vector<8x4xf32>
    %942 = arith.truncf %941 : vector<8x4xf32> to vector<8x4xbf16>
    %cst_824 = arith.constant dense<0.000000e+00> : vector<8x32xf32>
    %943 = tpu.matmul %942, %777, %cst_824 {dimension_numbers = #tpu.dot_dimension_numbers<[1], [0], [0], [1], [0, 0, 1, 1], [], []>} : vector<8x4xbf16>, vector<4x32xbf16>, vector<8x32xf32> -> vector<8x32xf32>
    %944 = arith.addf %939, %943 : vector<8x32xf32>
    %c0_825 = arith.constant 0 : index
    %c6_826 = arith.constant 6 : index
    %c2_827 = arith.constant 2 : index
    %c0_828 = arith.constant 0 : index
    %945 = vector.load %arg5[%c0_825, %c6_826, %c2_827, %c0_828] : memref<1x10x10x4xf32, #tpu.memory_space<vmem>>, vector<1x1x8x4xf32>
    %946 = vector.shape_cast %945 : vector<1x1x8x4xf32> to vector<8x4xf32>
    %947 = arith.truncf %946 : vector<8x4xf32> to vector<8x4xbf16>
    %cst_829 = arith.constant dense<0.000000e+00> : vector<8x32xf32>
    %948 = tpu.matmul %947, %779, %cst_829 {dimension_numbers = #tpu.dot_dimension_numbers<[1], [0], [0], [1], [0, 0, 1, 1], [], []>} : vector<8x4xbf16>, vector<4x32xbf16>, vector<8x32xf32> -> vector<8x32xf32>
    %949 = arith.addf %944, %948 : vector<8x32xf32>
    %c0_830 = arith.constant 0 : index
    %c7_831 = arith.constant 7 : index
    %c1_832 = arith.constant 1 : index
    %c0_833 = arith.constant 0 : index
    %950 = vector.load %arg5[%c0_830, %c7_831, %c1_832, %c0_833] : memref<1x10x10x4xf32, #tpu.memory_space<vmem>>, vector<1x1x8x4xf32>
    %951 = vector.shape_cast %950 : vector<1x1x8x4xf32> to vector<8x4xf32>
    %952 = arith.truncf %951 : vector<8x4xf32> to vector<8x4xbf16>
    %cst_834 = arith.constant dense<0.000000e+00> : vector<8x32xf32>
    %953 = tpu.matmul %952, %781, %cst_834 {dimension_numbers = #tpu.dot_dimension_numbers<[1], [0], [0], [1], [0, 0, 1, 1], [], []>} : vector<8x4xbf16>, vector<4x32xbf16>, vector<8x32xf32> -> vector<8x32xf32>
    %954 = arith.addf %949, %953 : vector<8x32xf32>
    %c0_835 = arith.constant 0 : index
    %c7_836 = arith.constant 7 : index
    %c2_837 = arith.constant 2 : index
    %c0_838 = arith.constant 0 : index
    %955 = vector.load %arg5[%c0_835, %c7_836, %c2_837, %c0_838] : memref<1x10x10x4xf32, #tpu.memory_space<vmem>>, vector<1x1x8x4xf32>
    %956 = vector.shape_cast %955 : vector<1x1x8x4xf32> to vector<8x4xf32>
    %957 = arith.truncf %956 : vector<8x4xf32> to vector<8x4xbf16>
    %cst_839 = arith.constant dense<0.000000e+00> : vector<8x32xf32>
    %958 = tpu.matmul %957, %783, %cst_839 {dimension_numbers = #tpu.dot_dimension_numbers<[1], [0], [0], [1], [0, 0, 1, 1], [], []>} : vector<8x4xbf16>, vector<4x32xbf16>, vector<8x32xf32> -> vector<8x32xf32>
    %959 = arith.addf %954, %958 : vector<8x32xf32>
    %960 = vector.broadcast %7 : vector<1x32xf32> to vector<8x32xf32>
    %961 = arith.addf %959, %960 : vector<8x32xf32>
    %962 = arith.negf %961 : vector<8x32xf32>
    %963 = math.exp %962 : vector<8x32xf32>
    %cst_840 = arith.constant 1.000000e+00 : f32
    %964 = vector.broadcast %cst_840 : f32 to vector<8x32xf32>
    %965 = arith.addf %964, %963 : vector<8x32xf32>
    %966 = arith.divf %964, %965 : vector<8x32xf32>
    %c0_841 = arith.constant 0 : index
    %c5_842 = arith.constant 5 : index
    %c0_843 = arith.constant 0 : index
    %c96_844 = arith.constant 96 : index
    %967 = vector.load %arg4[%c0_841, %c5_842, %c0_843, %c96_844] : memref<1x8x8x128xf32, #tpu.memory_space<vmem>>, vector<1x1x8x32xf32>
    %968 = vector.shape_cast %967 : vector<1x1x8x32xf32> to vector<8x32xf32>
    %969 = vector.shape_cast %966 : vector<8x32xf32> to vector<1x1x8x32xf32>
    tpu.vector_store %arg4[%c0_841, %c5_842, %c0_843, %c96_844], %969 {strides = array<i32>} : memref<1x8x8x128xf32, #tpu.memory_space<vmem>>, vector<1x1x8x32xf32>,
    %cst_845 = arith.constant 0.000000e+00 : f32
    %970 = vector.broadcast %cst_845 : f32 to vector<8x32xf32>
    %c0_846 = arith.constant 0 : index
    %c7_847 = arith.constant 7 : index
    %c1_848 = arith.constant 1 : index
    %c0_849 = arith.constant 0 : index
    %971 = vector.load %arg5[%c0_846, %c7_847, %c1_848, %c0_849] : memref<1x10x10x4xf32, #tpu.memory_space<vmem>>, vector<1x1x8x4xf32>
    %972 = vector.shape_cast %971 : vector<1x1x8x4xf32> to vector<8x4xf32>
    %973 = arith.truncf %972 : vector<8x4xf32> to vector<8x4xbf16>
    %cst_850 = arith.constant dense<0.000000e+00> : vector<8x32xf32>
    %974 = tpu.matmul %973, %777, %cst_850 {dimension_numbers = #tpu.dot_dimension_numbers<[1], [0], [0], [1], [0, 0, 1, 1], [], []>} : vector<8x4xbf16>, vector<4x32xbf16>, vector<8x32xf32> -> vector<8x32xf32>
    %975 = arith.addf %970, %974 : vector<8x32xf32>
    %c0_851 = arith.constant 0 : index
    %c7_852 = arith.constant 7 : index
    %c2_853 = arith.constant 2 : index
    %c0_854 = arith.constant 0 : index
    %976 = vector.load %arg5[%c0_851, %c7_852, %c2_853, %c0_854] : memref<1x10x10x4xf32, #tpu.memory_space<vmem>>, vector<1x1x8x4xf32>
    %977 = vector.shape_cast %976 : vector<1x1x8x4xf32> to vector<8x4xf32>
    %978 = arith.truncf %977 : vector<8x4xf32> to vector<8x4xbf16>
    %cst_855 = arith.constant dense<0.000000e+00> : vector<8x32xf32>
    %979 = tpu.matmul %978, %779, %cst_855 {dimension_numbers = #tpu.dot_dimension_numbers<[1], [0], [0], [1], [0, 0, 1, 1], [], []>} : vector<8x4xbf16>, vector<4x32xbf16>, vector<8x32xf32> -> vector<8x32xf32>
    %980 = arith.addf %975, %979 : vector<8x32xf32>
    %c0_856 = arith.constant 0 : index
    %c8_857 = arith.constant 8 : index
    %c1_858 = arith.constant 1 : index
    %c0_859 = arith.constant 0 : index
    %981 = vector.load %arg5[%c0_856, %c8_857, %c1_858, %c0_859] : memref<1x10x10x4xf32, #tpu.memory_space<vmem>>, vector<1x1x8x4xf32>
    %982 = vector.shape_cast %981 : vector<1x1x8x4xf32> to vector<8x4xf32>
    %983 = arith.truncf %982 : vector<8x4xf32> to vector<8x4xbf16>
    %cst_860 = arith.constant dense<0.000000e+00> : vector<8x32xf32>
    %984 = tpu.matmul %983, %781, %cst_860 {dimension_numbers = #tpu.dot_dimension_numbers<[1], [0], [0], [1], [0, 0, 1, 1], [], []>} : vector<8x4xbf16>, vector<4x32xbf16>, vector<8x32xf32> -> vector<8x32xf32>
    %985 = arith.addf %980, %984 : vector<8x32xf32>
    %c0_861 = arith.constant 0 : index
    %c8_862 = arith.constant 8 : index
    %c2_863 = arith.constant 2 : index
    %c0_864 = arith.constant 0 : index
    %986 = vector.load %arg5[%c0_861, %c8_862, %c2_863, %c0_864] : memref<1x10x10x4xf32, #tpu.memory_space<vmem>>, vector<1x1x8x4xf32>
    %987 = vector.shape_cast %986 : vector<1x1x8x4xf32> to vector<8x4xf32>
    %988 = arith.truncf %987 : vector<8x4xf32> to vector<8x4xbf16>
    %cst_865 = arith.constant dense<0.000000e+00> : vector<8x32xf32>
    %989 = tpu.matmul %988, %783, %cst_865 {dimension_numbers = #tpu.dot_dimension_numbers<[1], [0], [0], [1], [0, 0, 1, 1], [], []>} : vector<8x4xbf16>, vector<4x32xbf16>, vector<8x32xf32> -> vector<8x32xf32>
    %990 = arith.addf %985, %989 : vector<8x32xf32>
    %991 = vector.broadcast %7 : vector<1x32xf32> to vector<8x32xf32>
    %992 = arith.addf %990, %991 : vector<8x32xf32>
    %993 = arith.negf %992 : vector<8x32xf32>
    %994 = math.exp %993 : vector<8x32xf32>
    %cst_866 = arith.constant 1.000000e+00 : f32
    %995 = vector.broadcast %cst_866 : f32 to vector<8x32xf32>
    %996 = arith.addf %995, %994 : vector<8x32xf32>
    %997 = arith.divf %995, %996 : vector<8x32xf32>
    %c0_867 = arith.constant 0 : index
    %c6_868 = arith.constant 6 : index
    %c0_869 = arith.constant 0 : index
    %c96_870 = arith.constant 96 : index
    %998 = vector.load %arg4[%c0_867, %c6_868, %c0_869, %c96_870] : memref<1x8x8x128xf32, #tpu.memory_space<vmem>>, vector<1x1x8x32xf32>
    %999 = vector.shape_cast %998 : vector<1x1x8x32xf32> to vector<8x32xf32>
    %1000 = vector.shape_cast %997 : vector<8x32xf32> to vector<1x1x8x32xf32>
    tpu.vector_store %arg4[%c0_867, %c6_868, %c0_869, %c96_870], %1000 {strides = array<i32>} : memref<1x8x8x128xf32, #tpu.memory_space<vmem>>, vector<1x1x8x32xf32>,
    %cst_871 = arith.constant 0.000000e+00 : f32
    %1001 = vector.broadcast %cst_871 : f32 to vector<8x32xf32>
    %c0_872 = arith.constant 0 : index
    %c8_873 = arith.constant 8 : index
    %c1_874 = arith.constant 1 : index
    %c0_875 = arith.constant 0 : index
    %1002 = vector.load %arg5[%c0_872, %c8_873, %c1_874, %c0_875] : memref<1x10x10x4xf32, #tpu.memory_space<vmem>>, vector<1x1x8x4xf32>
    %1003 = vector.shape_cast %1002 : vector<1x1x8x4xf32> to vector<8x4xf32>
    %1004 = arith.truncf %1003 : vector<8x4xf32> to vector<8x4xbf16>
    %cst_876 = arith.constant dense<0.000000e+00> : vector<8x32xf32>
    %1005 = tpu.matmul %1004, %777, %cst_876 {dimension_numbers = #tpu.dot_dimension_numbers<[1], [0], [0], [1], [0, 0, 1, 1], [], []>} : vector<8x4xbf16>, vector<4x32xbf16>, vector<8x32xf32> -> vector<8x32xf32>
    %1006 = arith.addf %1001, %1005 : vector<8x32xf32>
    %c0_877 = arith.constant 0 : index
    %c8_878 = arith.constant 8 : index
    %c2_879 = arith.constant 2 : index
    %c0_880 = arith.constant 0 : index
    %1007 = vector.load %arg5[%c0_877, %c8_878, %c2_879, %c0_880] : memref<1x10x10x4xf32, #tpu.memory_space<vmem>>, vector<1x1x8x4xf32>
    %1008 = vector.shape_cast %1007 : vector<1x1x8x4xf32> to vector<8x4xf32>
    %1009 = arith.truncf %1008 : vector<8x4xf32> to vector<8x4xbf16>
    %cst_881 = arith.constant dense<0.000000e+00> : vector<8x32xf32>
    %1010 = tpu.matmul %1009, %779, %cst_881 {dimension_numbers = #tpu.dot_dimension_numbers<[1], [0], [0], [1], [0, 0, 1, 1], [], []>} : vector<8x4xbf16>, vector<4x32xbf16>, vector<8x32xf32> -> vector<8x32xf32>
    %1011 = arith.addf %1006, %1010 : vector<8x32xf32>
    %c0_882 = arith.constant 0 : index
    %c9_883 = arith.constant 9 : index
    %c1_884 = arith.constant 1 : index
    %c0_885 = arith.constant 0 : index
    %1012 = vector.load %arg5[%c0_882, %c9_883, %c1_884, %c0_885] : memref<1x10x10x4xf32, #tpu.memory_space<vmem>>, vector<1x1x8x4xf32>
    %1013 = vector.shape_cast %1012 : vector<1x1x8x4xf32> to vector<8x4xf32>
    %1014 = arith.truncf %1013 : vector<8x4xf32> to vector<8x4xbf16>
    %cst_886 = arith.constant dense<0.000000e+00> : vector<8x32xf32>
    %1015 = tpu.matmul %1014, %781, %cst_886 {dimension_numbers = #tpu.dot_dimension_numbers<[1], [0], [0], [1], [0, 0, 1, 1], [], []>} : vector<8x4xbf16>, vector<4x32xbf16>, vector<8x32xf32> -> vector<8x32xf32>
    %1016 = arith.addf %1011, %1015 : vector<8x32xf32>
    %c0_887 = arith.constant 0 : index
    %c9_888 = arith.constant 9 : index
    %c2_889 = arith.constant 2 : index
    %c0_890 = arith.constant 0 : index
    %1017 = vector.load %arg5[%c0_887, %c9_888, %c2_889, %c0_890] : memref<1x10x10x4xf32, #tpu.memory_space<vmem>>, vector<1x1x8x4xf32>
    %1018 = vector.shape_cast %1017 : vector<1x1x8x4xf32> to vector<8x4xf32>
    %1019 = arith.truncf %1018 : vector<8x4xf32> to vector<8x4xbf16>
    %cst_891 = arith.constant dense<0.000000e+00> : vector<8x32xf32>
    %1020 = tpu.matmul %1019, %783, %cst_891 {dimension_numbers = #tpu.dot_dimension_numbers<[1], [0], [0], [1], [0, 0, 1, 1], [], []>} : vector<8x4xbf16>, vector<4x32xbf16>, vector<8x32xf32> -> vector<8x32xf32>
    %1021 = arith.addf %1016, %1020 : vector<8x32xf32>
    %1022 = vector.broadcast %7 : vector<1x32xf32> to vector<8x32xf32>
    %1023 = arith.addf %1021, %1022 : vector<8x32xf32>
    %1024 = arith.negf %1023 : vector<8x32xf32>
    %1025 = math.exp %1024 : vector<8x32xf32>
    %cst_892 = arith.constant 1.000000e+00 : f32
    %1026 = vector.broadcast %cst_892 : f32 to vector<8x32xf32>
    %1027 = arith.addf %1026, %1025 : vector<8x32xf32>
    %1028 = arith.divf %1026, %1027 : vector<8x32xf32>
    %c0_893 = arith.constant 0 : index
    %c7_894 = arith.constant 7 : index
    %c0_895 = arith.constant 0 : index
    %c96_896 = arith.constant 96 : index
    %1029 = vector.load %arg4[%c0_893, %c7_894, %c0_895, %c96_896] : memref<1x8x8x128xf32, #tpu.memory_space<vmem>>, vector<1x1x8x32xf32>
    %1030 = vector.shape_cast %1029 : vector<1x1x8x32xf32> to vector<8x32xf32>
    %1031 = vector.shape_cast %1028 : vector<8x32xf32> to vector<1x1x8x32xf32>
    tpu.vector_store %arg4[%c0_893, %c7_894, %c0_895, %c96_896], %1031 {strides = array<i32>} : memref<1x8x8x128xf32, #tpu.memory_space<vmem>>, vector<1x1x8x32xf32>,
    return
  }
  func.func @transform_0(%arg0: i32) -> (i32, i32, i32, i32) {
    %c0_i32 = arith.constant 0 : i32
    %c0_i32_0 = arith.constant 0 : i32
    %c0_i32_1 = arith.constant 0 : i32
    %c0_i32_2 = arith.constant 0 : i32
    return %arg0, %c0_i32, %c0_i32_0, %c0_i32_1 : i32, i32, i32, i32
  }
  func.func @transform_1(%arg0: i32) -> (i32, i32, i32, i32) {
    %c0_i32 = arith.constant 0 : i32
    %c0_i32_0 = arith.constant 0 : i32
    %c0_i32_1 = arith.constant 0 : i32
    %c0_i32_2 = arith.constant 0 : i32
    %c0_i32_3 = arith.constant 0 : i32
    return %c0_i32, %c0_i32_0, %c0_i32_1, %c0_i32_2 : i32, i32, i32, i32
  }
  func.func @transform_2(%arg0: i32) -> (i32, i32) {
    %c0_i32 = arith.constant 0 : i32
    %c0_i32_0 = arith.constant 0 : i32
    %c0_i32_1 = arith.constant 0 : i32
    return %c0_i32, %c0_i32_0 : i32, i32
  }
  func.func @transform_3(%arg0: i32) -> (i32, i32, i32, i32) {
    %c0_i32 = arith.constant 0 : i32
    %c0_i32_0 = arith.constant 0 : i32
    %c0_i32_1 = arith.constant 0 : i32
    %c0_i32_2 = arith.constant 0 : i32
    return %arg0, %c0_i32, %c0_i32_0, %c0_i32_1 : i32, i32, i32, i32
  }
}

</mosaic_0001>

<bundles_post_ra>
// kernel: decoder_forward.3
= control target key start
LH: loop header
LB: loop body
LE: loop exit
PB: predicated region body
PF: predicated region fallthrough
CT: control target
= control target key end

     0   :  { %10 = vsyncpa [#allocation4], 0  ;;  %s1848_s0 = inlined_call_operand.vmem [shape: bf16[8,128], index: 0, kind: input, shape index: {}]   ;;  %s1849_s1 = inlined_call_operand.hbm [shape: bf16[128,1024], index: 1, kind: input, shape index: {}]   ;;  %s1850_s2 = inlined_call_operand.vmem [shape: f32[1,1024], index: 2, kind: input, shape index: {}]   ;;  %s1851_s3 = inlined_call_operand.hbm [shape: bf16[1024,128], index: 3, kind: input, shape index: {}]   ;;  %s1852_s4 = inlined_call_operand.vmem [shape: f32[1,128], index: 4, kind: input, shape index: {}]   ;;  %s1853_s5 = inlined_call_operand.vmem [shape: f32[8,128], index: 5, kind: output, shape index: {}]  }
   0x1   :  { %11 = vsyncpa [#allocation6], 0  ;;  %s1763_s18 = smov [#allocation3]  }
   0x2   :  { %s19_s19 = sshll.u32 %s1763_s18, 4  ;;  %s20_s19 = int_to_ptr.vmem [resolvable:$true] %s19_s19 }
   0x3   :  { %s1727_s20 = scalar_lea.vmem %s20_s19, 8192  ;;  %p1732_p1 = scmp.lt.s32.totalorder %s20_s19, %s20_s19 }
   0x4   :  { %p1728_p0 = scmp.ne.s32.totalorder %s20_s19, %s1727_s20  ;;  %p1733_p2 = scmp.lt.s32.totalorder %s1727_s20, %s1727_s20 }
   0x6   :  { %p1734_p3 = por %p1733_p2, %p1732_p1 }
   0x8   :  { %p1735_p4 = pnand %p1734_p3, %p1728_p0 }
   0xa   :  { %1738 = shalt.err (!%p1735_p4)
}
   0xb   :  { %s1764_s21 = smov 512   ;;  %s1765_s22 = smov 32  }
   0xc   :  { %25 = dma.hbm_to_vmem [thread:$0]  %s1849_s1, 8192, %s20_s19, [#allocation4], %s1764_s21, %s1764_s21, %s1765_s22  }
   0xd   :  { %s1766_s25 = smov [#allocation5]  }
   0xe   :  { %s33_s26 = sshll.u32 %s1766_s25, 4  ;;  %s34_s26 = int_to_ptr.vmem [resolvable:$true] %s33_s26 }
   0xf   :  { %s1747_s27 = scalar_lea.vmem %s34_s26, 8192  ;;  %p1752_p6 = scmp.lt.s32.totalorder %s34_s26, %s34_s26 }
  0x10   :  { %p1748_p5 = scmp.ne.s32.totalorder %s34_s26, %s1747_s27  ;;  %p1753_p7 = scmp.lt.s32.totalorder %s1747_s27, %s1747_s27 }
  0x12   :  { %p1754_p8 = por %p1753_p7, %p1752_p6 }
  0x14   :  { %p1755_p9 = pnand %p1754_p8, %p1748_p5 }
  0x16   :  { %1758 = shalt.err (!%p1755_p9)
}
  0x17   :  { %s1767_s28 = smov 64   ;;  %s1768_s29 = smov 4  }
  0x18   :  { %39 = dma.hbm_to_vmem [thread:$0]  %s1851_s3, 8192, %s34_s26, [#allocation6], %s1767_s28, %s1767_s28, %s1768_s29  }
  0x19   :  { %1759 = dma.done.wait [#allocation4], 8192  }
  0x1a   :  { %1760 = vsyncadd [#allocation4], 4294959104 }
  0x1b   :  { %1761 = dma.done.wait [#allocation6], 8192  }
  0x1c   :  { %1762 = vsyncadd [#allocation6], 4294959104  ;;  %v1769_v0 = vmov 0   ;;  %v110_v1 = vld [vmem:[#allocation3 + $0x1c0] sm:$0xff]  ;;  %v111_v3 = vld [vmem:[#allocation3 + $0x1c8] sm:$0xff] }
  0x1d   :  { %512 = vmatprep.mubr.bf16.mxu0 %v1769_v0  ;;  %553 = vmatprep.mubr.bf16.mxu1 %v1769_v0  ;;  %v114_v2 = vld [vmem:[#allocation3 + $0x1e0] sm:$0xff]  ;;  %v115_v5 = vld [vmem:[#allocation3 + $0x1e8] sm:$0xff]  ;;  %v112_v60 = vld [vmem:[#allocation3 + $0x1d0] sm:$0xff] }
  0x1e   :  { %v1464_v4 = vcombine.high %v110_v1, %v114_v2  ;;  %v1463_v6 = vcombine.low %v110_v1, %v114_v2  ;;  %v102_v7 = vld [vmem:[#allocation3 + $0x180] sm:$0xff]  ;;  %v1466_v9 = vcombine.high %v111_v3, %v115_v5  ;;  %v1465_v10 = vcombine.low %v111_v3, %v115_v5  ;;  %v103_v12 = vld [vmem:[#allocation3 + $0x188] sm:$0xff]  ;;  %v116_v63 = vld [vmem:[#allocation3 + $0x1f0] sm:$0xff] }
  0x1f   :  { %v106_v8 = vld [vmem:[#allocation3 + $0x1a0] sm:$0xff]  ;;  %v107_v13 = vld [vmem:[#allocation3 + $0x1a8] sm:$0xff]  ;;  %v113_v2 = vld [vmem:[#allocation3 + $0x1d8] sm:$0xff] }
  0x20   :  { %v1456_v11 = vcombine.high %v102_v7, %v106_v8  ;;  %v94_v14 = vld [vmem:[#allocation3 + $0x140] sm:$0xff]  ;;  %480 = vmatprep.subr.bf16.mxu0 %v1464_v4  ;;  %v1458_v15 = vcombine.high %v103_v12, %v107_v13  ;;  %v95_v17 = vld [vmem:[#allocation3 + $0x148] sm:$0xff]  ;;  %521 = vmatprep.subr.bf16.mxu1 %v1466_v9  ;;  %v1455_v19 = vcombine.low %v102_v7, %v106_v8  ;;  %v117_v3 = vld [vmem:[#allocation3 + $0x1f8] sm:$0xff] }
  0x21   :  { %v98_v16 = vld [vmem:[#allocation3 + $0x160] sm:$0xff]  ;;  %v99_v18 = vld [vmem:[#allocation3 + $0x168] sm:$0xff]  ;;  %481 = vmatpush1.bf16.msra.mxu0 %v1463_v6  ;;  %522 = vmatpush1.bf16.msra.mxu1 %v1465_v10  ;;  %v1457_v20 = vcombine.low %v103_v12, %v107_v13  ;;  %v104_v5 = vld [vmem:[#allocation3 + $0x190] sm:$0xff]  ;;  %v1468_v7 = vcombine.high %v112_v60, %v116_v63  ;;  %v1470_v10 = vcombine.high %v113_v2, %v117_v3 }
  0x22   :  { %482 = vmatprep.subr.bf16.mxu0 %v1456_v11  ;;  %v1448_v21 = vcombine.high %v94_v14, %v98_v16  ;;  %523 = vmatprep.subr.bf16.mxu1 %v1458_v15  ;;  %v1450_v22 = vcombine.high %v95_v17, %v99_v18  ;;  %v86_v23 = vld [vmem:[#allocation3 + $0x100] sm:$0xff]  ;;  %v87_v25 = vld [vmem:[#allocation3 + $0x108] sm:$0xff]  ;;  %v1447_v27 = vcombine.low %v94_v14, %v98_v16  ;;  %v108_v8 = vld [vmem:[#allocation3 + $0x1b0] sm:$0xff] }
  0x23   :  { %v90_v24 = vld [vmem:[#allocation3 + $0x120] sm:$0xff]  ;;  %v91_v26 = vld [vmem:[#allocation3 + $0x128] sm:$0xff]  ;;  %v1449_v28 = vcombine.low %v95_v17, %v99_v18  ;;  %v105_v11 = vld [vmem:[#allocation3 + $0x198] sm:$0xff]  ;;  %v1467_v13 = vcombine.low %v112_v60, %v116_v63  ;;  %v1469_v15 = vcombine.low %v113_v2, %v117_v3  ;;  %v1460_v16 = vcombine.high %v104_v5, %v108_v8 }
  0x24   :  { %v1440_v29 = vcombine.high %v86_v23, %v90_v24  ;;  %v1442_v30 = vcombine.high %v87_v25, %v91_v26  ;;  %v78_v31 = vld [vmem:[#allocation3 + $0xc0] sm:$0xff]  ;;  %v79_v33 = vld [vmem:[#allocation3 + $0xc8] sm:$0xff]  ;;  %v1439_v35 = vcombine.low %v86_v23, %v90_v24  ;;  %v1441_v36 = vcombine.low %v87_v25, %v91_v26  ;;  %v109_v12 = vld [vmem:[#allocation3 + $0x1b8] sm:$0xff] }
  0x25   :  { %483 = vmatpush1.bf16.msra.mxu0 %v1455_v19  ;;  %524 = vmatpush1.bf16.msra.mxu1 %v1457_v20  ;;  %v82_v32 = vld [vmem:[#allocation3 + $0xe0] sm:$0xff]  ;;  %v83_v34 = vld [vmem:[#allocation3 + $0xe8] sm:$0xff]  ;;  %v96_v14 = vld [vmem:[#allocation3 + $0x150] sm:$0xff]  ;;  %v1462_v18 = vcombine.high %v105_v11, %v109_v12  ;;  %v1461_v23 = vcombine.low %v105_v11, %v109_v12 }
  0x26   :  { %484 = vmatprep.subr.bf16.mxu0 %v1448_v21  ;;  %525 = vmatprep.subr.bf16.mxu1 %v1450_v22  ;;  %v1432_v37 = vcombine.high %v78_v31, %v82_v32  ;;  %v1434_v38 = vcombine.high %v79_v33, %v83_v34  ;;  %v70_v39 = vld [vmem:[#allocation3 + $0x80] sm:$0xff]  ;;  %v71_v41 = vld [vmem:[#allocation3 + $0x88] sm:$0xff]  ;;  %v1431_v43 = vcombine.low %v78_v31, %v82_v32  ;;  %v100_v17 = vld [vmem:[#allocation3 + $0x170] sm:$0xff] }
  0x27   :  { %v74_v40 = vld [vmem:[#allocation3 + $0xa0] sm:$0xff]  ;;  %v75_v42 = vld [vmem:[#allocation3 + $0xa8] sm:$0xff]  ;;  %v1433_v44 = vcombine.low %v79_v33, %v83_v34  ;;  %v97_v19 = vld [vmem:[#allocation3 + $0x158] sm:$0xff]  ;;  %v1459_v21 = vcombine.low %v104_v5, %v108_v8  ;;  %v1452_v24 = vcombine.high %v96_v14, %v100_v17 }
  0x28   :  { %v1424_v45 = vcombine.high %v70_v39, %v74_v40  ;;  %v1426_v46 = vcombine.high %v71_v41, %v75_v42  ;;  %v62_v47 = vld [vmem:[#allocation3 + $0x40] sm:$0xff]  ;;  %v63_v49 = vld [vmem:[#allocation3 + $0x48] sm:$0xff]  ;;  %v1423_v51 = vcombine.low %v70_v39, %v74_v40  ;;  %v1425_v52 = vcombine.low %v71_v41, %v75_v42  ;;  %v101_v20 = vld [vmem:[#allocation3 + $0x178] sm:$0xff] }
  0x29   :  { %485 = vmatpush1.bf16.msra.mxu0 %v1447_v27  ;;  %526 = vmatpush1.bf16.msra.mxu1 %v1449_v28  ;;  %v66_v48 = vld [vmem:[#allocation3 + $0x60] sm:$0xff]  ;;  %v67_v50 = vld [vmem:[#allocation3 + $0x68] sm:$0xff]  ;;  %v88_v22 = vld [vmem:[#allocation3 + $0x110] sm:$0xff]  ;;  %v1454_v26 = vcombine.high %v97_v19, %v101_v20  ;;  %v1453_v31 = vcombine.low %v97_v19, %v101_v20 }
  0x2a   :  { %486 = vmatprep.subr.bf16.mxu0 %v1440_v29  ;;  %527 = vmatprep.subr.bf16.mxu1 %v1442_v30  ;;  %v1416_v53 = vcombine.high %v62_v47, %v66_v48  ;;  %v54_v54 = vld [vmem:[#allocation3] sm:$0xff]  ;;  %v1418_v56 = vcombine.high %v63_v49, %v67_v50  ;;  %v55_v57 = vld [vmem:[#allocation3 + $0x8] sm:$0xff]  ;;  %v1415_v59 = vcombine.low %v62_v47, %v66_v48  ;;  %v92_v25 = vld [vmem:[#allocation3 + $0x130] sm:$0xff] }
  0x2b   :  { %v58_v55 = vld [vmem:[#allocation3 + $0x20] sm:$0xff]  ;;  %v59_v58 = vld [vmem:[#allocation3 + $0x28] sm:$0xff]  ;;  %v1417_v61 = vcombine.low %v63_v49, %v67_v50  ;;  %v89_v27 = vld [vmem:[#allocation3 + $0x118] sm:$0xff]  ;;  %v1451_v29 = vcombine.low %v96_v14, %v100_v17  ;;  %v1444_v32 = vcombine.high %v88_v22, %v92_v25 }
  0x2c   :  { %v1408_v62 = vcombine.high %v54_v54, %v58_v55  ;;  %v1410_v1 = vcombine.high %v55_v57, %v59_v58  ;;  %v1407_v4 = vcombine.low %v54_v54, %v58_v55  ;;  %v1409_v6 = vcombine.low %v55_v57, %v59_v58  ;;  %v1811_v9 = vld [vmem:[%s1848_s0] sm:$0xf]  ;;  %v93_v28 = vld [vmem:[#allocation3 + $0x138] sm:$0xff]  ;;  %v80_v30 = vld [vmem:[#allocation3 + $0xd0] sm:$0xff] }
  0x2d   :  { %487 = vmatpush1.bf16.msra.mxu0 %v1439_v35  ;;  %528 = vmatpush1.bf16.msra.mxu1 %v1441_v36  ;;  %v84_v33 = vld [vmem:[#allocation3 + $0xf0] sm:$0xff]  ;;  %v1446_v34 = vcombine.high %v89_v27, %v93_v28  ;;  %v81_v35 = vld [vmem:[#allocation3 + $0xd8] sm:$0xff]  ;;  %v1445_v40 = vcombine.low %v89_v27, %v93_v28  ;;  %v1663_v12 = vld [vmem:[#allocation5 + $0x68] sm:$0xff]  }
  0x2e   :  { %488 = vmatprep.subr.bf16.mxu0 %v1432_v37  ;;  %529 = vmatprep.subr.bf16.mxu1 %v1434_v38  ;;  %v85_v36 = vld [vmem:[#allocation3 + $0xf8] sm:$0xff]  ;;  %v1443_v37 = vcombine.low %v88_v22, %v92_v25  ;;  %v72_v38 = vld [vmem:[#allocation3 + $0x90] sm:$0xff]  ;;  %v1665_v14 = vld [vmem:[#allocation5 + $0x28] sm:$0xff]  }
  0x2f   :  { %v76_v39 = vld [vmem:[#allocation3 + $0xb0] sm:$0xff]  ;;  %v73_v41 = vld [vmem:[#allocation3 + $0x98] sm:$0xff]  ;;  %v1437_v47 = vcombine.low %v81_v35, %v85_v36  ;;  %v1668_v17 = vld [vmem:[#allocation5 + $0xe0] sm:$0xff]  }
  0x30   :  { %v77_v42 = vld [vmem:[#allocation3 + $0xb8] sm:$0xff]  ;;  %v1428_v48 = vcombine.high %v72_v38, %v76_v39  ;;  %v60_v54 = vld [vmem:[#allocation3 + $0x30] sm:$0xff]  ;;  %v1670_v19 = vld [vmem:[#allocation5 + $0xa0] sm:$0xff]  }
  0x31   :  { %489 = vmatpush1.bf16.msra.mxu0 %v1431_v43  ;;  %530 = vmatpush1.bf16.msra.mxu1 %v1433_v44  ;;  %v1438_v43 = vcombine.high %v81_v35, %v85_v36  ;;  %v1435_v44 = vcombine.low %v80_v30, %v84_v33  ;;  %v65_v49 = vld [vmem:[#allocation3 + $0x58] sm:$0xff]  ;;  %v1429_v55 = vcombine.low %v73_v41, %v77_v42  ;;  %v1660_v8 = vld [vmem:[#allocation5 + $0xf0] sm:$0xff]   ;;  %v1679_v27 = vld [vmem:[#allocation5 + $0x48] sm:$0xff]  }
  0x32   :  { %490 = vmatprep.subr.bf16.mxu0 %v1424_v45  ;;  %531 = vmatprep.subr.bf16.mxu1 %v1426_v46  ;;  %v64_v45 = vld [vmem:[#allocation3 + $0x50] sm:$0xff]  ;;  %v69_v50 = vld [vmem:[#allocation3 + $0x78] sm:$0xff]  ;;  %v1680_v28 = vld [vmem:[#allocation5 + $0xc8] sm:$0xff]  }
  0x33   :  { %v68_v46 = vld [vmem:[#allocation3 + $0x70] sm:$0xff]  ;;  %v57_v57 = vld [vmem:[#allocation3 + $0x18] sm:$0xff] }
  0x34   :  { %v61_v58 = vld [vmem:[#allocation3 + $0x38] sm:$0xff]  ;;  %v1419_v60 = vcombine.low %v64_v45, %v68_v46  ;;  %v1662_v11 = vld [vmem:[#allocation5 + $0xb0] sm:$0xff]  }
  0x35   :  { %491 = vmatpush1.bf16.msra.mxu0 %v1423_v51  ;;  %532 = vmatpush1.bf16.msra.mxu1 %v1425_v52  ;;  %v1430_v51 = vcombine.high %v73_v41, %v77_v42  ;;  %v1427_v52 = vcombine.low %v72_v38, %v76_v39  ;;  %v1414_v63 = vcombine.high %v57_v57, %v61_v58  ;;  %v1656_v3 = vld [vmem:[#allocation5 + $0xf8] sm:$0xff]   ;;  %v1677_v25 = vld [vmem:[#allocation5 + $0x10] sm:$0xff]  }
  0x36   :  { %492 = vmatprep.subr.bf16.mxu0 %v1416_v53  ;;  %533 = vmatprep.subr.bf16.mxu1 %v1418_v56  ;;  %v56_v53 = vld [vmem:[#allocation3 + $0x10] sm:$0xff]  ;;  %v1420_v56 = vcombine.high %v64_v45, %v68_v46  ;;  %v1657_v5 = vld [vmem:[#allocation5 + $0x38] sm:$0xff]  }
  0x37   :  { %v1411_v2 = vcombine.low %v56_v53, %v60_v54  ;;  %v1671_v20 = vld [vmem:[#allocation5 + $0x58] sm:$0xff]  }
  0x38   :  { %v1674_v22 = vld [vmem:[#allocation5 + $0x98] sm:$0xff]  }
  0x39   :  { %493 = vmatpush1.bf16.msra.mxu0 %v1415_v59  ;;  %534 = vmatpush1.bf16.msra.mxu1 %v1417_v61  ;;  %v1422_v59 = vcombine.high %v65_v49, %v69_v50  ;;  %v1421_v61 = vcombine.low %v65_v49, %v69_v50  ;;  %v1687_v35 = vld [vmem:[#allocation5 + $0x178] sm:$0xff]  }
  0x3a   :  { %494 = vmatprep.subr.bf16.mxu0 %v1408_v62  ;;  %535 = vmatprep.subr.bf16.mxu1 %v1410_v1  ;;  %v1412_v62 = vcombine.high %v56_v53, %v60_v54  ;;  %v1655_v1 = vld [vmem:[#allocation5 + $0x78] sm:$0xff]  }
  0x3b   :  { %v1688_v36 = vld [vmem:[#allocation5 + $0x1f8] sm:$0xff]  }
  0x3d   :  { %495 = vmatpush1.bf16.msra.mxu0 %v1407_v4  ;;  %536 = vmatpush1.bf16.msra.mxu1 %v1409_v6  ;;  %v1413_v4 = vcombine.low %v57_v57, %v61_v58  ;;  %v1658_v6 = vld [vmem:[#allocation5 + $0xb8] sm:$0xff]  }
  0x3e   :  { %562 = vmatprep.subr.bf16.mxu0 %v1468_v7  ;;  %603 = vmatprep.subr.bf16.mxu1 %v1470_v10  ;;  %v1659_v7 = vld [vmem:[#allocation5 + $0x70] sm:$0xff]  }
  0x3f   :  { %v1661_v10 = vld [vmem:[#allocation5 + $0x30] sm:$0xff]  }
  0x40   :  { %513 = vmatmul.mubr.bf16.vlgmr.msra.gmra.mxu0 %v1811_v9  ;;  %554 = vmatmul.mubr.bf16.vlgmr.msra.gmra.mxu1 %v1811_v9 }
  0x41   :  { %563 = vmatpush1.bf16.msra.mxu0 %v1467_v13  ;;  %604 = vmatpush1.bf16.msra.mxu1 %v1469_v15  ;;  %v1664_v13 = vld [vmem:[#allocation5 + $0xe8] sm:$0xff]  }
  0x42   :  { %564 = vmatprep.subr.bf16.mxu0 %v1460_v16  ;;  %605 = vmatprep.subr.bf16.mxu1 %v1462_v18  ;;  %v1666_v15 = vld [vmem:[#allocation5 + $0xa8] sm:$0xff]   ;;  %v1667_v16 = vld [vmem:[#allocation5 + $0x60] sm:$0xff]  }
  0x43   :  { %594 = vmatprep.mubr.bf16.mxu0 %v1769_v0  ;;  %635 = vmatprep.mubr.bf16.mxu1 %v1769_v0  ;;  %v1436_v0 = vcombine.high %v80_v30, %v84_v33  ;;  %v1669_v18 = vld [vmem:[#allocation5 + $0x20] sm:$0xff]   ;;  %v1682_v30 = vld [vmem:[#allocation5 + $0x88] sm:$0xff]  }
  0x44   :  { %v1685_v33 = vld [vmem:[#allocation5] sm:$0xff]  }
  0x45   :  { %565 = vmatpush1.bf16.msra.mxu0 %v1459_v21  ;;  %606 = vmatpush1.bf16.msra.mxu1 %v1461_v23  ;;  %v1673_v21 = vld [vmem:[#allocation5 + $0x18] sm:$0xff]   ;;  %v1675_v23 = vld [vmem:[#allocation5 + $0x50] sm:$0xff]  }
  0x46   :  { %566 = vmatprep.subr.bf16.mxu0 %v1452_v24  ;;  %607 = vmatprep.subr.bf16.mxu1 %v1454_v26  ;;  %v1676_v24 = vld [vmem:[#allocation5 + $0xd0] sm:$0xff]  }
  0x47   :  { %v1678_v26 = vld [vmem:[#allocation5 + $0x90] sm:$0xff]  }
  0x49   :  { %567 = vmatpush1.bf16.msra.mxu0 %v1451_v29  ;;  %608 = vmatpush1.bf16.msra.mxu1 %v1453_v31  ;;  %v1681_v29 = vld [vmem:[#allocation5 + $0x8] sm:$0xff]   ;;  %v1683_v31 = vld [vmem:[#allocation5 + $0x40] sm:$0xff]  }
  0x4a   :  { %568 = vmatprep.subr.bf16.mxu0 %v1444_v32  ;;  %609 = vmatprep.subr.bf16.mxu1 %v1446_v34  ;;  %v1684_v32 = vld [vmem:[#allocation5 + $0xc0] sm:$0xff]  }
  0x4b   :  { %v1686_v34 = vld [vmem:[#allocation5 + $0x80] sm:$0xff]  }
  0x4d   :  { %569 = vmatpush1.bf16.msra.mxu0 %v1443_v37  ;;  %610 = vmatpush1.bf16.msra.mxu1 %v1445_v40  ;;  %v120_v37 = vlaneseq  ;;  %v1825_v40 = vld [vmem:[%s1850_s2] sm:$0xff] }
  0x4e   :  { %570 = vmatprep.subr.bf16.mxu0 %v1436_v0  ;;  %611 = vmatprep.subr.bf16.mxu1 %v1438_v43 }
  0x4f   :  { %v1819_v38 = vshrl.u32 %v120_v37, 7 }
  0x51   :  { %571 = vmatpush1.bf16.msra.mxu0 %v1435_v44  ;;  %612 = vmatpush1.bf16.msra.mxu1 %v1437_v47  ;;  %v122_v39 = vsub.s32 0, %v1819_v38  ;;  %v130_v0 = vsub.s32 2, %v1819_v38  ;;  %v126_v41 = vsub.s32 1, %v1819_v38  ;;  %v134_v42 = vsub.s32 3, %v1819_v38 }
  0x52   :  { %572 = vmatprep.subr.bf16.mxu0 %v1428_v48  ;;  %613 = vmatprep.subr.bf16.mxu1 %v1430_v51 }
  0x53   :  { %v123_v43 = vrot.slane %v1825_v40, %v122_v39  ;;  %v131_v44 = vrot.slane %v1825_v40, %v130_v0  ;;  %v127_v45 = vrot.slane %v1825_v40, %v126_v41  ;;  %v135_v47 = vrot.slane %v1825_v40, %v134_v42  ;;  %v1714_v39 = vld [vmem:[#allocation5 + $0x188] sm:$0xff]   ;;  %v1715_v0 = vld [vmem:[#allocation5 + $0x140] sm:$0xff]  }
  0x54   :  { %v1716_v42 = vld [vmem:[#allocation5 + $0x1c0] sm:$0xff]  }
  0x55   :  { %573 = vmatpush1.bf16.msra.mxu0 %v1427_v52  ;;  %614 = vmatpush1.bf16.msra.mxu1 %v1429_v55 }
  0x56   :  { %574 = vmatprep.subr.bf16.mxu0 %v1420_v56  ;;  %615 = vmatprep.subr.bf16.mxu1 %v1422_v59 }
  0x59   :  { %575 = vmatpush1.bf16.msra.mxu0 %v1419_v60  ;;  %616 = vmatpush1.bf16.msra.mxu1 %v1421_v61 }
  0x5a   :  { %576 = vmatprep.subr.bf16.mxu0 %v1412_v62  ;;  %617 = vmatprep.subr.bf16.mxu1 %v1414_v63 }
  0x5d   :  { %577 = vmatpush1.bf16.msra.mxu0 %v1411_v2  ;;  %618 = vmatpush1.bf16.msra.mxu1 %v1413_v4  ;;  %v1689_v2 = vld [vmem:[#allocation5 + $0x138] sm:$0xff]  }
  0x5e   :  { %1560 = vmatprep.subr.bf16.mxu0 %v1655_v1  ;;  %1582 = vmatprep.subr.bf16.mxu1 %v1656_v3 }
  0x60   :  { %595 = vmatmul.mubr.bf16.vlgmr.msra.gmra.mxu0 %v1811_v9  ;;  %636 = vmatmul.mubr.bf16.vlgmr.msra.gmra.mxu1 %v1811_v9  ;;  %v1672_v9 = vld [vmem:[#allocation5 + $0xd8] sm:$0xff]  }
  0x61   :  { %1561 = vmatpush3.bf16.msra.mxu0 %v1657_v5  ;;  %1583 = vmatpush3.bf16.msra.mxu1 %v1658_v6  ;;  %v1690_v5 = vld [vmem:[#allocation5 + $0x1b8] sm:$0xff]   ;;  %v1691_v6 = vld [vmem:[#allocation5 + $0x170] sm:$0xff]  }
  0x62   :  { %1562 = vmatprep.subr.bf16.mxu0 %v1659_v7  ;;  %1584 = vmatprep.subr.bf16.mxu1 %v1660_v8  ;;  %v1692_v7 = vld [vmem:[#allocation5 + $0x1f0] sm:$0xff]  }
  0x63   :  { %v1693_v8 = vld [vmem:[#allocation5 + $0x130] sm:$0xff]  }
  0x65   :  { %1563 = vmatpush3.bf16.msra.mxu0 %v1661_v10  ;;  %1585 = vmatpush3.bf16.msra.mxu1 %v1662_v11  ;;  %v1694_v10 = vld [vmem:[#allocation5 + $0x1b0] sm:$0xff]   ;;  %v1695_v11 = vld [vmem:[#allocation5 + $0x168] sm:$0xff]  }
  0x66   :  { %1564 = vmatprep.subr.bf16.mxu0 %v1663_v12  ;;  %1586 = vmatprep.subr.bf16.mxu1 %v1664_v13  ;;  %v1696_v12 = vld [vmem:[#allocation5 + $0x1e8] sm:$0xff]  }
  0x67   :  { %v1697_v13 = vld [vmem:[#allocation5 + $0x128] sm:$0xff]  }
  0x69   :  { %1565 = vmatpush3.bf16.msra.mxu0 %v1665_v14  ;;  %1587 = vmatpush3.bf16.msra.mxu1 %v1666_v15  ;;  %v1698_v14 = vld [vmem:[#allocation5 + $0x1a8] sm:$0xff]   ;;  %v1699_v15 = vld [vmem:[#allocation5 + $0x160] sm:$0xff]  }
  0x6a   :  { %1566 = vmatprep.subr.bf16.mxu0 %v1667_v16  ;;  %1588 = vmatprep.subr.bf16.mxu1 %v1668_v17  ;;  %v1700_v16 = vld [vmem:[#allocation5 + $0x1e0] sm:$0xff]  }
  0x6b   :  { %v1701_v17 = vld [vmem:[#allocation5 + $0x120] sm:$0xff]  }
  0x6d   :  { %1567 = vmatpush3.bf16.msra.mxu0 %v1669_v18  ;;  %1589 = vmatpush3.bf16.msra.mxu1 %v1670_v19  ;;  %v1702_v18 = vld [vmem:[#allocation5 + $0x1a0] sm:$0xff]   ;;  %v1703_v19 = vld [vmem:[#allocation5 + $0x158] sm:$0xff]  }
  0x6e   :  { %1568 = vmatprep.subr.bf16.mxu0 %v1671_v20  ;;  %1590 = vmatprep.subr.bf16.mxu1 %v1672_v9  ;;  %v1704_v20 = vld [vmem:[#allocation5 + $0x1d8] sm:$0xff]  }
  0x6f   :  { %v1705_v9 = vld [vmem:[#allocation5 + $0x118] sm:$0xff]  }
  0x71   :  { %1569 = vmatpush3.bf16.msra.mxu0 %v1673_v21  ;;  %1591 = vmatpush3.bf16.msra.mxu1 %v1674_v22  ;;  %v1706_v21 = vld [vmem:[#allocation5 + $0x198] sm:$0xff]   ;;  %v1707_v22 = vld [vmem:[#allocation5 + $0x150] sm:$0xff]  }
  0x72   :  { %1570 = vmatprep.subr.bf16.mxu0 %v1675_v23  ;;  %1592 = vmatprep.subr.bf16.mxu1 %v1676_v24  ;;  %v1708_v23 = vld [vmem:[#allocation5 + $0x1d0] sm:$0xff]   ;;  %v138_v24 = vsub.s32 4, %v1819_v38 }
  0x75   :  { %1571 = vmatpush3.bf16.msra.mxu0 %v1677_v25  ;;  %1593 = vmatpush3.bf16.msra.mxu1 %v1678_v26  ;;  %v146_v25 = vsub.s32 6, %v1819_v38  ;;  %v1709_v26 = vld [vmem:[#allocation5 + $0x110] sm:$0xff]  }
  0x76   :  { %1572 = vmatprep.subr.bf16.mxu0 %v1679_v27  ;;  %1594 = vmatprep.subr.bf16.mxu1 %v1680_v28  ;;  %v142_v27 = vsub.s32 5, %v1819_v38  ;;  %v1710_v28 = vld [vmem:[#allocation5 + $0x190] sm:$0xff]  }
  0x79   :  { %1573 = vmatpush3.bf16.msra.mxu0 %v1681_v29  ;;  %1595 = vmatpush3.bf16.msra.mxu1 %v1682_v30  ;;  %v150_v29 = vsub.s32 7, %v1819_v38  ;;  %v1711_v30 = vld [vmem:[#allocation5 + $0x148] sm:$0xff]  }
  0x7a   :  { %1574 = vmatprep.subr.bf16.mxu0 %v1683_v31  ;;  %1596 = vmatprep.subr.bf16.mxu1 %v1684_v32  ;;  %v139_v31 = vrot.slane %v1825_v40, %v138_v24  ;;  %v1712_v32 = vld [vmem:[#allocation5 + $0x1c8] sm:$0xff]  }
  0x7b   :  { %v151_v37 = vrot.slane %v1825_v40, %v150_v29 }
  0x7d   :  { %1575 = vmatpush3.bf16.msra.mxu0 %v1685_v33  ;;  %1597 = vmatpush3.bf16.msra.mxu1 %v1686_v34  ;;  %v147_v33 = vrot.slane %v1825_v40, %v146_v25  ;;  %v143_v34 = vrot.slane %v1825_v40, %v142_v27  ;;  %v1718_v40 = vld [vmem:[#allocation5 + $0x180] sm:$0xff]  }
  0x7e   :  { %1604 = vmatprep.subr.bf16.mxu0 %v1687_v35  ;;  %1626 = vmatprep.subr.bf16.mxu1 %v1688_v36  ;;  %v1713_v35 = vld [vmem:[#allocation5 + $0x108] sm:$0xff]  }
 0x100   :  { %v514_v46 = vpop.f32.mrf.mxu0  ;;  %v555_v49 = vpop.f32.mrf.mxu1 }
 0x101   :  { %v515_v48 = vadd.f32 %v514_v46, %v123_v43  ;;  %v556_v50 = vadd.f32 %v555_v49, %v131_v44 }
 0x102   :  { %v516_v51 = vpop.f32.mrf.mxu0  ;;  %v557_v53 = vpop.f32.mrf.mxu1 }
 0x103   :  { %v517_v52 = vadd.f32 %v516_v51, %v127_v45  ;;  %v644_v54 = vmax.f32 %v515_v48, 0.0  ;;  %v646_v55 = vmax.f32 %v556_v50, 0.0  ;;  %v558_v56 = vadd.f32 %v557_v53, %v135_v47  ;;  %v1717_v47 = vld [vmem:[#allocation5 + $0x100] sm:$0xff]  }
 0x104   :  { %v518_v57 = vpop.f32.mrf.mxu0  ;;  %v559_v59 = vpop.f32.mrf.mxu1 }
 0x105   :  { %v645_v58 = vmax.f32 %v517_v52, 0.0  ;;  %v647_v60 = vmax.f32 %v558_v56, 0.0  ;;  %v1554_v62 = vpack.c.bf16 %v646_v55, %v646_v55  ;;  %v1552_v3 = vpack.c.bf16 %v644_v54, %v644_v54 }
 0x106   :  { %v519_v61 = vpop.f32.mrf.mxu0  ;;  %v560_v1 = vpop.f32.mrf.mxu1 }
 0x107   :  { %v1553_v63 = vpack.c.bf16 %v645_v58, %v645_v58  ;;  %v1555_v4 = vpack.c.bf16 %v647_v60, %v647_v60 }
 0x109   :  { %1271 = vmatprep.mubr.bf16.mxu0 %v1553_v63  ;;  %1311 = vmatprep.mubr.bf16.mxu1 %v1555_v4 }
 0x10a   :  { %1272 = vmatmul.mubr.bf16.vlgmr.msra.gmra.mxu0 %v1552_v3  ;;  %1312 = vmatmul.mubr.bf16.vlgmr.msra.gmra.mxu1 %v1554_v62 }
 0x10b   :  { %1605 = vmatpush3.bf16.msra.mxu0 %v1689_v2  ;;  %1627 = vmatpush3.bf16.msra.mxu1 %v1690_v5 }
 0x10c   :  { %1606 = vmatprep.subr.bf16.mxu0 %v1691_v6  ;;  %1628 = vmatprep.subr.bf16.mxu1 %v1692_v7  ;;  %v1475_v7 = vld [vmem:[%s1852_s4] ss:$0 sm:$0xff] }
 0x10f   :  { %1607 = vmatpush3.bf16.msra.mxu0 %v1693_v8  ;;  %1629 = vmatpush3.bf16.msra.mxu1 %v1694_v10 }
 0x110   :  { %1608 = vmatprep.subr.bf16.mxu0 %v1695_v11  ;;  %1630 = vmatprep.subr.bf16.mxu1 %v1696_v12 }
 0x113   :  { %1609 = vmatpush3.bf16.msra.mxu0 %v1697_v13  ;;  %1631 = vmatpush3.bf16.msra.mxu1 %v1698_v14 }
 0x114   :  { %1610 = vmatprep.subr.bf16.mxu0 %v1699_v15  ;;  %1632 = vmatprep.subr.bf16.mxu1 %v1700_v16 }
 0x117   :  { %1611 = vmatpush3.bf16.msra.mxu0 %v1701_v17  ;;  %1633 = vmatpush3.bf16.msra.mxu1 %v1702_v18 }
 0x118   :  { %1612 = vmatprep.subr.bf16.mxu0 %v1703_v19  ;;  %1634 = vmatprep.subr.bf16.mxu1 %v1704_v20 }
 0x11b   :  { %1613 = vmatpush3.bf16.msra.mxu0 %v1705_v9  ;;  %1635 = vmatpush3.bf16.msra.mxu1 %v1706_v21 }
 0x11c   :  { %1614 = vmatprep.subr.bf16.mxu0 %v1707_v22  ;;  %1636 = vmatprep.subr.bf16.mxu1 %v1708_v23 }
 0x11f   :  { %1615 = vmatpush3.bf16.msra.mxu0 %v1709_v26  ;;  %1637 = vmatpush3.bf16.msra.mxu1 %v1710_v28 }
 0x120   :  { %v596_v36 = vpop.f32.mrf.mxu0  ;;  %1616 = vmatprep.subr.bf16.mxu0 %v1711_v30  ;;  %v637_v38 = vpop.f32.mrf.mxu1  ;;  %1638 = vmatprep.subr.bf16.mxu1 %v1712_v32 }
 0x121   :  { %v597_v41 = vadd.f32 %v596_v36, %v139_v31  ;;  %v638_v43 = vadd.f32 %v637_v38, %v147_v33 }
 0x122   :  { %v598_v44 = vpop.f32.mrf.mxu0  ;;  %v639_v46 = vpop.f32.mrf.mxu1 }
 0x123   :  { %v599_v45 = vadd.f32 %v598_v44, %v143_v34  ;;  %1617 = vmatpush3.bf16.msra.mxu0 %v1713_v35  ;;  %v648_v48 = vmax.f32 %v597_v41, 0.0  ;;  %v650_v49 = vmax.f32 %v638_v43, 0.0  ;;  %v640_v50 = vadd.f32 %v639_v46, %v151_v37  ;;  %1639 = vmatpush3.bf16.msra.mxu1 %v1714_v39 }
 0x124   :  { %v600_v51 = vpop.f32.mrf.mxu0  ;;  %1618 = vmatprep.subr.bf16.mxu0 %v1715_v0  ;;  %v641_v53 = vpop.f32.mrf.mxu1  ;;  %1640 = vmatprep.subr.bf16.mxu1 %v1716_v42 }
 0x125   :  { %v649_v52 = vmax.f32 %v599_v45, 0.0  ;;  %v651_v54 = vmax.f32 %v640_v50, 0.0  ;;  %v1558_v56 = vpack.c.bf16 %v650_v49, %v650_v49  ;;  %v1556_v59 = vpack.c.bf16 %v648_v48, %v648_v48 }
 0x126   :  { %v601_v55 = vpop.f32.mrf.mxu0  ;;  %v642_v58 = vpop.f32.mrf.mxu1 }
 0x127   :  { %v1557_v57 = vpack.c.bf16 %v649_v52, %v649_v52  ;;  %1619 = vmatpush3.bf16.msra.mxu0 %v1717_v47  ;;  %v1559_v60 = vpack.c.bf16 %v651_v54, %v651_v54  ;;  %1641 = vmatpush3.bf16.msra.mxu1 %v1718_v40 }
 0x129   :  { %1351 = vmatprep.mubr.bf16.mxu0 %v1557_v57  ;;  %1391 = vmatprep.mubr.bf16.mxu1 %v1559_v60 }
 0x12a   :  { %1352 = vmatmul.mubr.bf16.vlgmr.msra.gmra.mxu0 %v1556_v59  ;;  %1392 = vmatmul.mubr.bf16.vlgmr.msra.gmra.mxu1 %v1558_v56 }
 0x1ca   :  { %v1576_v61 = vpop.f32.mrf.mxu0  ;;  %v1598_v62 = vpop.f32.mrf.mxu1 }
 0x1cc   :  { %v1577_v63 = vpop.f32.mrf.mxu0  ;;  %v1599_v1 = vpop.f32.mrf.mxu1 }
 0x1cd   :  { %v1578_v6 = vadd.f32 %v1577_v63, %v1576_v61  ;;  %v1600_v11 = vadd.f32 %v1599_v1, %v1598_v62 }
 0x1ce   :  { %v1579_v2 = vpop.f32.mrf.mxu0  ;;  %v1601_v3 = vpop.f32.mrf.mxu1 }
 0x1cf   :  { %v1274_v8 = vadd.f32 %v1578_v6, %v1475_v7 }
 0x1d0   :  { %v1580_v4 = vpop.f32.mrf.mxu0  ;;  %v1602_v5 = vpop.f32.mrf.mxu1 }
 0x1d1   :  { %v1314_v14 = vadd.f32 %v1600_v11, %v1274_v8 }
 0x1ea   :  { %v1620_v10 = vpop.f32.mrf.mxu0  ;;  %v1642_v12 = vpop.f32.mrf.mxu1 }
 0x1ec   :  { %v1621_v13 = vpop.f32.mrf.mxu0  ;;  %v1643_v16 = vpop.f32.mrf.mxu1 }
 0x1ed   :  { %v1622_v15 = vadd.f32 %v1621_v13, %v1620_v10  ;;  %v1644_v19 = vadd.f32 %v1643_v16, %v1642_v12 }
 0x1ee   :  { %v1623_v17 = vpop.f32.mrf.mxu0  ;;  %v1645_v20 = vpop.f32.mrf.mxu1 }
 0x1ef   :  { %v1354_v18 = vadd.f32 %v1622_v15, %v1314_v14 }
 0x1f0   :  { %v1624_v9 = vpop.f32.mrf.mxu0  ;;  %v1646_v22 = vpop.f32.mrf.mxu1 }
 0x1f1   :  { %v1394_v21 = vadd.f32 %v1644_v19, %v1354_v18 }
 0x1f3   :  { %v1399_v23 = vmax.f32 %v1394_v21, 0.0 }
 0x1f5   :  { %1400 = vst [vmem:[%s1853_s5] sm:$0xff] %v1399_v23 }
 0x1f6   :  { %1405 = vsyncpa [#allocation4], 1 }
 0x1f7   :  { %1406 = vsyncpa [#allocation6], 1 }

// kernel: decoder_forward.4
= control target key start
LH: loop header
LB: loop body
LE: loop exit
PB: predicated region body
PF: predicated region fallthrough
CT: control target
= control target key end

     0   :  { %s4014_s12 = smov 0   ;;  %s4523_s0 = inlined_call_operand.vmem [shape: f32[2,4,4,8], index: 0, kind: input, shape index: {}]   ;;  %s4524_s1 = inlined_call_operand.vmem [shape: bf16[4,4,8,32], index: 1, kind: input, shape index: {}]   ;;  %s4525_s2 = inlined_call_operand.vmem [shape: f32[1,32], index: 2, kind: input, shape index: {}]   ;;  %s4526_s3 = inlined_call_operand.vmem [shape: f32[2,4,4,128], index: 3, kind: output, shape index: {}]  }
   0x1 LB: > { %s3351_s13 = sadd.s32 4294967295, %s3987_s12   ;;  %p3355_p0 = scmp.ge.s32.totalorder %s3987_s12, 1  ;;  %s3987_s12 = sphi %s4014_s12, %s13_s12  }
   0x2   : > { %p137_p1 = scmp.lt.s32.totalorder %s3987_s12, 3 }
   0x4   : > { %p138_p2 = pnand %p3355_p0, %p137_p1 }
   0x5   : > { %p161_p3 = scmp.lt.s32.totalorder (!%p138_p2), %s3351_s13, 1  ;;  %s3993_s4 = smov (!%p138_p2), 96  }
   0x6   : > { %141 = sbr.rel (%p138_p2) target bundleno = 588 (0x24c), region = 32 }
   0xb   : > { %v3360_v0 = vld [vmem:[%s4524_s1 + $0x4] sm:$0xf]  ;;  %vm205_vm0 = vcmask 1043456   ;;  %v190_v1 = vld [vmem:[%s4524_s1] sm:$0xf]  ;;  %v3989_v2 = vmov 0.0  }
   0xc   : > { %3584 = vmatprep.subr.bf16.mxu0 %v3989_v2  ;;  %v4030_v3 = vsel %vm205_vm0, %v3360_v0, 0  ;;  %3590 = vmatprep.subr.bf16.mxu1 %v3989_v2  ;;  %v4034_v4 = vsel %vm205_vm0, %v190_v1, 0  ;;  %vm172_vm1 = vcmask 62464   ;;  %vm3990_vm2 = vmmov 0   ;;  %s4528_s13 = smov (!%p161_p3, %s3351_s13), 1 }
   0xd   : > { %3585 = vmatpush3.bf16.msra.mxu0 %v4030_v3  ;;  %3591 = vmatpush3.bf16.msra.mxu1 %v4034_v4  ;;  %173 = vst.msk [vmem:[#allocation2] sm:$0x3f] %vm172_vm1, %v3989_v2  ;;  %174 = vst.msk [vmem:[#allocation2 + $0x8] sm:$0x3f] %vm172_vm1, %v3989_v2  ;;  %s3454_s18 = sshll.u32 %s4528_s13, 4  ;;  %vm184_vm3 = vcmask 60416  }
   0xe   : > { %175 = vst.msk [vmem:[#allocation2 + $0x10] sm:$0x3f] %vm172_vm1, %v3989_v2  ;;  %176 = vst.msk [vmem:[#allocation2 + $0x18] sm:$0x3f] %vm172_vm1, %v3989_v2  ;;  %3586 = vmatprep.mubr.msk.bf16.mxu0 %vm3990_vm2, %v3989_v2  ;;  %3592 = vmatprep.mubr.msk.bf16.mxu1 %vm3990_vm2, %v3989_v2  ;;  %vm201_vm4 = vcmask 64512   ;;  %s165_s25 = scalar_lea.vmem %s4523_s0, %s3454_s18  ;;  %s4417_s30 = scalar_lea.vmem %s4526_s3, %s3454_s18  ;;  %vm401_vm5 = vcmask 257024  }
   0xf   : > { %177 = vst.msk [vmem:[#allocation2 + $0x20] sm:$0x3f] %vm172_vm1, %v3989_v2  ;;  %178 = vst.msk [vmem:[#allocation2 + $0x28] sm:$0x3f] %vm172_vm1, %v3989_v2  ;;  %3596 = vmatprep.subr.bf16.mxu0 %v3989_v2  ;;  %3602 = vmatprep.subr.bf16.mxu1 %v3989_v2  ;;  %v3361_v5 = vld [vmem:[%s4524_s1 + $0x8] sm:$0xf] }
  0x10   : > { %v3362_v6 = vld [vmem:[%s4524_s1 + $0xc] sm:$0xf]  ;;  %v179_v7 = vld [vmem:[%s165_s25] sm:$0xf]  ;;  %v180_v8 = vld [vmem:[%s165_s25 + $0x4] sm:$0xf] }
  0x11   : > { %v181_v9 = vld [vmem:[%s165_s25 + $0x8] sm:$0xf]  ;;  %185 = vst.msk [vmem:[#allocation2 + $0x9] sm:$0xf] %vm184_vm3, %v179_v7  ;;  %186 = vst.msk [vmem:[#allocation2 + $0x11] sm:$0xf] %vm184_vm3, %v180_v8 }
  0x12   : > { %187 = vst.msk [vmem:[#allocation2 + $0x19] sm:$0xf] %vm184_vm3, %v181_v9  ;;  %v182_v12 = vld [vmem:[%s165_s25 + $0xc] sm:$0xf]  ;;  %v4068_v15 = vsel %vm205_vm0, %v3361_v5, 0  ;;  %v4071_v16 = vsel %vm205_vm0, %v3362_v6, 0 }
  0x13   : > { %188 = vst.msk [vmem:[#allocation2 + $0x21] sm:$0xf] %vm184_vm3, %v182_v12  ;;  %v3384_v43 = vld [vmem:[%s4524_s1 + $0x14] sm:$0xf]  ;;  %v3383_v44 = vld [vmem:[%s4524_s1 + $0x10] sm:$0xf] }
  0x14   : > { %v199_v10 = vld [vmem:[#allocation2 + $0x1] sm:$0xf]  ;;  %v4151_v47 = vsel %vm205_vm0, %v3384_v43, 0  ;;  %v4154_v48 = vsel %vm205_vm0, %v3383_v44, 0  ;;  %v3385_v51 = vld [vmem:[%s4524_s1 + $0x18] sm:$0xf] }
  0x15   : > { %v197_v11 = vld [vmem:[#allocation2] sm:$0xf]  ;;  %v200_v13 = vpack.c.bf16 %v199_v10, %v199_v10  ;;  %v3386_v52 = vld [vmem:[%s4524_s1 + $0x1c] sm:$0xf]  ;;  %v4173_v55 = vsel %vm205_vm0, %v3385_v51, 0  ;;  %s3991_s13 = smov 32  }
  0x16   : > { %v198_v14 = vpack.c.bf16 %v197_v11, %v197_v11  ;;  %v974_v49 = vld [vmem:[#allocation2 + $0x2] sm:$0xf]  ;;  %v4176_v56 = vsel %vm205_vm0, %v3386_v52, 0  ;;  %s3992_s18 = smov 64   ;;  %vm1172_vm6 = vcmask 519424   ;;  %vm1949_vm7 = vcmask 781824  }
  0x17   : > { %3587 = vmatmul.mubr.msk.bf16.vlgmr.msra.gmra.mxu0 %vm201_vm4, %v200_v13  ;;  %v972_v50 = vld [vmem:[#allocation2 + $0x1] sm:$0xf]  ;;  %v975_v53 = vpack.c.bf16 %v974_v49, %v974_v49  ;;  %vm2727_vm8 = vcmask 1044224  }
  0x18   : > { %3593 = vmatmul.mubr.msk.bf16.vlgmr.msra.gmra.mxu1 %vm201_vm4, %v198_v14  ;;  %3597 = vmatpush3.bf16.msra.mxu0 %v4068_v15  ;;  %v295_v17 = vld [vmem:[#allocation2 + $0x8] sm:$0xf]  ;;  %v494_v25 = vld [vmem:[#allocation2 + $0x10] sm:$0xf]  ;;  %v973_v54 = vpack.c.bf16 %v972_v50, %v972_v50 }
  0x19   : > { %3603 = vmatpush3.bf16.msra.mxu1 %v4071_v16  ;;  %3598 = vmatprep.mubr.msk.bf16.mxu0 %vm3990_vm2, %v3989_v2  ;;  %v344_v18 = vld [vmem:[#allocation2 + $0x9] sm:$0xf]  ;;  %v296_v19 = vpack.c.bf16 %v295_v17, %v295_v17  ;;  %v540_v26 = vld [vmem:[#allocation2 + $0x11] sm:$0xf]  ;;  %v495_v27 = vpack.c.bf16 %v494_v25, %v494_v25  ;;  %v681_v33 = vld [vmem:[#allocation2 + $0x18] sm:$0xf] }
  0x1a   : > { %3604 = vmatprep.mubr.msk.bf16.mxu1 %vm3990_vm2, %v3989_v2  ;;  %3608 = vmatprep.subr.bf16.mxu0 %v3989_v2  ;;  %v345_v20 = vpack.c.bf16 %v344_v18, %v344_v18  ;;  %v405_v21 = vld [vmem:[#allocation2 + $0x9] sm:$0xf]  ;;  %v541_v28 = vpack.c.bf16 %v540_v26, %v540_v26  ;;  %v592_v29 = vld [vmem:[#allocation2 + $0x11] sm:$0xf]  ;;  %v727_v34 = vld [vmem:[#allocation2 + $0x19] sm:$0xf]  ;;  %v682_v35 = vpack.c.bf16 %v681_v33, %v681_v33 }
  0x1b   : > { %3614 = vmatprep.subr.bf16.mxu1 %v3989_v2  ;;  %v403_v22 = vld [vmem:[#allocation2 + $0x8] sm:$0xf]  ;;  %v406_v23 = vpack.c.bf16 %v405_v21, %v405_v21  ;;  %v590_v30 = vld [vmem:[#allocation2 + $0x10] sm:$0xf]  ;;  %v593_v31 = vpack.c.bf16 %v592_v29, %v592_v29  ;;  %v728_v36 = vpack.c.bf16 %v727_v34, %v727_v34  ;;  %v779_v37 = vld [vmem:[#allocation2 + $0x19] sm:$0xf] }
  0x1c   : > { %v404_v24 = vpack.c.bf16 %v403_v22, %v403_v22  ;;  %v591_v32 = vpack.c.bf16 %v590_v30, %v590_v30  ;;  %v777_v38 = vld [vmem:[#allocation2 + $0x18] sm:$0xf]  ;;  %v780_v39 = vpack.c.bf16 %v779_v37, %v779_v37  ;;  %v868_v41 = vld [vmem:[#allocation2 + $0x20] sm:$0xf]  ;;  %v1068_v57 = vld [vmem:[#allocation2 + $0x9] sm:$0xf] }
  0x1d   : > { %v778_v40 = vpack.c.bf16 %v777_v38, %v777_v38  ;;  %v914_v42 = vld [vmem:[#allocation2 + $0x21] sm:$0xf]  ;;  %v869_v45 = vpack.c.bf16 %v868_v41, %v868_v41  ;;  %v1117_v58 = vld [vmem:[#allocation2 + $0xa] sm:$0xf]  ;;  %v1069_v59 = vpack.c.bf16 %v1068_v57, %v1068_v57  ;;  %v1264_v1 = vld [vmem:[#allocation2 + $0x11] sm:$0xf] }
  0x1e   : > { %v915_v46 = vpack.c.bf16 %v914_v42, %v914_v42  ;;  %v1118_v60 = vpack.c.bf16 %v1117_v58, %v1117_v58  ;;  %v1176_v61 = vld [vmem:[#allocation2 + $0xa] sm:$0xf]  ;;  %v1365_v6 = vld [vmem:[#allocation2 + $0x12] sm:$0xf]  ;;  %v1453_v10 = vld [vmem:[#allocation2 + $0x19] sm:$0xf] }
  0x1f   : > { %3599 = vmatmul.mubr.msk.bf16.vlgmr.msra.gmra.mxu0 %vm201_vm4, %v296_v19  ;;  %v1174_v62 = vld [vmem:[#allocation2 + $0x9] sm:$0xf]  ;;  %v1177_v63 = vpack.c.bf16 %v1176_v61, %v1176_v61  ;;  %v1363_v7 = vld [vmem:[#allocation2 + $0x11] sm:$0xf]  ;;  %v1366_v8 = vpack.c.bf16 %v1365_v6, %v1365_v6  ;;  %v1499_v11 = vld [vmem:[#allocation2 + $0x1a] sm:$0xf]  ;;  %v1454_v12 = vpack.c.bf16 %v1453_v10, %v1453_v10 }
  0x20   : > { %3605 = vmatmul.mubr.msk.bf16.vlgmr.msra.gmra.mxu1 %vm201_vm4, %v345_v20  ;;  %3609 = vmatpush3.bf16.msra.mxu0 %v4030_v3  ;;  %v1175_v0 = vpack.c.bf16 %v1174_v62, %v1174_v62  ;;  %v1364_v9 = vpack.c.bf16 %v1363_v7, %v1363_v7  ;;  %v1500_v13 = vpack.c.bf16 %v1499_v11, %v1499_v11  ;;  %v1554_v14 = vld [vmem:[#allocation2 + $0x1a] sm:$0xf]  ;;  %v1642_v18 = vld [vmem:[#allocation2 + $0x21] sm:$0xf]  ;;  %v1751_v26 = vld [vmem:[#allocation2 + $0x9] sm:$0xf] }
  0x21   : > { %3615 = vmatpush3.bf16.msra.mxu1 %v4034_v4  ;;  %3610 = vmatprep.mubr.msk.bf16.mxu0 %vm3990_vm2, %v3989_v2  ;;  %v1688_v19 = vld [vmem:[#allocation2 + $0x22] sm:$0xf]  ;;  %v1643_v22 = vpack.c.bf16 %v1642_v18, %v1642_v18  ;;  %v3409_v29 = vld [vmem:[%s4524_s1 + $0x2c] sm:$0xf]  ;;  %v1752_v30 = vpack.c.bf16 %v1751_v26, %v1751_v26  ;;  %v1845_v34 = vld [vmem:[#allocation2 + $0x10] sm:$0xf] }
  0x22   : > { %3616 = vmatprep.mubr.msk.bf16.mxu1 %vm3990_vm2, %v3989_v2  ;;  %3620 = vmatprep.subr.bf16.mxu0 %v3989_v2  ;;  %v3407_v20 = vld [vmem:[%s4524_s1 + $0x24] sm:$0xf]  ;;  %v3406_v21 = vld [vmem:[%s4524_s1 + $0x20] sm:$0xf]  ;;  %v4280_v33 = vsel %vm205_vm0, %v3409_v29, 0 }
  0x23   : > { %3626 = vmatprep.subr.bf16.mxu1 %v3989_v2  ;;  %v4258_v25 = vsel %vm205_vm0, %v3406_v21, 0  ;;  %v1953_v38 = vld [vmem:[#allocation2 + $0x11] sm:$0xf]  ;;  %v2041_v42 = vld [vmem:[#allocation2 + $0x18] sm:$0xf] }
  0x24   : > { %v2087_v43 = vld [vmem:[#allocation2 + $0x19] sm:$0xf]  ;;  %v2042_v44 = vpack.c.bf16 %v2041_v42, %v2041_v42  ;;  %v2230_v50 = vld [vmem:[#allocation2 + $0x20] sm:$0xf]  ;;  %v2420_v58 = vld [vmem:[#allocation2 + $0x28] sm:$0xf] }
  0x25   : > { %v2276_v51 = vld [vmem:[#allocation2 + $0x21] sm:$0xf]  ;;  %v2231_v52 = vpack.c.bf16 %v2230_v50, %v2230_v50  ;;  %v3429_v61 = vld [vmem:[%s4524_s1 + $0x30] sm:$0xf]  ;;  %v2421_v62 = vpack.c.bf16 %v2420_v58, %v2420_v58  ;;  %v3432_v6 = vld [vmem:[%s4524_s1 + $0x3c] sm:$0xf] }
  0x26   : > { %v4384_v10 = vsel %vm205_vm0, %v3432_v6, 0  ;;  %v4403_v29 = vld [vmem:[%s4525_s2] ss:$0 sm:$0xff]  ;;  %v2918_v58 = vld [vmem:[#allocation2 + $0x19] sm:$0xf] }
  0x27   : > { %3611 = vmatmul.mubr.msk.bf16.vlgmr.msra.gmra.mxu0 %vm201_vm4, %v406_v23  ;;  %v1689_v23 = vpack.c.bf16 %v1688_v19, %v1688_v19 }
  0x28   : > { %3617 = vmatmul.mubr.msk.bf16.vlgmr.msra.gmra.mxu1 %vm201_vm4, %v404_v24  ;;  %3621 = vmatpush3.bf16.msra.mxu0 %v4068_v15  ;;  %v4255_v24 = vsel %vm205_vm0, %v3407_v20, 0 }
  0x29   : > { %3627 = vmatpush3.bf16.msra.mxu1 %v4071_v16  ;;  %3622 = vmatprep.mubr.msk.bf16.mxu0 %vm3990_vm2, %v3989_v2 }
  0x2a   : > { %3628 = vmatprep.mubr.msk.bf16.mxu1 %vm3990_vm2, %v3989_v2  ;;  %3632 = vmatprep.subr.bf16.mxu0 %v3989_v2 }
  0x2b   : > { %3638 = vmatprep.subr.bf16.mxu1 %v3989_v2 }
  0x2f   : > { %3623 = vmatmul.mubr.msk.bf16.vlgmr.msra.gmra.mxu0 %vm201_vm4, %v495_v27  ;;  %v1749_v27 = vld [vmem:[#allocation2 + $0x8] sm:$0xf] }
  0x30   : > { %3629 = vmatmul.mubr.msk.bf16.vlgmr.msra.gmra.mxu1 %vm201_vm4, %v541_v28  ;;  %3633 = vmatpush3.bf16.msra.mxu0 %v4030_v3  ;;  %v3408_v28 = vld [vmem:[%s4524_s1 + $0x28] sm:$0xf] }
  0x31   : > { %3639 = vmatpush3.bf16.msra.mxu1 %v4034_v4  ;;  %3634 = vmatprep.mubr.msk.bf16.mxu0 %vm3990_vm2, %v3989_v2 }
  0x32   : > { %3640 = vmatprep.mubr.msk.bf16.mxu1 %vm3990_vm2, %v3989_v2  ;;  %3644 = vmatprep.subr.bf16.mxu0 %v3989_v2 }
  0x33   : > { %3650 = vmatprep.subr.bf16.mxu1 %v3989_v2 }
  0x37   : > { %3635 = vmatmul.mubr.msk.bf16.vlgmr.msra.gmra.mxu0 %vm201_vm4, %v593_v31  ;;  %v1750_v31 = vpack.c.bf16 %v1749_v27, %v1749_v27  ;;  %v2731_v27 = vld [vmem:[#allocation2 + $0x12] sm:$0xf] }
  0x38   : > { %3641 = vmatmul.mubr.msk.bf16.vlgmr.msra.gmra.mxu1 %vm201_vm4, %v591_v32  ;;  %3645 = vmatpush3.bf16.msra.mxu0 %v4068_v15  ;;  %v4277_v32 = vsel %vm205_vm0, %v3408_v28, 0  ;;  %v2729_v28 = vld [vmem:[#allocation2 + $0x11] sm:$0xf] }
  0x39   : > { %3651 = vmatpush3.bf16.msra.mxu1 %v4071_v16  ;;  %3646 = vmatprep.mubr.msk.bf16.mxu0 %vm3990_vm2, %v3989_v2 }
  0x3a   : > { %3652 = vmatprep.mubr.msk.bf16.mxu1 %vm3990_vm2, %v3989_v2  ;;  %3656 = vmatprep.subr.bf16.mxu0 %v3989_v2 }
  0x3b   : > { %3662 = vmatprep.subr.bf16.mxu1 %v3989_v2 }
  0x3f   : > { %3647 = vmatmul.mubr.msk.bf16.vlgmr.msra.gmra.mxu0 %vm201_vm4, %v682_v35  ;;  %v1894_v35 = vld [vmem:[#allocation2 + $0x11] sm:$0xf] }
  0x40   : > { %3653 = vmatmul.mubr.msk.bf16.vlgmr.msra.gmra.mxu1 %vm201_vm4, %v728_v36  ;;  %3657 = vmatpush3.bf16.msra.mxu0 %v4030_v3  ;;  %v1310_v3 = vld [vmem:[#allocation2 + $0x12] sm:$0xf]  ;;  %v1846_v36 = vpack.c.bf16 %v1845_v34, %v1845_v34  ;;  %v1895_v37 = vpack.c.bf16 %v1894_v35, %v1894_v35  ;;  %v2732_v35 = vpack.c.bf16 %v2731_v27, %v2731_v27  ;;  %v3109_v27 = vld [vmem:[#allocation2 + $0x22] sm:$0xf] }
  0x41   : > { %3663 = vmatpush3.bf16.msra.mxu1 %v4034_v4  ;;  %3658 = vmatprep.mubr.msk.bf16.mxu0 %vm3990_vm2, %v3989_v2  ;;  %v1265_v4 = vpack.c.bf16 %v1264_v1, %v1264_v1  ;;  %v1311_v5 = vpack.c.bf16 %v1310_v3, %v1310_v3  ;;  %v4362_v1 = vsel %vm205_vm0, %v3429_v61, 0  ;;  %v2529_v3 = vld [vmem:[#allocation2 + $0xa] sm:$0xf] }
  0x42   : > { %3664 = vmatprep.mubr.msk.bf16.mxu1 %vm3990_vm2, %v3989_v2  ;;  %3668 = vmatprep.subr.bf16.mxu0 %v3989_v2  ;;  %v2530_v7 = vpack.c.bf16 %v2529_v3, %v2529_v3 }
  0x43   : > { %3674 = vmatprep.subr.bf16.mxu1 %v3989_v2 }
  0x47   : > { %3659 = vmatmul.mubr.msk.bf16.vlgmr.msra.gmra.mxu0 %vm201_vm4, %v780_v39  ;;  %v1951_v39 = vld [vmem:[#allocation2 + $0x10] sm:$0xf] }
  0x48   : > { %3665 = vmatmul.mubr.msk.bf16.vlgmr.msra.gmra.mxu1 %vm201_vm4, %v778_v40  ;;  %3669 = vmatpush3.bf16.msra.mxu0 %v4068_v15  ;;  %v1552_v15 = vld [vmem:[#allocation2 + $0x19] sm:$0xf]  ;;  %v1954_v40 = vpack.c.bf16 %v1953_v38, %v1953_v38  ;;  %v1952_v41 = vpack.c.bf16 %v1951_v39, %v1951_v39 }
  0x49   : > { %3675 = vmatpush3.bf16.msra.mxu1 %v4071_v16  ;;  %3670 = vmatprep.mubr.msk.bf16.mxu0 %vm3990_vm2, %v3989_v2  ;;  %v1555_v16 = vpack.c.bf16 %v1554_v14, %v1554_v14  ;;  %v1553_v17 = vpack.c.bf16 %v1552_v15, %v1552_v15  ;;  %v2672_v14 = vld [vmem:[#allocation2 + $0x12] sm:$0xf] }
  0x4a   : > { %3676 = vmatprep.mubr.msk.bf16.mxu1 %vm3990_vm2, %v3989_v2  ;;  %3680 = vmatprep.subr.bf16.mxu0 %v3989_v2  ;;  %v2673_v20 = vpack.c.bf16 %v2672_v14, %v2672_v14  ;;  %v3054_v14 = vld [vmem:[#allocation2 + $0x22] sm:$0xf] }
  0x4b   : > { %3686 = vmatprep.subr.bf16.mxu1 %v3989_v2 }
  0x4f   : > { %3671 = vmatmul.mubr.msk.bf16.vlgmr.msra.gmra.mxu0 %vm201_vm4, %v869_v45  ;;  %v2088_v45 = vpack.c.bf16 %v2087_v43, %v2087_v43  ;;  %v2819_v43 = vld [vmem:[#allocation2 + $0x19] sm:$0xf] }
  0x50   : > { %3677 = vmatmul.mubr.msk.bf16.vlgmr.msra.gmra.mxu1 %vm201_vm4, %v915_v46  ;;  %3681 = vmatpush3.bf16.msra.mxu0 %v4151_v47  ;;  %v2142_v46 = vld [vmem:[#allocation2 + $0x19] sm:$0xf] }
  0x51   : > { %3687 = vmatpush3.bf16.msra.mxu1 %v4154_v48  ;;  %3682 = vmatprep.mubr.msk.bf16.mxu0 %vm3990_vm2, %v3989_v2 }
  0x52   : > { %3688 = vmatprep.mubr.msk.bf16.mxu1 %vm3990_vm2, %v3989_v2  ;;  %3692 = vmatprep.subr.bf16.mxu0 %v3989_v2 }
  0x53   : > { %3698 = vmatprep.subr.bf16.mxu1 %v3989_v2 }
  0x57   : > { %3683 = vmatmul.mubr.msk.bf16.vlgmr.msra.gmra.mxu0 %vm201_vm4, %v975_v53  ;;  %v2277_v53 = vpack.c.bf16 %v2276_v51, %v2276_v51 }
  0x58   : > { %3689 = vmatmul.mubr.msk.bf16.vlgmr.msra.gmra.mxu1 %vm201_vm4, %v973_v54  ;;  %3693 = vmatpush3.bf16.msra.mxu0 %v4173_v55  ;;  %v2331_v54 = vld [vmem:[#allocation2 + $0x21] sm:$0xf] }
  0x59   : > { %3699 = vmatpush3.bf16.msra.mxu1 %v4176_v56  ;;  %3694 = vmatprep.mubr.msk.bf16.mxu0 %vm3990_vm2, %v3989_v2 }
  0x5a   : > { %3700 = vmatprep.mubr.msk.bf16.mxu1 %vm3990_vm2, %v3989_v2  ;;  %3704 = vmatprep.subr.bf16.mxu0 %v3989_v2 }
  0x5b   : > { %3710 = vmatprep.subr.bf16.mxu1 %v3989_v2 }
  0x5f   : > { %3695 = vmatmul.mubr.msk.bf16.vlgmr.msra.gmra.mxu0 %vm201_vm4, %v1069_v59  ;;  %v2466_v59 = vld [vmem:[#allocation2 + $0x29] sm:$0xf] }
  0x60   : > { %3701 = vmatmul.mubr.msk.bf16.vlgmr.msra.gmra.mxu1 %vm201_vm4, %v1118_v60  ;;  %3705 = vmatpush3.bf16.msra.mxu0 %v4151_v47  ;;  %v3430_v60 = vld [vmem:[%s4524_s1 + $0x34] sm:$0xf] }
  0x61   : > { %3711 = vmatpush3.bf16.msra.mxu1 %v4154_v48  ;;  %3706 = vmatprep.mubr.msk.bf16.mxu0 %vm3990_vm2, %v3989_v2 }
  0x62   : > { %3712 = vmatprep.mubr.msk.bf16.mxu1 %vm3990_vm2, %v3989_v2  ;;  %3716 = vmatprep.subr.bf16.mxu0 %v3989_v2 }
  0x63   : > { %3722 = vmatprep.subr.bf16.mxu1 %v3989_v2 }
  0x67   : > { %3707 = vmatmul.mubr.msk.bf16.vlgmr.msra.gmra.mxu0 %vm201_vm4, %v1177_v63  ;;  %v2467_v63 = vpack.c.bf16 %v2466_v59, %v2466_v59 }
  0x68   : > { %3713 = vmatmul.mubr.msk.bf16.vlgmr.msra.gmra.mxu1 %vm201_vm4, %v1175_v0  ;;  %3717 = vmatpush3.bf16.msra.mxu0 %v4173_v55  ;;  %v4359_v0 = vsel %vm205_vm0, %v3430_v60, 0 }
  0x69   : > { %3723 = vmatpush3.bf16.msra.mxu1 %v4176_v56  ;;  %3718 = vmatprep.mubr.msk.bf16.mxu0 %vm3990_vm2, %v3989_v2 }
  0x6a   : > { %3724 = vmatprep.mubr.msk.bf16.mxu1 %vm3990_vm2, %v3989_v2  ;;  %3728 = vmatprep.subr.bf16.mxu0 %v3989_v2 }
  0x6b   : > { %3734 = vmatprep.subr.bf16.mxu1 %v3989_v2 }
  0x6f   : > { %3719 = vmatmul.mubr.msk.bf16.vlgmr.msra.gmra.mxu0 %vm201_vm4, %v1265_v4  ;;  %v2527_v4 = vld [vmem:[#allocation2 + $0x9] sm:$0xf] }
  0x70   : > { %3725 = vmatmul.mubr.msk.bf16.vlgmr.msra.gmra.mxu1 %vm201_vm4, %v1311_v5  ;;  %3729 = vmatpush3.bf16.msra.mxu0 %v4151_v47  ;;  %v3431_v5 = vld [vmem:[%s4524_s1 + $0x38] sm:$0xf] }
  0x71   : > { %3735 = vmatpush3.bf16.msra.mxu1 %v4154_v48  ;;  %3730 = vmatprep.mubr.msk.bf16.mxu0 %vm3990_vm2, %v3989_v2 }
  0x72   : > { %3736 = vmatprep.mubr.msk.bf16.mxu1 %vm3990_vm2, %v3989_v2  ;;  %3740 = vmatprep.subr.bf16.mxu0 %v3989_v2 }
  0x73   : > { %3746 = vmatprep.subr.bf16.mxu1 %v3989_v2 }
  0x77   : > { %3731 = vmatmul.mubr.msk.bf16.vlgmr.msra.gmra.mxu0 %vm201_vm4, %v1366_v8  ;;  %v2528_v8 = vpack.c.bf16 %v2527_v4, %v2527_v4  ;;  %v2919_v4 = vpack.c.bf16 %v2918_v58, %v2918_v58 }
  0x78   : > { %3737 = vmatmul.mubr.msk.bf16.vlgmr.msra.gmra.mxu1 %vm201_vm4, %v1364_v9  ;;  %3741 = vmatpush3.bf16.msra.mxu0 %v4173_v55  ;;  %v4381_v9 = vsel %vm205_vm0, %v3431_v5, 0 }
  0x79   : > { %3747 = vmatpush3.bf16.msra.mxu1 %v4176_v56  ;;  %3742 = vmatprep.mubr.msk.bf16.mxu0 %vm3990_vm2, %v3989_v2 }
  0x7a   : > { %3748 = vmatprep.mubr.msk.bf16.mxu1 %vm3990_vm2, %v3989_v2  ;;  %3752 = vmatprep.subr.bf16.mxu0 %v3989_v2 }
  0x7b   : > { %3758 = vmatprep.subr.bf16.mxu1 %v3989_v2 }
  0x7f   : > { %3743 = vmatmul.mubr.msk.bf16.vlgmr.msra.gmra.mxu0 %vm201_vm4, %v1454_v12 }
  0x80   : > { %3749 = vmatmul.mubr.msk.bf16.vlgmr.msra.gmra.mxu1 %vm201_vm4, %v1500_v13  ;;  %3753 = vmatpush3.bf16.msra.mxu0 %v4151_v47  ;;  %v2140_v47 = vld [vmem:[#allocation2 + $0x18] sm:$0xf]  ;;  %v2623_v13 = vld [vmem:[#allocation2 + $0x11] sm:$0xf] }
  0x81   : > { %3759 = vmatpush3.bf16.msra.mxu1 %v4154_v48  ;;  %3754 = vmatprep.mubr.msk.bf16.mxu0 %vm3990_vm2, %v3989_v2  ;;  %v2143_v48 = vpack.c.bf16 %v2142_v46, %v2142_v46  ;;  %v2141_v49 = vpack.c.bf16 %v2140_v47, %v2140_v47  ;;  %v2624_v19 = vpack.c.bf16 %v2623_v13, %v2623_v13  ;;  %v3008_v13 = vld [vmem:[#allocation2 + $0x21] sm:$0xf] }
  0x82   : > { %3760 = vmatprep.mubr.msk.bf16.mxu1 %vm3990_vm2, %v3989_v2  ;;  %3764 = vmatprep.subr.bf16.mxu0 %v3989_v2 }
  0x83   : > { %3770 = vmatprep.subr.bf16.mxu1 %v3989_v2 }
  0x87   : > { %3755 = vmatmul.mubr.msk.bf16.vlgmr.msra.gmra.mxu0 %vm201_vm4, %v1555_v16 }
  0x88   : > { %3761 = vmatmul.mubr.msk.bf16.vlgmr.msra.gmra.mxu1 %vm201_vm4, %v1553_v17  ;;  %3765 = vmatpush3.bf16.msra.mxu0 %v4173_v55  ;;  %v2329_v55 = vld [vmem:[#allocation2 + $0x20] sm:$0xf] }
  0x89   : > { %3771 = vmatpush3.bf16.msra.mxu1 %v4176_v56  ;;  %3766 = vmatprep.mubr.msk.bf16.mxu0 %vm3990_vm2, %v3989_v2  ;;  %v2332_v56 = vpack.c.bf16 %v2331_v54, %v2331_v54  ;;  %v2330_v57 = vpack.c.bf16 %v2329_v55, %v2329_v55 }
  0x8a   : > { %3772 = vmatprep.mubr.msk.bf16.mxu1 %vm3990_vm2, %v3989_v2  ;;  %3776 = vmatprep.subr.bf16.mxu0 %v3989_v2 }
  0x8b   : > { %3782 = vmatprep.subr.bf16.mxu1 %v3989_v2 }
  0x8f   : > { %3767 = vmatmul.mubr.msk.bf16.vlgmr.msra.gmra.mxu0 %vm201_vm4, %v1643_v22 }
  0x90   : > { %3773 = vmatmul.mubr.msk.bf16.vlgmr.msra.gmra.mxu1 %vm201_vm4, %v1689_v23  ;;  %3777 = vmatpush3.bf16.msra.mxu0 %v4255_v24 }
  0x91   : > { %3783 = vmatpush3.bf16.msra.mxu1 %v4258_v25  ;;  %3778 = vmatprep.mubr.msk.bf16.mxu0 %vm3990_vm2, %v3989_v2 }
  0x92   : > { %3784 = vmatprep.mubr.msk.bf16.mxu1 %vm3990_vm2, %v3989_v2  ;;  %3788 = vmatprep.subr.bf16.mxu0 %v3989_v2 }
  0x93   : > { %3794 = vmatprep.subr.bf16.mxu1 %v3989_v2 }
  0x97   : > { %3779 = vmatmul.mubr.msk.bf16.vlgmr.msra.gmra.mxu0 %vm201_vm4, %v1752_v30 }
  0x98   : > { %3785 = vmatmul.mubr.msk.bf16.vlgmr.msra.gmra.mxu1 %vm201_vm4, %v1750_v31  ;;  %3789 = vmatpush3.bf16.msra.mxu0 %v4277_v32 }
  0x99   : > { %3795 = vmatpush3.bf16.msra.mxu1 %v4280_v33  ;;  %3790 = vmatprep.mubr.msk.bf16.mxu0 %vm3990_vm2, %v3989_v2 }
  0x9a   : > { %3796 = vmatprep.mubr.msk.bf16.mxu1 %vm3990_vm2, %v3989_v2  ;;  %3800 = vmatprep.subr.bf16.mxu0 %v3989_v2 }
  0x9b   : > { %3806 = vmatprep.subr.bf16.mxu1 %v3989_v2 }
  0x9f   : > { %3791 = vmatmul.mubr.msk.bf16.vlgmr.msra.gmra.mxu0 %vm201_vm4, %v1846_v36  ;;  %v2730_v36 = vpack.c.bf16 %v2729_v28, %v2729_v28  ;;  %v3107_v28 = vld [vmem:[#allocation2 + $0x21] sm:$0xf] }
  0xa0   : > { %3797 = vmatmul.mubr.msk.bf16.vlgmr.msra.gmra.mxu1 %vm201_vm4, %v1895_v37  ;;  %3801 = vmatpush3.bf16.msra.mxu0 %v4255_v24 }
  0xa1   : > { %3807 = vmatpush3.bf16.msra.mxu1 %v4258_v25  ;;  %3802 = vmatprep.mubr.msk.bf16.mxu0 %vm3990_vm2, %v3989_v2 }
  0xa2   : > { %3808 = vmatprep.mubr.msk.bf16.mxu1 %vm3990_vm2, %v3989_v2  ;;  %3812 = vmatprep.subr.bf16.mxu0 %v3989_v2 }
  0xa3   : > { %3818 = vmatprep.subr.bf16.mxu1 %v3989_v2 }
  0xa7   : > { %3803 = vmatmul.mubr.msk.bf16.vlgmr.msra.gmra.mxu0 %vm201_vm4, %v1954_v40 }
  0xa8   : > { %3809 = vmatmul.mubr.msk.bf16.vlgmr.msra.gmra.mxu1 %vm201_vm4, %v1952_v41  ;;  %3813 = vmatpush3.bf16.msra.mxu0 %v4277_v32 }
  0xa9   : > { %3819 = vmatpush3.bf16.msra.mxu1 %v4280_v33  ;;  %3814 = vmatprep.mubr.msk.bf16.mxu0 %vm3990_vm2, %v3989_v2 }
  0xaa   : > { %3820 = vmatprep.mubr.msk.bf16.mxu1 %vm3990_vm2, %v3989_v2  ;;  %3824 = vmatprep.subr.bf16.mxu0 %v3989_v2 }
  0xab   : > { %3830 = vmatprep.subr.bf16.mxu1 %v3989_v2 }
  0xaf   : > { %3815 = vmatmul.mubr.msk.bf16.vlgmr.msra.gmra.mxu0 %vm201_vm4, %v2042_v44  ;;  %v2865_v44 = vld [vmem:[#allocation2 + $0x1a] sm:$0xf] }
  0xb0   : > { %3821 = vmatmul.mubr.msk.bf16.vlgmr.msra.gmra.mxu1 %vm201_vm4, %v2088_v45  ;;  %3825 = vmatpush3.bf16.msra.mxu0 %v4255_v24  ;;  %v2866_v50 = vpack.c.bf16 %v2865_v44, %v2865_v44 }
  0xb1   : > { %3831 = vmatpush3.bf16.msra.mxu1 %v4258_v25  ;;  %3826 = vmatprep.mubr.msk.bf16.mxu0 %vm3990_vm2, %v3989_v2 }
  0xb2   : > { %3832 = vmatprep.mubr.msk.bf16.mxu1 %vm3990_vm2, %v3989_v2  ;;  %3836 = vmatprep.subr.bf16.mxu0 %v3989_v2 }
  0xb3   : > { %3842 = vmatprep.subr.bf16.mxu1 %v3989_v2 }
  0xb7   : > { %3827 = vmatmul.mubr.msk.bf16.vlgmr.msra.gmra.mxu0 %vm201_vm4, %v2143_v48 }
  0xb8   : > { %3833 = vmatmul.mubr.msk.bf16.vlgmr.msra.gmra.mxu1 %vm201_vm4, %v2141_v49  ;;  %3837 = vmatpush3.bf16.msra.mxu0 %v4277_v32  ;;  %v2820_v49 = vpack.c.bf16 %v2819_v43, %v2819_v43 }
  0xb9   : > { %3843 = vmatpush3.bf16.msra.mxu1 %v4280_v33  ;;  %3838 = vmatprep.mubr.msk.bf16.mxu0 %vm3990_vm2, %v3989_v2 }
  0xba   : > { %3844 = vmatprep.mubr.msk.bf16.mxu1 %vm3990_vm2, %v3989_v2  ;;  %3848 = vmatprep.subr.bf16.mxu0 %v3989_v2 }
  0xbb   : > { %3854 = vmatprep.subr.bf16.mxu1 %v3989_v2 }
  0xbf   : > { %3839 = vmatmul.mubr.msk.bf16.vlgmr.msra.gmra.mxu0 %vm201_vm4, %v2231_v52 }
  0xc0   : > { %3845 = vmatmul.mubr.msk.bf16.vlgmr.msra.gmra.mxu1 %vm201_vm4, %v2277_v53  ;;  %3849 = vmatpush3.bf16.msra.mxu0 %v4255_v24 }
  0xc1   : > { %3855 = vmatpush3.bf16.msra.mxu1 %v4258_v25  ;;  %3850 = vmatprep.mubr.msk.bf16.mxu0 %vm3990_vm2, %v3989_v2 }
  0xc2   : > { %3856 = vmatprep.mubr.msk.bf16.mxu1 %vm3990_vm2, %v3989_v2  ;;  %3860 = vmatprep.subr.bf16.mxu0 %v3989_v2 }
  0xc3   : > { %3866 = vmatprep.subr.bf16.mxu1 %v3989_v2 }
  0xc7   : > { %3851 = vmatmul.mubr.msk.bf16.vlgmr.msra.gmra.mxu0 %vm201_vm4, %v2332_v56 }
  0xc8   : > { %3857 = vmatmul.mubr.msk.bf16.vlgmr.msra.gmra.mxu1 %vm201_vm4, %v2330_v57  ;;  %3861 = vmatpush3.bf16.msra.mxu0 %v4277_v32  ;;  %v2920_v57 = vld [vmem:[#allocation2 + $0x1a] sm:$0xf] }
  0xc9   : > { %3867 = vmatpush3.bf16.msra.mxu1 %v4280_v33  ;;  %3862 = vmatprep.mubr.msk.bf16.mxu0 %vm3990_vm2, %v3989_v2  ;;  %v2921_v3 = vpack.c.bf16 %v2920_v57, %v2920_v57 }
  0xca   : > { %3868 = vmatprep.mubr.msk.bf16.mxu1 %vm3990_vm2, %v3989_v2  ;;  %3872 = vmatprep.subr.bf16.mxu0 %v3989_v2 }
  0xcb   : > { %3878 = vmatprep.subr.bf16.mxu1 %v3989_v2 }
  0xcf   : > { %3863 = vmatmul.mubr.msk.bf16.vlgmr.msra.gmra.mxu0 %vm201_vm4, %v2421_v62 }
  0xd0   : > { %3869 = vmatmul.mubr.msk.bf16.vlgmr.msra.gmra.mxu1 %vm201_vm4, %v2467_v63  ;;  %3873 = vmatpush3.bf16.msra.mxu0 %v4359_v0 }
  0xd1   : > { %3879 = vmatpush3.bf16.msra.mxu1 %v4362_v1  ;;  %3874 = vmatprep.mubr.msk.bf16.mxu0 %vm3990_vm2, %v3989_v2 }
  0xd2   : > { %3880 = vmatprep.mubr.msk.bf16.mxu1 %vm3990_vm2, %v3989_v2  ;;  %3884 = vmatprep.subr.bf16.mxu0 %v3989_v2 }
  0xd3   : > { %3890 = vmatprep.subr.bf16.mxu1 %v3989_v2 }
  0xd7   : > { %v243_v11 = vpop.f32.mrf.mxu0  ;;  %3875 = vmatmul.mubr.msk.bf16.vlgmr.msra.gmra.mxu0 %vm201_vm4, %v2530_v7 }
  0xd8   : > { %v289_v12 = vpop.f32.mrf.mxu1  ;;  %3881 = vmatmul.mubr.msk.bf16.vlgmr.msra.gmra.mxu1 %vm201_vm4, %v2528_v8  ;;  %3885 = vmatpush3.bf16.msra.mxu0 %v4381_v9 }
  0xd9   : > { %3891 = vmatpush3.bf16.msra.mxu1 %v4384_v10  ;;  %v3588_v15 = vpop.f32.mrf.mxu0  ;;  %3886 = vmatprep.mubr.msk.bf16.mxu0 %vm3990_vm2, %v3989_v2  ;;  %v290_v23 = vadd.f32 %v289_v12, %v243_v11 }
  0xda   : > { %v3594_v16 = vpop.f32.mrf.mxu1  ;;  %3892 = vmatprep.mubr.msk.bf16.mxu1 %vm3990_vm2, %v3989_v2  ;;  %3896 = vmatprep.subr.bf16.mxu0 %v3989_v2 }
  0xdb   : > { %3902 = vmatprep.subr.bf16.mxu1 %v3989_v2  ;;  %v246_v17 = vpop.f32.mrf.mxu0 }
  0xdc   : > { %v292_v18 = vpop.f32.mrf.mxu1 }
  0xdd   : > { %v3589_v21 = vpop.f32.mrf.mxu0 }
  0xde   : > { %v3595_v22 = vpop.f32.mrf.mxu1 }
  0xdf   : > { %v337_v24 = vpop.f32.mrf.mxu0  ;;  %3887 = vmatmul.mubr.msk.bf16.vlgmr.msra.gmra.mxu0 %vm201_vm4, %v2624_v19  ;;  %v3009_v19 = vpack.c.bf16 %v3008_v13, %v3008_v13 }
  0xe0   : > { %v386_v25 = vpop.f32.mrf.mxu1  ;;  %3893 = vmatmul.mubr.msk.bf16.vlgmr.msra.gmra.mxu1 %vm201_vm4, %v2673_v20  ;;  %v343_v26 = vadd.f32 %v337_v24, %v290_v23  ;;  %3897 = vmatpush3.bf16.msra.mxu0 %v4359_v0  ;;  %v3055_v20 = vpack.c.bf16 %v3054_v14, %v3054_v14 }
  0xe1   : > { %3903 = vmatpush3.bf16.msra.mxu1 %v4362_v1  ;;  %v3600_v30 = vpop.f32.mrf.mxu0  ;;  %3898 = vmatprep.mubr.msk.bf16.mxu0 %vm3990_vm2, %v3989_v2 }
  0xe2   : > { %v3606_v31 = vpop.f32.mrf.mxu1  ;;  %3904 = vmatprep.mubr.msk.bf16.mxu1 %vm3990_vm2, %v3989_v2  ;;  %v392_v32 = vadd.f32 %v386_v25, %v343_v26  ;;  %3908 = vmatprep.subr.bf16.mxu0 %v3989_v2 }
  0xe3   : > { %3914 = vmatprep.subr.bf16.mxu1 %v3989_v2  ;;  %v340_v33 = vpop.f32.mrf.mxu0 }
  0xe4   : > { %v389_v34 = vpop.f32.mrf.mxu1  ;;  %v399_v37 = vadd.f32 %v4403_v29, %v392_v32 }
  0xe5   : > { %v3601_v38 = vpop.f32.mrf.mxu0  ;;  %v3110_v34 = vpack.c.bf16 %v3109_v27, %v3109_v27 }
  0xe6   : > { %v3607_v39 = vpop.f32.mrf.mxu1  ;;  %v400_v40 = vmax.f32 %v399_v37, 0.0 }
  0xe7   : > { %v444_v41 = vpop.f32.mrf.mxu0  ;;  %3899 = vmatmul.mubr.msk.bf16.vlgmr.msra.gmra.mxu0 %vm201_vm4, %v2732_v35 }
  0xe8   : > { %v487_v42 = vpop.f32.mrf.mxu1  ;;  %3905 = vmatmul.mubr.msk.bf16.vlgmr.msra.gmra.mxu1 %vm201_vm4, %v2730_v36  ;;  %3909 = vmatpush3.bf16.msra.mxu0 %v4381_v9  ;;  %402 = vst.msk [vmem:[%s4417_s30] sm:$0xf] %vm401_vm5, %v400_v40 }
  0xe9   : > { %3915 = vmatpush3.bf16.msra.mxu1 %v4384_v10  ;;  %v3612_v45 = vpop.f32.mrf.mxu0  ;;  %3910 = vmatprep.mubr.msk.bf16.mxu0 %vm3990_vm2, %v3989_v2  ;;  %v488_v53 = vadd.f32 %v487_v42, %v444_v41  ;;  %v3197_v41 = vld [vmem:[#allocation2 + $0x29] sm:$0xf] }
  0xea   : > { %v3618_v46 = vpop.f32.mrf.mxu1  ;;  %3916 = vmatprep.mubr.msk.bf16.mxu1 %vm3990_vm2, %v3989_v2  ;;  %3920 = vmatprep.subr.bf16.mxu0 %v3989_v2  ;;  %v3243_v42 = vld [vmem:[#allocation2 + $0x2a] sm:$0xf] }
  0xeb   : > { %3926 = vmatprep.subr.bf16.mxu1 %v3989_v2  ;;  %v447_v47 = vpop.f32.mrf.mxu0 }
  0xec   : > { %v490_v48 = vpop.f32.mrf.mxu1  ;;  %v3198_v47 = vpack.c.bf16 %v3197_v41, %v3197_v41 }
  0xed   : > { %v3613_v51 = vpop.f32.mrf.mxu0  ;;  %v3244_v48 = vpack.c.bf16 %v3243_v42, %v3243_v42 }
  0xee   : > { %v3619_v52 = vpop.f32.mrf.mxu1 }
  0xef   : > { %v533_v54 = vpop.f32.mrf.mxu0  ;;  %3911 = vmatmul.mubr.msk.bf16.vlgmr.msra.gmra.mxu0 %vm201_vm4, %v2820_v49 }
  0xf0   : > { %v579_v55 = vpop.f32.mrf.mxu1  ;;  %3917 = vmatmul.mubr.msk.bf16.vlgmr.msra.gmra.mxu1 %vm201_vm4, %v2866_v50  ;;  %v539_v56 = vadd.f32 %v533_v54, %v488_v53  ;;  %3921 = vmatpush3.bf16.msra.mxu0 %v4359_v0 }
  0xf1   : > { %3927 = vmatpush3.bf16.msra.mxu1 %v4362_v1  ;;  %v3624_v59 = vpop.f32.mrf.mxu0  ;;  %3922 = vmatprep.mubr.msk.bf16.mxu0 %vm3990_vm2, %v3989_v2 }
  0xf2   : > { %v3630_v60 = vpop.f32.mrf.mxu1  ;;  %3928 = vmatprep.mubr.msk.bf16.mxu1 %vm3990_vm2, %v3989_v2  ;;  %v585_v61 = vadd.f32 %v579_v55, %v539_v56  ;;  %3932 = vmatprep.subr.bf16.mxu0 %v3989_v2 }
  0xf3   : > { %3938 = vmatprep.subr.bf16.mxu1 %v3989_v2  ;;  %v536_v62 = vpop.f32.mrf.mxu0 }
  0xf4   : > { %v582_v63 = vpop.f32.mrf.mxu1  ;;  %v586_v5 = vadd.f32 %v4403_v29, %v585_v61 }
  0xf5   : > { %v3625_v6 = vpop.f32.mrf.mxu0 }
  0xf6   : > { %v3631_v7 = vpop.f32.mrf.mxu1  ;;  %v587_v8 = vmax.f32 %v586_v5, 0.0 }
  0xf7   : > { %v631_v11 = vpop.f32.mrf.mxu0  ;;  %3923 = vmatmul.mubr.msk.bf16.vlgmr.msra.gmra.mxu0 %vm201_vm4, %v2921_v3 }
  0xf8   : > { %v674_v12 = vpop.f32.mrf.mxu1  ;;  %3929 = vmatmul.mubr.msk.bf16.vlgmr.msra.gmra.mxu1 %vm201_vm4, %v2919_v4  ;;  %3933 = vmatpush3.bf16.msra.mxu0 %v4381_v9  ;;  %3372 = vst.msk [vmem:[%s4417_s30 + $0x4] sm:$0xf] %vm401_vm5, %v587_v8 }
  0xf9   : > { %3939 = vmatpush3.bf16.msra.mxu1 %v4384_v10  ;;  %v3636_v15 = vpop.f32.mrf.mxu0  ;;  %3934 = vmatprep.mubr.msk.bf16.mxu0 %vm3990_vm2, %v3989_v2  ;;  %v675_v23 = vadd.f32 %v674_v12, %v631_v11 }
  0xfa   : > { %v3642_v16 = vpop.f32.mrf.mxu1  ;;  %3940 = vmatprep.mubr.msk.bf16.mxu1 %vm3990_vm2, %v3989_v2  ;;  %3944 = vmatprep.subr.bf16.mxu0 %v3989_v2 }
  0xfb   : > { %3950 = vmatprep.subr.bf16.mxu1 %v3989_v2  ;;  %v634_v17 = vpop.f32.mrf.mxu0 }
  0xfc   : > { %v677_v18 = vpop.f32.mrf.mxu1 }
  0xfd   : > { %v3637_v21 = vpop.f32.mrf.mxu0 }
  0xfe   : > { %v3643_v22 = vpop.f32.mrf.mxu1 }
  0xff   : > { %v720_v24 = vpop.f32.mrf.mxu0  ;;  %3935 = vmatmul.mubr.msk.bf16.vlgmr.msra.gmra.mxu0 %vm201_vm4, %v3009_v19 }
 0x100   : > { %v766_v25 = vpop.f32.mrf.mxu1  ;;  %3941 = vmatmul.mubr.msk.bf16.vlgmr.msra.gmra.mxu1 %vm201_vm4, %v3055_v20  ;;  %v726_v26 = vadd.f32 %v720_v24, %v675_v23  ;;  %3945 = vmatpush3.bf16.msra.mxu0 %v4359_v0 }
 0x101   : > { %3951 = vmatpush3.bf16.msra.mxu1 %v4362_v1  ;;  %v3648_v30 = vpop.f32.mrf.mxu0  ;;  %3946 = vmatprep.mubr.msk.bf16.mxu0 %vm3990_vm2, %v3989_v2  ;;  %v3108_v1 = vpack.c.bf16 %v3107_v28, %v3107_v28 }
 0x102   : > { %v3654_v31 = vpop.f32.mrf.mxu1  ;;  %3952 = vmatprep.mubr.msk.bf16.mxu1 %vm3990_vm2, %v3989_v2  ;;  %v772_v32 = vadd.f32 %v766_v25, %v726_v26  ;;  %3956 = vmatprep.subr.bf16.mxu0 %v3989_v2 }
 0x103   : > { %3962 = vmatprep.subr.bf16.mxu1 %v3989_v2  ;;  %v723_v33 = vpop.f32.mrf.mxu0 }
 0x104   : > { %v769_v0 = vpop.f32.mrf.mxu1  ;;  %v773_v35 = vadd.f32 %v4403_v29, %v772_v32 }
 0x105   : > { %v3649_v36 = vpop.f32.mrf.mxu0 }
 0x106   : > { %v3655_v37 = vpop.f32.mrf.mxu1  ;;  %v774_v38 = vmax.f32 %v773_v35, 0.0 }
 0x107   : > { %v818_v39 = vpop.f32.mrf.mxu0  ;;  %3947 = vmatmul.mubr.msk.bf16.vlgmr.msra.gmra.mxu0 %vm201_vm4, %v3110_v34 }
 0x108   : > { %v861_v40 = vpop.f32.mrf.mxu1  ;;  %3953 = vmatmul.mubr.msk.bf16.vlgmr.msra.gmra.mxu1 %vm201_vm4, %v3108_v1  ;;  %3957 = vmatpush3.bf16.msra.mxu0 %v4381_v9  ;;  %3377 = vst.msk [vmem:[%s4417_s30 + $0x8] sm:$0xf] %vm401_vm5, %v774_v38 }
 0x109   : > { %3963 = vmatpush3.bf16.msra.mxu1 %v4384_v10  ;;  %v3660_v43 = vpop.f32.mrf.mxu0  ;;  %3958 = vmatprep.mubr.msk.bf16.mxu0 %vm3990_vm2, %v3989_v2  ;;  %v862_v50 = vadd.f32 %v861_v40, %v818_v39 }
 0x10a   : > { %v3666_v44 = vpop.f32.mrf.mxu1  ;;  %3964 = vmatprep.mubr.msk.bf16.mxu1 %vm3990_vm2, %v3989_v2 }
 0x10b   : > { %v821_v45 = vpop.f32.mrf.mxu0 }
 0x10c   : > { %v864_v46 = vpop.f32.mrf.mxu1 }
 0x10d   : > { %v3661_v49 = vpop.f32.mrf.mxu0 }
 0x10e   : > { %v3667_v9 = vpop.f32.mrf.mxu1 }
 0x10f   : > { %v907_v10 = vpop.f32.mrf.mxu0  ;;  %3959 = vmatmul.mubr.msk.bf16.vlgmr.msra.gmra.mxu0 %vm201_vm4, %v3198_v47 }
 0x110   : > { %v953_v51 = vpop.f32.mrf.mxu1  ;;  %3965 = vmatmul.mubr.msk.bf16.vlgmr.msra.gmra.mxu1 %vm201_vm4, %v3244_v48  ;;  %v913_v52 = vadd.f32 %v907_v10, %v862_v50 }
 0x111   : > { %v3672_v53 = vpop.f32.mrf.mxu0 }
 0x112   : > { %v3678_v54 = vpop.f32.mrf.mxu1  ;;  %v959_v55 = vadd.f32 %v953_v51, %v913_v52 }
 0x113   : > { %v910_v56 = vpop.f32.mrf.mxu0 }
 0x114   : > { %v956_v2 = vpop.f32.mrf.mxu1  ;;  %v960_v57 = vadd.f32 %v4403_v29, %v959_v55 }
 0x115   : > { %v3673_v58 = vpop.f32.mrf.mxu0 }
 0x116   : > { %v3679_v59 = vpop.f32.mrf.mxu1  ;;  %v961_v60 = vmax.f32 %v960_v57, 0.0 }
 0x117   : > { %v1016_v61 = vpop.f32.mrf.mxu0 }
 0x118   : > { %v1062_v62 = vpop.f32.mrf.mxu1  ;;  %3382 = vst.msk [vmem:[%s4417_s30 + $0xc] sm:$0xf] %vm401_vm5, %v961_v60 }
 0x119   : > { %v3684_v63 = vpop.f32.mrf.mxu0  ;;  %v1063_v8 = vadd.f32 %v1062_v62, %v1016_v61 }
 0x11a   : > { %v3690_v3 = vpop.f32.mrf.mxu1 }
 0x11b   : > { %v1019_v4 = vpop.f32.mrf.mxu0 }
 0x11c   : > { %v1065_v5 = vpop.f32.mrf.mxu1 }
 0x11d   : > { %v3685_v6 = vpop.f32.mrf.mxu0 }
 0x11e   : > { %v3691_v7 = vpop.f32.mrf.mxu1 }
 0x11f   : > { %v1110_v11 = vpop.f32.mrf.mxu0 }
 0x120   : > { %v1159_v12 = vpop.f32.mrf.mxu1  ;;  %v1116_v13 = vadd.f32 %v1110_v11, %v1063_v8 }
 0x121   : > { %v3696_v14 = vpop.f32.mrf.mxu0 }
 0x122   : > { %v3702_v15 = vpop.f32.mrf.mxu1  ;;  %v1165_v16 = vadd.f32 %v1159_v12, %v1116_v13 }
 0x123   : > { %v1113_v17 = vpop.f32.mrf.mxu0 }
 0x124   : > { %v1162_v18 = vpop.f32.mrf.mxu1  ;;  %v1166_v19 = vadd.f32 %v4403_v29, %v1165_v16 }
 0x125   : > { %v3697_v20 = vpop.f32.mrf.mxu0 }
 0x126   : > { %v3703_v21 = vpop.f32.mrf.mxu1  ;;  %v1167_v22 = vmax.f32 %v1166_v19, 0.0 }
 0x127   : > { %v1215_v23 = vpop.f32.mrf.mxu0 }
 0x128   : > { %v1258_v24 = vpop.f32.mrf.mxu1  ;;  %1169 = vrot.lane.b32.xlu0 %v1167_v22, %s3991_s13 }
 0x129   : > { %v3708_v25 = vpop.f32.mrf.mxu0  ;;  %v1259_v32 = vadd.f32 %v1258_v24, %v1215_v23 }
 0x12a   : > { %v3714_v26 = vpop.f32.mrf.mxu1 }
 0x12b   : > { %v1218_v27 = vpop.f32.mrf.mxu0 }
 0x12c   : > { %v1261_v28 = vpop.f32.mrf.mxu1 }
 0x12d   : > { %v3709_v30 = vpop.f32.mrf.mxu0 }
 0x12e   : > { %v3715_v31 = vpop.f32.mrf.mxu1 }
 0x12f   : > { %v1303_v33 = vpop.f32.mrf.mxu0 }
 0x130   : > { %v1349_v0 = vpop.f32.mrf.mxu1  ;;  %v1309_v34 = vadd.f32 %v1303_v33, %v1259_v32 }
 0x131   : > { %v3720_v1 = vpop.f32.mrf.mxu0 }
 0x132   : > { %v3726_v35 = vpop.f32.mrf.mxu1  ;;  %v1355_v36 = vadd.f32 %v1349_v0, %v1309_v34 }
 0x133   : > { %v1306_v37 = vpop.f32.mrf.mxu0 }
 0x134   : > { %v1352_v38 = vpop.f32.mrf.mxu1  ;;  %v1356_v39 = vadd.f32 %v4403_v29, %v1355_v36 }
 0x135   : > { %v3721_v40 = vpop.f32.mrf.mxu0 }
 0x136   : > { %v3727_v41 = vpop.f32.mrf.mxu1  ;;  %v1357_v42 = vmax.f32 %v1356_v39, 0.0 }
 0x137   : > { %v1404_v43 = vpop.f32.mrf.mxu0 }
 0x138   : > { %v1447_v44 = vpop.f32.mrf.mxu1  ;;  %1359 = vrot.lane.b32.xlu0 %v1357_v42, %s3991_s13 }
 0x139   : > { %v3732_v45 = vpop.f32.mrf.mxu0  ;;  %v1448_v50 = vadd.f32 %v1447_v44, %v1404_v43 }
 0x13a   : > { %v3738_v46 = vpop.f32.mrf.mxu1 }
 0x13b   : > { %v1407_v47 = vpop.f32.mrf.mxu0 }
 0x13c   : > { %v1450_v48 = vpop.f32.mrf.mxu1 }
 0x13d   : > { %v3733_v49 = vpop.f32.mrf.mxu0 }
 0x13e   : > { %v3739_v9 = vpop.f32.mrf.mxu1 }
 0x13f   : > { %v1492_v10 = vpop.f32.mrf.mxu0 }
 0x140   : > { %v1538_v51 = vpop.f32.mrf.mxu1  ;;  %v1498_v52 = vadd.f32 %v1492_v10, %v1448_v50 }
 0x141   : > { %v3744_v53 = vpop.f32.mrf.mxu0 }
 0x142   : > { %v3750_v54 = vpop.f32.mrf.mxu1  ;;  %v1544_v55 = vadd.f32 %v1538_v51, %v1498_v52 }
 0x143   : > { %v1495_v56 = vpop.f32.mrf.mxu0 }
 0x144   : > { %v1541_v2 = vpop.f32.mrf.mxu1  ;;  %v1545_v57 = vadd.f32 %v4403_v29, %v1544_v55 }
 0x145   : > { %v3745_v58 = vpop.f32.mrf.mxu0 }
 0x146   : > { %v3751_v59 = vpop.f32.mrf.mxu1  ;;  %v1546_v60 = vmax.f32 %v1545_v57, 0.0 }
 0x147   : > { %v1593_v61 = vpop.f32.mrf.mxu0 }
 0x148   : > { %v1636_v62 = vpop.f32.mrf.mxu1  ;;  %1548 = vrot.lane.b32.xlu1 %v1546_v60, %s3991_s13 }
 0x149   : > { %v3756_v63 = vpop.f32.mrf.mxu0  ;;  %v1637_v8 = vadd.f32 %v1636_v62, %v1593_v61 }
 0x14a   : > { %v3762_v3 = vpop.f32.mrf.mxu1 }
 0x14b   : > { %v1596_v4 = vpop.f32.mrf.mxu0 }
 0x14c   : > { %v1639_v5 = vpop.f32.mrf.mxu1 }
 0x14d   : > { %v3757_v6 = vpop.f32.mrf.mxu0 }
 0x14e   : > { %v3763_v7 = vpop.f32.mrf.mxu1 }
 0x14f   : > { %v1681_v11 = vpop.f32.mrf.mxu0 }
 0x150   : > { %v1727_v12 = vpop.f32.mrf.mxu1  ;;  %v1687_v13 = vadd.f32 %v1681_v11, %v1637_v8 }
 0x151   : > { %v3768_v14 = vpop.f32.mrf.mxu0 }
 0x152   : > { %v3774_v15 = vpop.f32.mrf.mxu1  ;;  %v1733_v16 = vadd.f32 %v1727_v12, %v1687_v13 }
 0x153   : > { %v1684_v17 = vpop.f32.mrf.mxu0 }
 0x154   : > { %v1730_v18 = vpop.f32.mrf.mxu1  ;;  %v1734_v19 = vadd.f32 %v4403_v29, %v1733_v16 }
 0x155   : > { %v3769_v20 = vpop.f32.mrf.mxu0 }
 0x156   : > { %v3775_v21 = vpop.f32.mrf.mxu1  ;;  %v1735_v22 = vmax.f32 %v1734_v19, 0.0 }
 0x157   : > { %v1793_v23 = vpop.f32.mrf.mxu0 }
 0x158   : > { %v1839_v24 = vpop.f32.mrf.mxu1  ;;  %1737 = vrot.lane.b32.xlu1 %v1735_v22, %s3991_s13 }
 0x159   : > { %v3780_v25 = vpop.f32.mrf.mxu0  ;;  %v1840_v32 = vadd.f32 %v1839_v24, %v1793_v23 }
 0x15a   : > { %v3786_v26 = vpop.f32.mrf.mxu1 }
 0x15b   : > { %v1796_v27 = vpop.f32.mrf.mxu0 }
 0x15c   : > { %v1842_v28 = vpop.f32.mrf.mxu1 }
 0x15d   : > { %v3781_v30 = vpop.f32.mrf.mxu0 }
 0x15e   : > { %v3787_v31 = vpop.f32.mrf.mxu1 }
 0x15f   : > { %v1887_v33 = vpop.f32.mrf.mxu0 }
 0x160   : > { %v1936_v0 = vpop.f32.mrf.mxu1  ;;  %v1893_v34 = vadd.f32 %v1887_v33, %v1840_v32 }
 0x161   : > { %v3792_v1 = vpop.f32.mrf.mxu0 }
 0x162   : > { %v3798_v35 = vpop.f32.mrf.mxu1  ;;  %v1942_v36 = vadd.f32 %v1936_v0, %v1893_v34 }
 0x163   : > { %v1890_v37 = vpop.f32.mrf.mxu0 }
 0x164   : > { %v1939_v38 = vpop.f32.mrf.mxu1  ;;  %v1943_v39 = vadd.f32 %v4403_v29, %v1942_v36 }
 0x165   : > { %v3793_v40 = vpop.f32.mrf.mxu0 }
 0x166   : > { %v3799_v41 = vpop.f32.mrf.mxu1  ;;  %v1944_v42 = vmax.f32 %v1943_v39, 0.0 }
 0x167   : > { %v1992_v43 = vpop.f32.mrf.mxu0 }
 0x168   : > { %v2035_v44 = vpop.f32.mrf.mxu1  ;;  %1946 = vrot.lane.b32.xlu0 %v1944_v42, %s3992_s18 }
 0x169   : > { %v3804_v45 = vpop.f32.mrf.mxu0  ;;  %v2036_v50 = vadd.f32 %v2035_v44, %v1992_v43 }
 0x16a   : > { %v3810_v46 = vpop.f32.mrf.mxu1 }
 0x16b   : > { %v1995_v47 = vpop.f32.mrf.mxu0 }
 0x16c   : > { %v2038_v48 = vpop.f32.mrf.mxu1 }
 0x16d   : > { %v3805_v49 = vpop.f32.mrf.mxu0 }
 0x16e   : > { %v3811_v9 = vpop.f32.mrf.mxu1 }
 0x16f   : > { %v2080_v10 = vpop.f32.mrf.mxu0 }
 0x170   : > { %v2126_v51 = vpop.f32.mrf.mxu1  ;;  %v2086_v52 = vadd.f32 %v2080_v10, %v2036_v50 }
 0x171   : > { %v3816_v53 = vpop.f32.mrf.mxu0 }
 0x172   : > { %v3822_v54 = vpop.f32.mrf.mxu1  ;;  %v2132_v55 = vadd.f32 %v2126_v51, %v2086_v52 }
 0x173   : > { %v2083_v56 = vpop.f32.mrf.mxu0 }
 0x174   : > { %v2129_v2 = vpop.f32.mrf.mxu1  ;;  %v2133_v57 = vadd.f32 %v4403_v29, %v2132_v55 }
 0x175   : > { %v3817_v58 = vpop.f32.mrf.mxu0 }
 0x176   : > { %v3823_v59 = vpop.f32.mrf.mxu1  ;;  %v2134_v60 = vmax.f32 %v2133_v57, 0.0 }
 0x177   : > { %v2181_v61 = vpop.f32.mrf.mxu0 }
 0x178   : > { %v2224_v62 = vpop.f32.mrf.mxu1  ;;  %2136 = vrot.lane.b32.xlu1 %v2134_v60, %s3992_s18 }
 0x179   : > { %v3828_v63 = vpop.f32.mrf.mxu0  ;;  %v2225_v8 = vadd.f32 %v2224_v62, %v2181_v61 }
 0x17a   : > { %v3834_v3 = vpop.f32.mrf.mxu1 }
 0x17b   : > { %v2184_v4 = vpop.f32.mrf.mxu0 }
 0x17c   : > { %v2227_v5 = vpop.f32.mrf.mxu1 }
 0x17d   : > { %v3829_v6 = vpop.f32.mrf.mxu0 }
 0x17e   : > { %v3835_v7 = vpop.f32.mrf.mxu1 }
 0x17f   : > { %v2269_v11 = vpop.f32.mrf.mxu0 }
 0x180   : > { %v2315_v12 = vpop.f32.mrf.mxu1  ;;  %v2275_v13 = vadd.f32 %v2269_v11, %v2225_v8 }
 0x181   : > { %v3840_v14 = vpop.f32.mrf.mxu0 }
 0x182   : > { %v3846_v15 = vpop.f32.mrf.mxu1  ;;  %v2321_v16 = vadd.f32 %v2315_v12, %v2275_v13 }
 0x183   : > { %v2272_v17 = vpop.f32.mrf.mxu0 }
 0x184   : > { %v2318_v18 = vpop.f32.mrf.mxu1  ;;  %v2322_v19 = vadd.f32 %v4403_v29, %v2321_v16 }
 0x185   : > { %v3841_v20 = vpop.f32.mrf.mxu0 }
 0x186   : > { %v3847_v21 = vpop.f32.mrf.mxu1  ;;  %v2323_v22 = vmax.f32 %v2322_v19, 0.0 }
 0x187   : > { %v2370_v23 = vpop.f32.mrf.mxu0 }
 0x188   : > { %v2413_v24 = vpop.f32.mrf.mxu1  ;;  %2325 = vrot.lane.b32.xlu0 %v2323_v22, %s3992_s18 }
 0x189   : > { %v3852_v25 = vpop.f32.mrf.mxu0  ;;  %v2414_v32 = vadd.f32 %v2413_v24, %v2370_v23 }
 0x18a   : > { %v3858_v26 = vpop.f32.mrf.mxu1 }
 0x18b   : > { %v2373_v27 = vpop.f32.mrf.mxu0 }
 0x18c   : > { %v2416_v28 = vpop.f32.mrf.mxu1 }
 0x18d   : > { %v3853_v30 = vpop.f32.mrf.mxu0 }
 0x18e   : > { %v3859_v31 = vpop.f32.mrf.mxu1 }
 0x18f   : > { %v2459_v33 = vpop.f32.mrf.mxu0 }
 0x190   : > { %v2505_v0 = vpop.f32.mrf.mxu1  ;;  %v2465_v34 = vadd.f32 %v2459_v33, %v2414_v32 }
 0x191   : > { %v3864_v1 = vpop.f32.mrf.mxu0 }
 0x192   : > { %v3870_v35 = vpop.f32.mrf.mxu1  ;;  %v2511_v36 = vadd.f32 %v2505_v0, %v2465_v34 }
 0x193   : > { %v2462_v37 = vpop.f32.mrf.mxu0 }
 0x194   : > { %v2508_v38 = vpop.f32.mrf.mxu1  ;;  %v2512_v39 = vadd.f32 %v4403_v29, %v2511_v36 }
 0x195   : > { %v3865_v40 = vpop.f32.mrf.mxu0 }
 0x196   : > { %v3871_v41 = vpop.f32.mrf.mxu1  ;;  %v2513_v42 = vmax.f32 %v2512_v39, 0.0 }
 0x197   : > { %v2571_v43 = vpop.f32.mrf.mxu0 }
 0x198   : > { %v2617_v44 = vpop.f32.mrf.mxu1  ;;  %2515 = vrot.lane.b32.xlu1 %v2513_v42, %s3992_s18 }
 0x199   : > { %v3876_v45 = vpop.f32.mrf.mxu0  ;;  %v2618_v10 = vadd.f32 %v2617_v44, %v2571_v43 }
 0x19a   : > { %v3882_v46 = vpop.f32.mrf.mxu1  ;;  %v1170_v47 = vpop.permute.xlu0 %1169 }
 0x19b   : > { %1173 = vst.msk [vmem:[%s4417_s30] sm:$0xf] %vm1172_vm6, %v1170_v47  ;;  %v2574_v48 = vpop.f32.mrf.mxu0 }
 0x19c   : > { %v2620_v49 = vpop.f32.mrf.mxu1 }
 0x19d   : > { %v3877_v9 = vpop.f32.mrf.mxu0 }
 0x19e   : > { %v3883_v50 = vpop.f32.mrf.mxu1 }
 0x19f   : > { %v2665_v51 = vpop.f32.mrf.mxu0 }
 0x1a0   : > { %v2714_v52 = vpop.f32.mrf.mxu1  ;;  %v2671_v53 = vadd.f32 %v2665_v51, %v2618_v10 }
 0x1a1   : > { %v3888_v54 = vpop.f32.mrf.mxu0 }
 0x1a2   : > { %v3894_v55 = vpop.f32.mrf.mxu1  ;;  %v2720_v56 = vadd.f32 %v2714_v52, %v2671_v53 }
 0x1a3   : > { %v2668_v2 = vpop.f32.mrf.mxu0 }
 0x1a4   : > { %v2717_v57 = vpop.f32.mrf.mxu1  ;;  %v2721_v58 = vadd.f32 %v4403_v29, %v2720_v56 }
 0x1a5   : > { %v3889_v59 = vpop.f32.mrf.mxu0 }
 0x1a6   : > { %v3895_v60 = vpop.f32.mrf.mxu1  ;;  %v2722_v61 = vmax.f32 %v2721_v58, 0.0 }
 0x1a7   : > { %v2770_v62 = vpop.f32.mrf.mxu0 }
 0x1a8   : > { %v2813_v63 = vpop.f32.mrf.mxu1  ;;  %2724 = vrot.lane.b32.xlu0 %v2722_v61, %s3993_s4 }
 0x1a9   : > { %v3900_v3 = vpop.f32.mrf.mxu0  ;;  %v2814_v12 = vadd.f32 %v2813_v63, %v2770_v62 }
 0x1aa   : > { %v3906_v4 = vpop.f32.mrf.mxu1  ;;  %v1360_v5 = vpop.permute.xlu0 %1359 }
 0x1ab   : > { %3395 = vst.msk [vmem:[%s4417_s30 + $0x4] sm:$0xf] %vm1172_vm6, %v1360_v5  ;;  %v2773_v6 = vpop.f32.mrf.mxu0 }
 0x1ac   : > { %v2816_v7 = vpop.f32.mrf.mxu1 }
 0x1ad   : > { %v3901_v8 = vpop.f32.mrf.mxu0 }
 0x1ae   : > { %v3907_v11 = vpop.f32.mrf.mxu1 }
 0x1af   : > { %v2858_v13 = vpop.f32.mrf.mxu0 }
 0x1b0   : > { %v2904_v14 = vpop.f32.mrf.mxu1  ;;  %v2864_v15 = vadd.f32 %v2858_v13, %v2814_v12 }
 0x1b1   : > { %v3912_v16 = vpop.f32.mrf.mxu0 }
 0x1b2   : > { %v3918_v17 = vpop.f32.mrf.mxu1  ;;  %v2910_v18 = vadd.f32 %v2904_v14, %v2864_v15 }
 0x1b3   : > { %v2861_v19 = vpop.f32.mrf.mxu0 }
 0x1b4   : > { %v2907_v20 = vpop.f32.mrf.mxu1  ;;  %v2911_v21 = vadd.f32 %v4403_v29, %v2910_v18 }
 0x1b5   : > { %v3913_v22 = vpop.f32.mrf.mxu0 }
 0x1b6   : > { %v3919_v23 = vpop.f32.mrf.mxu1  ;;  %v2912_v24 = vmax.f32 %v2911_v21, 0.0 }
 0x1b7   : > { %v2959_v25 = vpop.f32.mrf.mxu0 }
 0x1b8   : > { %v3002_v26 = vpop.f32.mrf.mxu1  ;;  %2914 = vrot.lane.b32.xlu1 %v2912_v24, %s3993_s4 }
 0x1b9   : > { %v3924_v27 = vpop.f32.mrf.mxu0  ;;  %v3003_v34 = vadd.f32 %v3002_v26, %v2959_v25 }
 0x1ba   : > { %v3930_v28 = vpop.f32.mrf.mxu1  ;;  %v1549_v30 = vpop.permute.xlu1 %1548 }
 0x1bb   : > { %3400 = vst.msk [vmem:[%s4417_s30 + $0x8] sm:$0xf] %vm1172_vm6, %v1549_v30  ;;  %v2962_v31 = vpop.f32.mrf.mxu0 }
 0x1bc   : > { %v3005_v32 = vpop.f32.mrf.mxu1 }
 0x1bd   : > { %v3925_v33 = vpop.f32.mrf.mxu0 }
 0x1be   : > { %v3931_v0 = vpop.f32.mrf.mxu1 }
 0x1bf   : > { %v3047_v1 = vpop.f32.mrf.mxu0 }
 0x1c0   : > { %v3093_v35 = vpop.f32.mrf.mxu1  ;;  %v3053_v36 = vadd.f32 %v3047_v1, %v3003_v34 }
 0x1c1   : > { %v3936_v37 = vpop.f32.mrf.mxu0 }
 0x1c2   : > { %v3942_v38 = vpop.f32.mrf.mxu1  ;;  %v3099_v39 = vadd.f32 %v3093_v35, %v3053_v36 }
 0x1c3   : > { %v3050_v40 = vpop.f32.mrf.mxu0 }
 0x1c4   : > { %v3096_v41 = vpop.f32.mrf.mxu1  ;;  %v3100_v42 = vadd.f32 %v4403_v29, %v3099_v39 }
 0x1c5   : > { %v3937_v43 = vpop.f32.mrf.mxu0 }
 0x1c6   : > { %v3943_v44 = vpop.f32.mrf.mxu1  ;;  %v3101_v45 = vmax.f32 %v3100_v42, 0.0 }
 0x1c7   : > { %v3148_v46 = vpop.f32.mrf.mxu0 }
 0x1c8   : > { %v3191_v47 = vpop.f32.mrf.mxu1  ;;  %3103 = vrot.lane.b32.xlu0 %v3101_v45, %s3993_s4 }
 0x1c9   : > { %v3948_v48 = vpop.f32.mrf.mxu0  ;;  %v3192_v53 = vadd.f32 %v3191_v47, %v3148_v46 }
 0x1ca   : > { %v3954_v49 = vpop.f32.mrf.mxu1  ;;  %v1738_v9 = vpop.permute.xlu1 %1737 }
 0x1cb   : > { %3405 = vst.msk [vmem:[%s4417_s30 + $0xc] sm:$0xf] %vm1172_vm6, %v1738_v9  ;;  %v3151_v50 = vpop.f32.mrf.mxu0 }
 0x1cc   : > { %v3194_v10 = vpop.f32.mrf.mxu1 }
 0x1cd   : > { %v3949_v51 = vpop.f32.mrf.mxu0 }
 0x1ce   : > { %v3955_v52 = vpop.f32.mrf.mxu1 }
 0x1cf   : > { %v3236_v54 = vpop.f32.mrf.mxu0 }
 0x1d0   : > { %v3282_v55 = vpop.f32.mrf.mxu1  ;;  %v3242_v56 = vadd.f32 %v3236_v54, %v3192_v53 }
 0x1d1   : > { %v3960_v2 = vpop.f32.mrf.mxu0 }
 0x1d2   : > { %v3966_v57 = vpop.f32.mrf.mxu1  ;;  %v3288_v58 = vadd.f32 %v3282_v55, %v3242_v56 }
 0x1d3   : > { %v3239_v59 = vpop.f32.mrf.mxu0 }
 0x1d4   : > { %v3285_v60 = vpop.f32.mrf.mxu1  ;;  %v3289_v61 = vadd.f32 %v4403_v29, %v3288_v58 }
 0x1d5   : > { %v3961_v62 = vpop.f32.mrf.mxu0 }
 0x1d6   : > { %v3967_v63 = vpop.f32.mrf.mxu1  ;;  %v3290_v3 = vmax.f32 %v3289_v61, 0.0 }
 0x1d8   : > { %3292 = vrot.lane.b32.xlu1 %v3290_v3, %s3993_s4 }
 0x1da   : > { %v1947_v4 = vpop.permute.xlu0 %1946 }
 0x1db   : > { %1950 = vst.msk [vmem:[%s4417_s30] sm:$0xf] %vm1949_vm7, %v1947_v4 }
 0x1ea   : > { %v2137_v5 = vpop.permute.xlu1 %2136 }
 0x1eb   : > { %3418 = vst.msk [vmem:[%s4417_s30 + $0x4] sm:$0xf] %vm1949_vm7, %v2137_v5 }
 0x1fa   : > { %v2326_v6 = vpop.permute.xlu0 %2325 }
 0x1fb   : > { %3423 = vst.msk [vmem:[%s4417_s30 + $0x8] sm:$0xf] %vm1949_vm7, %v2326_v6 }
 0x20a   : > { %v2516_v7 = vpop.permute.xlu1 %2515 }
 0x20b   : > { %3428 = vst.msk [vmem:[%s4417_s30 + $0xc] sm:$0xf] %vm1949_vm7, %v2516_v7 }
 0x21a   : > { %v2725_v29 = vpop.permute.xlu0 %2724 }
 0x21b   : > { %2728 = vst.msk [vmem:[%s4417_s30] sm:$0xf] %vm2727_vm8, %v2725_v29 }
 0x22a   : > { %v2915_v8 = vpop.permute.xlu1 %2914 }
 0x22b   : > { %3441 = vst.msk [vmem:[%s4417_s30 + $0x4] sm:$0xf] %vm2727_vm8, %v2915_v8 }
 0x23a   : > { %v3104_v11 = vpop.permute.xlu0 %3103 }
 0x23b   : > { %3446 = vst.msk [vmem:[%s4417_s30 + $0x8] sm:$0xf] %vm2727_vm8, %v3104_v11 }
 0x24a   : > { %v3293_v12 = vpop.permute.xlu1 %3292 }
 0x24b   : > { %3451 = vst.msk [vmem:[%s4417_s30 + $0xc] sm:$0xf] %vm2727_vm8, %v3293_v12 }
 0x24c PF: > { %s13_s12 = sadd.s32 1, %s3987_s12  }
 0x24d   : > { %p10_p4 = scmp.ge.s32.totalorder %s13_s12, 4  }
 0x24f   :  { %12 = sbr.rel (!%p10_p4) target bundleno = 1 (0x1), region = 85 }

// kernel: decoder_forward.5
= control target key start
LH: loop header
LB: loop body
LE: loop exit
PB: predicated region body
PF: predicated region fallthrough
CT: control target
= control target key end

     0   :  { %s7965_s12 = smov 0   ;;  %s9027_s0 = inlined_call_operand.vmem [shape: f32[2,8,8,4], index: 0, kind: input, shape index: {}]   ;;  %s9028_s1 = inlined_call_operand.vmem [shape: bf16[4,4,4,32], index: 1, kind: input, shape index: {}]   ;;  %s9029_s2 = inlined_call_operand.vmem [shape: f32[1,32], index: 2, kind: input, shape index: {}]   ;;  %s9030_s3 = inlined_call_operand.vmem [shape: f32[2,8,8,128], index: 3, kind: output, shape index: {}]  }
   0x1 LB: > { %s6548_s13 = sadd.s32 4294967295, %s7938_s12   ;;  %p6552_p0 = scmp.ge.s32.totalorder %s7938_s12, 1  ;;  %s7938_s12 = sphi %s7965_s12, %s13_s12  }
   0x2   : > { %p137_p1 = scmp.lt.s32.totalorder %s7938_s12, 3 }
   0x4   : > { %p138_p2 = pnand %p6552_p0, %p137_p1 }
   0x5   : > { %p8011_p3 = scmp.lt.s32.totalorder (!%p138_p2), %s6548_s13, 1  ;;  %s7942_s22 = smov (!%p138_p2), 32  }
   0x6   : > { %141 = sbr.rel (%p138_p2) target bundleno = 880 (0x370), region = 32  ;;  %s7943_s6 = smov (!%p138_p2), 64  }
   0x7   : > { %s7944_s9 = smov (!%p138_p2), 96  }
   0xb   : > { %v6557_v0 = vld [vmem:[%s9028_s1 + $0x2] sm:$0x3]  ;;  %vm226_vm0 = vcmask 1041408   ;;  %v212_v1 = vld [vmem:[%s9028_s1] sm:$0x3]  ;;  %v7940_v2 = vmov 0.0  }
   0xc   : > { %7021 = vmatprep.subr.bf16.mxu0 %v7940_v2  ;;  %v7981_v3 = vsel %vm226_vm0, %v6557_v0, 0  ;;  %7027 = vmatprep.subr.bf16.mxu1 %v7940_v2  ;;  %v7985_v4 = vsel %vm226_vm0, %v212_v1, 0  ;;  %vm172_vm1 = vcmask 31744   ;;  %vm174_vm2 = vcmask 25600   ;;  %s9033_s13 = smov (!%p8011_p3, %s6548_s13), 1 }
   0xd   : > { %7022 = vmatpush3.bf16.msra.mxu0 %v7981_v3  ;;  %7028 = vmatpush3.bf16.msra.mxu1 %v7985_v4  ;;  %173 = vst.msk [vmem:[#allocation2] sm:$0xff] %vm172_vm1, %v7940_v2  ;;  %176 = vst.msk [vmem:[#allocation2 + $0x10] sm:$0xff] %vm172_vm1, %v7940_v2  ;;  %vm7941_vm3 = vmmov 0   ;;  %s6763_s19 = sshll.u32 %s9033_s13, 6  ;;  %v6558_v5 = vld [vmem:[%s9028_s1 + $0x4] sm:$0x3] }
   0xe   : > { %178 = vst.msk [vmem:[#allocation2 + $0x20] sm:$0xff] %vm172_vm1, %v7940_v2  ;;  %180 = vst.msk [vmem:[#allocation2 + $0x30] sm:$0xff] %vm172_vm1, %v7940_v2  ;;  %7023 = vmatprep.mubr.msk.bf16.mxu0 %vm7941_vm3, %v7940_v2  ;;  %7029 = vmatprep.mubr.msk.bf16.mxu1 %vm7941_vm3, %v7940_v2  ;;  %v6559_v6 = vld [vmem:[%s9028_s1 + $0x6] sm:$0x3]  ;;  %s165_s26 = scalar_lea.vmem %s9027_s0, %s6763_s19  ;;  %v8070_v19 = vsel %vm226_vm0, %v6558_v5, 0  ;;  %s8465_s14 = scalar_lea.vmem %s9030_s3, %s6763_s19  ;;  %vm427_vm4 = vcmask 261120  }
   0xf   : > { %182 = vst.msk [vmem:[#allocation2 + $0x40] sm:$0xff] %vm172_vm1, %v7940_v2  ;;  %184 = vst.msk [vmem:[#allocation2 + $0x50] sm:$0xff] %vm172_vm1, %v7940_v2  ;;  %7033 = vmatprep.subr.bf16.mxu0 %v7940_v2  ;;  %7039 = vmatprep.subr.bf16.mxu1 %v7940_v2  ;;  %v194_v7 = vld [vmem:[%s165_s26] sm:$0xff]  ;;  %v195_v8 = vld [vmem:[%s165_s26 + $0x8] sm:$0xff]  ;;  %v8063_v15 = vsel %vm226_vm0, %v6559_v6, 0  ;;  %vm1986_vm5 = vcmask 523520  }
  0x10   : > { %186 = vst.msk [vmem:[#allocation2 + $0x60] sm:$0xff] %vm172_vm1, %v7940_v2  ;;  %188 = vst.msk [vmem:[#allocation2 + $0x70] sm:$0xff] %vm172_vm1, %v7940_v2  ;;  %v196_v9 = vld [vmem:[%s165_s26 + $0x10] sm:$0xff]  ;;  %v197_v11 = vld [vmem:[%s165_s26 + $0x18] sm:$0xff]  ;;  %vm3559_vm6 = vcmask 785920   ;;  %vm5133_vm7 = vcmask 1048320  }
  0x11   : > { %190 = vst.msk [vmem:[#allocation2 + $0x80] sm:$0xff] %vm172_vm1, %v7940_v2  ;;  %192 = vst.msk [vmem:[#allocation2 + $0x90] sm:$0xff] %vm172_vm1, %v7940_v2  ;;  %v198_v12 = vld [vmem:[%s165_s26 + $0x20] sm:$0xff]  ;;  %v199_v16 = vld [vmem:[%s165_s26 + $0x28] sm:$0xff] }
  0x12   : > { %175 = vst.msk [vmem:[#allocation2 + $0x8] sm:$0x3] %vm174_vm2, %v7940_v2  ;;  %177 = vst.msk [vmem:[#allocation2 + $0x18] sm:$0x3] %vm174_vm2, %v7940_v2  ;;  %v200_v17 = vld [vmem:[%s165_s26 + $0x30] sm:$0xff]  ;;  %v201_v20 = vld [vmem:[%s165_s26 + $0x38] sm:$0xff] }
  0x13   : > { %179 = vst.msk [vmem:[#allocation2 + $0x28] sm:$0x3] %vm174_vm2, %v7940_v2  ;;  %181 = vst.msk [vmem:[#allocation2 + $0x38] sm:$0x3] %vm174_vm2, %v7940_v2  ;;  %v6608_v51 = vld [vmem:[%s9028_s1 + $0x8] sm:$0x3] }
  0x14   : > { %183 = vst.msk [vmem:[#allocation2 + $0x48] sm:$0x3] %vm174_vm2, %v7940_v2  ;;  %185 = vst.msk [vmem:[#allocation2 + $0x58] sm:$0x3] %vm174_vm2, %v7940_v2  ;;  %v219_v10 = vld [vmem:[#allocation2] sm:$0xff]  ;;  %v8271_v55 = vsel %vm226_vm0, %v6608_v51, 0 }
  0x15   : > { %187 = vst.msk [vmem:[#allocation2 + $0x68] sm:$0x3] %vm174_vm2, %v7940_v2  ;;  %189 = vst.msk [vmem:[#allocation2 + $0x78] sm:$0x3] %vm174_vm2, %v7940_v2  ;;  %v220_v14 = vpack.c.bf16 %v219_v10, %v219_v10  ;;  %v6609_v53 = vld [vmem:[%s9028_s1 + $0xa] sm:$0x3] }
  0x16   : > { %191 = vst.msk [vmem:[#allocation2 + $0x88] sm:$0x3] %vm174_vm2, %v7940_v2  ;;  %193 = vst.msk [vmem:[#allocation2 + $0x98] sm:$0x3] %vm174_vm2, %v7940_v2  ;;  %v8274_v56 = vsel %vm226_vm0, %v6609_v53, 0 }
  0x17   : > { %203 = vst.msk [vmem:[#allocation2 + $0x11] sm:$0xff] %vm172_vm1, %v194_v7  ;;  %204 = vst.msk [vmem:[#allocation2 + $0x21] sm:$0xff] %vm172_vm1, %v195_v8  ;;  %7030 = vmatmul.mubr.msk.bf16.vlgmr.msra.gmra.mxu1 %vm172_vm1, %v220_v14  ;;  %v6611_v58 = vld [vmem:[%s9028_s1 + $0xe] sm:$0x3]  ;;  %v6610_v59 = vld [vmem:[%s9028_s1 + $0xc] sm:$0x3] }
  0x18   : > { %205 = vst.msk [vmem:[#allocation2 + $0x31] sm:$0xff] %vm172_vm1, %v196_v9  ;;  %206 = vst.msk [vmem:[#allocation2 + $0x41] sm:$0xff] %vm172_vm1, %v197_v11  ;;  %7040 = vmatpush3.bf16.msra.mxu1 %v8063_v15  ;;  %7041 = vmatprep.mubr.msk.bf16.mxu1 %vm7941_vm3, %v7940_v2  ;;  %v8294_v61 = vsel %vm226_vm0, %v6611_v58, 0  ;;  %v8297_v62 = vsel %vm226_vm0, %v6610_v59, 0 }
  0x19   : > { %v221_v13 = vld [vmem:[#allocation2 + $0x1] sm:$0xff]  ;;  %207 = vst.msk [vmem:[#allocation2 + $0x51] sm:$0xff] %vm172_vm1, %v198_v12  ;;  %208 = vst.msk [vmem:[#allocation2 + $0x61] sm:$0xff] %vm172_vm1, %v199_v16  ;;  %7051 = vmatprep.subr.bf16.mxu1 %v7940_v2 }
  0x1a   : > { %v8067_v18 = vpack.c.bf16 %v221_v13, %v221_v13  ;;  %209 = vst.msk [vmem:[#allocation2 + $0x71] sm:$0xff] %vm172_vm1, %v200_v17  ;;  %210 = vst.msk [vmem:[#allocation2 + $0x81] sm:$0xff] %vm172_vm1, %v201_v20  ;;  %v1783_v57 = vld [vmem:[#allocation2 + $0x2] sm:$0xff] }
  0x1b   : > { %v1784_v60 = vpack.c.bf16 %v1783_v57, %v1783_v57 }
  0x1c   : > { %7024 = vmatmul.mubr.msk.bf16.vlgmr.msra.gmra.mxu0 %vm172_vm1, %v8067_v18 }
  0x1d   : > { %7034 = vmatpush3.bf16.msra.mxu0 %v8070_v19  ;;  %7035 = vmatprep.mubr.msk.bf16.mxu0 %vm7941_vm3, %v7940_v2 }
  0x1e   : > { %7045 = vmatprep.subr.bf16.mxu0 %v7940_v2  ;;  %v316_v21 = vld [vmem:[#allocation2 + $0x10] sm:$0xff]  ;;  %v566_v25 = vld [vmem:[#allocation2 + $0x21] sm:$0xff] }
  0x1f   : > { %v365_v22 = vld [vmem:[#allocation2 + $0x11] sm:$0xff]  ;;  %v8086_v23 = vpack.c.bf16 %v316_v21, %v316_v21  ;;  %v520_v26 = vld [vmem:[#allocation2 + $0x20] sm:$0xff]  ;;  %v8113_v27 = vpack.c.bf16 %v566_v25, %v566_v25 }
  0x20   : > { %v8088_v24 = vpack.c.bf16 %v365_v22, %v365_v22  ;;  %v8116_v28 = vpack.c.bf16 %v520_v26, %v520_v26  ;;  %v758_v29 = vld [vmem:[#allocation2 + $0x31] sm:$0xff]  ;;  %v950_v33 = vld [vmem:[#allocation2 + $0x41] sm:$0xff]  ;;  %v8408_v25 = vld [vmem:[%s9029_s2] ss:$0 sm:$0xff] }
  0x21   : > { %v712_v30 = vld [vmem:[#allocation2 + $0x30] sm:$0xff]  ;;  %v8141_v31 = vpack.c.bf16 %v758_v29, %v758_v29  ;;  %v904_v34 = vld [vmem:[#allocation2 + $0x40] sm:$0xff]  ;;  %v8165_v35 = vpack.c.bf16 %v950_v33, %v950_v33 }
  0x22   : > { %7042 = vmatmul.mubr.msk.bf16.vlgmr.msra.gmra.mxu1 %vm172_vm1, %v8088_v24  ;;  %v713_v32 = vpack.c.bf16 %v712_v30, %v712_v30  ;;  %v905_v36 = vpack.c.bf16 %v904_v34, %v904_v34  ;;  %v1142_v37 = vld [vmem:[#allocation2 + $0x51] sm:$0xff]  ;;  %v1334_v41 = vld [vmem:[#allocation2 + $0x61] sm:$0xff] }
  0x23   : > { %7052 = vmatpush3.bf16.msra.mxu1 %v7985_v4  ;;  %7053 = vmatprep.mubr.msk.bf16.mxu1 %vm7941_vm3, %v7940_v2  ;;  %v1096_v38 = vld [vmem:[#allocation2 + $0x50] sm:$0xff]  ;;  %v8189_v39 = vpack.c.bf16 %v1142_v37, %v1142_v37  ;;  %v1288_v42 = vld [vmem:[#allocation2 + $0x60] sm:$0xff]  ;;  %v8213_v43 = vpack.c.bf16 %v1334_v41, %v1334_v41 }
  0x24   : > { %7036 = vmatmul.mubr.msk.bf16.vlgmr.msra.gmra.mxu0 %vm172_vm1, %v8086_v23  ;;  %7063 = vmatprep.subr.bf16.mxu1 %v7940_v2  ;;  %v1097_v40 = vpack.c.bf16 %v1096_v38, %v1096_v38  ;;  %v1289_v44 = vpack.c.bf16 %v1288_v42, %v1288_v42  ;;  %v1526_v45 = vld [vmem:[#allocation2 + $0x71] sm:$0xff]  ;;  %v1718_v49 = vld [vmem:[#allocation2 + $0x81] sm:$0xff] }
  0x25   : > { %7046 = vmatpush3.bf16.msra.mxu0 %v7981_v3  ;;  %7047 = vmatprep.mubr.msk.bf16.mxu0 %vm7941_vm3, %v7940_v2  ;;  %v1480_v46 = vld [vmem:[#allocation2 + $0x70] sm:$0xff]  ;;  %v8237_v47 = vpack.c.bf16 %v1526_v45, %v1526_v45  ;;  %v1672_v50 = vld [vmem:[#allocation2 + $0x80] sm:$0xff]  ;;  %v8264_v52 = vpack.c.bf16 %v1718_v49, %v1718_v49 }
  0x26   : > { %7057 = vmatprep.subr.bf16.mxu0 %v7940_v2  ;;  %v1481_v48 = vpack.c.bf16 %v1480_v46, %v1480_v46  ;;  %v1673_v54 = vpack.c.bf16 %v1672_v50, %v1672_v50  ;;  %v1926_v63 = vld [vmem:[#allocation2 + $0x12] sm:$0xff]  ;;  %v2124_v1 = vld [vmem:[#allocation2 + $0x22] sm:$0xff] }
  0x27   : > { %v1927_v0 = vpack.c.bf16 %v1926_v63, %v1926_v63  ;;  %v2512_v6 = vld [vmem:[#allocation2 + $0x42] sm:$0xff]  ;;  %v2706_v10 = vld [vmem:[#allocation2 + $0x52] sm:$0xff] }
  0x28   : > { %v2513_v7 = vpack.c.bf16 %v2512_v6, %v2512_v6  ;;  %v2707_v14 = vpack.c.bf16 %v2706_v10, %v2706_v10  ;;  %v2900_v38 = vld [vmem:[#allocation2 + $0x62] sm:$0xff] }
  0x29   : > { %v2901_v42 = vpack.c.bf16 %v2900_v38, %v2900_v38 }
  0x2a   : > { %7054 = vmatmul.mubr.msk.bf16.vlgmr.msra.gmra.mxu1 %vm172_vm1, %v8086_v23 }
  0x2b   : > { %7064 = vmatpush3.bf16.msra.mxu1 %v8063_v15  ;;  %7065 = vmatprep.mubr.msk.bf16.mxu1 %vm7941_vm3, %v7940_v2 }
  0x2c   : > { %7048 = vmatmul.mubr.msk.bf16.vlgmr.msra.gmra.mxu0 %vm172_vm1, %v8088_v24  ;;  %7075 = vmatprep.subr.bf16.mxu1 %v7940_v2 }
  0x2d   : > { %7058 = vmatpush3.bf16.msra.mxu0 %v8070_v19  ;;  %7059 = vmatprep.mubr.msk.bf16.mxu0 %vm7941_vm3, %v7940_v2 }
  0x2e   : > { %7069 = vmatprep.subr.bf16.mxu0 %v7940_v2 }
  0x32   : > { %7066 = vmatmul.mubr.msk.bf16.vlgmr.msra.gmra.mxu1 %vm172_vm1, %v8113_v27 }
  0x33   : > { %7076 = vmatpush3.bf16.msra.mxu1 %v7985_v4  ;;  %7077 = vmatprep.mubr.msk.bf16.mxu1 %vm7941_vm3, %v7940_v2 }
  0x34   : > { %7060 = vmatmul.mubr.msk.bf16.vlgmr.msra.gmra.mxu0 %vm172_vm1, %v8116_v28  ;;  %7087 = vmatprep.subr.bf16.mxu1 %v7940_v2 }
  0x35   : > { %7070 = vmatpush3.bf16.msra.mxu0 %v7981_v3  ;;  %7071 = vmatprep.mubr.msk.bf16.mxu0 %vm7941_vm3, %v7940_v2 }
  0x36   : > { %7081 = vmatprep.subr.bf16.mxu0 %v7940_v2 }
  0x3a   : > { %7078 = vmatmul.mubr.msk.bf16.vlgmr.msra.gmra.mxu1 %vm172_vm1, %v8116_v28 }
  0x3b   : > { %7088 = vmatpush3.bf16.msra.mxu1 %v8063_v15  ;;  %7089 = vmatprep.mubr.msk.bf16.mxu1 %vm7941_vm3, %v7940_v2 }
  0x3c   : > { %7072 = vmatmul.mubr.msk.bf16.vlgmr.msra.gmra.mxu0 %vm172_vm1, %v8113_v27  ;;  %7099 = vmatprep.subr.bf16.mxu1 %v7940_v2 }
  0x3d   : > { %7082 = vmatpush3.bf16.msra.mxu0 %v8070_v19  ;;  %7083 = vmatprep.mubr.msk.bf16.mxu0 %vm7941_vm3, %v7940_v2 }
  0x3e   : > { %7093 = vmatprep.subr.bf16.mxu0 %v7940_v2 }
  0x42   : > { %7090 = vmatmul.mubr.msk.bf16.vlgmr.msra.gmra.mxu1 %vm172_vm1, %v8141_v31 }
  0x43   : > { %7100 = vmatpush3.bf16.msra.mxu1 %v7985_v4  ;;  %7101 = vmatprep.mubr.msk.bf16.mxu1 %vm7941_vm3, %v7940_v2 }
  0x44   : > { %7084 = vmatmul.mubr.msk.bf16.vlgmr.msra.gmra.mxu0 %vm172_vm1, %v713_v32  ;;  %7111 = vmatprep.subr.bf16.mxu1 %v7940_v2 }
  0x45   : > { %7094 = vmatpush3.bf16.msra.mxu0 %v7981_v3  ;;  %7095 = vmatprep.mubr.msk.bf16.mxu0 %vm7941_vm3, %v7940_v2 }
  0x46   : > { %7105 = vmatprep.subr.bf16.mxu0 %v7940_v2 }
  0x4a   : > { %7102 = vmatmul.mubr.msk.bf16.vlgmr.msra.gmra.mxu1 %vm172_vm1, %v713_v32 }
  0x4b   : > { %7112 = vmatpush3.bf16.msra.mxu1 %v8063_v15  ;;  %7113 = vmatprep.mubr.msk.bf16.mxu1 %vm7941_vm3, %v7940_v2 }
  0x4c   : > { %7096 = vmatmul.mubr.msk.bf16.vlgmr.msra.gmra.mxu0 %vm172_vm1, %v8141_v31  ;;  %7123 = vmatprep.subr.bf16.mxu1 %v7940_v2 }
  0x4d   : > { %7106 = vmatpush3.bf16.msra.mxu0 %v8070_v19  ;;  %7107 = vmatprep.mubr.msk.bf16.mxu0 %vm7941_vm3, %v7940_v2 }
  0x4e   : > { %7117 = vmatprep.subr.bf16.mxu0 %v7940_v2 }
  0x52   : > { %7114 = vmatmul.mubr.msk.bf16.vlgmr.msra.gmra.mxu1 %vm172_vm1, %v8165_v35 }
  0x53   : > { %7124 = vmatpush3.bf16.msra.mxu1 %v7985_v4  ;;  %7125 = vmatprep.mubr.msk.bf16.mxu1 %vm7941_vm3, %v7940_v2 }
  0x54   : > { %7108 = vmatmul.mubr.msk.bf16.vlgmr.msra.gmra.mxu0 %vm172_vm1, %v905_v36  ;;  %7135 = vmatprep.subr.bf16.mxu1 %v7940_v2 }
  0x55   : > { %7118 = vmatpush3.bf16.msra.mxu0 %v7981_v3  ;;  %7119 = vmatprep.mubr.msk.bf16.mxu0 %vm7941_vm3, %v7940_v2 }
  0x56   : > { %7129 = vmatprep.subr.bf16.mxu0 %v7940_v2 }
  0x5a   : > { %7126 = vmatmul.mubr.msk.bf16.vlgmr.msra.gmra.mxu1 %vm172_vm1, %v905_v36 }
  0x5b   : > { %7136 = vmatpush3.bf16.msra.mxu1 %v8063_v15  ;;  %7137 = vmatprep.mubr.msk.bf16.mxu1 %vm7941_vm3, %v7940_v2 }
  0x5c   : > { %7120 = vmatmul.mubr.msk.bf16.vlgmr.msra.gmra.mxu0 %vm172_vm1, %v8165_v35  ;;  %7147 = vmatprep.subr.bf16.mxu1 %v7940_v2 }
  0x5d   : > { %7130 = vmatpush3.bf16.msra.mxu0 %v8070_v19  ;;  %7131 = vmatprep.mubr.msk.bf16.mxu0 %vm7941_vm3, %v7940_v2 }
  0x5e   : > { %7141 = vmatprep.subr.bf16.mxu0 %v7940_v2 }
  0x62   : > { %7138 = vmatmul.mubr.msk.bf16.vlgmr.msra.gmra.mxu1 %vm172_vm1, %v8189_v39 }
  0x63   : > { %7148 = vmatpush3.bf16.msra.mxu1 %v7985_v4  ;;  %7149 = vmatprep.mubr.msk.bf16.mxu1 %vm7941_vm3, %v7940_v2 }
  0x64   : > { %7132 = vmatmul.mubr.msk.bf16.vlgmr.msra.gmra.mxu0 %vm172_vm1, %v1097_v40  ;;  %7159 = vmatprep.subr.bf16.mxu1 %v7940_v2 }
  0x65   : > { %7142 = vmatpush3.bf16.msra.mxu0 %v7981_v3  ;;  %7143 = vmatprep.mubr.msk.bf16.mxu0 %vm7941_vm3, %v7940_v2 }
  0x66   : > { %7153 = vmatprep.subr.bf16.mxu0 %v7940_v2 }
  0x6a   : > { %7150 = vmatmul.mubr.msk.bf16.vlgmr.msra.gmra.mxu1 %vm172_vm1, %v1097_v40 }
  0x6b   : > { %7160 = vmatpush3.bf16.msra.mxu1 %v8063_v15  ;;  %7161 = vmatprep.mubr.msk.bf16.mxu1 %vm7941_vm3, %v7940_v2 }
  0x6c   : > { %7144 = vmatmul.mubr.msk.bf16.vlgmr.msra.gmra.mxu0 %vm172_vm1, %v8189_v39  ;;  %7171 = vmatprep.subr.bf16.mxu1 %v7940_v2 }
  0x6d   : > { %7154 = vmatpush3.bf16.msra.mxu0 %v8070_v19  ;;  %7155 = vmatprep.mubr.msk.bf16.mxu0 %vm7941_vm3, %v7940_v2 }
  0x6e   : > { %7165 = vmatprep.subr.bf16.mxu0 %v7940_v2 }
  0x72   : > { %7162 = vmatmul.mubr.msk.bf16.vlgmr.msra.gmra.mxu1 %vm172_vm1, %v8213_v43 }
  0x73   : > { %7172 = vmatpush3.bf16.msra.mxu1 %v7985_v4  ;;  %7173 = vmatprep.mubr.msk.bf16.mxu1 %vm7941_vm3, %v7940_v2 }
  0x74   : > { %7156 = vmatmul.mubr.msk.bf16.vlgmr.msra.gmra.mxu0 %vm172_vm1, %v1289_v44  ;;  %7183 = vmatprep.subr.bf16.mxu1 %v7940_v2 }
  0x75   : > { %7166 = vmatpush3.bf16.msra.mxu0 %v7981_v3  ;;  %7167 = vmatprep.mubr.msk.bf16.mxu0 %vm7941_vm3, %v7940_v2 }
  0x76   : > { %7177 = vmatprep.subr.bf16.mxu0 %v7940_v2 }
  0x7a   : > { %7174 = vmatmul.mubr.msk.bf16.vlgmr.msra.gmra.mxu1 %vm172_vm1, %v1289_v44 }
  0x7b   : > { %7184 = vmatpush3.bf16.msra.mxu1 %v8063_v15  ;;  %7185 = vmatprep.mubr.msk.bf16.mxu1 %vm7941_vm3, %v7940_v2 }
  0x7c   : > { %7168 = vmatmul.mubr.msk.bf16.vlgmr.msra.gmra.mxu0 %vm172_vm1, %v8213_v43  ;;  %7195 = vmatprep.subr.bf16.mxu1 %v7940_v2 }
  0x7d   : > { %7178 = vmatpush3.bf16.msra.mxu0 %v8070_v19  ;;  %7179 = vmatprep.mubr.msk.bf16.mxu0 %vm7941_vm3, %v7940_v2 }
  0x7e   : > { %7189 = vmatprep.subr.bf16.mxu0 %v7940_v2 }
  0x82   : > { %7186 = vmatmul.mubr.msk.bf16.vlgmr.msra.gmra.mxu1 %vm172_vm1, %v8237_v47 }
  0x83   : > { %7196 = vmatpush3.bf16.msra.mxu1 %v7985_v4  ;;  %7197 = vmatprep.mubr.msk.bf16.mxu1 %vm7941_vm3, %v7940_v2  ;;  %v2318_v4 = vld [vmem:[#allocation2 + $0x32] sm:$0xff] }
  0x84   : > { %7180 = vmatmul.mubr.msk.bf16.vlgmr.msra.gmra.mxu0 %vm172_vm1, %v1481_v48  ;;  %7207 = vmatprep.subr.bf16.mxu1 %v7940_v2  ;;  %v2319_v5 = vpack.c.bf16 %v2318_v4, %v2318_v4 }
  0x85   : > { %7190 = vmatpush3.bf16.msra.mxu0 %v7981_v3  ;;  %7191 = vmatprep.mubr.msk.bf16.mxu0 %vm7941_vm3, %v7940_v2  ;;  %v2125_v3 = vpack.c.bf16 %v2124_v1, %v2124_v1 }
  0x86   : > { %7201 = vmatprep.subr.bf16.mxu0 %v7940_v2 }
  0x8a   : > { %7198 = vmatmul.mubr.msk.bf16.vlgmr.msra.gmra.mxu1 %vm172_vm1, %v1481_v48 }
  0x8b   : > { %7208 = vmatpush3.bf16.msra.mxu1 %v8063_v15  ;;  %7209 = vmatprep.mubr.msk.bf16.mxu1 %vm7941_vm3, %v7940_v2 }
  0x8c   : > { %7192 = vmatmul.mubr.msk.bf16.vlgmr.msra.gmra.mxu0 %vm172_vm1, %v8237_v47  ;;  %7219 = vmatprep.subr.bf16.mxu1 %v7940_v2 }
  0x8d   : > { %7202 = vmatpush3.bf16.msra.mxu0 %v8070_v19  ;;  %7203 = vmatprep.mubr.msk.bf16.mxu0 %vm7941_vm3, %v7940_v2 }
  0x8e   : > { %7213 = vmatprep.subr.bf16.mxu0 %v7940_v2 }
  0x92   : > { %7210 = vmatmul.mubr.msk.bf16.vlgmr.msra.gmra.mxu1 %vm172_vm1, %v8264_v52 }
  0x93   : > { %7220 = vmatpush3.bf16.msra.mxu1 %v8271_v55  ;;  %7221 = vmatprep.mubr.msk.bf16.mxu1 %vm7941_vm3, %v7940_v2 }
  0x94   : > { %7204 = vmatmul.mubr.msk.bf16.vlgmr.msra.gmra.mxu0 %vm172_vm1, %v1673_v54  ;;  %7231 = vmatprep.subr.bf16.mxu1 %v7940_v2 }
  0x95   : > { %7214 = vmatpush3.bf16.msra.mxu0 %v8274_v56  ;;  %7215 = vmatprep.mubr.msk.bf16.mxu0 %vm7941_vm3, %v7940_v2 }
  0x96   : > { %7225 = vmatprep.subr.bf16.mxu0 %v7940_v2 }
  0x9a   : > { %7222 = vmatmul.mubr.msk.bf16.vlgmr.msra.gmra.mxu1 %vm172_vm1, %v8067_v18 }
  0x9b   : > { %7232 = vmatpush3.bf16.msra.mxu1 %v8294_v61  ;;  %7233 = vmatprep.mubr.msk.bf16.mxu1 %vm7941_vm3, %v7940_v2 }
  0x9c   : > { %7216 = vmatmul.mubr.msk.bf16.vlgmr.msra.gmra.mxu0 %vm172_vm1, %v1784_v60  ;;  %7243 = vmatprep.subr.bf16.mxu1 %v7940_v2 }
  0x9d   : > { %7226 = vmatpush3.bf16.msra.mxu0 %v8297_v62  ;;  %7227 = vmatprep.mubr.msk.bf16.mxu0 %vm7941_vm3, %v7940_v2 }
  0x9e   : > { %7237 = vmatprep.subr.bf16.mxu0 %v7940_v2 }
  0xa2   : > { %7234 = vmatmul.mubr.msk.bf16.vlgmr.msra.gmra.mxu1 %vm172_vm1, %v1927_v0 }
  0xa3   : > { %7244 = vmatpush3.bf16.msra.mxu1 %v8271_v55  ;;  %7245 = vmatprep.mubr.msk.bf16.mxu1 %vm7941_vm3, %v7940_v2 }
  0xa4   : > { %7228 = vmatmul.mubr.msk.bf16.vlgmr.msra.gmra.mxu0 %vm172_vm1, %v8088_v24  ;;  %7255 = vmatprep.subr.bf16.mxu1 %v7940_v2 }
  0xa5   : > { %7238 = vmatpush3.bf16.msra.mxu0 %v8274_v56  ;;  %7239 = vmatprep.mubr.msk.bf16.mxu0 %vm7941_vm3, %v7940_v2 }
  0xa6   : > { %7249 = vmatprep.subr.bf16.mxu0 %v7940_v2 }
  0xaa   : > { %7246 = vmatmul.mubr.msk.bf16.vlgmr.msra.gmra.mxu1 %vm172_vm1, %v8088_v24 }
  0xab   : > { %7256 = vmatpush3.bf16.msra.mxu1 %v8294_v61  ;;  %7257 = vmatprep.mubr.msk.bf16.mxu1 %vm7941_vm3, %v7940_v2 }
  0xac   : > { %7240 = vmatmul.mubr.msk.bf16.vlgmr.msra.gmra.mxu0 %vm172_vm1, %v1927_v0  ;;  %7267 = vmatprep.subr.bf16.mxu1 %v7940_v2 }
  0xad   : > { %7250 = vmatpush3.bf16.msra.mxu0 %v8297_v62  ;;  %7251 = vmatprep.mubr.msk.bf16.mxu0 %vm7941_vm3, %v7940_v2 }
  0xae   : > { %7261 = vmatprep.subr.bf16.mxu0 %v7940_v2 }
  0xb2   : > { %7258 = vmatmul.mubr.msk.bf16.vlgmr.msra.gmra.mxu1 %vm172_vm1, %v2125_v3 }
  0xb3   : > { %7268 = vmatpush3.bf16.msra.mxu1 %v8271_v55  ;;  %7269 = vmatprep.mubr.msk.bf16.mxu1 %vm7941_vm3, %v7940_v2 }
  0xb4   : > { %7252 = vmatmul.mubr.msk.bf16.vlgmr.msra.gmra.mxu0 %vm172_vm1, %v8113_v27  ;;  %7279 = vmatprep.subr.bf16.mxu1 %v7940_v2 }
  0xb5   : > { %7262 = vmatpush3.bf16.msra.mxu0 %v8274_v56  ;;  %7263 = vmatprep.mubr.msk.bf16.mxu0 %vm7941_vm3, %v7940_v2 }
  0xb6   : > { %7273 = vmatprep.subr.bf16.mxu0 %v7940_v2 }
  0xba   : > { %7270 = vmatmul.mubr.msk.bf16.vlgmr.msra.gmra.mxu1 %vm172_vm1, %v8113_v27 }
  0xbb   : > { %7280 = vmatpush3.bf16.msra.mxu1 %v8294_v61  ;;  %7281 = vmatprep.mubr.msk.bf16.mxu1 %vm7941_vm3, %v7940_v2 }
  0xbc   : > { %7264 = vmatmul.mubr.msk.bf16.vlgmr.msra.gmra.mxu0 %vm172_vm1, %v2125_v3  ;;  %7291 = vmatprep.subr.bf16.mxu1 %v7940_v2 }
  0xbd   : > { %7274 = vmatpush3.bf16.msra.mxu0 %v8297_v62  ;;  %7275 = vmatprep.mubr.msk.bf16.mxu0 %vm7941_vm3, %v7940_v2 }
  0xbe   : > { %7285 = vmatprep.subr.bf16.mxu0 %v7940_v2 }
  0xc2   : > { %7282 = vmatmul.mubr.msk.bf16.vlgmr.msra.gmra.mxu1 %vm172_vm1, %v2319_v5 }
  0xc3   : > { %7292 = vmatpush3.bf16.msra.mxu1 %v8271_v55  ;;  %7293 = vmatprep.mubr.msk.bf16.mxu1 %vm7941_vm3, %v7940_v2 }
  0xc4   : > { %7276 = vmatmul.mubr.msk.bf16.vlgmr.msra.gmra.mxu0 %vm172_vm1, %v8141_v31  ;;  %7303 = vmatprep.subr.bf16.mxu1 %v7940_v2 }
  0xc5   : > { %7286 = vmatpush3.bf16.msra.mxu0 %v8274_v56  ;;  %7287 = vmatprep.mubr.msk.bf16.mxu0 %vm7941_vm3, %v7940_v2 }
  0xc6   : > { %7297 = vmatprep.subr.bf16.mxu0 %v7940_v2 }
  0xca   : > { %7294 = vmatmul.mubr.msk.bf16.vlgmr.msra.gmra.mxu1 %vm172_vm1, %v8141_v31 }
  0xcb   : > { %7304 = vmatpush3.bf16.msra.mxu1 %v8294_v61  ;;  %7305 = vmatprep.mubr.msk.bf16.mxu1 %vm7941_vm3, %v7940_v2 }
  0xcc   : > { %7288 = vmatmul.mubr.msk.bf16.vlgmr.msra.gmra.mxu0 %vm172_vm1, %v2319_v5  ;;  %7315 = vmatprep.subr.bf16.mxu1 %v7940_v2 }
  0xcd   : > { %7298 = vmatpush3.bf16.msra.mxu0 %v8297_v62  ;;  %7299 = vmatprep.mubr.msk.bf16.mxu0 %vm7941_vm3, %v7940_v2 }
  0xce   : > { %7309 = vmatprep.subr.bf16.mxu0 %v7940_v2 }
  0xd2   : > { %7306 = vmatmul.mubr.msk.bf16.vlgmr.msra.gmra.mxu1 %vm172_vm1, %v2513_v7 }
  0xd3   : > { %7316 = vmatpush3.bf16.msra.mxu1 %v8271_v55  ;;  %7317 = vmatprep.mubr.msk.bf16.mxu1 %vm7941_vm3, %v7940_v2 }
  0xd4   : > { %7300 = vmatmul.mubr.msk.bf16.vlgmr.msra.gmra.mxu0 %vm172_vm1, %v8165_v35  ;;  %7327 = vmatprep.subr.bf16.mxu1 %v7940_v2 }
  0xd5   : > { %7310 = vmatpush3.bf16.msra.mxu0 %v8274_v56  ;;  %7311 = vmatprep.mubr.msk.bf16.mxu0 %vm7941_vm3, %v7940_v2 }
  0xd6   : > { %7321 = vmatprep.subr.bf16.mxu0 %v7940_v2 }
  0xd7   : > { %v310_v8 = vpop.f32.mrf.mxu1 }
  0xd9   : > { %v7031_v11 = vpop.f32.mrf.mxu1 }
  0xda   : > { %7318 = vmatmul.mubr.msk.bf16.vlgmr.msra.gmra.mxu1 %vm172_vm1, %v8165_v35 }
  0xdb   : > { %7328 = vmatpush3.bf16.msra.mxu1 %v8294_v61  ;;  %7329 = vmatprep.mubr.msk.bf16.mxu1 %vm7941_vm3, %v7940_v2  ;;  %v313_v13 = vpop.f32.mrf.mxu1 }
  0xdc   : > { %v264_v9 = vpop.f32.mrf.mxu0  ;;  %7312 = vmatmul.mubr.msk.bf16.vlgmr.msra.gmra.mxu0 %vm172_vm1, %v2513_v7  ;;  %7339 = vmatprep.subr.bf16.mxu1 %v7940_v2  ;;  %v3094_v7 = vld [vmem:[#allocation2 + $0x72] sm:$0xff] }
  0xdd   : > { %7322 = vmatpush3.bf16.msra.mxu0 %v8297_v62  ;;  %7323 = vmatprep.mubr.msk.bf16.mxu0 %vm7941_vm3, %v7940_v2  ;;  %v7032_v16 = vpop.f32.mrf.mxu1  ;;  %v311_v18 = vadd.f32 %v310_v8, %v264_v9  ;;  %v3095_v10 = vpack.c.bf16 %v3094_v7, %v3094_v7 }
  0xde   : > { %v7025_v12 = vpop.f32.mrf.mxu0  ;;  %7333 = vmatprep.subr.bf16.mxu0 %v7940_v2 }
  0xe0   : > { %v267_v15 = vpop.f32.mrf.mxu0 }
  0xe2   : > { %v7026_v17 = vpop.f32.mrf.mxu0  ;;  %v407_v19 = vpop.f32.mrf.mxu1  ;;  %7330 = vmatmul.mubr.msk.bf16.vlgmr.msra.gmra.mxu1 %vm172_vm1, %v2707_v14 }
  0xe3   : > { %7340 = vmatpush3.bf16.msra.mxu1 %v8271_v55  ;;  %7341 = vmatprep.mubr.msk.bf16.mxu1 %vm7941_vm3, %v7940_v2 }
  0xe4   : > { %v358_v20 = vpop.f32.mrf.mxu0  ;;  %7324 = vmatmul.mubr.msk.bf16.vlgmr.msra.gmra.mxu0 %vm172_vm1, %v8189_v39  ;;  %v7043_v22 = vpop.f32.mrf.mxu1  ;;  %7351 = vmatprep.subr.bf16.mxu1 %v7940_v2 }
  0xe5   : > { %v364_v21 = vadd.f32 %v358_v20, %v311_v18  ;;  %7334 = vmatpush3.bf16.msra.mxu0 %v8274_v56  ;;  %7335 = vmatprep.mubr.msk.bf16.mxu0 %vm7941_vm3, %v7940_v2 }
  0xe6   : > { %v7037_v26 = vpop.f32.mrf.mxu0  ;;  %7345 = vmatprep.subr.bf16.mxu0 %v7940_v2  ;;  %v410_v30 = vpop.f32.mrf.mxu1 }
  0xe7   : > { %v413_v29 = vadd.f32 %v407_v19, %v364_v21 }
  0xe8   : > { %v361_v31 = vpop.f32.mrf.mxu0  ;;  %v7044_v33 = vpop.f32.mrf.mxu1 }
  0xe9   : > { %v420_v32 = vadd.f32 %v8408_v25, %v413_v29 }
  0xea   : > { %v7038_v34 = vpop.f32.mrf.mxu0  ;;  %v513_v36 = vpop.f32.mrf.mxu1  ;;  %7342 = vmatmul.mubr.msk.bf16.vlgmr.msra.gmra.mxu1 %vm172_vm1, %v8189_v39 }
  0xeb   : > { %v6565_v35 = vmul.f32 -1.442695, %v420_v32  ;;  %7352 = vmatpush3.bf16.msra.mxu1 %v8294_v61  ;;  %7353 = vmatprep.mubr.msk.bf16.mxu1 %vm7941_vm3, %v7940_v2 }
  0xec   : > { %v470_v37 = vpop.f32.mrf.mxu0  ;;  %7336 = vmatmul.mubr.msk.bf16.vlgmr.msra.gmra.mxu0 %vm172_vm1, %v2707_v14  ;;  %v7055_v40 = vpop.f32.mrf.mxu1  ;;  %7363 = vmatprep.subr.bf16.mxu1 %v7940_v2 }
  0xed   : > { %7802 = vpow2.f32 %v6565_v35  ;;  %7346 = vmatpush3.bf16.msra.mxu0 %v8297_v62  ;;  %7347 = vmatprep.mubr.msk.bf16.mxu0 %vm7941_vm3, %v7940_v2  ;;  %v514_v48 = vadd.f32 %v513_v36, %v470_v37  ;;  %v3288_v35 = vld [vmem:[#allocation2 + $0x82] sm:$0xff] }
  0xee   : > { %v7049_v41 = vpop.f32.mrf.mxu0  ;;  %7357 = vmatprep.subr.bf16.mxu0 %v7940_v2  ;;  %v516_v39 = vpop.f32.mrf.mxu1  ;;  %v3289_v38 = vpack.c.bf16 %v3288_v35, %v3288_v35  ;;  %v3697_v35 = vld [vmem:[#allocation2 + $0x31] sm:$0xff] }
  0xf0   : > { %v473_v44 = vpop.f32.mrf.mxu0  ;;  %v7056_v45 = vpop.f32.mrf.mxu1 }
  0xf2   : > { %v7050_v46 = vpop.f32.mrf.mxu0  ;;  %v605_v49 = vpop.f32.mrf.mxu1  ;;  %7354 = vmatmul.mubr.msk.bf16.vlgmr.msra.gmra.mxu1 %vm172_vm1, %v2901_v42 }
  0xf3   : > { %7364 = vmatpush3.bf16.msra.mxu1 %v8271_v55  ;;  %7365 = vmatprep.mubr.msk.bf16.mxu1 %vm7941_vm3, %v7940_v2 }
  0xf4   : > { %v559_v50 = vpop.f32.mrf.mxu0  ;;  %7348 = vmatmul.mubr.msk.bf16.vlgmr.msra.gmra.mxu0 %vm172_vm1, %v8213_v43  ;;  %v7067_v53 = vpop.f32.mrf.mxu1  ;;  %7375 = vmatprep.subr.bf16.mxu1 %v7940_v2 }
  0xf5   : > { %v565_v51 = vadd.f32 %v559_v50, %v514_v48  ;;  %7358 = vmatpush3.bf16.msra.mxu0 %v8274_v56  ;;  %7359 = vmatprep.mubr.msk.bf16.mxu0 %vm7941_vm3, %v7940_v2  ;;  %v6662_v53 = vld [vmem:[%s9028_s1 + $0x16] sm:$0x3] }
  0xf6   : > { %v7061_v54 = vpop.f32.mrf.mxu0  ;;  %7369 = vmatprep.subr.bf16.mxu0 %v7940_v2  ;;  %v608_v58 = vpop.f32.mrf.mxu1 }
  0xf7   : > { %v611_v57 = vadd.f32 %v605_v49, %v565_v51 }
  0xf8   : > { %v562_v59 = vpop.f32.mrf.mxu0  ;;  %v7068_v63 = vpop.f32.mrf.mxu1 }
  0xf9   : > { %v612_v60 = vadd.f32 %v8408_v25, %v611_v57  ;;  %v6661_v57 = vld [vmem:[%s9028_s1 + $0x14] sm:$0x3]  ;;  %v8512_v63 = vsel %vm226_vm0, %v6662_v53, 0 }
  0xfa   : > { %v7803_v0 = vpop.eup %7802  ;;  %v7062_v1 = vpop.f32.mrf.mxu0  ;;  %7366 = vmatmul.mubr.msk.bf16.vlgmr.msra.gmra.mxu1 %vm172_vm1, %v8213_v43 }
  0xfb   : > { %v424_v3 = vadd.f32 1.0, %v7803_v0  ;;  %v6570_v4 = vmul.f32 -1.442695, %v612_v60  ;;  %v705_v5 = vpop.f32.mrf.mxu1  ;;  %7376 = vmatpush3.bf16.msra.mxu1 %v8294_v61  ;;  %7377 = vmatprep.mubr.msk.bf16.mxu1 %vm7941_vm3, %v7940_v2 }
  0xfc   : > { %v662_v6 = vpop.f32.mrf.mxu0  ;;  %7360 = vmatmul.mubr.msk.bf16.vlgmr.msra.gmra.mxu0 %vm172_vm1, %v2901_v42  ;;  %7387 = vmatprep.subr.bf16.mxu1 %v7940_v2 }
  0xfd   : > { %7804 = vrcp.f32 %v424_v3  ;;  %7370 = vmatpush3.bf16.msra.mxu0 %v8297_v62  ;;  %v7079_v8 = vpop.f32.mrf.mxu1  ;;  %7371 = vmatprep.mubr.msk.bf16.mxu0 %vm7941_vm3, %v7940_v2  ;;  %v706_v14 = vadd.f32 %v705_v5, %v662_v6  ;;  %v8515_v3 = vsel %vm226_vm0, %v6661_v57, 0 }
  0xfe   : > { %7806 = vpow2.f32 %v6570_v4  ;;  %v7073_v9 = vpop.f32.mrf.mxu0  ;;  %7381 = vmatprep.subr.bf16.mxu0 %v7940_v2 }
  0xff   : > { %v708_v43 = vpop.f32.mrf.mxu1 }
 0x100   : > { %v665_v11 = vpop.f32.mrf.mxu0 }
 0x101   : > { %v7080_v12 = vpop.f32.mrf.mxu1 }
 0x102   : > { %v7074_v13 = vpop.f32.mrf.mxu0  ;;  %7378 = vmatmul.mubr.msk.bf16.vlgmr.msra.gmra.mxu1 %vm172_vm1, %v3095_v10 }
 0x103   : > { %v797_v15 = vpop.f32.mrf.mxu1  ;;  %7388 = vmatpush3.bf16.msra.mxu1 %v8271_v55  ;;  %7389 = vmatprep.mubr.msk.bf16.mxu1 %vm7941_vm3, %v7940_v2 }
 0x104   : > { %v751_v16 = vpop.f32.mrf.mxu0  ;;  %7372 = vmatmul.mubr.msk.bf16.vlgmr.msra.gmra.mxu0 %vm172_vm1, %v8237_v47  ;;  %7399 = vmatprep.subr.bf16.mxu1 %v7940_v2 }
 0x105   : > { %v757_v17 = vadd.f32 %v751_v16, %v706_v14  ;;  %7382 = vmatpush3.bf16.msra.mxu0 %v8274_v56  ;;  %v7091_v18 = vpop.f32.mrf.mxu1  ;;  %7383 = vmatprep.mubr.msk.bf16.mxu0 %vm7941_vm3, %v7940_v2 }
 0x106   : > { %v7085_v19 = vpop.f32.mrf.mxu0  ;;  %7393 = vmatprep.subr.bf16.mxu0 %v7940_v2  ;;  %v3563_v18 = vld [vmem:[#allocation2 + $0x21] sm:$0xff] }
 0x107   : > { %v803_v20 = vadd.f32 %v797_v15, %v757_v17  ;;  %v800_v21 = vpop.f32.mrf.mxu1  ;;  %v3561_v15 = vld [vmem:[#allocation2 + $0x20] sm:$0xff] }
 0x108   : > { %v754_v55 = vpop.f32.mrf.mxu0 }
 0x109   : > { %v804_v56 = vadd.f32 %v8408_v25, %v803_v20  ;;  %v7092_v22 = vpop.f32.mrf.mxu1  ;;  %v3562_v20 = vpack.c.bf16 %v3561_v15, %v3561_v15  ;;  %v8543_v55 = vpack.c.bf16 %v3563_v18, %v3563_v18 }
 0x10a   : > { %v7805_v26 = vpop.eup %7804  ;;  %v7086_v29 = vpop.f32.mrf.mxu0  ;;  %7390 = vmatmul.mubr.msk.bf16.vlgmr.msra.gmra.mxu1 %vm172_vm1, %v8237_v47  ;;  %v6659_v47 = vld [vmem:[%s9028_s1 + $0x10] sm:$0x3] }
 0x10b   : > { %v7807_v30 = vpop.eup %7806  ;;  %v6576_v31 = vmul.f32 -1.442695, %v804_v56  ;;  %v897_v32 = vpop.f32.mrf.mxu1  ;;  %428 = vst.msk [vmem:[%s8465_s14] sm:$0xff] %vm427_vm4, %v7805_v26  ;;  %7400 = vmatpush3.bf16.msra.mxu1 %v8294_v61  ;;  %7401 = vmatprep.mubr.msk.bf16.mxu1 %vm7941_vm3, %v7940_v2  ;;  %v8488_v39 = vsel %vm226_vm0, %v6659_v47, 0 }
 0x10c   : > { %v616_v33 = vadd.f32 1.0, %v7807_v30  ;;  %v854_v34 = vpop.f32.mrf.mxu0  ;;  %7384 = vmatmul.mubr.msk.bf16.vlgmr.msra.gmra.mxu0 %vm172_vm1, %v3095_v10  ;;  %7411 = vmatprep.subr.bf16.mxu1 %v7940_v2 }
 0x10d   : > { %7808 = vpow2.f32 %v6576_v31  ;;  %7394 = vmatpush3.bf16.msra.mxu0 %v8297_v62  ;;  %v7103_v36 = vpop.f32.mrf.mxu1  ;;  %7395 = vmatprep.mubr.msk.bf16.mxu0 %vm7941_vm3, %v7940_v2  ;;  %v6660_v62 = vld [vmem:[%s9028_s1 + $0x12] sm:$0x3]  ;;  %v898_v45 = vadd.f32 %v897_v32, %v854_v34 }
 0x10e   : > { %7810 = vrcp.f32 %v616_v33  ;;  %v7097_v37 = vpop.f32.mrf.mxu0  ;;  %7405 = vmatprep.subr.bf16.mxu0 %v7940_v2  ;;  %v8491_v44 = vsel %vm226_vm0, %v6660_v62, 0 }
 0x10f   : > { %v900_v61 = vpop.f32.mrf.mxu1  ;;  %v3651_v37 = vld [vmem:[#allocation2 + $0x30] sm:$0xff] }
 0x110   : > { %v857_v40 = vpop.f32.mrf.mxu0 }
 0x111   : > { %v7104_v41 = vpop.f32.mrf.mxu1  ;;  %v3652_v40 = vpack.c.bf16 %v3651_v37, %v3651_v37 }
 0x112   : > { %v7098_v42 = vpop.f32.mrf.mxu0  ;;  %7402 = vmatmul.mubr.msk.bf16.vlgmr.msra.gmra.mxu1 %vm172_vm1, %v3289_v38  ;;  %v8558_v38 = vpack.c.bf16 %v3697_v35, %v3697_v35 }
 0x113   : > { %v989_v46 = vpop.f32.mrf.mxu1  ;;  %7412 = vmatpush3.bf16.msra.mxu1 %v8488_v39  ;;  %7413 = vmatprep.mubr.msk.bf16.mxu1 %vm7941_vm3, %v7940_v2 }
 0x114   : > { %v943_v48 = vpop.f32.mrf.mxu0  ;;  %7396 = vmatmul.mubr.msk.bf16.vlgmr.msra.gmra.mxu0 %vm172_vm1, %v8264_v52  ;;  %7423 = vmatprep.subr.bf16.mxu1 %v7940_v2 }
 0x115   : > { %v949_v49 = vadd.f32 %v943_v48, %v898_v45  ;;  %7406 = vmatpush3.bf16.msra.mxu0 %v8491_v44  ;;  %v7115_v50 = vpop.f32.mrf.mxu1  ;;  %7407 = vmatprep.mubr.msk.bf16.mxu0 %vm7941_vm3, %v7940_v2 }
 0x116   : > { %v7109_v51 = vpop.f32.mrf.mxu0  ;;  %7417 = vmatprep.subr.bf16.mxu0 %v7940_v2 }
 0x117   : > { %v995_v52 = vadd.f32 %v989_v46, %v949_v49  ;;  %v992_v54 = vpop.f32.mrf.mxu1 }
 0x118   : > { %v946_v58 = vpop.f32.mrf.mxu0 }
 0x119   : > { %v996_v59 = vadd.f32 %v8408_v25, %v995_v52  ;;  %v7116_v60 = vpop.f32.mrf.mxu1 }
 0x11a   : > { %v7809_v0 = vpop.eup %7808  ;;  %v7110_v1 = vpop.f32.mrf.mxu0  ;;  %7414 = vmatmul.mubr.msk.bf16.vlgmr.msra.gmra.mxu1 %vm172_vm1, %v8086_v23 }
 0x11b   : > { %v7811_v4 = vpop.eup %7810  ;;  %v808_v5 = vadd.f32 1.0, %v7809_v0  ;;  %v6582_v6 = vmul.f32 -1.442695, %v996_v59  ;;  %v1089_v7 = vpop.f32.mrf.mxu1  ;;  %7424 = vmatpush3.bf16.msra.mxu1 %v8512_v63  ;;  %7425 = vmatprep.mubr.msk.bf16.mxu1 %vm7941_vm3, %v7940_v2 }
 0x11c   : > { %v1046_v8 = vpop.f32.mrf.mxu0  ;;  %7408 = vmatmul.mubr.msk.bf16.vlgmr.msra.gmra.mxu0 %vm172_vm1, %v8088_v24  ;;  %6571 = vst.msk [vmem:[%s8465_s14 + $0x8] sm:$0xff] %vm427_vm4, %v7811_v4  ;;  %7435 = vmatprep.subr.bf16.mxu1 %v7940_v2 }
 0x11d   : > { %7812 = vrcp.f32 %v808_v5  ;;  %7418 = vmatpush3.bf16.msra.mxu0 %v8515_v3  ;;  %v7127_v9 = vpop.f32.mrf.mxu1  ;;  %7419 = vmatprep.mubr.msk.bf16.mxu0 %vm7941_vm3, %v7940_v2  ;;  %v1090_v12 = vadd.f32 %v1089_v7, %v1046_v8  ;;  %v3891_v7 = vld [vmem:[#allocation2 + $0x41] sm:$0xff] }
 0x11e   : > { %7814 = vpow2.f32 %v6582_v6  ;;  %v7121_v43 = vpop.f32.mrf.mxu0  ;;  %7429 = vmatprep.subr.bf16.mxu0 %v7940_v2  ;;  %v3845_v9 = vld [vmem:[#allocation2 + $0x40] sm:$0xff] }
 0x11f   : > { %v1092_v23 = vpop.f32.mrf.mxu1 }
 0x120   : > { %v1049_v24 = vpop.f32.mrf.mxu0 }
 0x121   : > { %v7128_v10 = vpop.f32.mrf.mxu1  ;;  %v8585_v24 = vpack.c.bf16 %v3891_v7, %v3891_v7  ;;  %v4279_v7 = vld [vmem:[#allocation2 + $0x61] sm:$0xff] }
 0x122   : > { %v7122_v11 = vpop.f32.mrf.mxu0  ;;  %7426 = vmatmul.mubr.msk.bf16.vlgmr.msra.gmra.mxu1 %vm172_vm1, %v8113_v27 }
 0x123   : > { %v1181_v13 = vpop.f32.mrf.mxu1  ;;  %7436 = vmatpush3.bf16.msra.mxu1 %v8488_v39  ;;  %7437 = vmatprep.mubr.msk.bf16.mxu1 %vm7941_vm3, %v7940_v2  ;;  %v3846_v11 = vpack.c.bf16 %v3845_v9, %v3845_v9  ;;  %v4233_v9 = vld [vmem:[#allocation2 + $0x60] sm:$0xff] }
 0x124   : > { %v1135_v14 = vpop.f32.mrf.mxu0  ;;  %7420 = vmatmul.mubr.msk.bf16.vlgmr.msra.gmra.mxu0 %vm172_vm1, %v8116_v28  ;;  %7447 = vmatprep.subr.bf16.mxu1 %v7940_v2 }
 0x125   : > { %v1141_v16 = vadd.f32 %v1135_v14, %v1090_v12  ;;  %7430 = vmatpush3.bf16.msra.mxu0 %v8491_v44  ;;  %v7139_v17 = vpop.f32.mrf.mxu1  ;;  %7431 = vmatprep.mubr.msk.bf16.mxu0 %vm7941_vm3, %v7940_v2 }
 0x126   : > { %v7133_v19 = vpop.f32.mrf.mxu0  ;;  %7441 = vmatprep.subr.bf16.mxu0 %v7940_v2 }
 0x127   : > { %v1187_v27 = vadd.f32 %v1181_v13, %v1141_v16  ;;  %v1184_v28 = vpop.f32.mrf.mxu1 }
 0x128   : > { %v1138_v21 = vpop.f32.mrf.mxu0 }
 0x129   : > { %v1188_v56 = vadd.f32 %v8408_v25, %v1187_v27  ;;  %v7140_v22 = vpop.f32.mrf.mxu1 }
 0x12a   : > { %v7813_v26 = vpop.eup %7812  ;;  %v7134_v29 = vpop.f32.mrf.mxu0  ;;  %7438 = vmatmul.mubr.msk.bf16.vlgmr.msra.gmra.mxu1 %vm172_vm1, %v3562_v20 }
 0x12b   : > { %v7815_v30 = vpop.eup %7814  ;;  %v6588_v31 = vmul.f32 -1.442695, %v1188_v56  ;;  %v1281_v32 = vpop.f32.mrf.mxu1  ;;  %6577 = vst.msk [vmem:[%s8465_s14 + $0x10] sm:$0xff] %vm427_vm4, %v7813_v26  ;;  %7448 = vmatpush3.bf16.msra.mxu1 %v8512_v63  ;;  %7449 = vmatprep.mubr.msk.bf16.mxu1 %vm7941_vm3, %v7940_v2 }
 0x12c   : > { %v1000_v33 = vadd.f32 1.0, %v7815_v30  ;;  %v1238_v34 = vpop.f32.mrf.mxu0  ;;  %7432 = vmatmul.mubr.msk.bf16.vlgmr.msra.gmra.mxu0 %vm172_vm1, %v8543_v55  ;;  %7459 = vmatprep.subr.bf16.mxu1 %v7940_v2 }
 0x12d   : > { %7816 = vpow2.f32 %v6588_v31  ;;  %7442 = vmatpush3.bf16.msra.mxu0 %v8515_v3  ;;  %v7151_v36 = vpop.f32.mrf.mxu1  ;;  %7443 = vmatprep.mubr.msk.bf16.mxu0 %vm7941_vm3, %v7940_v2  ;;  %v1282_v45 = vadd.f32 %v1281_v32, %v1238_v34  ;;  %v4085_v34 = vld [vmem:[#allocation2 + $0x51] sm:$0xff] }
 0x12e   : > { %7818 = vrcp.f32 %v1000_v33  ;;  %v7145_v47 = vpop.f32.mrf.mxu0  ;;  %7453 = vmatprep.subr.bf16.mxu0 %v7940_v2  ;;  %v4039_v36 = vld [vmem:[#allocation2 + $0x50] sm:$0xff] }
 0x12f   : > { %v1284_v61 = vpop.f32.mrf.mxu1 }
 0x130   : > { %v1241_v62 = vpop.f32.mrf.mxu0  ;;  %v8612_v61 = vpack.c.bf16 %v4085_v34, %v4085_v34 }
 0x131   : > { %v7152_v41 = vpop.f32.mrf.mxu1 }
 0x132   : > { %v7146_v42 = vpop.f32.mrf.mxu0  ;;  %7450 = vmatmul.mubr.msk.bf16.vlgmr.msra.gmra.mxu1 %vm172_vm1, %v8558_v38 }
 0x133   : > { %v1373_v46 = vpop.f32.mrf.mxu1  ;;  %7460 = vmatpush3.bf16.msra.mxu1 %v8488_v39  ;;  %7461 = vmatprep.mubr.msk.bf16.mxu1 %vm7941_vm3, %v7940_v2 }
 0x134   : > { %v1327_v48 = vpop.f32.mrf.mxu0  ;;  %7444 = vmatmul.mubr.msk.bf16.vlgmr.msra.gmra.mxu0 %vm172_vm1, %v3652_v40  ;;  %7471 = vmatprep.subr.bf16.mxu1 %v7940_v2 }
 0x135   : > { %v1333_v49 = vadd.f32 %v1327_v48, %v1282_v45  ;;  %7454 = vmatpush3.bf16.msra.mxu0 %v8491_v44  ;;  %v7163_v50 = vpop.f32.mrf.mxu1  ;;  %7455 = vmatprep.mubr.msk.bf16.mxu0 %vm7941_vm3, %v7940_v2 }
 0x136   : > { %v7157_v51 = vpop.f32.mrf.mxu0  ;;  %7465 = vmatprep.subr.bf16.mxu0 %v7940_v2 }
 0x137   : > { %v1379_v53 = vadd.f32 %v1373_v46, %v1333_v49  ;;  %v1376_v52 = vpop.f32.mrf.mxu1 }
 0x138   : > { %v1330_v54 = vpop.f32.mrf.mxu0 }
 0x139   : > { %v1380_v57 = vadd.f32 %v8408_v25, %v1379_v53  ;;  %v7164_v58 = vpop.f32.mrf.mxu1 }
 0x13a   : > { %v7817_v59 = vpop.eup %7816  ;;  %v7158_v60 = vpop.f32.mrf.mxu0  ;;  %7462 = vmatmul.mubr.msk.bf16.vlgmr.msra.gmra.mxu1 %vm172_vm1, %v3652_v40  ;;  %v4040_v40 = vpack.c.bf16 %v4039_v36, %v4039_v36 }
 0x13b   : > { %v7819_v0 = vpop.eup %7818  ;;  %v1192_v1 = vadd.f32 1.0, %v7817_v59  ;;  %v6594_v4 = vmul.f32 -1.442695, %v1380_v57  ;;  %v1473_v5 = vpop.f32.mrf.mxu1  ;;  %7472 = vmatpush3.bf16.msra.mxu1 %v8512_v63  ;;  %7473 = vmatprep.mubr.msk.bf16.mxu1 %vm7941_vm3, %v7940_v2 }
 0x13c   : > { %v1430_v6 = vpop.f32.mrf.mxu0  ;;  %7456 = vmatmul.mubr.msk.bf16.vlgmr.msra.gmra.mxu0 %vm172_vm1, %v8558_v38  ;;  %6583 = vst.msk [vmem:[%s8465_s14 + $0x18] sm:$0xff] %vm427_vm4, %v7819_v0  ;;  %7483 = vmatprep.subr.bf16.mxu1 %v7940_v2 }
 0x13d   : > { %7820 = vrcp.f32 %v1192_v1  ;;  %7466 = vmatpush3.bf16.msra.mxu0 %v8515_v3  ;;  %v7175_v8 = vpop.f32.mrf.mxu1  ;;  %7467 = vmatprep.mubr.msk.bf16.mxu0 %vm7941_vm3, %v7940_v2  ;;  %v1474_v14 = vadd.f32 %v1473_v5, %v1430_v6 }
 0x13e   : > { %7822 = vpow2.f32 %v6594_v4  ;;  %v7169_v43 = vpop.f32.mrf.mxu0  ;;  %7477 = vmatprep.subr.bf16.mxu0 %v7940_v2 }
 0x13f   : > { %v1476_v23 = vpop.f32.mrf.mxu1 }
 0x140   : > { %v1433_v10 = vpop.f32.mrf.mxu0 }
 0x141   : > { %v7176_v12 = vpop.f32.mrf.mxu1  ;;  %v8639_v10 = vpack.c.bf16 %v4279_v7, %v4279_v7 }
 0x142   : > { %v7170_v13 = vpop.f32.mrf.mxu0  ;;  %7474 = vmatmul.mubr.msk.bf16.vlgmr.msra.gmra.mxu1 %vm172_vm1, %v8585_v24  ;;  %v4234_v12 = vpack.c.bf16 %v4233_v9, %v4233_v9  ;;  %v4667_v9 = vld [vmem:[#allocation2 + $0x81] sm:$0xff] }
 0x143   : > { %v1565_v15 = vpop.f32.mrf.mxu1  ;;  %7484 = vmatpush3.bf16.msra.mxu1 %v8488_v39  ;;  %7485 = vmatprep.mubr.msk.bf16.mxu1 %vm7941_vm3, %v7940_v2 }
 0x144   : > { %v1519_v16 = vpop.f32.mrf.mxu0  ;;  %7468 = vmatmul.mubr.msk.bf16.vlgmr.msra.gmra.mxu0 %vm172_vm1, %v3846_v11  ;;  %7495 = vmatprep.subr.bf16.mxu1 %v7940_v2 }
 0x145   : > { %v1525_v17 = vadd.f32 %v1519_v16, %v1474_v14  ;;  %7478 = vmatpush3.bf16.msra.mxu0 %v8491_v44  ;;  %v7187_v18 = vpop.f32.mrf.mxu1  ;;  %7479 = vmatprep.mubr.msk.bf16.mxu0 %vm7941_vm3, %v7940_v2 }
 0x146   : > { %v7181_v19 = vpop.f32.mrf.mxu0  ;;  %7489 = vmatprep.subr.bf16.mxu0 %v7940_v2 }
 0x147   : > { %v1571_v27 = vadd.f32 %v1565_v15, %v1525_v17  ;;  %v1568_v28 = vpop.f32.mrf.mxu1 }
 0x148   : > { %v1522_v20 = vpop.f32.mrf.mxu0 }
 0x149   : > { %v1572_v21 = vadd.f32 %v8408_v25, %v1571_v27  ;;  %v7188_v56 = vpop.f32.mrf.mxu1 }
 0x14a   : > { %v7821_v22 = vpop.eup %7820  ;;  %v7182_v26 = vpop.f32.mrf.mxu0  ;;  %7486 = vmatmul.mubr.msk.bf16.vlgmr.msra.gmra.mxu1 %vm172_vm1, %v3846_v11 }
 0x14b   : > { %v7823_v29 = vpop.eup %7822  ;;  %v6600_v30 = vmul.f32 -1.442695, %v1572_v21  ;;  %v1665_v31 = vpop.f32.mrf.mxu1  ;;  %6589 = vst.msk [vmem:[%s8465_s14 + $0x20] sm:$0xff] %vm427_vm4, %v7821_v22  ;;  %7496 = vmatpush3.bf16.msra.mxu1 %v8512_v63  ;;  %7497 = vmatprep.mubr.msk.bf16.mxu1 %vm7941_vm3, %v7940_v2 }
 0x14c   : > { %v1384_v32 = vadd.f32 1.0, %v7823_v29  ;;  %v1622_v33 = vpop.f32.mrf.mxu0  ;;  %7480 = vmatmul.mubr.msk.bf16.vlgmr.msra.gmra.mxu0 %vm172_vm1, %v8585_v24  ;;  %7507 = vmatprep.subr.bf16.mxu1 %v7940_v2 }
 0x14d   : > { %7824 = vpow2.f32 %v6600_v30  ;;  %7490 = vmatpush3.bf16.msra.mxu0 %v8515_v3  ;;  %v7199_v35 = vpop.f32.mrf.mxu1  ;;  %7491 = vmatprep.mubr.msk.bf16.mxu0 %vm7941_vm3, %v7940_v2  ;;  %v1666_v45 = vadd.f32 %v1665_v31, %v1622_v33 }
 0x14e   : > { %7826 = vrcp.f32 %v1384_v32  ;;  %v7193_v37 = vpop.f32.mrf.mxu0  ;;  %7501 = vmatprep.subr.bf16.mxu0 %v7940_v2  ;;  %v4473_v35 = vld [vmem:[#allocation2 + $0x71] sm:$0xff] }
 0x14f   : > { %v1668_v47 = vpop.f32.mrf.mxu1  ;;  %v4427_v37 = vld [vmem:[#allocation2 + $0x70] sm:$0xff] }
 0x150   : > { %v1625_v62 = vpop.f32.mrf.mxu0 }
 0x151   : > { %v7200_v41 = vpop.f32.mrf.mxu1 }
 0x152   : > { %v7194_v42 = vpop.f32.mrf.mxu0  ;;  %7498 = vmatmul.mubr.msk.bf16.vlgmr.msra.gmra.mxu1 %vm172_vm1, %v8612_v61 }
 0x153   : > { %v1757_v46 = vpop.f32.mrf.mxu1  ;;  %7508 = vmatpush3.bf16.msra.mxu1 %v8488_v39  ;;  %7509 = vmatprep.mubr.msk.bf16.mxu1 %vm7941_vm3, %v7940_v2  ;;  %v4428_v42 = vpack.c.bf16 %v4427_v37, %v4427_v37  ;;  %v4816_v37 = vld [vmem:[#allocation2 + $0x90] sm:$0xff] }
 0x154   : > { %v1711_v48 = vpop.f32.mrf.mxu0  ;;  %7492 = vmatmul.mubr.msk.bf16.vlgmr.msra.gmra.mxu0 %vm172_vm1, %v4040_v40  ;;  %7519 = vmatprep.subr.bf16.mxu1 %v7940_v2 }
 0x155   : > { %v1717_v49 = vadd.f32 %v1711_v48, %v1666_v45  ;;  %7502 = vmatpush3.bf16.msra.mxu0 %v8491_v44  ;;  %v7211_v50 = vpop.f32.mrf.mxu1  ;;  %7503 = vmatprep.mubr.msk.bf16.mxu0 %vm7941_vm3, %v7940_v2 }
 0x156   : > { %v7205_v51 = vpop.f32.mrf.mxu0  ;;  %7513 = vmatprep.subr.bf16.mxu0 %v7940_v2 }
 0x157   : > { %v1763_v53 = vadd.f32 %v1757_v46, %v1717_v49  ;;  %v1760_v52 = vpop.f32.mrf.mxu1 }
 0x158   : > { %v1714_v54 = vpop.f32.mrf.mxu0 }
 0x159   : > { %v1764_v57 = vadd.f32 %v8408_v25, %v1763_v53  ;;  %v7212_v58 = vpop.f32.mrf.mxu1 }
 0x15a   : > { %v7825_v59 = vpop.eup %7824  ;;  %v7206_v60 = vpop.f32.mrf.mxu0  ;;  %7510 = vmatmul.mubr.msk.bf16.vlgmr.msra.gmra.mxu1 %vm172_vm1, %v4040_v40  ;;  %v8666_v40 = vpack.c.bf16 %v4473_v35, %v4473_v35 }
 0x15b   : > { %v7827_v0 = vpop.eup %7826  ;;  %v1576_v1 = vadd.f32 1.0, %v7825_v59  ;;  %v6606_v4 = vmul.f32 -1.442695, %v1764_v57  ;;  %v1871_v5 = vpop.f32.mrf.mxu1  ;;  %7520 = vmatpush3.bf16.msra.mxu1 %v8512_v63  ;;  %7521 = vmatprep.mubr.msk.bf16.mxu1 %vm7941_vm3, %v7940_v2 }
 0x15c   : > { %v1825_v6 = vpop.f32.mrf.mxu0  ;;  %7504 = vmatmul.mubr.msk.bf16.vlgmr.msra.gmra.mxu0 %vm172_vm1, %v8612_v61  ;;  %6595 = vst.msk [vmem:[%s8465_s14 + $0x28] sm:$0xff] %vm427_vm4, %v7827_v0  ;;  %7531 = vmatprep.subr.bf16.mxu1 %v7940_v2 }
 0x15d   : > { %7828 = vrcp.f32 %v1576_v1  ;;  %7514 = vmatpush3.bf16.msra.mxu0 %v8515_v3  ;;  %v7223_v8 = vpop.f32.mrf.mxu1  ;;  %7515 = vmatprep.mubr.msk.bf16.mxu0 %vm7941_vm3, %v7940_v2  ;;  %v1872_v15 = vadd.f32 %v1871_v5, %v1825_v6 }
 0x15e   : > { %7830 = vpow2.f32 %v6606_v4  ;;  %v7217_v43 = vpop.f32.mrf.mxu0  ;;  %7525 = vmatprep.subr.bf16.mxu0 %v7940_v2 }
 0x15f   : > { %v1874_v23 = vpop.f32.mrf.mxu1 }
 0x160   : > { %v1828_v11 = vpop.f32.mrf.mxu0  ;;  %v4621_v23 = vld [vmem:[#allocation2 + $0x80] sm:$0xff] }
 0x161   : > { %v7224_v13 = vpop.f32.mrf.mxu1 }
 0x162   : > { %v7218_v14 = vpop.f32.mrf.mxu0  ;;  %7522 = vmatmul.mubr.msk.bf16.vlgmr.msra.gmra.mxu1 %vm172_vm1, %v8639_v10  ;;  %v8693_v13 = vpack.c.bf16 %v4667_v9, %v4667_v9  ;;  %v8754_v9 = vld [vmem:[%s9029_s2] ss:$0 sm:$0xff] }
 0x163   : > { %v1968_v16 = vpop.f32.mrf.mxu1  ;;  %7532 = vmatpush3.bf16.msra.mxu1 %v8488_v39  ;;  %7533 = vmatprep.mubr.msk.bf16.mxu1 %vm7941_vm3, %v7940_v2 }
 0x164   : > { %v1919_v17 = vpop.f32.mrf.mxu0  ;;  %7516 = vmatmul.mubr.msk.bf16.vlgmr.msra.gmra.mxu0 %vm172_vm1, %v4234_v12  ;;  %7543 = vmatprep.subr.bf16.mxu1 %v7940_v2 }
 0x165   : > { %v1925_v18 = vadd.f32 %v1919_v17, %v1872_v15  ;;  %7526 = vmatpush3.bf16.msra.mxu0 %v8491_v44  ;;  %v7235_v19 = vpop.f32.mrf.mxu1  ;;  %7527 = vmatprep.mubr.msk.bf16.mxu0 %vm7941_vm3, %v7940_v2  ;;  %v4622_v15 = vpack.c.bf16 %v4621_v23, %v4621_v23 }
 0x166   : > { %v7229_v27 = vpop.f32.mrf.mxu0  ;;  %7537 = vmatprep.subr.bf16.mxu0 %v7940_v2 }
 0x167   : > { %v1974_v28 = vadd.f32 %v1968_v16, %v1925_v18  ;;  %v1971_v20 = vpop.f32.mrf.mxu1 }
 0x168   : > { %v1922_v21 = vpop.f32.mrf.mxu0 }
 0x169   : > { %v1975_v56 = vadd.f32 %v8408_v25, %v1974_v28  ;;  %v7236_v22 = vpop.f32.mrf.mxu1 }
 0x16a   : > { %v7829_v26 = vpop.eup %7828  ;;  %v7230_v29 = vpop.f32.mrf.mxu0  ;;  %7534 = vmatmul.mubr.msk.bf16.vlgmr.msra.gmra.mxu1 %vm172_vm1, %v4234_v12 }
 0x16b   : > { %v7831_v30 = vpop.eup %7830  ;;  %v6616_v31 = vmul.f32 -1.442695, %v1975_v56  ;;  %v2072_v32 = vpop.f32.mrf.mxu1  ;;  %6601 = vst.msk [vmem:[%s8465_s14 + $0x30] sm:$0xff] %vm427_vm4, %v7829_v26  ;;  %7544 = vmatpush3.bf16.msra.mxu1 %v8512_v63  ;;  %7545 = vmatprep.mubr.msk.bf16.mxu1 %vm7941_vm3, %v7940_v2 }
 0x16c   : > { %v1768_v33 = vadd.f32 1.0, %v7831_v30  ;;  %v2029_v34 = vpop.f32.mrf.mxu0  ;;  %7528 = vmatmul.mubr.msk.bf16.vlgmr.msra.gmra.mxu0 %vm172_vm1, %v8639_v10  ;;  %7555 = vmatprep.subr.bf16.mxu1 %v7940_v2 }
 0x16d   : > { %7832 = vpow2.f32 %v6616_v31  ;;  %7538 = vmatpush3.bf16.msra.mxu0 %v8515_v3  ;;  %v7247_v36 = vpop.f32.mrf.mxu1  ;;  %7539 = vmatprep.mubr.msk.bf16.mxu0 %vm7941_vm3, %v7940_v2  ;;  %v2073_v48 = vadd.f32 %v2072_v32, %v2029_v34 }
 0x16e   : > { %7834 = vrcp.f32 %v1768_v33  ;;  %v7241_v47 = vpop.f32.mrf.mxu0  ;;  %7549 = vmatprep.subr.bf16.mxu0 %v7940_v2  ;;  %v4862_v36 = vld [vmem:[#allocation2 + $0x91] sm:$0xff] }
 0x16f   : > { %v2075_v62 = vpop.f32.mrf.mxu1 }
 0x170   : > { %v2032_v41 = vpop.f32.mrf.mxu0 }
 0x171   : > { %v7248_v45 = vpop.f32.mrf.mxu1  ;;  %v8722_v41 = vpack.c.bf16 %v4862_v36, %v4862_v36 }
 0x172   : > { %v7242_v46 = vpop.f32.mrf.mxu0  ;;  %7546 = vmatmul.mubr.msk.bf16.vlgmr.msra.gmra.mxu1 %vm172_vm1, %v8666_v40  ;;  %v4817_v45 = vpack.c.bf16 %v4816_v37, %v4816_v37 }
 0x173   : > { %v2163_v49 = vpop.f32.mrf.mxu1  ;;  %7556 = vmatpush3.bf16.msra.mxu1 %v8488_v39  ;;  %7557 = vmatprep.mubr.msk.bf16.mxu1 %vm7941_vm3, %v7940_v2 }
 0x174   : > { %v2117_v50 = vpop.f32.mrf.mxu0  ;;  %7540 = vmatmul.mubr.msk.bf16.vlgmr.msra.gmra.mxu0 %vm172_vm1, %v4428_v42  ;;  %7567 = vmatprep.subr.bf16.mxu1 %v7940_v2 }
 0x175   : > { %v2123_v51 = vadd.f32 %v2117_v50, %v2073_v48  ;;  %7550 = vmatpush3.bf16.msra.mxu0 %v8491_v44  ;;  %v7259_v53 = vpop.f32.mrf.mxu1  ;;  %7551 = vmatprep.mubr.msk.bf16.mxu0 %vm7941_vm3, %v7940_v2 }
 0x176   : > { %v7253_v52 = vpop.f32.mrf.mxu0  ;;  %7561 = vmatprep.subr.bf16.mxu0 %v7940_v2 }
 0x177   : > { %v2169_v54 = vadd.f32 %v2163_v49, %v2123_v51  ;;  %v2166_v57 = vpop.f32.mrf.mxu1 }
 0x178   : > { %v2120_v58 = vpop.f32.mrf.mxu0 }
 0x179   : > { %v2170_v59 = vadd.f32 %v8408_v25, %v2169_v54  ;;  %v7260_v60 = vpop.f32.mrf.mxu1  ;;  %v4928_v54 = vld [vmem:[#allocation2 + $0x11] sm:$0xff] }
 0x17a   : > { %v7833_v0 = vpop.eup %7832  ;;  %v7254_v1 = vpop.f32.mrf.mxu0  ;;  %7558 = vmatmul.mubr.msk.bf16.vlgmr.msra.gmra.mxu1 %vm172_vm1, %v4428_v42 }
 0x17b   : > { %v7835_v4 = vpop.eup %7834  ;;  %v1979_v5 = vadd.f32 1.0, %v7833_v0  ;;  %v6621_v6 = vmul.f32 -1.442695, %v2170_v59  ;;  %v2266_v7 = vpop.f32.mrf.mxu1  ;;  %7568 = vmatpush3.bf16.msra.mxu1 %v8512_v63  ;;  %7569 = vmatprep.mubr.msk.bf16.mxu1 %vm7941_vm3, %v7940_v2  ;;  %v4930_v59 = vld [vmem:[#allocation2 + $0x12] sm:$0xff] }
 0x17c   : > { %v2223_v8 = vpop.f32.mrf.mxu0  ;;  %7552 = vmatmul.mubr.msk.bf16.vlgmr.msra.gmra.mxu0 %vm172_vm1, %v8666_v40  ;;  %6607 = vst.msk [vmem:[%s8465_s14 + $0x38] sm:$0xff] %vm427_vm4, %v7835_v4  ;;  %7579 = vmatprep.subr.bf16.mxu1 %v7940_v2  ;;  %v4929_v4 = vpack.c.bf16 %v4928_v54, %v4928_v54 }
 0x17d   : > { %7836 = vrcp.f32 %v1979_v5  ;;  %7562 = vmatpush3.bf16.msra.mxu0 %v8515_v3  ;;  %v7271_v43 = vpop.f32.mrf.mxu1  ;;  %7563 = vmatprep.mubr.msk.bf16.mxu0 %vm7941_vm3, %v7940_v2  ;;  %v2267_v18 = vadd.f32 %v2266_v7, %v2223_v8  ;;  %v6712_v5 = vld [vmem:[%s9028_s1 + $0x1c] sm:$0x3]  ;;  %v4931_v8 = vpack.c.bf16 %v4930_v59, %v4930_v59 }
 0x17e   : > { %7838 = vpow2.f32 %v6621_v6  ;;  %v7265_v11 = vpop.f32.mrf.mxu0  ;;  %7573 = vmatprep.subr.bf16.mxu0 %v7940_v2  ;;  %v6713_v6 = vld [vmem:[%s9028_s1 + $0x1e] sm:$0x3] }
 0x17f   : > { %v2269_v12 = vpop.f32.mrf.mxu1 }
 0x180   : > { %v2226_v14 = vpop.f32.mrf.mxu0 }
 0x181   : > { %v7272_v16 = vpop.f32.mrf.mxu1  ;;  %v8758_v14 = vsel %vm226_vm0, %v6712_v5, 0 }
 0x182   : > { %v7266_v17 = vpop.f32.mrf.mxu0  ;;  %7570 = vmatmul.mubr.msk.bf16.vlgmr.msra.gmra.mxu1 %vm172_vm1, %v8693_v13 }
 0x183   : > { %v2357_v19 = vpop.f32.mrf.mxu1  ;;  %7580 = vmatpush3.bf16.msra.mxu1 %v8488_v39  ;;  %7581 = vmatprep.mubr.msk.bf16.mxu1 %vm7941_vm3, %v7940_v2 }
 0x184   : > { %v2311_v27 = vpop.f32.mrf.mxu0  ;;  %7564 = vmatmul.mubr.msk.bf16.vlgmr.msra.gmra.mxu0 %vm172_vm1, %v4622_v15  ;;  %7591 = vmatprep.subr.bf16.mxu1 %v7940_v2 }
 0x185   : > { %v2317_v28 = vadd.f32 %v2311_v27, %v2267_v18  ;;  %7574 = vmatpush3.bf16.msra.mxu0 %v8491_v44  ;;  %v7283_v20 = vpop.f32.mrf.mxu1  ;;  %7575 = vmatprep.mubr.msk.bf16.mxu0 %vm7941_vm3, %v7940_v2 }
 0x186   : > { %v7277_v21 = vpop.f32.mrf.mxu0  ;;  %7585 = vmatprep.subr.bf16.mxu0 %v7940_v2 }
 0x187   : > { %v2363_v56 = vadd.f32 %v2357_v19, %v2317_v28  ;;  %v2360_v22 = vpop.f32.mrf.mxu1  ;;  %v5073_v28 = vld [vmem:[#allocation2 + $0x22] sm:$0xff] }
 0x188   : > { %v2314_v26 = vpop.f32.mrf.mxu0  ;;  %v5074_v22 = vpack.c.bf16 %v5073_v28, %v5073_v28 }
 0x189   : > { %v2364_v39 = vadd.f32 %v8408_v25, %v2363_v56  ;;  %v7284_v29 = vpop.f32.mrf.mxu1 }
 0x18a   : > { %v7837_v30 = vpop.eup %7836  ;;  %v7278_v44 = vpop.f32.mrf.mxu0  ;;  %7582 = vmatmul.mubr.msk.bf16.vlgmr.msra.gmra.mxu1 %vm172_vm1, %v4622_v15  ;;  %v8761_v15 = vsel %vm226_vm0, %v6713_v6, 0 }
 0x18b   : > { %v7839_v31 = vpop.eup %7838  ;;  %v6627_v32 = vmul.f32 -1.442695, %v2364_v39  ;;  %1983 = vrot.lane.b32.xlu0 %v7837_v30, %s7942_s22  ;;  %v2460_v33 = vpop.f32.mrf.mxu1  ;;  %7592 = vmatpush3.bf16.msra.mxu1 %v8512_v63  ;;  %v6710_v63 = vld [vmem:[%s9028_s1 + $0x18] sm:$0x3] }
 0x18c   : > { %v2174_v34 = vadd.f32 1.0, %v7839_v31  ;;  %v2417_v35 = vpop.f32.mrf.mxu0  ;;  %7576 = vmatmul.mubr.msk.bf16.vlgmr.msra.gmra.mxu0 %vm172_vm1, %v8693_v13  ;;  %7593 = vmatprep.mubr.msk.bf16.mxu1 %vm7941_vm3, %v7940_v2  ;;  %v8729_v48 = vsel %vm226_vm0, %v6710_v63, 0 }
 0x18d   : > { %7840 = vpow2.f32 %v6627_v32  ;;  %7586 = vmatpush3.bf16.msra.mxu0 %v8515_v3  ;;  %v7295_v25 = vpop.f32.mrf.mxu1  ;;  %7587 = vmatprep.mubr.msk.bf16.mxu0 %vm7941_vm3, %v7940_v2  ;;  %v6711_v3 = vld [vmem:[%s9028_s1 + $0x1a] sm:$0x3]  ;;  %v2461_v51 = vadd.f32 %v2460_v33, %v2417_v35 }
 0x18e   : > { %7842 = vrcp.f32 %v2174_v34  ;;  %v7289_v47 = vpop.f32.mrf.mxu0  ;;  %7597 = vmatprep.subr.bf16.mxu0 %v7940_v2  ;;  %7603 = vmatprep.subr.bf16.mxu1 %v7940_v2  ;;  %v8732_v50 = vsel %vm226_vm0, %v6711_v3, 0 }
 0x18f   : > { %v2463_v62 = vpop.f32.mrf.mxu1 }
 0x190   : > { %v2420_v42 = vpop.f32.mrf.mxu0 }
 0x191   : > { %v7296_v46 = vpop.f32.mrf.mxu1 }
 0x192   : > { %v7290_v49 = vpop.f32.mrf.mxu0  ;;  %7594 = vmatmul.mubr.msk.bf16.vlgmr.msra.gmra.mxu1 %vm172_vm1, %v8722_v41 }
 0x193   : > { %v2551_v53 = vpop.f32.mrf.mxu1  ;;  %7604 = vmatpush3.bf16.msra.mxu1 %v8729_v48  ;;  %7605 = vmatprep.mubr.msk.bf16.mxu1 %vm7941_vm3, %v7940_v2 }
 0x194   : > { %v2505_v52 = vpop.f32.mrf.mxu0  ;;  %7588 = vmatmul.mubr.msk.bf16.vlgmr.msra.gmra.mxu0 %vm172_vm1, %v4817_v45  ;;  %7615 = vmatprep.subr.bf16.mxu1 %v7940_v2 }
 0x195   : > { %v2511_v57 = vadd.f32 %v2505_v52, %v2461_v51  ;;  %7598 = vmatpush3.bf16.msra.mxu0 %v8732_v50  ;;  %v7307_v58 = vpop.f32.mrf.mxu1  ;;  %7599 = vmatprep.mubr.msk.bf16.mxu0 %vm7941_vm3, %v7940_v2  ;;  %v5271_v51 = vld [vmem:[#allocation2 + $0x32] sm:$0xff] }
 0x196   : > { %v7301_v60 = vpop.f32.mrf.mxu0  ;;  %7609 = vmatprep.subr.bf16.mxu0 %v7940_v2  ;;  %v5272_v54 = vpack.c.bf16 %v5271_v51, %v5271_v51  ;;  %v5659_v51 = vld [vmem:[#allocation2 + $0x52] sm:$0xff] }
 0x197   : > { %v2557_v0 = vadd.f32 %v2551_v53, %v2511_v57  ;;  %v2554_v1 = vpop.f32.mrf.mxu1 }
 0x198   : > { %v2508_v7 = vpop.f32.mrf.mxu0 }
 0x199   : > { %v2558_v43 = vadd.f32 %v8754_v9, %v2557_v0  ;;  %v7308_v23 = vpop.f32.mrf.mxu1 }
 0x19a   : > { %v7841_v11 = vpop.eup %7840  ;;  %v7302_v12 = vpop.f32.mrf.mxu0  ;;  %7606 = vmatmul.mubr.msk.bf16.vlgmr.msra.gmra.mxu1 %vm172_vm1, %v4929_v4 }
 0x19b   : > { %v7843_v16 = vpop.eup %7842  ;;  %v2368_v17 = vadd.f32 1.0, %v7841_v11  ;;  %v6633_v18 = vmul.f32 -1.442695, %v2558_v43  ;;  %v2654_v19 = vpop.f32.mrf.mxu1  ;;  %7616 = vmatpush3.bf16.msra.mxu1 %v8761_v15  ;;  %7617 = vmatprep.mubr.msk.bf16.mxu1 %vm7941_vm3, %v7940_v2 }
 0x19c   : > { %2178 = vrot.lane.b32.xlu0 %v7843_v16, %s7942_s22  ;;  %v2611_v27 = vpop.f32.mrf.mxu0  ;;  %7600 = vmatmul.mubr.msk.bf16.vlgmr.msra.gmra.mxu0 %vm172_vm1, %v4931_v8 }
 0x19d   : > { %7844 = vrcp.f32 %v2368_v17  ;;  %7610 = vmatpush3.bf16.msra.mxu0 %v8758_v14  ;;  %v7319_v20 = vpop.f32.mrf.mxu1  ;;  %7611 = vmatprep.mubr.msk.bf16.mxu0 %vm7941_vm3, %v7940_v2  ;;  %v2655_v30 = vadd.f32 %v2654_v19, %v2611_v27 }
 0x19e   : > { %7846 = vpow2.f32 %v6633_v18  ;;  %v7313_v21 = vpop.f32.mrf.mxu0  ;;  %7621 = vmatprep.subr.bf16.mxu0 %v7940_v2  ;;  %7627 = vmatprep.subr.bf16.mxu1 %v7940_v2  ;;  %v5465_v20 = vld [vmem:[#allocation2 + $0x42] sm:$0xff] }
 0x19f   : > { %v2657_v56 = vpop.f32.mrf.mxu1 }
 0x1a0   : > { %v2614_v26 = vpop.f32.mrf.mxu0 }
 0x1a1   : > { %v7320_v39 = vpop.f32.mrf.mxu1 }
 0x1a2   : > { %v7314_v29 = vpop.f32.mrf.mxu0  ;;  %7618 = vmatmul.mubr.msk.bf16.vlgmr.msra.gmra.mxu1 %vm172_vm1, %v5074_v22 }
 0x1a3   : > { %v2745_v44 = vpop.f32.mrf.mxu1  ;;  %7628 = vmatpush3.bf16.msra.mxu1 %v8729_v48  ;;  %7629 = vmatprep.mubr.msk.bf16.mxu1 %vm7941_vm3, %v7940_v2 }
 0x1a4   : > { %v2699_v31 = vpop.f32.mrf.mxu0  ;;  %7612 = vmatmul.mubr.msk.bf16.vlgmr.msra.gmra.mxu0 %vm172_vm1, %v8543_v55  ;;  %7639 = vmatprep.subr.bf16.mxu1 %v7940_v2 }
 0x1a5   : > { %v2705_v32 = vadd.f32 %v2699_v31, %v2655_v30  ;;  %7622 = vmatpush3.bf16.msra.mxu0 %v8732_v50  ;;  %v7331_v33 = vpop.f32.mrf.mxu1  ;;  %7623 = vmatprep.mubr.msk.bf16.mxu0 %vm7941_vm3, %v7940_v2 }
 0x1a6   : > { %v7325_v34 = vpop.f32.mrf.mxu0  ;;  %7633 = vmatprep.subr.bf16.mxu0 %v7940_v2 }
 0x1a7   : > { %v2751_v35 = vadd.f32 %v2745_v44, %v2705_v32  ;;  %v2748_v36 = vpop.f32.mrf.mxu1 }
 0x1a8   : > { %v2702_v25 = vpop.f32.mrf.mxu0 }
 0x1a9   : > { %v2752_v37 = vadd.f32 %v8754_v9, %v2751_v35  ;;  %v7332_v47 = vpop.f32.mrf.mxu1 }
 0x1aa   : > { %v7845_v63 = vpop.eup %7844  ;;  %v7326_v62 = vpop.f32.mrf.mxu0  ;;  %7630 = vmatmul.mubr.msk.bf16.vlgmr.msra.gmra.mxu1 %vm172_vm1, %v8543_v55 }
 0x1ab   : > { %v7847_v3 = vpop.eup %7846  ;;  %v6639_v42 = vmul.f32 -1.442695, %v2752_v37  ;;  %2372 = vrot.lane.b32.xlu1 %v7845_v63, %s7942_s22  ;;  %v2848_v45 = vpop.f32.mrf.mxu1  ;;  %7640 = vmatpush3.bf16.msra.mxu1 %v8761_v15 }
 0x1ac   : > { %v2562_v46 = vadd.f32 1.0, %v7847_v3  ;;  %v2805_v49 = vpop.f32.mrf.mxu0  ;;  %7624 = vmatmul.mubr.msk.bf16.vlgmr.msra.gmra.mxu0 %vm172_vm1, %v5074_v22  ;;  %7641 = vmatprep.mubr.msk.bf16.mxu1 %vm7941_vm3, %v7940_v2  ;;  %v5466_v22 = vpack.c.bf16 %v5465_v20, %v5465_v20 }
 0x1ad   : > { %7848 = vpow2.f32 %v6639_v42  ;;  %7634 = vmatpush3.bf16.msra.mxu0 %v8758_v14  ;;  %v7343_v53 = vpop.f32.mrf.mxu1  ;;  %7635 = vmatprep.mubr.msk.bf16.mxu0 %vm7941_vm3, %v7940_v2  ;;  %v2849_v60 = vadd.f32 %v2848_v45, %v2805_v49 }
 0x1ae   : > { %7850 = vrcp.f32 %v2562_v46  ;;  %v7337_v52 = vpop.f32.mrf.mxu0  ;;  %7645 = vmatprep.subr.bf16.mxu0 %v7940_v2  ;;  %7651 = vmatprep.subr.bf16.mxu1 %v7940_v2 }
 0x1af   : > { %v2851_v55 = vpop.f32.mrf.mxu1 }
 0x1b0   : > { %v2808_v57 = vpop.f32.mrf.mxu0  ;;  %v5660_v55 = vpack.c.bf16 %v5659_v51, %v5659_v51 }
 0x1b1   : > { %v7344_v58 = vpop.f32.mrf.mxu1 }
 0x1b2   : > { %v7338_v59 = vpop.f32.mrf.mxu0  ;;  %7642 = vmatmul.mubr.msk.bf16.vlgmr.msra.gmra.mxu1 %vm172_vm1, %v5272_v54 }
 0x1b3   : > { %v2939_v0 = vpop.f32.mrf.mxu1  ;;  %7652 = vmatpush3.bf16.msra.mxu1 %v8729_v48  ;;  %7653 = vmatprep.mubr.msk.bf16.mxu1 %vm7941_vm3, %v7940_v2 }
 0x1b4   : > { %v2893_v1 = vpop.f32.mrf.mxu0  ;;  %7636 = vmatmul.mubr.msk.bf16.vlgmr.msra.gmra.mxu0 %vm172_vm1, %v8558_v38  ;;  %7663 = vmatprep.subr.bf16.mxu1 %v7940_v2 }
 0x1b5   : > { %v2899_v4 = vadd.f32 %v2893_v1, %v2849_v60  ;;  %7646 = vmatpush3.bf16.msra.mxu0 %v8732_v50  ;;  %v7355_v5 = vpop.f32.mrf.mxu1  ;;  %7647 = vmatprep.mubr.msk.bf16.mxu0 %vm7941_vm3, %v7940_v2 }
 0x1b6   : > { %v7349_v6 = vpop.f32.mrf.mxu0  ;;  %7657 = vmatprep.subr.bf16.mxu0 %v7940_v2 }
 0x1b7   : > { %v2945_v7 = vadd.f32 %v2939_v0, %v2899_v4  ;;  %v2942_v8 = vpop.f32.mrf.mxu1 }
 0x1b8   : > { %v2896_v43 = vpop.f32.mrf.mxu0 }
 0x1b9   : > { %v2946_v23 = vadd.f32 %v8754_v9, %v2945_v7  ;;  %v7356_v11 = vpop.f32.mrf.mxu1 }
 0x1ba   : > { %v7849_v12 = vpop.eup %7848  ;;  %v7350_v16 = vpop.f32.mrf.mxu0  ;;  %7654 = vmatmul.mubr.msk.bf16.vlgmr.msra.gmra.mxu1 %vm172_vm1, %v8558_v38 }
 0x1bb   : > { %v7851_v17 = vpop.eup %7850  ;;  %v2756_v18 = vadd.f32 1.0, %v7849_v12  ;;  %v6645_v19 = vmul.f32 -1.442695, %v2946_v23  ;;  %v3042_v27 = vpop.f32.mrf.mxu1  ;;  %7664 = vmatpush3.bf16.msra.mxu1 %v8761_v15  ;;  %7665 = vmatprep.mubr.msk.bf16.mxu1 %vm7941_vm3, %v7940_v2 }
 0x1bc   : > { %2566 = vrot.lane.b32.xlu1 %v7851_v17, %s7942_s22  ;;  %v2999_v28 = vpop.f32.mrf.mxu0  ;;  %7648 = vmatmul.mubr.msk.bf16.vlgmr.msra.gmra.mxu0 %vm172_vm1, %v5272_v54 }
 0x1bd   : > { %7852 = vrcp.f32 %v2756_v18  ;;  %7658 = vmatpush3.bf16.msra.mxu0 %v8758_v14  ;;  %v7367_v21 = vpop.f32.mrf.mxu1  ;;  %7659 = vmatprep.mubr.msk.bf16.mxu0 %vm7941_vm3, %v7940_v2  ;;  %v3043_v30 = vadd.f32 %v3042_v27, %v2999_v28  ;;  %v5853_v28 = vld [vmem:[#allocation2 + $0x62] sm:$0xff] }
 0x1be   : > { %7854 = vpow2.f32 %v6645_v19  ;;  %v7361_v56 = vpop.f32.mrf.mxu0  ;;  %7669 = vmatprep.subr.bf16.mxu0 %v7940_v2  ;;  %7675 = vmatprep.subr.bf16.mxu1 %v7940_v2 }
 0x1bf   : > { %v3045_v38 = vpop.f32.mrf.mxu1  ;;  %v5854_v56 = vpack.c.bf16 %v5853_v28, %v5853_v28 }
 0x1c0   : > { %v3002_v26 = vpop.f32.mrf.mxu0 }
 0x1c1   : > { %v7368_v39 = vpop.f32.mrf.mxu1 }
 0x1c2   : > { %v7362_v29 = vpop.f32.mrf.mxu0  ;;  %7666 = vmatmul.mubr.msk.bf16.vlgmr.msra.gmra.mxu1 %vm172_vm1, %v5466_v22 }
 0x1c3   : > { %v3133_v44 = vpop.f32.mrf.mxu1  ;;  %7676 = vmatpush3.bf16.msra.mxu1 %v8729_v48  ;;  %7677 = vmatprep.mubr.msk.bf16.mxu1 %vm7941_vm3, %v7940_v2 }
 0x1c4   : > { %v3087_v31 = vpop.f32.mrf.mxu0  ;;  %7660 = vmatmul.mubr.msk.bf16.vlgmr.msra.gmra.mxu0 %vm172_vm1, %v8585_v24  ;;  %7687 = vmatprep.subr.bf16.mxu1 %v7940_v2 }
 0x1c5   : > { %v3093_v32 = vadd.f32 %v3087_v31, %v3043_v30  ;;  %7670 = vmatpush3.bf16.msra.mxu0 %v8732_v50  ;;  %v7379_v33 = vpop.f32.mrf.mxu1  ;;  %7671 = vmatprep.mubr.msk.bf16.mxu0 %vm7941_vm3, %v7940_v2 }
 0x1c6   : > { %v7373_v34 = vpop.f32.mrf.mxu0  ;;  %7681 = vmatprep.subr.bf16.mxu0 %v7940_v2 }
 0x1c7   : > { %v3139_v35 = vadd.f32 %v3133_v44, %v3093_v32  ;;  %v3136_v36 = vpop.f32.mrf.mxu1 }
 0x1c8   : > { %v3090_v25 = vpop.f32.mrf.mxu0 }
 0x1c9   : > { %v3140_v37 = vadd.f32 %v8754_v9, %v3139_v35  ;;  %v7380_v47 = vpop.f32.mrf.mxu1 }
 0x1ca   : > { %v7853_v63 = vpop.eup %7852  ;;  %v7374_v62 = vpop.f32.mrf.mxu0  ;;  %7678 = vmatmul.mubr.msk.bf16.vlgmr.msra.gmra.mxu1 %vm172_vm1, %v8585_v24 }
 0x1cb   : > { %v7855_v3 = vpop.eup %7854  ;;  %v6651_v42 = vmul.f32 -1.442695, %v3140_v37  ;;  %2760 = vrot.lane.b32.xlu0 %v7853_v63, %s7942_s22  ;;  %v3236_v45 = vpop.f32.mrf.mxu1  ;;  %7688 = vmatpush3.bf16.msra.mxu1 %v8761_v15 }
 0x1cc   : > { %v2950_v46 = vadd.f32 1.0, %v7855_v3  ;;  %v3193_v49 = vpop.f32.mrf.mxu0  ;;  %7672 = vmatmul.mubr.msk.bf16.vlgmr.msra.gmra.mxu0 %vm172_vm1, %v5466_v22  ;;  %7689 = vmatprep.mubr.msk.bf16.mxu1 %vm7941_vm3, %v7940_v2 }
 0x1cd   : > { %7856 = vpow2.f32 %v6651_v42  ;;  %7682 = vmatpush3.bf16.msra.mxu0 %v8758_v14  ;;  %v7391_v53 = vpop.f32.mrf.mxu1  ;;  %7683 = vmatprep.mubr.msk.bf16.mxu0 %vm7941_vm3, %v7940_v2  ;;  %v3237_v59 = vadd.f32 %v3236_v45, %v3193_v49 }
 0x1ce   : > { %7858 = vrcp.f32 %v2950_v46  ;;  %v7385_v52 = vpop.f32.mrf.mxu0  ;;  %7693 = vmatprep.subr.bf16.mxu0 %v7940_v2  ;;  %7699 = vmatprep.subr.bf16.mxu1 %v7940_v2  ;;  %v6047_v46 = vld [vmem:[#allocation2 + $0x72] sm:$0xff] }
 0x1cf   : > { %v3239_v24 = vpop.f32.mrf.mxu1  ;;  %v6048_v53 = vpack.c.bf16 %v6047_v46, %v6047_v46 }
 0x1d0   : > { %v3196_v54 = vpop.f32.mrf.mxu0 }
 0x1d1   : > { %v7392_v57 = vpop.f32.mrf.mxu1 }
 0x1d2   : > { %v7386_v58 = vpop.f32.mrf.mxu0  ;;  %7690 = vmatmul.mubr.msk.bf16.vlgmr.msra.gmra.mxu1 %vm172_vm1, %v5660_v55 }
 0x1d3   : > { %v3327_v60 = vpop.f32.mrf.mxu1  ;;  %7700 = vmatpush3.bf16.msra.mxu1 %v8729_v48  ;;  %7701 = vmatprep.mubr.msk.bf16.mxu1 %vm7941_vm3, %v7940_v2 }
 0x1d4   : > { %v3281_v0 = vpop.f32.mrf.mxu0  ;;  %7684 = vmatmul.mubr.msk.bf16.vlgmr.msra.gmra.mxu0 %vm172_vm1, %v8612_v61  ;;  %7711 = vmatprep.subr.bf16.mxu1 %v7940_v2 }
 0x1d5   : > { %v3287_v1 = vadd.f32 %v3281_v0, %v3237_v59  ;;  %7694 = vmatpush3.bf16.msra.mxu0 %v8732_v50  ;;  %v7403_v4 = vpop.f32.mrf.mxu1  ;;  %7695 = vmatprep.mubr.msk.bf16.mxu0 %vm7941_vm3, %v7940_v2 }
 0x1d6   : > { %v7397_v5 = vpop.f32.mrf.mxu0  ;;  %7705 = vmatprep.subr.bf16.mxu0 %v7940_v2 }
 0x1d7   : > { %v3333_v6 = vadd.f32 %v3327_v60, %v3287_v1  ;;  %v3330_v7 = vpop.f32.mrf.mxu1 }
 0x1d8   : > { %v3284_v8 = vpop.f32.mrf.mxu0 }
 0x1d9   : > { %v3334_v43 = vadd.f32 %v8754_v9, %v3333_v6  ;;  %v7404_v23 = vpop.f32.mrf.mxu1 }
 0x1da   : > { %v7857_v11 = vpop.eup %7856  ;;  %v7398_v12 = vpop.f32.mrf.mxu0  ;;  %7702 = vmatmul.mubr.msk.bf16.vlgmr.msra.gmra.mxu1 %vm172_vm1, %v8612_v61 }
 0x1db   : > { %v7859_v16 = vpop.eup %7858  ;;  %v3144_v17 = vadd.f32 1.0, %v7857_v11  ;;  %v6657_v18 = vmul.f32 -1.442695, %v3334_v43  ;;  %v3444_v19 = vpop.f32.mrf.mxu1  ;;  %7712 = vmatpush3.bf16.msra.mxu1 %v8761_v15  ;;  %7713 = vmatprep.mubr.msk.bf16.mxu1 %vm7941_vm3, %v7940_v2 }
 0x1dc   : > { %2954 = vrot.lane.b32.xlu1 %v7859_v16, %s7942_s22  ;;  %v3398_v27 = vpop.f32.mrf.mxu0  ;;  %7696 = vmatmul.mubr.msk.bf16.vlgmr.msra.gmra.mxu0 %vm172_vm1, %v5660_v55 }
 0x1dd   : > { %7860 = vrcp.f32 %v3144_v17  ;;  %7706 = vmatpush3.bf16.msra.mxu0 %v8758_v14  ;;  %v7415_v20 = vpop.f32.mrf.mxu1  ;;  %7707 = vmatprep.mubr.msk.bf16.mxu0 %vm7941_vm3, %v7940_v2  ;;  %v3445_v39 = vadd.f32 %v3444_v19, %v3398_v27 }
 0x1de   : > { %7862 = vpow2.f32 %v6657_v18  ;;  %v7409_v21 = vpop.f32.mrf.mxu0  ;;  %7717 = vmatprep.subr.bf16.mxu0 %v7940_v2  ;;  %7723 = vmatprep.subr.bf16.mxu1 %v7940_v2  ;;  %v6241_v18 = vld [vmem:[#allocation2 + $0x82] sm:$0xff] }
 0x1df   : > { %v3447_v61 = vpop.f32.mrf.mxu1  ;;  %v6242_v20 = vpack.c.bf16 %v6241_v18, %v6241_v18 }
 0x1e0   : > { %v3401_v38 = vpop.f32.mrf.mxu0 }
 0x1e1   : > { %v7416_v22 = vpop.f32.mrf.mxu1 }
 0x1e2   : > { %v7410_v26 = vpop.f32.mrf.mxu0  ;;  %7714 = vmatmul.mubr.msk.bf16.vlgmr.msra.gmra.mxu1 %vm172_vm1, %v5854_v56 }
 0x1e3   : > { %v3541_v29 = vpop.f32.mrf.mxu1  ;;  %7724 = vmatpush3.bf16.msra.mxu1 %v8729_v48  ;;  %7725 = vmatprep.mubr.msk.bf16.mxu1 %vm7941_vm3, %v7940_v2 }
 0x1e4   : > { %v3492_v30 = vpop.f32.mrf.mxu0  ;;  %7708 = vmatmul.mubr.msk.bf16.vlgmr.msra.gmra.mxu0 %vm172_vm1, %v8639_v10  ;;  %7735 = vmatprep.subr.bf16.mxu1 %v7940_v2 }
 0x1e5   : > { %v3498_v44 = vadd.f32 %v3492_v30, %v3445_v39  ;;  %7718 = vmatpush3.bf16.msra.mxu0 %v8732_v50  ;;  %v7427_v31 = vpop.f32.mrf.mxu1  ;;  %7719 = vmatprep.mubr.msk.bf16.mxu0 %vm7941_vm3, %v7940_v2 }
 0x1e6   : > { %v7421_v32 = vpop.f32.mrf.mxu0  ;;  %7729 = vmatprep.subr.bf16.mxu0 %v7940_v2 }
 0x1e7   : > { %v3547_v33 = vadd.f32 %v3541_v29, %v3498_v44  ;;  %v3544_v34 = vpop.f32.mrf.mxu1 }
 0x1e8   : > { %v3495_v35 = vpop.f32.mrf.mxu0 }
 0x1e9   : > { %v3548_v36 = vadd.f32 %v8754_v9, %v3547_v33  ;;  %v7428_v25 = vpop.f32.mrf.mxu1 }
 0x1ea   : > { %v7861_v37 = vpop.eup %7860  ;;  %v7422_v47 = vpop.f32.mrf.mxu0  ;;  %7726 = vmatmul.mubr.msk.bf16.vlgmr.msra.gmra.mxu1 %vm172_vm1, %v8639_v10 }
 0x1eb   : > { %v7863_v63 = vpop.eup %7862  ;;  %v6667_v62 = vmul.f32 -1.442695, %v3548_v36  ;;  %3148 = vrot.lane.b32.xlu0 %v7861_v37, %s7942_s22  ;;  %v3645_v3 = vpop.f32.mrf.mxu1  ;;  %7736 = vmatpush3.bf16.msra.mxu1 %v8761_v15 }
 0x1ec   : > { %v3338_v42 = vadd.f32 1.0, %v7863_v63  ;;  %v3602_v45 = vpop.f32.mrf.mxu0  ;;  %7720 = vmatmul.mubr.msk.bf16.vlgmr.msra.gmra.mxu0 %vm172_vm1, %v5854_v56  ;;  %7737 = vmatprep.mubr.msk.bf16.mxu1 %vm7941_vm3, %v7940_v2  ;;  %v6435_v63 = vld [vmem:[#allocation2 + $0x92] sm:$0xff] }
 0x1ed   : > { %7864 = vpow2.f32 %v6667_v62  ;;  %7730 = vmatpush3.bf16.msra.mxu0 %v8758_v14  ;;  %v7439_v49 = vpop.f32.mrf.mxu1  ;;  %7731 = vmatprep.mubr.msk.bf16.mxu0 %vm7941_vm3, %v7940_v2  ;;  %v3646_v54 = vadd.f32 %v3645_v3, %v3602_v45  ;;  %v6436_v45 = vpack.c.bf16 %v6435_v63, %v6435_v63 }
 0x1ee   : > { %7866 = vrcp.f32 %v3338_v42  ;;  %v7433_v51 = vpop.f32.mrf.mxu0  ;;  %7741 = vmatprep.subr.bf16.mxu0 %v7940_v2  ;;  %7747 = vmatprep.subr.bf16.mxu1 %v7940_v2 }
 0x1ef   : > { %v3648_v10 = vpop.f32.mrf.mxu1 }
 0x1f0   : > { %v3605_v52 = vpop.f32.mrf.mxu0 }
 0x1f1   : > { %v7440_v24 = vpop.f32.mrf.mxu1 }
 0x1f2   : > { %v7434_v55 = vpop.f32.mrf.mxu0  ;;  %7738 = vmatmul.mubr.msk.bf16.vlgmr.msra.gmra.mxu1 %vm172_vm1, %v6048_v53 }
 0x1f3   : > { %v3736_v57 = vpop.f32.mrf.mxu1  ;;  %7748 = vmatpush3.bf16.msra.mxu1 %v8729_v48  ;;  %7749 = vmatprep.mubr.msk.bf16.mxu1 %vm7941_vm3, %v7940_v2 }
 0x1f4   : > { %v3690_v58 = vpop.f32.mrf.mxu0  ;;  %7732 = vmatmul.mubr.msk.bf16.vlgmr.msra.gmra.mxu0 %vm172_vm1, %v8666_v40  ;;  %7759 = vmatprep.subr.bf16.mxu1 %v7940_v2 }
 0x1f5   : > { %v3696_v59 = vadd.f32 %v3690_v58, %v3646_v54  ;;  %7742 = vmatpush3.bf16.msra.mxu0 %v8732_v50  ;;  %v7451_v60 = vpop.f32.mrf.mxu1  ;;  %7743 = vmatprep.mubr.msk.bf16.mxu0 %vm7941_vm3, %v7940_v2 }
 0x1f6   : > { %v7445_v0 = vpop.f32.mrf.mxu0  ;;  %7753 = vmatprep.subr.bf16.mxu0 %v7940_v2 }
 0x1f7   : > { %v3742_v1 = vadd.f32 %v3736_v57, %v3696_v59  ;;  %v3739_v4 = vpop.f32.mrf.mxu1 }
 0x1f8   : > { %v3693_v5 = vpop.f32.mrf.mxu0 }
 0x1f9   : > { %v3743_v6 = vadd.f32 %v8754_v9, %v3742_v1  ;;  %v7452_v7 = vpop.f32.mrf.mxu1 }
 0x1fa   : > { %v7865_v8 = vpop.eup %7864  ;;  %v7446_v43 = vpop.f32.mrf.mxu0  ;;  %7750 = vmatmul.mubr.msk.bf16.vlgmr.msra.gmra.mxu1 %vm172_vm1, %v8666_v40 }
 0x1fb   : > { %v7867_v23 = vpop.eup %7866  ;;  %v3552_v11 = vadd.f32 1.0, %v7865_v8  ;;  %v6672_v12 = vmul.f32 -1.442695, %v3743_v6  ;;  %v3839_v16 = vpop.f32.mrf.mxu1  ;;  %7760 = vmatpush3.bf16.msra.mxu1 %v8761_v15  ;;  %7761 = vmatprep.mubr.msk.bf16.mxu1 %vm7941_vm3, %v7940_v2 }
 0x1fc   : > { %3342 = vrot.lane.b32.xlu1 %v7867_v23, %s7942_s22  ;;  %v3796_v17 = vpop.f32.mrf.mxu0  ;;  %7744 = vmatmul.mubr.msk.bf16.vlgmr.msra.gmra.mxu0 %vm172_vm1, %v6048_v53 }
 0x1fd   : > { %7868 = vrcp.f32 %v3552_v11  ;;  %7754 = vmatpush3.bf16.msra.mxu0 %v8758_v14  ;;  %v1984_v19 = vpop.permute.xlu0 %1983  ;;  %v7463_v27 = vpop.f32.mrf.mxu1  ;;  %7755 = vmatprep.mubr.msk.bf16.mxu0 %vm7941_vm3, %v7940_v2  ;;  %v3840_v38 = vadd.f32 %v3839_v16, %v3796_v17 }
 0x1fe   : > { %7870 = vpow2.f32 %v6672_v12  ;;  %1987 = vst.msk [vmem:[%s8465_s14] sm:$0xff] %vm1986_vm5, %v1984_v19  ;;  %v7457_v28 = vpop.f32.mrf.mxu0  ;;  %7765 = vmatprep.subr.bf16.mxu0 %v7940_v2  ;;  %7771 = vmatprep.subr.bf16.mxu1 %v7940_v2 }
 0x1ff   : > { %v3842_v40 = vpop.f32.mrf.mxu1 }
 0x200   : > { %v3799_v21 = vpop.f32.mrf.mxu0 }
 0x201   : > { %v7464_v61 = vpop.f32.mrf.mxu1 }
 0x202   : > { %v7458_v56 = vpop.f32.mrf.mxu0  ;;  %7762 = vmatmul.mubr.msk.bf16.vlgmr.msra.gmra.mxu1 %vm172_vm1, %v6242_v20 }
 0x203   : > { %v3930_v22 = vpop.f32.mrf.mxu1  ;;  %7772 = vmatpush3.bf16.msra.mxu1 %v8729_v48  ;;  %7773 = vmatprep.mubr.msk.bf16.mxu1 %vm7941_vm3, %v7940_v2 }
 0x204   : > { %v3884_v26 = vpop.f32.mrf.mxu0  ;;  %7756 = vmatmul.mubr.msk.bf16.vlgmr.msra.gmra.mxu0 %vm172_vm1, %v8693_v13  ;;  %7783 = vmatprep.subr.bf16.mxu1 %v7940_v2 }
 0x205   : > { %v3890_v39 = vadd.f32 %v3884_v26, %v3840_v38  ;;  %7766 = vmatpush3.bf16.msra.mxu0 %v8732_v50  ;;  %v7475_v29 = vpop.f32.mrf.mxu1  ;;  %7767 = vmatprep.mubr.msk.bf16.mxu0 %vm7941_vm3, %v7940_v2 }
 0x206   : > { %v7469_v30 = vpop.f32.mrf.mxu0  ;;  %7777 = vmatprep.subr.bf16.mxu0 %v7940_v2 }
 0x207   : > { %v3936_v44 = vadd.f32 %v3930_v22, %v3890_v39  ;;  %v3933_v31 = vpop.f32.mrf.mxu1 }
 0x208   : > { %v3887_v32 = vpop.f32.mrf.mxu0 }
 0x209   : > { %v3937_v48 = vadd.f32 %v8754_v9, %v3936_v44  ;;  %v7476_v33 = vpop.f32.mrf.mxu1 }
 0x20a   : > { %v7869_v34 = vpop.eup %7868  ;;  %v7470_v50 = vpop.f32.mrf.mxu0  ;;  %7774 = vmatmul.mubr.msk.bf16.vlgmr.msra.gmra.mxu1 %vm172_vm1, %v8693_v13 }
 0x20b   : > { %v7871_v35 = vpop.eup %7870  ;;  %v6678_v36 = vmul.f32 -1.442695, %v3937_v48  ;;  %3556 = vrot.lane.b32.xlu0 %v7869_v34, %s7943_s6  ;;  %v4033_v25 = vpop.f32.mrf.mxu1  ;;  %7784 = vmatpush3.bf16.msra.mxu1 %v8761_v15 }
 0x20c   : > { %v3747_v37 = vadd.f32 1.0, %v7871_v35  ;;  %v3990_v47 = vpop.f32.mrf.mxu0  ;;  %7768 = vmatmul.mubr.msk.bf16.vlgmr.msra.gmra.mxu0 %vm172_vm1, %v6242_v20  ;;  %7785 = vmatprep.mubr.msk.bf16.mxu1 %vm7941_vm3, %v7940_v2 }
 0x20d   : > { %7872 = vpow2.f32 %v6678_v36  ;;  %7778 = vmatpush3.bf16.msra.mxu0 %v8758_v14  ;;  %v7487_v62 = vpop.f32.mrf.mxu1  ;;  %7779 = vmatprep.mubr.msk.bf16.mxu0 %vm7941_vm3, %v7940_v2  ;;  %v4034_v51 = vadd.f32 %v4033_v25, %v3990_v47 }
 0x20e   : > { %7874 = vrcp.f32 %v3747_v37  ;;  %v2179_v3 = vpop.permute.xlu0 %2178  ;;  %v7481_v42 = vpop.f32.mrf.mxu0 }
 0x20f   : > { %6622 = vst.msk [vmem:[%s8465_s14 + $0x8] sm:$0xff] %vm1986_vm5, %v2179_v3  ;;  %v4036_v13 = vpop.f32.mrf.mxu1 }
 0x210   : > { %v3993_v46 = vpop.f32.mrf.mxu0 }
 0x211   : > { %v7488_v15 = vpop.f32.mrf.mxu1 }
 0x212   : > { %v7482_v49 = vpop.f32.mrf.mxu0  ;;  %7786 = vmatmul.mubr.msk.bf16.vlgmr.msra.gmra.mxu1 %vm172_vm1, %v6436_v45 }
 0x213   : > { %v4124_v10 = vpop.f32.mrf.mxu1 }
 0x214   : > { %v4078_v14 = vpop.f32.mrf.mxu0  ;;  %7780 = vmatmul.mubr.msk.bf16.vlgmr.msra.gmra.mxu0 %vm172_vm1, %v8722_v41 }
 0x215   : > { %v4084_v53 = vadd.f32 %v4078_v14, %v4034_v51  ;;  %v7499_v52 = vpop.f32.mrf.mxu1 }
 0x216   : > { %v7493_v24 = vpop.f32.mrf.mxu0 }
 0x217   : > { %v4130_v55 = vadd.f32 %v4124_v10, %v4084_v53  ;;  %v4127_v2 = vpop.f32.mrf.mxu1 }
 0x218   : > { %v4081_v54 = vpop.f32.mrf.mxu0 }
 0x219   : > { %v4131_v57 = vadd.f32 %v8754_v9, %v4130_v55  ;;  %v7500_v58 = vpop.f32.mrf.mxu1 }
 0x21a   : > { %v7873_v59 = vpop.eup %7872  ;;  %v7494_v60 = vpop.f32.mrf.mxu0 }
 0x21b   : > { %v7875_v0 = vpop.eup %7874  ;;  %v3941_v1 = vadd.f32 1.0, %v7873_v59  ;;  %v6684_v4 = vmul.f32 -1.442695, %v4131_v57  ;;  %v4227_v5 = vpop.f32.mrf.mxu1 }
 0x21c   : > { %3751 = vrot.lane.b32.xlu1 %v7875_v0, %s7943_s6  ;;  %v4184_v6 = vpop.f32.mrf.mxu0 }
 0x21d   : > { %7876 = vrcp.f32 %v3941_v1  ;;  %v2373_v41 = vpop.permute.xlu1 %2372  ;;  %v7511_v7 = vpop.f32.mrf.mxu1  ;;  %v4228_v16 = vadd.f32 %v4227_v5, %v4184_v6 }
 0x21e   : > { %7878 = vpow2.f32 %v6684_v4  ;;  %6628 = vst.msk [vmem:[%s8465_s14 + $0x10] sm:$0xff] %vm1986_vm5, %v2373_v41  ;;  %v7505_v8 = vpop.f32.mrf.mxu0 }
 0x21f   : > { %v4230_v43 = vpop.f32.mrf.mxu1 }
 0x220   : > { %v4187_v23 = vpop.f32.mrf.mxu0 }
 0x221   : > { %v7512_v11 = vpop.f32.mrf.mxu1 }
 0x222   : > { %v7506_v12 = vpop.f32.mrf.mxu0 }
 0x223   : > { %v4318_v17 = vpop.f32.mrf.mxu1 }
 0x224   : > { %v4272_v18 = vpop.f32.mrf.mxu0 }
 0x225   : > { %v4278_v19 = vadd.f32 %v4272_v18, %v4228_v16  ;;  %v7523_v27 = vpop.f32.mrf.mxu1 }
 0x226   : > { %v7517_v28 = vpop.f32.mrf.mxu0 }
 0x227   : > { %v4324_v40 = vadd.f32 %v4318_v17, %v4278_v19  ;;  %v4321_v20 = vpop.f32.mrf.mxu1 }
 0x228   : > { %v4275_v21 = vpop.f32.mrf.mxu0 }
 0x229   : > { %v4325_v61 = vadd.f32 %v8754_v9, %v4324_v40  ;;  %v7524_v56 = vpop.f32.mrf.mxu1 }
 0x22a   : > { %v7877_v38 = vpop.eup %7876  ;;  %v7518_v22 = vpop.f32.mrf.mxu0 }
 0x22b   : > { %v7879_v26 = vpop.eup %7878  ;;  %v6690_v39 = vmul.f32 -1.442695, %v4325_v61  ;;  %3945 = vrot.lane.b32.xlu0 %v7877_v38, %s7943_s6  ;;  %v4421_v29 = vpop.f32.mrf.mxu1 }
 0x22c   : > { %v4135_v30 = vadd.f32 1.0, %v7879_v26  ;;  %v4378_v44 = vpop.f32.mrf.mxu0 }
 0x22d   : > { %7880 = vpow2.f32 %v6690_v39  ;;  %v7535_v31 = vpop.f32.mrf.mxu1  ;;  %v4422_v36 = vadd.f32 %v4421_v29, %v4378_v44 }
 0x22e   : > { %7882 = vrcp.f32 %v4135_v30  ;;  %v2567_v32 = vpop.permute.xlu1 %2566  ;;  %v7529_v48 = vpop.f32.mrf.mxu0 }
 0x22f   : > { %6634 = vst.msk [vmem:[%s8465_s14 + $0x18] sm:$0xff] %vm1986_vm5, %v2567_v32  ;;  %v4424_v33 = vpop.f32.mrf.mxu1 }
 0x230   : > { %v4381_v34 = vpop.f32.mrf.mxu0 }
 0x231   : > { %v7536_v50 = vpop.f32.mrf.mxu1 }
 0x232   : > { %v7530_v35 = vpop.f32.mrf.mxu0 }
 0x233   : > { %v4512_v25 = vpop.f32.mrf.mxu1 }
 0x234   : > { %v4466_v37 = vpop.f32.mrf.mxu0 }
 0x235   : > { %v4472_v47 = vadd.f32 %v4466_v37, %v4422_v36  ;;  %v7547_v63 = vpop.f32.mrf.mxu1 }
 0x236   : > { %v7541_v62 = vpop.f32.mrf.mxu0 }
 0x237   : > { %v4518_v3 = vadd.f32 %v4512_v25, %v4472_v47  ;;  %v4515_v42 = vpop.f32.mrf.mxu1 }
 0x238   : > { %v4469_v13 = vpop.f32.mrf.mxu0 }
 0x239   : > { %v4519_v45 = vadd.f32 %v8754_v9, %v4518_v3  ;;  %v7548_v46 = vpop.f32.mrf.mxu1 }
 0x23a   : > { %v7881_v15 = vpop.eup %7880  ;;  %v7542_v49 = vpop.f32.mrf.mxu0 }
 0x23b   : > { %v7883_v51 = vpop.eup %7882  ;;  %v4329_v10 = vadd.f32 1.0, %v7881_v15  ;;  %v6696_v14 = vmul.f32 -1.442695, %v4519_v45  ;;  %v4615_v53 = vpop.f32.mrf.mxu1 }
 0x23c   : > { %4139 = vrot.lane.b32.xlu1 %v7883_v51, %s7943_s6  ;;  %v4572_v52 = vpop.f32.mrf.mxu0 }
 0x23d   : > { %7884 = vrcp.f32 %v4329_v10  ;;  %v2761_v24 = vpop.permute.xlu0 %2760  ;;  %v7559_v55 = vpop.f32.mrf.mxu1  ;;  %v4616_v60 = vadd.f32 %v4615_v53, %v4572_v52 }
 0x23e   : > { %7886 = vpow2.f32 %v6696_v14  ;;  %6640 = vst.msk [vmem:[%s8465_s14 + $0x20] sm:$0xff] %vm1986_vm5, %v2761_v24  ;;  %v7553_v2 = vpop.f32.mrf.mxu0 }
 0x23f   : > { %v4618_v54 = vpop.f32.mrf.mxu1 }
 0x240   : > { %v4575_v57 = vpop.f32.mrf.mxu0 }
 0x241   : > { %v7560_v58 = vpop.f32.mrf.mxu1 }
 0x242   : > { %v7554_v59 = vpop.f32.mrf.mxu0 }
 0x243   : > { %v4706_v0 = vpop.f32.mrf.mxu1 }
 0x244   : > { %v4660_v1 = vpop.f32.mrf.mxu0 }
 0x245   : > { %v4666_v4 = vadd.f32 %v4660_v1, %v4616_v60  ;;  %v7571_v5 = vpop.f32.mrf.mxu1 }
 0x246   : > { %v7565_v6 = vpop.f32.mrf.mxu0 }
 0x247   : > { %v4712_v41 = vadd.f32 %v4706_v0, %v4666_v4  ;;  %v4709_v7 = vpop.f32.mrf.mxu1 }
 0x248   : > { %v4663_v8 = vpop.f32.mrf.mxu0 }
 0x249   : > { %v4713_v43 = vadd.f32 %v8754_v9, %v4712_v41  ;;  %v7572_v23 = vpop.f32.mrf.mxu1 }
 0x24a   : > { %v7885_v11 = vpop.eup %7884  ;;  %v7566_v12 = vpop.f32.mrf.mxu0 }
 0x24b   : > { %v7887_v16 = vpop.eup %7886  ;;  %v6702_v17 = vmul.f32 -1.442695, %v4713_v43  ;;  %4333 = vrot.lane.b32.xlu0 %v7885_v11, %s7943_s6  ;;  %v4809_v18 = vpop.f32.mrf.mxu1 }
 0x24c   : > { %v4523_v19 = vadd.f32 1.0, %v7887_v16  ;;  %v4766_v27 = vpop.f32.mrf.mxu0 }
 0x24d   : > { %7888 = vpow2.f32 %v6702_v17  ;;  %v7583_v28 = vpop.f32.mrf.mxu1  ;;  %v4810_v22 = vadd.f32 %v4809_v18, %v4766_v27 }
 0x24e   : > { %7890 = vrcp.f32 %v4523_v19  ;;  %v2955_v40 = vpop.permute.xlu1 %2954  ;;  %v7577_v20 = vpop.f32.mrf.mxu0 }
 0x24f   : > { %6646 = vst.msk [vmem:[%s8465_s14 + $0x28] sm:$0xff] %vm1986_vm5, %v2955_v40  ;;  %v4812_v21 = vpop.f32.mrf.mxu1  ;;  %v8974_v20 = vld [vmem:[%s9029_s2] ss:$0 sm:$0xff] }
 0x250   : > { %v4769_v61 = vpop.f32.mrf.mxu0 }
 0x251   : > { %v7584_v56 = vpop.f32.mrf.mxu1 }
 0x252   : > { %v7578_v38 = vpop.f32.mrf.mxu0 }
 0x253   : > { %v4901_v26 = vpop.f32.mrf.mxu1 }
 0x254   : > { %v4855_v39 = vpop.f32.mrf.mxu0 }
 0x255   : > { %v4861_v29 = vadd.f32 %v4855_v39, %v4810_v22  ;;  %v7595_v30 = vpop.f32.mrf.mxu1 }
 0x256   : > { %v7589_v44 = vpop.f32.mrf.mxu0 }
 0x257   : > { %v4907_v31 = vadd.f32 %v4901_v26, %v4861_v29  ;;  %v4904_v32 = vpop.f32.mrf.mxu1 }
 0x258   : > { %v4858_v48 = vpop.f32.mrf.mxu0 }
 0x259   : > { %v4908_v33 = vadd.f32 %v8754_v9, %v4907_v31  ;;  %v7596_v34 = vpop.f32.mrf.mxu1 }
 0x25a   : > { %v7889_v50 = vpop.eup %7888  ;;  %v7590_v35 = vpop.f32.mrf.mxu0 }
 0x25b   : > { %v7891_v36 = vpop.eup %7890  ;;  %v4717_v25 = vadd.f32 1.0, %v7889_v50  ;;  %v6708_v37 = vmul.f32 -1.442695, %v4908_v33  ;;  %v5018_v47 = vpop.f32.mrf.mxu1 }
 0x25c   : > { %4527 = vrot.lane.b32.xlu1 %v7891_v36, %s7943_s6  ;;  %v4972_v63 = vpop.f32.mrf.mxu0 }
 0x25d   : > { %7892 = vrcp.f32 %v4717_v25  ;;  %v3149_v62 = vpop.permute.xlu0 %3148  ;;  %v7607_v3 = vpop.f32.mrf.mxu1  ;;  %v5019_v49 = vadd.f32 %v5018_v47, %v4972_v63 }
 0x25e   : > { %7894 = vpow2.f32 %v6708_v37  ;;  %6652 = vst.msk [vmem:[%s8465_s14 + $0x30] sm:$0xff] %vm1986_vm5, %v3149_v62  ;;  %v7601_v42 = vpop.f32.mrf.mxu0 }
 0x25f   : > { %v5021_v13 = vpop.f32.mrf.mxu1 }
 0x260   : > { %v4975_v45 = vpop.f32.mrf.mxu0 }
 0x261   : > { %v7608_v46 = vpop.f32.mrf.mxu1 }
 0x262   : > { %v7602_v15 = vpop.f32.mrf.mxu0 }
 0x263   : > { %v5115_v51 = vpop.f32.mrf.mxu1 }
 0x264   : > { %v5066_v10 = vpop.f32.mrf.mxu0 }
 0x265   : > { %v5072_v14 = vadd.f32 %v5066_v10, %v5019_v49  ;;  %v7619_v53 = vpop.f32.mrf.mxu1 }
 0x266   : > { %v7613_v52 = vpop.f32.mrf.mxu0 }
 0x267   : > { %v5121_v24 = vadd.f32 %v5115_v51, %v5072_v14  ;;  %v5118_v55 = vpop.f32.mrf.mxu1 }
 0x268   : > { %v5069_v2 = vpop.f32.mrf.mxu0 }
 0x269   : > { %v5122_v54 = vadd.f32 %v8754_v9, %v5121_v24  ;;  %v7620_v57 = vpop.f32.mrf.mxu1 }
 0x26a   : > { %v7893_v58 = vpop.eup %7892  ;;  %v7614_v59 = vpop.f32.mrf.mxu0 }
 0x26b   : > { %v7895_v60 = vpop.eup %7894  ;;  %v6718_v0 = vmul.f32 -1.442695, %v5122_v54  ;;  %4721 = vrot.lane.b32.xlu0 %v7893_v58, %s7943_s6  ;;  %v5219_v1 = vpop.f32.mrf.mxu1 }
 0x26c   : > { %v4912_v4 = vadd.f32 1.0, %v7895_v60  ;;  %v5176_v5 = vpop.f32.mrf.mxu0 }
 0x26d   : > { %7896 = vpow2.f32 %v6718_v0  ;;  %v7631_v6 = vpop.f32.mrf.mxu1  ;;  %v5220_v11 = vadd.f32 %v5219_v1, %v5176_v5 }
 0x26e   : > { %7898 = vrcp.f32 %v4912_v4  ;;  %v3343_v41 = vpop.permute.xlu1 %3342  ;;  %v7625_v7 = vpop.f32.mrf.mxu0 }
 0x26f   : > { %6658 = vst.msk [vmem:[%s8465_s14 + $0x38] sm:$0xff] %vm1986_vm5, %v3343_v41  ;;  %v5222_v8 = vpop.f32.mrf.mxu1 }
 0x270   : > { %v5179_v43 = vpop.f32.mrf.mxu0 }
 0x271   : > { %v7632_v9 = vpop.f32.mrf.mxu1 }
 0x272   : > { %v7626_v23 = vpop.f32.mrf.mxu0 }
 0x273   : > { %v5310_v12 = vpop.f32.mrf.mxu1 }
 0x274   : > { %v5264_v16 = vpop.f32.mrf.mxu0 }
 0x275   : > { %v5270_v17 = vadd.f32 %v5264_v16, %v5220_v11  ;;  %v7643_v18 = vpop.f32.mrf.mxu1 }
 0x276   : > { %v7637_v19 = vpop.f32.mrf.mxu0 }
 0x277   : > { %v5316_v27 = vadd.f32 %v5310_v12, %v5270_v17  ;;  %v5313_v28 = vpop.f32.mrf.mxu1 }
 0x278   : > { %v5267_v40 = vpop.f32.mrf.mxu0 }
 0x279   : > { %v5317_v21 = vadd.f32 %v8974_v20, %v5316_v27  ;;  %v7644_v61 = vpop.f32.mrf.mxu1 }
 0x27a   : > { %v7897_v56 = vpop.eup %7896  ;;  %v7638_v38 = vpop.f32.mrf.mxu0 }
 0x27b   : > { %v7899_v22 = vpop.eup %7898  ;;  %v5126_v26 = vadd.f32 1.0, %v7897_v56  ;;  %v6723_v39 = vmul.f32 -1.442695, %v5317_v21  ;;  %v5413_v29 = vpop.f32.mrf.mxu1 }
 0x27c   : > { %4916 = vrot.lane.b32.xlu1 %v7899_v22, %s7943_s6  ;;  %v5370_v30 = vpop.f32.mrf.mxu0 }
 0x27d   : > { %7900 = vrcp.f32 %v5126_v26  ;;  %v3557_v44 = vpop.permute.xlu0 %3556  ;;  %v7655_v31 = vpop.f32.mrf.mxu1  ;;  %v5414_v35 = vadd.f32 %v5413_v29, %v5370_v30 }
 0x27e   : > { %7902 = vpow2.f32 %v6723_v39  ;;  %3560 = vst.msk [vmem:[%s8465_s14] sm:$0xff] %vm3559_vm6, %v3557_v44  ;;  %v7649_v32 = vpop.f32.mrf.mxu0 }
 0x27f   : > { %v5416_v48 = vpop.f32.mrf.mxu1 }
 0x280   : > { %v5373_v33 = vpop.f32.mrf.mxu0 }
 0x281   : > { %v7656_v34 = vpop.f32.mrf.mxu1 }
 0x282   : > { %v7650_v50 = vpop.f32.mrf.mxu0 }
 0x283   : > { %v5504_v36 = vpop.f32.mrf.mxu1 }
 0x284   : > { %v5458_v25 = vpop.f32.mrf.mxu0 }
 0x285   : > { %v5464_v37 = vadd.f32 %v5458_v25, %v5414_v35  ;;  %v7667_v47 = vpop.f32.mrf.mxu1 }
 0x286   : > { %v7661_v63 = vpop.f32.mrf.mxu0 }
 0x287   : > { %v5510_v62 = vadd.f32 %v5504_v36, %v5464_v37  ;;  %v5507_v3 = vpop.f32.mrf.mxu1 }
 0x288   : > { %v5461_v42 = vpop.f32.mrf.mxu0 }
 0x289   : > { %v5511_v13 = vadd.f32 %v8974_v20, %v5510_v62  ;;  %v7668_v45 = vpop.f32.mrf.mxu1 }
 0x28a   : > { %v7901_v46 = vpop.eup %7900  ;;  %v7662_v15 = vpop.f32.mrf.mxu0 }
 0x28b   : > { %v7903_v49 = vpop.eup %7902  ;;  %v6729_v51 = vmul.f32 -1.442695, %v5511_v13  ;;  %5130 = vrot.lane.b32.xlu0 %v7901_v46, %s7944_s9  ;;  %v5607_v10 = vpop.f32.mrf.mxu1 }
 0x28c   : > { %v5321_v14 = vadd.f32 1.0, %v7903_v49  ;;  %v5564_v53 = vpop.f32.mrf.mxu0 }
 0x28d   : > { %7904 = vpow2.f32 %v6729_v51  ;;  %v7679_v52 = vpop.f32.mrf.mxu1  ;;  %v5608_v59 = vadd.f32 %v5607_v10, %v5564_v53 }
 0x28e   : > { %7906 = vrcp.f32 %v5321_v14  ;;  %v3752_v24 = vpop.permute.xlu1 %3751  ;;  %v7673_v55 = vpop.f32.mrf.mxu0 }
 0x28f   : > { %6673 = vst.msk [vmem:[%s8465_s14 + $0x8] sm:$0xff] %vm3559_vm6, %v3752_v24  ;;  %v5610_v2 = vpop.f32.mrf.mxu1 }
 0x290   : > { %v5567_v54 = vpop.f32.mrf.mxu0 }
 0x291   : > { %v7680_v57 = vpop.f32.mrf.mxu1 }
 0x292   : > { %v7674_v58 = vpop.f32.mrf.mxu0 }
 0x293   : > { %v5698_v60 = vpop.f32.mrf.mxu1 }
 0x294   : > { %v5652_v0 = vpop.f32.mrf.mxu0 }
 0x295   : > { %v5658_v1 = vadd.f32 %v5652_v0, %v5608_v59  ;;  %v7691_v4 = vpop.f32.mrf.mxu1 }
 0x296   : > { %v7685_v5 = vpop.f32.mrf.mxu0 }
 0x297   : > { %v5704_v6 = vadd.f32 %v5698_v60, %v5658_v1  ;;  %v5701_v41 = vpop.f32.mrf.mxu1 }
 0x298   : > { %v5655_v7 = vpop.f32.mrf.mxu0 }
 0x299   : > { %v5705_v8 = vadd.f32 %v8974_v20, %v5704_v6  ;;  %v7692_v43 = vpop.f32.mrf.mxu1 }
 0x29a   : > { %v7905_v9 = vpop.eup %7904  ;;  %v7686_v23 = vpop.f32.mrf.mxu0 }
 0x29b   : > { %v7907_v11 = vpop.eup %7906  ;;  %v5515_v12 = vadd.f32 1.0, %v7905_v9  ;;  %v6735_v16 = vmul.f32 -1.442695, %v5705_v8  ;;  %v5801_v17 = vpop.f32.mrf.mxu1 }
 0x29c   : > { %5325 = vrot.lane.b32.xlu1 %v7907_v11, %s7944_s9  ;;  %v5758_v18 = vpop.f32.mrf.mxu0 }
 0x29d   : > { %7908 = vrcp.f32 %v5515_v12  ;;  %v3946_v19 = vpop.permute.xlu0 %3945  ;;  %v7703_v27 = vpop.f32.mrf.mxu1  ;;  %v5802_v38 = vadd.f32 %v5801_v17, %v5758_v18 }
 0x29e   : > { %7910 = vpow2.f32 %v6735_v16  ;;  %6679 = vst.msk [vmem:[%s8465_s14 + $0x10] sm:$0xff] %vm3559_vm6, %v3946_v19  ;;  %v7697_v28 = vpop.f32.mrf.mxu0 }
 0x29f   : > { %v5804_v40 = vpop.f32.mrf.mxu1 }
 0x2a0   : > { %v5761_v21 = vpop.f32.mrf.mxu0 }
 0x2a1   : > { %v7704_v61 = vpop.f32.mrf.mxu1 }
 0x2a2   : > { %v7698_v56 = vpop.f32.mrf.mxu0 }
 0x2a3   : > { %v5892_v22 = vpop.f32.mrf.mxu1 }
 0x2a4   : > { %v5846_v26 = vpop.f32.mrf.mxu0 }
 0x2a5   : > { %v5852_v39 = vadd.f32 %v5846_v26, %v5802_v38  ;;  %v7715_v29 = vpop.f32.mrf.mxu1 }
 0x2a6   : > { %v7709_v30 = vpop.f32.mrf.mxu0 }
 0x2a7   : > { %v5898_v44 = vadd.f32 %v5892_v22, %v5852_v39  ;;  %v5895_v31 = vpop.f32.mrf.mxu1 }
 0x2a8   : > { %v5849_v32 = vpop.f32.mrf.mxu0 }
 0x2a9   : > { %v5899_v48 = vadd.f32 %v8974_v20, %v5898_v44  ;;  %v7716_v33 = vpop.f32.mrf.mxu1 }
 0x2aa   : > { %v7909_v34 = vpop.eup %7908  ;;  %v7710_v50 = vpop.f32.mrf.mxu0 }
 0x2ab   : > { %v7911_v35 = vpop.eup %7910  ;;  %v6741_v36 = vmul.f32 -1.442695, %v5899_v48  ;;  %5519 = vrot.lane.b32.xlu0 %v7909_v34, %s7944_s9  ;;  %v5995_v25 = vpop.f32.mrf.mxu1 }
 0x2ac   : > { %v5709_v37 = vadd.f32 1.0, %v7911_v35  ;;  %v5952_v47 = vpop.f32.mrf.mxu0 }
 0x2ad   : > { %7912 = vpow2.f32 %v6741_v36  ;;  %v7727_v63 = vpop.f32.mrf.mxu1  ;;  %v5996_v15 = vadd.f32 %v5995_v25, %v5952_v47 }
 0x2ae   : > { %7914 = vrcp.f32 %v5709_v37  ;;  %v4140_v62 = vpop.permute.xlu1 %4139  ;;  %v7721_v3 = vpop.f32.mrf.mxu0 }
 0x2af   : > { %6685 = vst.msk [vmem:[%s8465_s14 + $0x18] sm:$0xff] %vm3559_vm6, %v4140_v62  ;;  %v5998_v42 = vpop.f32.mrf.mxu1 }
 0x2b0   : > { %v5955_v13 = vpop.f32.mrf.mxu0 }
 0x2b1   : > { %v7728_v45 = vpop.f32.mrf.mxu1 }
 0x2b2   : > { %v7722_v46 = vpop.f32.mrf.mxu0 }
 0x2b3   : > { %v6086_v49 = vpop.f32.mrf.mxu1 }
 0x2b4   : > { %v6040_v51 = vpop.f32.mrf.mxu0 }
 0x2b5   : > { %v6046_v10 = vadd.f32 %v6040_v51, %v5996_v15  ;;  %v7739_v14 = vpop.f32.mrf.mxu1 }
 0x2b6   : > { %v7733_v53 = vpop.f32.mrf.mxu0 }
 0x2b7   : > { %v6092_v52 = vadd.f32 %v6086_v49, %v6046_v10  ;;  %v6089_v24 = vpop.f32.mrf.mxu1 }
 0x2b8   : > { %v6043_v55 = vpop.f32.mrf.mxu0 }
 0x2b9   : > { %v6093_v2 = vadd.f32 %v8974_v20, %v6092_v52  ;;  %v7740_v54 = vpop.f32.mrf.mxu1 }
 0x2ba   : > { %v7913_v57 = vpop.eup %7912  ;;  %v7734_v58 = vpop.f32.mrf.mxu0 }
 0x2bb   : > { %v7915_v59 = vpop.eup %7914  ;;  %v5903_v60 = vadd.f32 1.0, %v7913_v57  ;;  %v6747_v0 = vmul.f32 -1.442695, %v6093_v2  ;;  %v6189_v1 = vpop.f32.mrf.mxu1 }
 0x2bc   : > { %5713 = vrot.lane.b32.xlu1 %v7915_v59, %s7944_s9  ;;  %v6146_v4 = vpop.f32.mrf.mxu0 }
 0x2bd   : > { %7916 = vrcp.f32 %v5903_v60  ;;  %v4334_v5 = vpop.permute.xlu0 %4333  ;;  %v7751_v6 = vpop.f32.mrf.mxu1  ;;  %v6190_v23 = vadd.f32 %v6189_v1, %v6146_v4 }
 0x2be   : > { %7918 = vpow2.f32 %v6747_v0  ;;  %6691 = vst.msk [vmem:[%s8465_s14 + $0x20] sm:$0xff] %vm3559_vm6, %v4334_v5  ;;  %v7745_v41 = vpop.f32.mrf.mxu0 }
 0x2bf   : > { %v6192_v7 = vpop.f32.mrf.mxu1 }
 0x2c0   : > { %v6149_v8 = vpop.f32.mrf.mxu0 }
 0x2c1   : > { %v7752_v43 = vpop.f32.mrf.mxu1 }
 0x2c2   : > { %v7746_v9 = vpop.f32.mrf.mxu0 }
 0x2c3   : > { %v6280_v11 = vpop.f32.mrf.mxu1 }
 0x2c4   : > { %v6234_v12 = vpop.f32.mrf.mxu0 }
 0x2c5   : > { %v6240_v16 = vadd.f32 %v6234_v12, %v6190_v23  ;;  %v7763_v17 = vpop.f32.mrf.mxu1 }
 0x2c6   : > { %v7757_v18 = vpop.f32.mrf.mxu0 }
 0x2c7   : > { %v6286_v19 = vadd.f32 %v6280_v11, %v6240_v16  ;;  %v6283_v27 = vpop.f32.mrf.mxu1 }
 0x2c8   : > { %v6237_v28 = vpop.f32.mrf.mxu0 }
 0x2c9   : > { %v6287_v40 = vadd.f32 %v8974_v20, %v6286_v19  ;;  %v7764_v21 = vpop.f32.mrf.mxu1 }
 0x2ca   : > { %v7917_v61 = vpop.eup %7916  ;;  %v7758_v56 = vpop.f32.mrf.mxu0 }
 0x2cb   : > { %v7919_v38 = vpop.eup %7918  ;;  %v6753_v22 = vmul.f32 -1.442695, %v6287_v40  ;;  %5907 = vrot.lane.b32.xlu0 %v7917_v61, %s7944_s9  ;;  %v6383_v26 = vpop.f32.mrf.mxu1 }
 0x2cc   : > { %v6097_v39 = vadd.f32 1.0, %v7919_v38  ;;  %v6340_v29 = vpop.f32.mrf.mxu0 }
 0x2cd   : > { %7920 = vpow2.f32 %v6753_v22  ;;  %v7775_v30 = vpop.f32.mrf.mxu1  ;;  %v6384_v50 = vadd.f32 %v6383_v26, %v6340_v29 }
 0x2ce   : > { %7922 = vrcp.f32 %v6097_v39  ;;  %v4528_v44 = vpop.permute.xlu1 %4527  ;;  %v7769_v31 = vpop.f32.mrf.mxu0 }
 0x2cf   : > { %6697 = vst.msk [vmem:[%s8465_s14 + $0x28] sm:$0xff] %vm3559_vm6, %v4528_v44  ;;  %v6386_v32 = vpop.f32.mrf.mxu1 }
 0x2d0   : > { %v6343_v48 = vpop.f32.mrf.mxu0 }
 0x2d1   : > { %v7776_v33 = vpop.f32.mrf.mxu1 }
 0x2d2   : > { %v7770_v34 = vpop.f32.mrf.mxu0 }
 0x2d3   : > { %v6474_v35 = vpop.f32.mrf.mxu1 }
 0x2d4   : > { %v6428_v36 = vpop.f32.mrf.mxu0 }
 0x2d5   : > { %v6434_v25 = vadd.f32 %v6428_v36, %v6384_v50  ;;  %v7787_v37 = vpop.f32.mrf.mxu1 }
 0x2d6   : > { %v7781_v47 = vpop.f32.mrf.mxu0 }
 0x2d7   : > { %v6480_v63 = vadd.f32 %v6474_v35, %v6434_v25  ;;  %v6477_v62 = vpop.f32.mrf.mxu1 }
 0x2d8   : > { %v6431_v3 = vpop.f32.mrf.mxu0 }
 0x2d9   : > { %v6481_v42 = vadd.f32 %v8974_v20, %v6480_v63  ;;  %v7788_v13 = vpop.f32.mrf.mxu1 }
 0x2da   : > { %v7921_v45 = vpop.eup %7920  ;;  %v7782_v46 = vpop.f32.mrf.mxu0 }
 0x2db   : > { %v7923_v15 = vpop.eup %7922  ;;  %v6291_v49 = vadd.f32 1.0, %v7921_v45  ;;  %v6759_v51 = vmul.f32 -1.442695, %v6481_v42 }
 0x2dc   : > { %6101 = vrot.lane.b32.xlu1 %v7923_v15, %s7944_s9 }
 0x2dd   : > { %7924 = vrcp.f32 %v6291_v49  ;;  %v4722_v10 = vpop.permute.xlu0 %4721 }
 0x2de   : > { %7926 = vpow2.f32 %v6759_v51  ;;  %6703 = vst.msk [vmem:[%s8465_s14 + $0x30] sm:$0xff] %vm3559_vm6, %v4722_v10 }
 0x2ea   : > { %v7925_v14 = vpop.eup %7924 }
 0x2eb   : > { %v7927_v53 = vpop.eup %7926  ;;  %6295 = vrot.lane.b32.xlu0 %v7925_v14, %s7944_s9 }
 0x2ec   : > { %v6485_v20 = vadd.f32 1.0, %v7927_v53 }
 0x2ee   : > { %7928 = vrcp.f32 %v6485_v20  ;;  %v4917_v52 = vpop.permute.xlu1 %4916 }
 0x2ef   : > { %6709 = vst.msk [vmem:[%s8465_s14 + $0x38] sm:$0xff] %vm3559_vm6, %v4917_v52 }
 0x2fb   : > { %v7929_v24 = vpop.eup %7928 }
 0x2fc   : > { %6489 = vrot.lane.b32.xlu1 %v7929_v24, %s7944_s9 }
 0x2fd   : > { %v5131_v55 = vpop.permute.xlu0 %5130 }
 0x2fe   : > { %5134 = vst.msk [vmem:[%s8465_s14] sm:$0xff] %vm5133_vm7, %v5131_v55 }
 0x30e   : > { %v5326_v2 = vpop.permute.xlu1 %5325 }
 0x30f   : > { %6724 = vst.msk [vmem:[%s8465_s14 + $0x8] sm:$0xff] %vm5133_vm7, %v5326_v2 }
 0x31d   : > { %v5520_v54 = vpop.permute.xlu0 %5519 }
 0x31e   : > { %6730 = vst.msk [vmem:[%s8465_s14 + $0x10] sm:$0xff] %vm5133_vm7, %v5520_v54 }
 0x32e   : > { %v5714_v57 = vpop.permute.xlu1 %5713 }
 0x32f   : > { %6736 = vst.msk [vmem:[%s8465_s14 + $0x18] sm:$0xff] %vm5133_vm7, %v5714_v57 }
 0x33d   : > { %v5908_v58 = vpop.permute.xlu0 %5907 }
 0x33e   : > { %6742 = vst.msk [vmem:[%s8465_s14 + $0x20] sm:$0xff] %vm5133_vm7, %v5908_v58 }
 0x34e   : > { %v6102_v59 = vpop.permute.xlu1 %6101 }
 0x34f   : > { %6748 = vst.msk [vmem:[%s8465_s14 + $0x28] sm:$0xff] %vm5133_vm7, %v6102_v59 }
 0x35d   : > { %v6296_v60 = vpop.permute.xlu0 %6295 }
 0x35e   : > { %6754 = vst.msk [vmem:[%s8465_s14 + $0x30] sm:$0xff] %vm5133_vm7, %v6296_v60 }
 0x36e   : > { %v6490_v0 = vpop.permute.xlu1 %6489 }
 0x36f   : > { %6760 = vst.msk [vmem:[%s8465_s14 + $0x38] sm:$0xff] %vm5133_vm7, %v6490_v0 }
 0x370 PF: > { %s13_s12 = sadd.s32 1, %s7938_s12  }
 0x371   : > { %p10_p4 = scmp.ge.s32.totalorder %s13_s12, 4  }
 0x373   :  { %12 = sbr.rel (!%p10_p4) target bundleno = 1 (0x1), region = 93 }

</bundles_post_ra>
